<compile_context>
chip_gen: v7x
topology: tpu7x:2x2x1
jax: 0.10.0
libtpu: 0.0.40
codegen_flags: <defaults>
</compile_context>

<pallas_src>
import functools

import jax
import jax.numpy as jnp
from jax import lax
from jax.experimental import pallas as pl
from jax.experimental.pallas import tpu as pltpu


# ----------------------------------------------------------------------------
# In-kernel helpers (operate on VMEM-resident values)
# ----------------------------------------------------------------------------
def _zero_pad_hw1(x):
    """(He, We, C) -> (He+2, We+2, C) zero padding, built from VMEM values."""
    He, We, C = x.shape
    zc = jnp.zeros((He, 1, C), x.dtype)
    x = jnp.concatenate([zc, x, zc], axis=1)
    zr = jnp.zeros((1, We + 2, C), x.dtype)
    return jnp.concatenate([zr, x, zr], axis=0)


def _conv3x3_in_lrelu(xpad, w, gamma, beta, *, eps, slope):
    """3x3 conv (single im2col matmul) -> InstanceNorm(affine) -> LeakyReLU.

    xpad:  (He+2, We+2, C) zero-padded input value
    w:     (9*C, Cout)     rows ordered (dh, dw, ci)
    gamma, beta: (1, Cout)
    returns (He*We, Cout) float32
    """
    Hp, Wp, C = xpad.shape
    He, We = Hp - 2, Wp - 2
    # im2col: 9 shifted windows concatenated on the channel (lane) axis,
    # flattened once, then a single K = 9*C contraction on the MXU.
    windows = [xpad[dh:dh + He, dw:dw + We, :]
               for dh in range(3) for dw in range(3)]
    im = jnp.concatenate(windows, axis=-1).reshape(He * We, 9 * C)
    acc = jnp.dot(im, w, preferred_element_type=jnp.float32)   # (He*We, Cout)
    # InstanceNorm2d (biased variance, eps), stats over the He*We positions.
    # NOTE: the conv bias is intentionally omitted -- it is exactly cancelled
    # by the mean subtraction below.
    mean = jnp.mean(acc, axis=0, keepdims=True)
    cen = acc - mean
    var = jnp.mean(cen * cen, axis=0, keepdims=True)
    y = cen * lax.rsqrt(var + eps)
    y = y * gamma + beta
    return jnp.where(y >= 0.0, y, slope * y)                   # LeakyReLU(0.1)


# ----------------------------------------------------------------------------
# Fused UpCat kernel: deconv2x2(s=2) -> replicate-pad -> concat -> TwoConv
# ----------------------------------------------------------------------------
def _upcat_fused_kernel(*refs, H, W, Cin, Cup, Cout, He, We, has_skip,
                        eps=1e-5, slope=0.1):
    if has_skip:
        (x_ref, xe_ref, wup_ref, bup_ref, w0_ref, g0_ref, b0_ref,
         w1_ref, g1_ref, b1_ref, o_ref) = refs
    else:
        (x_ref, wup_ref, bup_ref, w0_ref, g0_ref, b0_ref,
         w1_ref, g1_ref, b1_ref, o_ref) = refs
        xe_ref = None

    # ---- ConvTranspose2d(k=2, s=2) as a single matmul -----------------------
    # wup columns are ordered (di, dj, c); bias is pre-tiled over (di, dj).
    x_flat = x_ref[0].reshape(H * W, Cin)                       # (H*W, Cin)
    y = jnp.dot(x_flat, wup_ref[...],
                preferred_element_type=jnp.float32) + bup_ref[...]
    # interleave the 4 (di, dj) pieces into the (2H, 2W, Cup) upsampled image
    p = [y[:, k * Cup:(k + 1) * Cup].reshape(H, W, Cup) for k in range(4)]
    r0 = jnp.stack([p[0], p[1]], axis=2).reshape(H, 2 * W, Cup)   # rows 2i
    r1 = jnp.stack([p[2], p[3]], axis=2).reshape(H, 2 * W, Cup)   # rows 2i+1
    x0 = jnp.stack([r0, r1], axis=1).reshape(2 * H, 2 * W, Cup)

    # ---- replicate-pad (high side) if the skip is one pixel larger ----------
    if He > 2 * H:
        x0 = jnp.concatenate([x0, x0[2 * H - 1:2 * H, :, :]], axis=0)
    if We > 2 * W:
        x0 = jnp.concatenate([x0, x0[:, 2 * W - 1:2 * W, :]], axis=1)

    # ---- channel concat with the skip connection (VMEM only) ----------------
    if has_skip:
        xcat = jnp.concatenate([xe_ref[0].astype(jnp.float32), x0], axis=-1)
    else:
        xcat = x0

    # ---- TwoConv: [conv3x3 -> InstanceNorm -> LeakyReLU] x 2 ----------------
    h0 = _conv3x3_in_lrelu(_zero_pad_hw1(xcat), w0_ref[...],
                           g0_ref[...], b0_ref[...], eps=eps, slope=slope)
    h0 = h0.reshape(He, We, Cout)
    h1 = _conv3x3_in_lrelu(_zero_pad_hw1(h0), w1_ref[...],
                           g1_ref[...], b1_ref[...], eps=eps, slope=slope)

    # ---- lane-dense store: (Cout, He*We) == NCHW layout ----------------------
    o_ref[0] = h1.T.astype(o_ref.dtype)


# ----------------------------------------------------------------------------
# Host-side wrapper
# ----------------------------------------------------------------------------
def upcat_forward(params, x_nchw, x_e_nchw):
    """UpCat forward. Inputs/outputs are PyTorch-style NCHW float32 arrays."""
    N, Cin, H, W = x_nchw.shape
    Cup = params["up_w"].shape[1] // 4
    Cout = params["c0_g"].shape[1]

    x = jnp.transpose(x_nchw, (0, 2, 3, 1))                  # tiny boundary glue
    has_skip = x_e_nchw is not None
    if has_skip:
        Ccat = x_e_nchw.shape[1]
        He, We = x_e_nchw.shape[2], x_e_nchw.shape[3]
        assert 0 <= He - 2 * H <= 1 and 0 <= We - 2 * W <= 1, \
            "UpCat supports skip/upsample spatial mismatches of at most 1"
        xe = jnp.transpose(x_e_nchw, (0, 2, 3, 1))
    else:
        Ccat = 0
        He, We = 2 * H, 2 * W

    kernel = functools.partial(
        _upcat_fused_kernel, H=H, W=W, Cin=Cin, Cup=Cup, Cout=Cout,
        He=He, We=We, has_skip=has_skip)

    def w_spec(shape):
        return pl.BlockSpec(shape, lambda n: (0,) * len(shape))

    in_specs = [pl.BlockSpec((1, H, W, Cin), lambda n: (n, 0, 0, 0))]
    args = [x]
    if has_skip:
        in_specs.append(pl.BlockSpec((1, He, We, Ccat), lambda n: (n, 0, 0, 0)))
        args.append(xe)
    in_specs += [
        w_spec((Cin, 4 * Cup)), w_spec((1, 4 * Cup)),
        w_spec((9 * (Ccat + Cup), Cout)), w_spec((1, Cout)), w_spec((1, Cout)),
        w_spec((9 * Cout, Cout)), w_spec((1, Cout)), w_spec((1, Cout)),
    ]
    args += [params["up_w"], params["up_b"],
             params["c0_w"], params["c0_g"], params["c0_beta"],
             params["c1_w"], params["c1_g"], params["c1_beta"]]

    out = pl.pallas_call(
        kernel,
        out_shape=jax.ShapeDtypeStruct((N, Cout, He * We), jnp.float32),
        grid=(N,),
        in_specs=in_specs,
        out_specs=pl.BlockSpec((1, Cout, He * We), lambda n: (n, 0, 0)),
        compiler_params=pltpu.CompilerParams(
            dimension_semantics=("parallel",)),
    )(*args)
    # Output is already (N, C, H*W) -> NCHW with a free row-major reshape.
    return out.reshape(N, Cout, He, We)


# ----------------------------------------------------------------------------
# Parameters: torch-layout init + packing into kernel-friendly layouts
# ----------------------------------------------------------------------------
def init_torch_params(key, in_chns, cat_chns, out_chns, halves=True):
    """Weights in PyTorch layouts (as the nn.Module would hold them)."""
    up_chns = in_chns // 2 if halves else in_chns
    c0_cin = cat_chns + up_chns
    ks = jax.random.split(key, 4)
    return {
        # ConvTranspose2d: (Cin, Cup, 2, 2); its bias is NOT cancelled by IN.
        "up_w": 0.1 * jax.random.normal(ks[0], (in_chns, up_chns, 2, 2), jnp.float32),
        "up_b": 0.05 * jax.random.normal(ks[1], (up_chns,), jnp.float32),
        # Conv2d: (Cout, Cin, 3, 3).  Conv biases are omitted entirely: they are
        # added uniformly per channel and exactly cancelled by InstanceNorm's
        # mean subtraction, so they never affect the forward output.
        "c0_w": 0.1 * jax.random.normal(ks[2], (out_chns, c0_cin, 3, 3), jnp.float32),
        "c0_g": jnp.ones((out_chns,), jnp.float32),
        "c0_beta": jnp.zeros((out_chns,), jnp.float32),
        "c1_w": 0.1 * jax.random.normal(ks[3], (out_chns, out_chns, 3, 3), jnp.float32),
        "c1_g": jnp.ones((out_chns,), jnp.float32),
        "c1_beta": jnp.zeros((out_chns,), jnp.float32),
    }


def pack_params(tp):
    """Torch layouts -> kernel matmul layouts (done once, outside the hot path)."""
    cin, cup = tp["up_w"].shape[0], tp["up_w"].shape[1]
    # (Cin, Cup, 2, 2) -> (Cin, 4*Cup) with columns ordered (di, dj, c)
    up_w = jnp.transpose(tp["up_w"], (0, 2, 3, 1)).reshape(cin, 4 * cup)
    up_b = jnp.tile(tp["up_b"], 4).reshape(1, 4 * cup)

    def conv_w(w):  # (Cout, Cin, 3, 3) -> (9*Cin, Cout), rows ordered (dh, dw, ci)
        cout, c = w.shape[0], w.shape[1]
        return jnp.transpose(w, (2, 3, 1, 0)).reshape(9 * c, cout)

    return {
        "up_w": up_w, "up_b": up_b,
        "c0_w": conv_w(tp["c0_w"]),
        "c0_g": tp["c0_g"].reshape(1, -1), "c0_beta": tp["c0_beta"].reshape(1, -1),
        "c1_w": conv_w(tp["c1_w"]),
        "c1_g": tp["c1_g"].reshape(1, -1), "c1_beta": tp["c1_beta"].reshape(1, -1),
    }


# ----------------------------------------------------------------------------
# Pure-JAX reference (NCHW, torch-layout weights) for validation
# ----------------------------------------------------------------------------
def upcat_reference(tp, x_nchw, x_e_nchw, *, eps=1e-5, slope=0.1):
    # ConvTranspose2d, k=2, s=2 (non-overlapping)
    t = jnp.einsum('ncij,codk->noidjk', x_nchw, tp["up_w"])
    N, Cup = t.shape[0], t.shape[1]
    H, W = x_nchw.shape[2], x_nchw.shape[3]
    x0 = t.reshape(N, Cup, 2 * H, 2 * W) + tp["up_b"][None, :, None, None]
    if x_e_nchw is not None:
        pads = [(0, 0), (0, 0), (0, 0), (0, 0)]
        if x_e_nchw.shape[2] != x0.shape[2]:
            pads[2] = (0, 1)
        if x_e_nchw.shape[3] != x0.shape[3]:
            pads[3] = (0, 1)
        if any(p != (0, 0) for p in pads):
            x0 = jnp.pad(x0, pads, mode="edge")
        y = jnp.concatenate([x_e_nchw, x0], axis=1)
    else:
        y = x0

    def conv_in_act(z, w, g, b):
        z = lax.conv_general_dilated(z, w, (1, 1), ((1, 1), (1, 1)),
                                     dimension_numbers=("NCHW", "OIHW", "NCHW"))
        mean = jnp.mean(z, axis=(2, 3), keepdims=True)
        var = jnp.mean((z - mean) ** 2, axis=(2, 3), keepdims=True)
        z = (z - mean) / jnp.sqrt(var + eps)
        z = z * g[None, :, None, None] + b[None, :, None, None]
        return jnp.where(z >= 0.0, z, slope * z)

    y = conv_in_act(y, tp["c0_w"], tp["c0_g"], tp["c0_beta"])
    y = conv_in_act(y, tp["c1_w"], tp["c1_g"], tp["c1_beta"])
    return y


if __name__ == "__main__":
    key = jax.random.PRNGKey(0)
    k_par, k_x, k_xe = jax.random.split(key, 3)

    in_chns, cat_chns, out_chns = 8, 4, 8
    N, H, W = 2, 8, 8                      # x spatial; skip connection is 2x

    torch_params = init_torch_params(k_par, in_chns, cat_chns, out_chns)
    params = pack_params(torch_params)
    x = jax.random.normal(k_x, (N, in_chns, H, W), jnp.float32)            # NCHW
    x_e = jax.random.normal(k_xe, (N, cat_chns, 2 * H, 2 * W), jnp.float32)

    out = jax.block_until_ready(upcat_forward(params, x, x_e))
    assert out.shape == (N, out_chns, 2 * H, 2 * W), out.shape
    assert bool(jnp.all(jnp.isfinite(out)))

    ref = jax.block_until_ready(upcat_reference(torch_params, x, x_e))
    err = float(jnp.max(jnp.abs(out - ref)))
    assert err < 3e-2, f"kernel/reference mismatch: max abs err {err}"
    print("KERNEL_OK")
</pallas_src>

<mosaic_0001>
module attributes {stable_mosaic.version = 11 : i64} {
  func.func @_upcat_fused_kernel(%arg0: i32, %arg1: memref<1x8x8x8xf32, #tpu.memory_space<vmem>>, %arg2: memref<1x16x16x4xf32, #tpu.memory_space<vmem>>, %arg3: memref<8x16xf32, #tpu.memory_space<vmem>>, %arg4: memref<1x16xf32, #tpu.memory_space<vmem>>, %arg5: memref<72x8xf32, #tpu.memory_space<vmem>>, %arg6: memref<1x8xf32, #tpu.memory_space<vmem>>, %arg7: memref<1x8xf32, #tpu.memory_space<vmem>>, %arg8: memref<72x8xf32, #tpu.memory_space<vmem>>, %arg9: memref<1x8xf32, #tpu.memory_space<vmem>>, %arg10: memref<1x8xf32, #tpu.memory_space<vmem>>, %arg11: memref<1x8x256xf32, #tpu.memory_space<vmem>>) attributes {dimension_semantics = [#tpu.dimension_semantics<parallel>], iteration_bounds = array<i64: 2>, scalar_prefetch = 0 : i64, scratch_operands = 0 : i64, tpu.core_type = #tpu.core_type<tc>, window_params = [{transform_indices = @transform_0, window_bounds = array<i64: 1, 8, 8, 8>}, {transform_indices = @transform_1, window_bounds = array<i64: 1, 16, 16, 4>}, {pipeline_mode = #tpu.pipeline_mode<synchronous>, transform_indices = @transform_2, window_bounds = array<i64: 8, 16>}, {pipeline_mode = #tpu.pipeline_mode<synchronous>, transform_indices = @transform_3, window_bounds = array<i64: 1, 16>}, {pipeline_mode = #tpu.pipeline_mode<synchronous>, transform_indices = @transform_4, window_bounds = array<i64: 72, 8>}, {pipeline_mode = #tpu.pipeline_mode<synchronous>, transform_indices = @transform_5, window_bounds = array<i64: 1, 8>}, {pipeline_mode = #tpu.pipeline_mode<synchronous>, transform_indices = @transform_6, window_bounds = array<i64: 1, 8>}, {pipeline_mode = #tpu.pipeline_mode<synchronous>, transform_indices = @transform_7, window_bounds = array<i64: 72, 8>}, {pipeline_mode = #tpu.pipeline_mode<synchronous>, transform_indices = @transform_8, window_bounds = array<i64: 1, 8>}, {pipeline_mode = #tpu.pipeline_mode<synchronous>, transform_indices = @transform_9, window_bounds = array<i64: 1, 8>}, {transform_indices = @transform_10, window_bounds = array<i64: 1, 8, 256>}]} {
    %c0 = arith.constant 0 : index
    %c0_0 = arith.constant 0 : index
    %c0_1 = arith.constant 0 : index
    %c0_2 = arith.constant 0 : index
    %0 = vector.load %arg1[%c0, %c0_0, %c0_1, %c0_2] : memref<1x8x8x8xf32, #tpu.memory_space<vmem>>, vector<1x8x8x8xf32>
    %1 = vector.shape_cast %0 : vector<1x8x8x8xf32> to vector<8x8x8xf32>
    %2 = vector.shape_cast %1 : vector<8x8x8xf32> to vector<64x8xf32>
    %c0_3 = arith.constant 0 : index
    %c0_4 = arith.constant 0 : index
    %3 = vector.load %arg3[%c0_3, %c0_4] : memref<8x16xf32, #tpu.memory_space<vmem>>, vector<8x16xf32>
    %cst = arith.constant dense<0.000000e+00> : vector<64x16xf32>
    %4 = tpu.matmul %2, %3, %cst {dimension_numbers = #tpu.dot_dimension_numbers<[1], [0], [0], [1], [0, 0, 1, 1], [], []>} : vector<64x8xf32>, vector<8x16xf32>, vector<64x16xf32> -> vector<64x16xf32>
    %c0_5 = arith.constant 0 : index
    %c0_6 = arith.constant 0 : index
    %5 = vector.load %arg4[%c0_5, %c0_6] : memref<1x16xf32, #tpu.memory_space<vmem>>, vector<1x16xf32>
    %6 = vector.broadcast %5 : vector<1x16xf32> to vector<64x16xf32>
    %7 = arith.addf %4, %6 : vector<64x16xf32>
    %8 = vector.extract_strided_slice %7 {offsets = [0, 0], sizes = [64, 4], strides = [1, 1]} : vector<64x16xf32> to vector<64x4xf32>
    %9 = vector.shape_cast %8 : vector<64x4xf32> to vector<8x8x4xf32>
    %10 = vector.extract_strided_slice %7 {offsets = [0, 4], sizes = [64, 4], strides = [1, 1]} : vector<64x16xf32> to vector<64x4xf32>
    %11 = vector.shape_cast %10 : vector<64x4xf32> to vector<8x8x4xf32>
    %12 = vector.extract_strided_slice %7 {offsets = [0, 8], sizes = [64, 4], strides = [1, 1]} : vector<64x16xf32> to vector<64x4xf32>
    %13 = vector.shape_cast %12 : vector<64x4xf32> to vector<8x8x4xf32>
    %14 = vector.extract_strided_slice %7 {offsets = [0, 12], sizes = [64, 4], strides = [1, 1]} : vector<64x16xf32> to vector<64x4xf32>
    %15 = vector.shape_cast %14 : vector<64x4xf32> to vector<8x8x4xf32>
    %16 = vector.shape_cast %9 : vector<8x8x4xf32> to vector<8x8x1x4xf32>
    %17 = vector.shape_cast %11 : vector<8x8x4xf32> to vector<8x8x1x4xf32>
    %18 = tpu.concatenate %16, %17 in 2 : vector<8x8x1x4xf32>, vector<8x8x1x4xf32> -> vector<8x8x2x4xf32>
    %19 = vector.shape_cast %18 : vector<8x8x2x4xf32> to vector<8x16x4xf32>
    %20 = vector.shape_cast %13 : vector<8x8x4xf32> to vector<8x8x1x4xf32>
    %21 = vector.shape_cast %15 : vector<8x8x4xf32> to vector<8x8x1x4xf32>
    %22 = tpu.concatenate %20, %21 in 2 : vector<8x8x1x4xf32>, vector<8x8x1x4xf32> -> vector<8x8x2x4xf32>
    %23 = vector.shape_cast %22 : vector<8x8x2x4xf32> to vector<8x16x4xf32>
    %24 = vector.shape_cast %19 : vector<8x16x4xf32> to vector<8x1x16x4xf32>
    %25 = vector.shape_cast %23 : vector<8x16x4xf32> to vector<8x1x16x4xf32>
    %26 = tpu.concatenate %24, %25 in 1 : vector<8x1x16x4xf32>, vector<8x1x16x4xf32> -> vector<8x2x16x4xf32>
    %27 = vector.shape_cast %26 : vector<8x2x16x4xf32> to vector<16x16x4xf32>
    %c0_7 = arith.constant 0 : index
    %c0_8 = arith.constant 0 : index
    %c0_9 = arith.constant 0 : index
    %c0_10 = arith.constant 0 : index
    %28 = vector.load %arg2[%c0_7, %c0_8, %c0_9, %c0_10] : memref<1x16x16x4xf32, #tpu.memory_space<vmem>>, vector<1x16x16x4xf32>
    %29 = vector.shape_cast %28 : vector<1x16x16x4xf32> to vector<16x16x4xf32>
    %30 = tpu.concatenate %29, %27 in 2 : vector<16x16x4xf32>, vector<16x16x4xf32> -> vector<16x16x8xf32>
    %cst_11 = arith.constant 0.000000e+00 : f32
    %31 = vector.broadcast %cst_11 : f32 to vector<16x1x8xf32>
    %32 = tpu.concatenate %31, %30, %31 in 1 : vector<16x1x8xf32>, vector<16x16x8xf32>, vector<16x1x8xf32> -> vector<16x18x8xf32>
    %cst_12 = arith.constant 0.000000e+00 : f32
    %33 = vector.broadcast %cst_12 : f32 to vector<1x18x8xf32>
    %34 = tpu.concatenate %33, %32, %33 in 0 : vector<1x18x8xf32>, vector<16x18x8xf32>, vector<1x18x8xf32> -> vector<18x18x8xf32>
    %c0_13 = arith.constant 0 : index
    %c0_14 = arith.constant 0 : index
    %35 = vector.load %arg5[%c0_13, %c0_14] : memref<72x8xf32, #tpu.memory_space<vmem>>, vector<72x8xf32>
    %c0_15 = arith.constant 0 : index
    %c0_16 = arith.constant 0 : index
    %36 = vector.load %arg6[%c0_15, %c0_16] : memref<1x8xf32, #tpu.memory_space<vmem>>, vector<1x8xf32>
    %c0_17 = arith.constant 0 : index
    %c0_18 = arith.constant 0 : index
    %37 = vector.load %arg7[%c0_17, %c0_18] : memref<1x8xf32, #tpu.memory_space<vmem>>, vector<1x8xf32>
    %38 = vector.extract_strided_slice %34 {offsets = [0, 0, 0], sizes = [16, 16, 8], strides = [1, 1, 1]} : vector<18x18x8xf32> to vector<16x16x8xf32>
    %39 = vector.extract_strided_slice %34 {offsets = [0, 1, 0], sizes = [16, 16, 8], strides = [1, 1, 1]} : vector<18x18x8xf32> to vector<16x16x8xf32>
    %40 = vector.extract_strided_slice %34 {offsets = [0, 2, 0], sizes = [16, 16, 8], strides = [1, 1, 1]} : vector<18x18x8xf32> to vector<16x16x8xf32>
    %41 = vector.extract_strided_slice %34 {offsets = [1, 0, 0], sizes = [16, 16, 8], strides = [1, 1, 1]} : vector<18x18x8xf32> to vector<16x16x8xf32>
    %42 = vector.extract_strided_slice %34 {offsets = [1, 1, 0], sizes = [16, 16, 8], strides = [1, 1, 1]} : vector<18x18x8xf32> to vector<16x16x8xf32>
    %43 = vector.extract_strided_slice %34 {offsets = [1, 2, 0], sizes = [16, 16, 8], strides = [1, 1, 1]} : vector<18x18x8xf32> to vector<16x16x8xf32>
    %44 = vector.extract_strided_slice %34 {offsets = [2, 0, 0], sizes = [16, 16, 8], strides = [1, 1, 1]} : vector<18x18x8xf32> to vector<16x16x8xf32>
    %45 = vector.extract_strided_slice %34 {offsets = [2, 1, 0], sizes = [16, 16, 8], strides = [1, 1, 1]} : vector<18x18x8xf32> to vector<16x16x8xf32>
    %46 = vector.extract_strided_slice %34 {offsets = [2, 2, 0], sizes = [16, 16, 8], strides = [1, 1, 1]} : vector<18x18x8xf32> to vector<16x16x8xf32>
    %47 = tpu.concatenate %38, %39, %40, %41, %42, %43, %44, %45, %46 in 2 : vector<16x16x8xf32>, vector<16x16x8xf32>, vector<16x16x8xf32>, vector<16x16x8xf32>, vector<16x16x8xf32>, vector<16x16x8xf32>, vector<16x16x8xf32>, vector<16x16x8xf32>, vector<16x16x8xf32> -> vector<16x16x72xf32>
    %48 = vector.shape_cast %47 : vector<16x16x72xf32> to vector<256x72xf32>
    %cst_19 = arith.constant dense<0.000000e+00> : vector<256x8xf32>
    %49 = tpu.matmul %48, %35, %cst_19 {dimension_numbers = #tpu.dot_dimension_numbers<[1], [0], [0], [1], [0, 0, 1, 1], [], []>} : vector<256x72xf32>, vector<72x8xf32>, vector<256x8xf32> -> vector<256x8xf32>
    %cst_20 = arith.constant dense<0.000000e+00> : vector<8xf32>
    %50 = vector.multi_reduction <add>, %49, %cst_20 [0] : vector<256x8xf32> to vector<8xf32>
    %51 = vector.shape_cast %50 : vector<8xf32> to vector<1x8xf32>
    %cst_21 = arith.constant 2.560000e+02 : f32
    %52 = vector.broadcast %cst_21 : f32 to vector<1x8xf32>
    %53 = arith.divf %51, %52 : vector<1x8xf32>
    %54 = vector.broadcast %53 : vector<1x8xf32> to vector<256x8xf32>
    %55 = arith.subf %49, %54 : vector<256x8xf32>
    %56 = arith.mulf %55, %55 : vector<256x8xf32>
    %cst_22 = arith.constant dense<0.000000e+00> : vector<8xf32>
    %57 = vector.multi_reduction <add>, %56, %cst_22 [0] : vector<256x8xf32> to vector<8xf32>
    %58 = vector.shape_cast %57 : vector<8xf32> to vector<1x8xf32>
    %cst_23 = arith.constant 2.560000e+02 : f32
    %59 = vector.broadcast %cst_23 : f32 to vector<1x8xf32>
    %60 = arith.divf %58, %59 : vector<1x8xf32>
    %cst_24 = arith.constant 9.99999974E-6 : f32
    %61 = vector.broadcast %cst_24 : f32 to vector<1x8xf32>
    %62 = arith.addf %60, %61 : vector<1x8xf32>
    %63 = math.rsqrt %62 : vector<1x8xf32>
    %64 = vector.broadcast %63 : vector<1x8xf32> to vector<256x8xf32>
    %65 = arith.mulf %55, %64 : vector<256x8xf32>
    %66 = vector.broadcast %36 : vector<1x8xf32> to vector<256x8xf32>
    %67 = arith.mulf %65, %66 : vector<256x8xf32>
    %68 = vector.broadcast %37 : vector<1x8xf32> to vector<256x8xf32>
    %69 = arith.addf %67, %68 : vector<256x8xf32>
    %cst_25 = arith.constant 0.000000e+00 : f32
    %70 = vector.broadcast %cst_25 : f32 to vector<256x8xf32>
    %71 = arith.cmpf oge, %69, %70 : vector<256x8xf32>
    %cst_26 = arith.constant 1.000000e-01 : f32
    %72 = vector.broadcast %cst_26 : f32 to vector<256x8xf32>
    %73 = arith.mulf %72, %69 : vector<256x8xf32>
    %74 = arith.select %71, %69, %73 : vector<256x8xi1>, vector<256x8xf32>
    %75 = vector.shape_cast %74 : vector<256x8xf32> to vector<16x16x8xf32>
    %cst_27 = arith.constant 0.000000e+00 : f32
    %76 = vector.broadcast %cst_27 : f32 to vector<16x1x8xf32>
    %77 = tpu.concatenate %76, %75, %76 in 1 : vector<16x1x8xf32>, vector<16x16x8xf32>, vector<16x1x8xf32> -> vector<16x18x8xf32>
    %cst_28 = arith.constant 0.000000e+00 : f32
    %78 = vector.broadcast %cst_28 : f32 to vector<1x18x8xf32>
    %79 = tpu.concatenate %78, %77, %78 in 0 : vector<1x18x8xf32>, vector<16x18x8xf32>, vector<1x18x8xf32> -> vector<18x18x8xf32>
    %c0_29 = arith.constant 0 : index
    %c0_30 = arith.constant 0 : index
    %80 = vector.load %arg8[%c0_29, %c0_30] : memref<72x8xf32, #tpu.memory_space<vmem>>, vector<72x8xf32>
    %c0_31 = arith.constant 0 : index
    %c0_32 = arith.constant 0 : index
    %81 = vector.load %arg9[%c0_31, %c0_32] : memref<1x8xf32, #tpu.memory_space<vmem>>, vector<1x8xf32>
    %c0_33 = arith.constant 0 : index
    %c0_34 = arith.constant 0 : index
    %82 = vector.load %arg10[%c0_33, %c0_34] : memref<1x8xf32, #tpu.memory_space<vmem>>, vector<1x8xf32>
    %83 = vector.extract_strided_slice %79 {offsets = [0, 0, 0], sizes = [16, 16, 8], strides = [1, 1, 1]} : vector<18x18x8xf32> to vector<16x16x8xf32>
    %84 = vector.extract_strided_slice %79 {offsets = [0, 1, 0], sizes = [16, 16, 8], strides = [1, 1, 1]} : vector<18x18x8xf32> to vector<16x16x8xf32>
    %85 = vector.extract_strided_slice %79 {offsets = [0, 2, 0], sizes = [16, 16, 8], strides = [1, 1, 1]} : vector<18x18x8xf32> to vector<16x16x8xf32>
    %86 = vector.extract_strided_slice %79 {offsets = [1, 0, 0], sizes = [16, 16, 8], strides = [1, 1, 1]} : vector<18x18x8xf32> to vector<16x16x8xf32>
    %87 = vector.extract_strided_slice %79 {offsets = [1, 1, 0], sizes = [16, 16, 8], strides = [1, 1, 1]} : vector<18x18x8xf32> to vector<16x16x8xf32>
    %88 = vector.extract_strided_slice %79 {offsets = [1, 2, 0], sizes = [16, 16, 8], strides = [1, 1, 1]} : vector<18x18x8xf32> to vector<16x16x8xf32>
    %89 = vector.extract_strided_slice %79 {offsets = [2, 0, 0], sizes = [16, 16, 8], strides = [1, 1, 1]} : vector<18x18x8xf32> to vector<16x16x8xf32>
    %90 = vector.extract_strided_slice %79 {offsets = [2, 1, 0], sizes = [16, 16, 8], strides = [1, 1, 1]} : vector<18x18x8xf32> to vector<16x16x8xf32>
    %91 = vector.extract_strided_slice %79 {offsets = [2, 2, 0], sizes = [16, 16, 8], strides = [1, 1, 1]} : vector<18x18x8xf32> to vector<16x16x8xf32>
    %92 = tpu.concatenate %83, %84, %85, %86, %87, %88, %89, %90, %91 in 2 : vector<16x16x8xf32>, vector<16x16x8xf32>, vector<16x16x8xf32>, vector<16x16x8xf32>, vector<16x16x8xf32>, vector<16x16x8xf32>, vector<16x16x8xf32>, vector<16x16x8xf32>, vector<16x16x8xf32> -> vector<16x16x72xf32>
    %93 = vector.shape_cast %92 : vector<16x16x72xf32> to vector<256x72xf32>
    %cst_35 = arith.constant dense<0.000000e+00> : vector<256x8xf32>
    %94 = tpu.matmul %93, %80, %cst_35 {dimension_numbers = #tpu.dot_dimension_numbers<[1], [0], [0], [1], [0, 0, 1, 1], [], []>} : vector<256x72xf32>, vector<72x8xf32>, vector<256x8xf32> -> vector<256x8xf32>
    %cst_36 = arith.constant dense<0.000000e+00> : vector<8xf32>
    %95 = vector.multi_reduction <add>, %94, %cst_36 [0] : vector<256x8xf32> to vector<8xf32>
    %96 = vector.shape_cast %95 : vector<8xf32> to vector<1x8xf32>
    %cst_37 = arith.constant 2.560000e+02 : f32
    %97 = vector.broadcast %cst_37 : f32 to vector<1x8xf32>
    %98 = arith.divf %96, %97 : vector<1x8xf32>
    %99 = vector.broadcast %98 : vector<1x8xf32> to vector<256x8xf32>
    %100 = arith.subf %94, %99 : vector<256x8xf32>
    %101 = arith.mulf %100, %100 : vector<256x8xf32>
    %cst_38 = arith.constant dense<0.000000e+00> : vector<8xf32>
    %102 = vector.multi_reduction <add>, %101, %cst_38 [0] : vector<256x8xf32> to vector<8xf32>
    %103 = vector.shape_cast %102 : vector<8xf32> to vector<1x8xf32>
    %cst_39 = arith.constant 2.560000e+02 : f32
    %104 = vector.broadcast %cst_39 : f32 to vector<1x8xf32>
    %105 = arith.divf %103, %104 : vector<1x8xf32>
    %cst_40 = arith.constant 9.99999974E-6 : f32
    %106 = vector.broadcast %cst_40 : f32 to vector<1x8xf32>
    %107 = arith.addf %105, %106 : vector<1x8xf32>
    %108 = math.rsqrt %107 : vector<1x8xf32>
    %109 = vector.broadcast %108 : vector<1x8xf32> to vector<256x8xf32>
    %110 = arith.mulf %100, %109 : vector<256x8xf32>
    %111 = vector.broadcast %81 : vector<1x8xf32> to vector<256x8xf32>
    %112 = arith.mulf %110, %111 : vector<256x8xf32>
    %113 = vector.broadcast %82 : vector<1x8xf32> to vector<256x8xf32>
    %114 = arith.addf %112, %113 : vector<256x8xf32>
    %cst_41 = arith.constant 0.000000e+00 : f32
    %115 = vector.broadcast %cst_41 : f32 to vector<256x8xf32>
    %116 = arith.cmpf oge, %114, %115 : vector<256x8xf32>
    %cst_42 = arith.constant 1.000000e-01 : f32
    %117 = vector.broadcast %cst_42 : f32 to vector<256x8xf32>
    %118 = arith.mulf %117, %114 : vector<256x8xf32>
    %119 = arith.select %116, %114, %118 : vector<256x8xi1>, vector<256x8xf32>
    %120 = tpu.transpose %119, [1, 0] : vector<256x8xf32> -> vector<8x256xf32>
    %c0_43 = arith.constant 0 : index
    %c0_44 = arith.constant 0 : index
    %c0_45 = arith.constant 0 : index
    %121 = vector.load %arg11[%c0_43, %c0_44, %c0_45] : memref<1x8x256xf32, #tpu.memory_space<vmem>>, vector<1x8x256xf32>
    %122 = vector.shape_cast %121 : vector<1x8x256xf32> to vector<8x256xf32>
    %123 = vector.shape_cast %120 : vector<8x256xf32> to vector<1x8x256xf32>
    tpu.vector_store %arg11[%c0_43, %c0_44, %c0_45], %123 {strides = array<i32>} : memref<1x8x256xf32, #tpu.memory_space<vmem>>, vector<1x8x256xf32>,
    return
  }
  func.func @transform_0(%arg0: i32) -> (i32, i32, i32, i32) {
    %c0_i32 = arith.constant 0 : i32
    %c0_i32_0 = arith.constant 0 : i32
    %c0_i32_1 = arith.constant 0 : i32
    %c0_i32_2 = arith.constant 0 : i32
    return %arg0, %c0_i32, %c0_i32_0, %c0_i32_1 : i32, i32, i32, i32
  }
  func.func @transform_1(%arg0: i32) -> (i32, i32, i32, i32) {
    %c0_i32 = arith.constant 0 : i32
    %c0_i32_0 = arith.constant 0 : i32
    %c0_i32_1 = arith.constant 0 : i32
    %c0_i32_2 = arith.constant 0 : i32
    return %arg0, %c0_i32, %c0_i32_0, %c0_i32_1 : i32, i32, i32, i32
  }
  func.func @transform_2(%arg0: i32) -> (i32, i32) {
    %c0_i32 = arith.constant 0 : i32
    %c0_i32_0 = arith.constant 0 : i32
    %c0_i32_1 = arith.constant 0 : i32
    return %c0_i32, %c0_i32_0 : i32, i32
  }
  func.func @transform_3(%arg0: i32) -> (i32, i32) {
    %c0_i32 = arith.constant 0 : i32
    %c0_i32_0 = arith.constant 0 : i32
    %c0_i32_1 = arith.constant 0 : i32
    return %c0_i32, %c0_i32_0 : i32, i32
  }
  func.func @transform_4(%arg0: i32) -> (i32, i32) {
    %c0_i32 = arith.constant 0 : i32
    %c0_i32_0 = arith.constant 0 : i32
    %c0_i32_1 = arith.constant 0 : i32
    return %c0_i32, %c0_i32_0 : i32, i32
  }
  func.func @transform_5(%arg0: i32) -> (i32, i32) {
    %c0_i32 = arith.constant 0 : i32
    %c0_i32_0 = arith.constant 0 : i32
    %c0_i32_1 = arith.constant 0 : i32
    return %c0_i32, %c0_i32_0 : i32, i32
  }
  func.func @transform_6(%arg0: i32) -> (i32, i32) {
    %c0_i32 = arith.constant 0 : i32
    %c0_i32_0 = arith.constant 0 : i32
    %c0_i32_1 = arith.constant 0 : i32
    return %c0_i32, %c0_i32_0 : i32, i32
  }
  func.func @transform_7(%arg0: i32) -> (i32, i32) {
    %c0_i32 = arith.constant 0 : i32
    %c0_i32_0 = arith.constant 0 : i32
    %c0_i32_1 = arith.constant 0 : i32
    return %c0_i32, %c0_i32_0 : i32, i32
  }
  func.func @transform_8(%arg0: i32) -> (i32, i32) {
    %c0_i32 = arith.constant 0 : i32
    %c0_i32_0 = arith.constant 0 : i32
    %c0_i32_1 = arith.constant 0 : i32
    return %c0_i32, %c0_i32_0 : i32, i32
  }
  func.func @transform_9(%arg0: i32) -> (i32, i32) {
    %c0_i32 = arith.constant 0 : i32
    %c0_i32_0 = arith.constant 0 : i32
    %c0_i32_1 = arith.constant 0 : i32
    return %c0_i32, %c0_i32_0 : i32, i32
  }
  func.func @transform_10(%arg0: i32) -> (i32, i32, i32) {
    %c0_i32 = arith.constant 0 : i32
    %c0_i32_0 = arith.constant 0 : i32
    %c0_i32_1 = arith.constant 0 : i32
    return %arg0, %c0_i32, %c0_i32_0 : i32, i32, i32
  }
}

</mosaic_0001>

<bundles_post_ra>
// kernel: tpu_custom_call.1
= control target key start
LH: loop header
LB: loop body
LE: loop exit
PB: predicated region body
PF: predicated region fallthrough
CT: control target
= control target key end

     0   :  { %s12641_s0 = inlined_call_operand.vmem [shape: f32[2,8,8,8], index: 0, kind: input, shape index: {}]   ;;  %s12642_s1 = inlined_call_operand.vmem [shape: f32[2,16,16,4], index: 1, kind: input, shape index: {}]   ;;  %s12643_s2 = inlined_call_operand.vmem [shape: f32[8,16], index: 2, kind: input, shape index: {}]   ;;  %s12644_s3 = inlined_call_operand.vmem [shape: f32[1,16], index: 3, kind: input, shape index: {}]   ;;  %s12645_s4 = inlined_call_operand.vmem [shape: f32[72,8], index: 4, kind: input, shape index: {}]   ;;  %s12646_s5 = inlined_call_operand.vmem [shape: f32[1,8], index: 5, kind: input, shape index: {}]   ;;  %s12647_s6 = inlined_call_operand.vmem [shape: f32[1,8], index: 6, kind: input, shape index: {}]   ;;  %s12648_s7 = inlined_call_operand.vmem [shape: f32[72,8], index: 7, kind: input, shape index: {}]   ;;  %s12649_s8 = inlined_call_operand.vmem [shape: f32[1,8], index: 8, kind: input, shape index: {}]   ;;  %s12650_s9 = inlined_call_operand.vmem [shape: f32[1,8], index: 9, kind: input, shape index: {}]   ;;  %s12651_s10 = inlined_call_operand.hbm [shape: f32[2,8,256], index: 10, kind: output, shape index: {}]  }
   0x1   :  { %12810 = sst [smem:[#allocation109_spill]] %s12641_s0 }
   0x2   :  { %12811 = sst [smem:[#allocation110_spill]] %s12642_s1 }
   0x3   :  { %15 = vsyncpa [#allocation3], 0 }
   0x4   :  { %17 = vsyncpa [#allocation3 + $0x1], 0  ;;  %s7303_s13 = smov 0   ;;  %s7305_s14 = smov 0  }
   0x5   :  { %s7307_s15 = smov 0   ;;  %s7309_s16 = smov 0  }
   0x6 LB: > { %s7324_s17 = sadd.s32 4294967295, %s7231_s16   ;;  %s6749_s18 = sadd.s32 4294967294, %s7231_s16   ;;  %s7231_s16 = sphi %s7309_s16, %s13507_s16   ;;  %s7227_s15 = sphi %s7307_s15, %s13506_s15   ;;  %s7223_s14 = sphi %s7305_s14, %s13505_s14   ;;  %s7219_s13 = sphi %s7303_s13, %s13504_s13  }
   0x7   : > { %s7328_s19 = sadd.s32 1, %s7231_s16   ;;  %s250_s20 = sadd.s32 1, %s7227_s15 }
   0x8   : > { %s247_s21 = ssub.s32 %s7231_s16, %s7328_s19  ;;  %p260_p0 = scmp.ne.s32.totalorder %s7227_s15, %s7223_s14 }
   0x9   : > { %p248_p1 = scmp.eq.s32.totalorder %s247_s21, 0  ;;  %p261_p2 = scmp.eq.s32.totalorder %s7324_s17, 1 }
   0xa   : > { %p266_p3 = scmp.ne.s32.totalorder %s7223_s14, %s7219_s13  ;;  %p267_p4 = scmp.eq.s32.totalorder %s6749_s18, 1 }
   0xb   : > { %s7339_s22 = scalar_select %p248_p1, %s7227_s15, %s250_s20  }
   0xc   : > { %p7341_p5 = por %p261_p2, %p260_p0  ;;  %p7345_p6 = por %p267_p4, %p266_p3 }
   0xd   : > { %p6752_p7 = scmp.ge.s32.totalorder %s7231_s16, 1  ;;  %p325_p8 = scmp.lt.s32.totalorder %s7231_s16, 3 }
   0xf   : > { %p326_p9 = pnand %p6752_p7, %p325_p8 }
  0x11   : > { %329 = sbr.rel (%p326_p9) target bundleno = 2690 (0xa82), region = 60 }
  0x18   : > { %v386_v0 = vld [vmem:[%s12643_s2] sm:$0xff]  ;;  %p368_p10 = scmp.lt.s32.totalorder %s7324_s17, 1  ;;  %vm12740_vm0 = vcmask 64512   ;;  %s12814_s0 = sld [smem:[#allocation109_spill]]  ;;  %v12652_v9 = vmov 0.0   ;;  %v536_v14 = vlaneseq  ;;  %vm1436_vm1 = vcmask 1040384  }
  0x19   : > { %6934 = vmatprep.subr.mxu0 %v386_v0  ;;  %v7371_v10 = vrot.slane %v12652_v9, 1  ;;  %v7374_v11 = vrot.slane %v12652_v9, 2  ;;  %s12709_s12 = smov 8   ;;  %s12707_s18 = smov 16   ;;  %v7236_v12 = vmov 1966171168  }
  0x1a   : > { %6935 = vmatpush3.msra.mxu0 %v386_v0  ;;  %s7356_s27 = scalar_select %p368_p10, %s7324_s17, 1  ;;  %v534_v13 = vunpack.c.l.s4 %v7236_v12  ;;  %v7380_v16 = vshrl.u32 %v536_v14, 7  ;;  %v7385_v17 = vld [vmem:[%s12644_s3] ss:$0 sm:$0xff]  ;;  %vm2365_vm2 = vcmask 31744   ;;  %vm2599_vm3 = vcmask 1046528  }
  0x1b   : > { %12815 = vst [vmem:[#allocation5_spill] sm:$0xff] %v7371_v10  ;;  %12816 = vst [vmem:[#allocation6_spill] sm:$0xff] %v7374_v11  ;;  %2677 = vrot.lane.b32.xlu0 %v7371_v10, %s12709_s12  ;;  %2848 = vrot.lane.b32.xlu1 %v7374_v11, %s12707_s18  ;;  %s7237_s25 = smov 124   ;;  %s7239_s26 = smov 120   ;;  %vm2770_vm4 = vcmask 1045504   ;;  %vm12739_vm5 = vcmask 130048  }
  0x1c   : > { %s6840_s28 = sshll.u32 %s7356_s27, 6  ;;  %v535_v15 = vunpack.c.0.s8 %v534_v13  ;;  %v7394_v24 = vsub.s32 0, %v7380_v16  ;;  %s6841_s29 = sshll.u32 %s7356_s27, 8  ;;  %vm3583_vm6 = vcmask 195584   ;;  %vm3616_vm7 = vcmask 261120  }
  0x1d   : > { %s12851_s1 = sld [smem:[#allocation110_spill]]  ;;  %s12791_s27 = smov 24   ;;  %vm12745_vm8 = vcmask 326656   ;;  %vm12744_vm9 = vcmask 392192   ;;  %vm12743_vm10 = vcmask 457728   ;;  %vm12742_vm11 = vcmask 523264  }
  0x1e   : > { %s372_s11 = scalar_lea.vmem %s12814_s0, %s6840_s28  ;;  %v7388_v18 = vsub.s32 %v535_v15, %v7380_v16  ;;  %s7240_s28 = smov 4   ;;  %vm12741_vm12 = vcmask 588800  }
  0x1f   : > { %v378_v1 = vld [vmem:[%s372_s11] sm:$0xff]  ;;  %v379_v2 = vld [vmem:[%s372_s11 + $0x8] sm:$0xff]  ;;  %v380_v3 = vld [vmem:[%s372_s11 + $0x10] sm:$0xff]  ;;  %s12737_s21 = smov 48   ;;  %s12703_s30 = smov 40  }
  0x20   : > { %6936 = vmatprep.mubr.msk.f32.mxu0 %vm12740_vm0, %v378_v1  ;;  %v381_v4 = vld [vmem:[%s372_s11 + $0x18] sm:$0xff]  ;;  %v382_v5 = vld [vmem:[%s372_s11 + $0x20] sm:$0xff]  ;;  %v383_v6 = vld [vmem:[%s372_s11 + $0x28] sm:$0xff]  ;;  %s13202_s0 = smov 24  }
  0x21   : > { %6937 = vmatmul.mubr.msk.f32.vlgmr.msra.gmra.mrb[0].mxu0 %vm12740_vm0, %v379_v2  ;;  %v384_v7 = vld [vmem:[%s372_s11 + $0x30] sm:$0xff]  ;;  %v385_v8 = vld [vmem:[%s372_s11 + $0x38] sm:$0xff] }
  0x22   : > { %6939 = vmatprep.mubr.msk.f32.mxu0 %vm12740_vm0, %v380_v3 }
  0x23   : > { %s8364_s20 = scalar_lea.vmem %s12851_s1, %s6841_s29  ;;  %s12699_s29 = smov 64  }
  0x25   : > { %6940 = vmatmul.mubr.msk.f32.gmra.mrb[2].mxu0 %vm12740_vm0, %v381_v4 }
  0x26   : > { %6942 = vmatprep.mubr.msk.f32.mxu0 %vm12740_vm0, %v382_v5 }
  0x29   : > { %6943 = vmatmul.mubr.msk.f32.gmra.mrb[4].mxu0 %vm12740_vm0, %v383_v6 }
  0x2a   : > { %6945 = vmatprep.mubr.msk.f32.mxu0 %vm12740_vm0, %v384_v7 }
  0x2d   : > { %6946 = vmatmul.mubr.msk.f32.gmra.mrb[6].mxu0 %vm12740_vm0, %v385_v8 }
  0xf4   : > { %v6938_v19 = vpop.f32.mrb[0].mxu0 }
  0xf5   : > { %v491_v20 = vadd.f32 %v6938_v19, %v7385_v17  ;;  %v485_v21 = vpop.f32.mrb[1].mxu0 }
  0xf6   : > { %v486_v22 = vadd.f32 %v7385_v17, %v485_v21 }
  0xf7   : > { %v588_v23 = vrot.slane %v491_v20, %v7388_v18  ;;  %v581_v27 = vcombine.high %v491_v20, %v491_v20 }
  0xf8   : > { %v539_v25 = vrot.slane %v486_v22, %v7388_v18  ;;  %v6941_v26 = vpop.f32.mrb[2].mxu0  ;;  %v532_v41 = vcombine.high %v486_v22, %v486_v22 }
  0xf9   : > { %v596_v28 = vcombine.high %v588_v23, %v588_v23  ;;  %v7398_v29 = vrot.slane %v588_v23, %v7388_v18  ;;  %v495_v30 = vpop.f32.mrb[3].mxu0  ;;  %v595_v35 = vrot.slane %v581_v27, %v7388_v18  ;;  %v7437_v50 = vadd.f32 %v6941_v26, %v7385_v17 }
  0xfa   : > { %v7401_v31 = vrot.slane %v539_v25, %v7388_v18  ;;  %v547_v44 = vcombine.high %v539_v25, %v539_v25  ;;  %v546_v51 = vrot.slane %v532_v41, %v7388_v18  ;;  %v7500_v23 = vadd.f32 %v7385_v17, %v495_v30 }
  0xfb   : > { %v7404_v32 = vrot.slane %v596_v28, %v7388_v18  ;;  %v1023_v33 = vrot.slane %v7398_v29, %v7394_v24  ;;  %v7421_v40 = vcombine.high %v7398_v29, %v7398_v29  ;;  %v597_v43 = vcombine.high %v595_v35, %v595_v35 }
  0xfc   : > { %v6944_v34 = vpop.f32.mrb[4].mxu0  ;;  %v7414_v37 = vcombine.high %v7401_v31, %v7401_v31  ;;  %v991_v39 = vrot.slane %v7401_v31, %v7394_v24  ;;  %v7431_v48 = vrot.slane %v595_v35, %v7388_v18  ;;  %v7441_v52 = vrot.slane %v547_v44, %v7388_v18 }
  0xfd   : > { %1260 = vrot.lane.b32.xlu0 %v1023_v33, %s7237_s25  ;;  %v1027_v36 = vrot.slane %v7404_v32, %v7394_v24  ;;  %v505_v38 = vpop.f32.mrb[5].mxu0  ;;  %v7428_v46 = vcombine.high %v7404_v32, %v7404_v32  ;;  %v1031_v49 = vrot.slane %v7421_v40, %v7394_v24  ;;  %v7447_v54 = vrot.slane %v597_v43, %v7388_v18 }
  0xfe   : > { %v999_v45 = vrot.slane %v7414_v37, %v7394_v24  ;;  %v1039_v55 = vrot.slane %v7431_v48, %v7394_v24  ;;  %v686_v56 = vrot.slane %v7437_v50, %v7388_v18  ;;  %v548_v57 = vcombine.high %v546_v51, %v546_v51 }
  0xff   : > { %1262 = vrot.lane.b32.xlu1 %v1027_v36, %s7237_s25  ;;  %v1035_v53 = vrot.slane %v7428_v46, %v7394_v24  ;;  %v1043_v58 = vrot.slane %v7447_v54, %v7394_v24  ;;  %v7459_v59 = vcombine.high %v7441_v52, %v7441_v52  ;;  %v511_v60 = vadd.f32 %v6944_v34, %v7385_v17 }
 0x100   : > { %v6947_v42 = vpop.f32.mrb[6].mxu0  ;;  %v7463_v61 = vrot.slane %v546_v51, %v7388_v18  ;;  %v506_v62 = vadd.f32 %v7385_v17, %v505_v38  ;;  %v995_v63 = vrot.slane %v7441_v52, %v7394_v24  ;;  %v694_v2 = vcombine.high %v686_v56, %v686_v56 }
 0x101   : > { %1244 = vrot.lane.b32.xlu0 %v991_v39, %s7237_s25  ;;  %v515_v47 = vpop.f32.mrb[7].mxu0  ;;  %v777_v0 = vcombine.high %v511_v60, %v511_v60  ;;  %v7470_v1 = vrot.slane %v511_v60, %v7388_v18  ;;  %v1003_v5 = vrot.slane %v7459_v59, %v7394_v24  ;;  %v7477_v6 = vrot.slane %v548_v57, %v7388_v18 }
 0x102   : > { %v728_v3 = vcombine.high %v506_v62, %v506_v62  ;;  %v735_v4 = vrot.slane %v506_v62, %v7388_v18  ;;  %v1007_v12 = vrot.slane %v7463_v61, %v7394_v24  ;;  %v7491_v19 = vcombine.high %v7431_v48, %v7431_v48 }
 0x103   : > { %1248 = vrot.lane.b32.xlu1 %v999_v45, %s7237_s25  ;;  %v791_v7 = vrot.slane %v777_v0, %v7388_v18  ;;  %v792_v8 = vcombine.high %v7470_v1, %v7470_v1  ;;  %v7509_v27 = vrot.slane %v686_v56, %v7388_v18  ;;  %v1011_v28 = vrot.slane %v7477_v6, %v7394_v24 }
 0x104   : > { %v742_v13 = vrot.slane %v728_v3, %v7388_v18  ;;  %v743_v14 = vcombine.high %v735_v4, %v735_v4  ;;  %v7486_v15 = vrot.slane %v735_v4, %v7388_v18  ;;  %v7516_v33 = vcombine.high %v7447_v54, %v7447_v54 }
 0x105   : > { %1264 = vrot.lane.b32.xlu0 %v1031_v49, %s7237_s25  ;;  %v793_v20 = vcombine.high %v791_v7, %v791_v7  ;;  %v7494_v21 = vrot.slane %v791_v7, %v7388_v18  ;;  %v7497_v22 = vrot.slane %v792_v8, %v7388_v18  ;;  %v7519_v34 = vrot.slane %v694_v2, %v7388_v18 }
 0x106   : > { %v7503_v25 = vrot.slane %v742_v13, %v7388_v18  ;;  %v7506_v26 = vrot.slane %v743_v14, %v7388_v18  ;;  %v744_v30 = vcombine.high %v742_v13, %v742_v13  ;;  %v1047_v35 = vrot.slane %v7491_v19, %v7394_v24 }
 0x107   : > { %1266 = vrot.lane.b32.xlu1 %v1035_v53, %s7237_s25  ;;  %v7525_v36 = vrot.slane %v793_v20, %v7388_v18  ;;  %v637_v38 = vrot.slane %v7500_v23, %v7388_v18  ;;  %v521_v39 = vadd.f32 %v6947_v42, %v7385_v17  ;;  %v1051_v41 = vrot.slane %v7516_v33, %v7394_v24 }
 0x108   : > { %v1087_v43 = vrot.slane %v7509_v27, %v7394_v24  ;;  %v516_v44 = vadd.f32 %v7385_v17, %v515_v47  ;;  %v679_v45 = vcombine.high %v7437_v50, %v7437_v50  ;;  %v7540_v53 = vrot.slane %v744_v30, %v7388_v18 }
 0x109   : > { %1268 = vrot.lane.b32.xlu0 %v1039_v55, %s7237_s25  ;;  %v875_v49 = vcombine.high %v521_v39, %v521_v39  ;;  %v882_v51 = vrot.slane %v521_v39, %v7388_v18  ;;  %v1091_v42 = vrot.slane %v7519_v34, %v7394_v24  ;;  %v7547_v55 = vcombine.high %v7463_v61, %v7463_v61 }
 0x10a   : > { %v826_v56 = vcombine.high %v516_v44, %v516_v44  ;;  %v833_v17 = vrot.slane %v516_v44, %v7388_v18  ;;  %v645_v47 = vcombine.high %v637_v38, %v637_v38  ;;  %v7557_v60 = vcombine.high %v7477_v6, %v7477_v6 }
 0x10b   : > { %1270 = vrot.lane.b32.xlu1 %v1043_v58, %s7237_s25  ;;  %v889_v50 = vrot.slane %v875_v49, %v7388_v18  ;;  %v890_v57 = vcombine.high %v882_v51, %v882_v51  ;;  %v7552_v58 = vrot.slane %v882_v51, %v7388_v18  ;;  %v1015_v7 = vrot.slane %v7547_v55, %v7394_v24 }
 0x10c   : > { %v840_v62 = vrot.slane %v826_v56, %v7388_v18  ;;  %v7561_v0 = vrot.slane %v833_v17, %v7388_v18  ;;  %v693_v14 = vrot.slane %v679_v45, %v7388_v18  ;;  %v7583_v20 = vrot.slane %v645_v47, %v7388_v18 }
 0x10d   : > { %1246 = vrot.lane.b32.xlu0 %v995_v63, %s7237_s25  ;;  %12817 = vst [vmem:[#allocation7_spill] sm:$0xff] %v7552_v58  ;;  %v841_v63 = vcombine.high %v833_v17, %v833_v17  ;;  %v891_v2 = vcombine.high %v889_v50, %v889_v50  ;;  %v7564_v3 = vrot.slane %v889_v50, %v7388_v18 }
 0x10e   : > { %12818 = vst [vmem:[#allocation8_spill] sm:$0xff] %v7561_v0  ;;  %v7567_v4 = vrot.slane %v890_v57, %v7388_v18  ;;  %v7576_v8 = vrot.slane %v840_v62, %v7388_v18  ;;  %v842_v13 = vcombine.high %v840_v62, %v840_v62  ;;  %v1059_v44 = vrot.slane %v7583_v20, %v7394_v24 }
 0x10f   : > { %1250 = vrot.lane.b32.xlu1 %v1003_v5, %s7237_s25  ;;  %12819 = vst [vmem:[#allocation9_spill] sm:$0xff] %v7564_v3  ;;  %v7570_v5 = vrot.slane %v637_v38, %v7388_v18  ;;  %v7589_v30 = vrot.slane %v891_v2, %v7388_v18  ;;  %v7596_v38 = vcombine.high %v7509_v27, %v7509_v27 }
 0x110   : > { %12820 = vst [vmem:[#allocation10_spill] sm:$0xff] %v7567_v4  ;;  %v7599_v39 = vrot.slane %v842_v13, %v7388_v18  ;;  %v7608_v45 = vcombine.high %v7519_v34, %v7519_v34  ;;  %v7611_v49 = vrot.slane %v693_v14, %v7388_v18  ;;  %v7635_v62 = vcombine.high %v7583_v20, %v7583_v20 }
 0x111   : > { %1252 = vrot.lane.b32.xlu0 %v1007_v12, %s7237_s25  ;;  %v7579_v12 = vrot.slane %v841_v63, %v7388_v18  ;;  %12822 = vst [vmem:[#allocation12_spill] sm:$0xff] %v7589_v30  ;;  %v1095_v51 = vrot.slane %v7596_v38, %v7394_v24  ;;  %v7628_v47 = vcombine.high %v7570_v5, %v7570_v5 }
 0x112   : > { %12823 = vst [vmem:[#allocation13_spill] sm:$0xff] %v7599_v39  ;;  %v1103_v17 = vrot.slane %v7611_v49, %v7394_v24  ;;  %v7760_v9 = vcombine.high %v7503_v25, %v7503_v25  ;;  %v1183_v10 = vrot.slane %v7561_v0, %v7394_v24 }
 0x113   : > { %1254 = vrot.lane.b32.xlu1 %v1011_v28, %s7237_s25  ;;  %12821 = vst [vmem:[#allocation11_spill] sm:$0xff] %v7579_v12  ;;  %v1019_v28 = vrot.slane %v7557_v60, %v7394_v24  ;;  %v1063_v2 = vrot.slane %v7628_v47, %v7394_v24 }
 0x114   : > { %12824 = vst [vmem:[#allocation14_spill] sm:$0xff] %v7760_v9 }
 0x115   : > { %1272 = vrot.lane.b32.xlu0 %v1047_v35, %s7237_s25  ;;  %v1055_v35 = vrot.slane %v7570_v5, %v7394_v24 }
 0x117   : > { %1274 = vrot.lane.b32.xlu1 %v1051_v41, %s7237_s25  ;;  %v695_v41 = vcombine.high %v693_v14, %v693_v14 }
 0x119   : > { %1292 = vrot.lane.b32.xlu0 %v1087_v43, %s7237_s25  ;;  %v630_v43 = vcombine.high %v7500_v23, %v7500_v23  ;;  %v1099_v23 = vrot.slane %v7608_v45, %v7394_v24  ;;  %v7621_v56 = vrot.slane %v695_v41, %v7388_v18 }
 0x11b   : > { %1294 = vrot.lane.b32.xlu1 %v1091_v42, %s7237_s25  ;;  %v644_v42 = vrot.slane %v630_v43, %v7388_v18  ;;  %v1107_v57 = vrot.slane %v7621_v56, %v7394_v24  ;;  %v7665_v43 = vcombine.high %v7621_v56, %v7621_v56 }
 0x11d   : > { %1256 = vrot.lane.b32.xlu0 %v1015_v7, %s7237_s25  ;;  %v646_v50 = vcombine.high %v644_v42, %v644_v42  ;;  %v7638_v63 = vrot.slane %v644_v42, %v7388_v18  ;;  %v1067_v7 = vrot.slane %v7635_v62, %v7394_v24 }
 0x11f   : > { %1258 = vrot.lane.b32.xlu1 %v1019_v28, %s7237_s25  ;;  %v7647_v13 = vrot.slane %v646_v50, %v7388_v18  ;;  %v1071_v14 = vrot.slane %v7638_v63, %v7394_v24  ;;  %v7654_v28 = vcombine.high %v7611_v49, %v7611_v49  ;;  %v7680_v42 = vcombine.high %v7638_v63, %v7638_v63 }
 0x121   : > { %1276 = vrot.lane.b32.xlu0 %v1055_v35, %s7237_s25  ;;  %v7658_v35 = vrot.slane %v7470_v1, %v7388_v18  ;;  %v1075_v41 = vrot.slane %v7647_v13, %v7394_v24  ;;  %v1115_v18 = vrot.slane %v7665_v43, %v7394_v24 }
 0x123   : > { %1278 = vrot.lane.b32.xlu1 %v1059_v44, %s7237_s25  ;;  %v1111_v44 = vrot.slane %v7654_v28, %v7394_v24  ;;  %v1151_v1 = vrot.slane %v7658_v35, %v7394_v24 }
 0x125   : > { %1296 = vrot.lane.b32.xlu0 %v1095_v51, %s7237_s25  ;;  %v1155_v51 = vrot.slane %v7497_v22, %v7394_v24 }
 0x127   : > { %1298 = vrot.lane.b32.xlu1 %v1099_v23, %s7237_s25  ;;  %v7685_v23 = vcombine.high %v7647_v13, %v7647_v13 }
 0x129   : > { %1300 = vrot.lane.b32.xlu0 %v1103_v17, %s7237_s25  ;;  %v1079_v17 = vrot.slane %v7680_v42, %v7394_v24  ;;  %v1083_v50 = vrot.slane %v7685_v23, %v7394_v24 }
 0x12b   : > { %1302 = vrot.lane.b32.xlu1 %v1107_v57, %s7237_s25  ;;  %v1119_v57 = vrot.slane %v7486_v15, %v7394_v24 }
 0x12d   : > { %1280 = vrot.lane.b32.xlu0 %v1063_v2, %s7237_s25  ;;  %v7698_v2 = vcombine.high %v7658_v35, %v7658_v35 }
 0x12f   : > { %1282 = vrot.lane.b32.xlu1 %v1067_v7, %s7237_s25  ;;  %v1123_v7 = vrot.slane %v7506_v26, %v7394_v24 }
 0x131   : > { %1284 = vrot.lane.b32.xlu0 %v1071_v14, %s7237_s25  ;;  %v7705_v14 = vcombine.high %v7497_v22, %v7497_v22 }
 0x133   : > { %1286 = vrot.lane.b32.xlu1 %v1075_v41, %s7237_s25  ;;  %v1159_v41 = vrot.slane %v7698_v2, %v7394_v24 }
 0x135   : > { %1304 = vrot.lane.b32.xlu0 %v1111_v44, %s7237_s25  ;;  %v1163_v44 = vrot.slane %v7705_v14, %v7394_v24 }
 0x137   : > { %1306 = vrot.lane.b32.xlu1 %v1115_v18, %s7237_s25  ;;  %v1167_v18 = vrot.slane %v7494_v21, %v7394_v24 }
 0x139   : > { %1324 = vrot.lane.b32.xlu0 %v1151_v1, %s7237_s25  ;;  %v7718_v1 = vcombine.high %v7486_v15, %v7486_v15 }
 0x13b   : > { %1326 = vrot.lane.b32.xlu1 %v1155_v51, %s7237_s25  ;;  %v1171_v51 = vrot.slane %v7525_v36, %v7394_v24 }
 0x13d   : > { %1288 = vrot.lane.b32.xlu0 %v1079_v17, %s7237_s25  ;;  %v7725_v17 = vcombine.high %v7506_v26, %v7506_v26 }
 0x13f   : > { %1290 = vrot.lane.b32.xlu1 %v1083_v50, %s7237_s25  ;;  %v1127_v50 = vrot.slane %v7718_v1, %v7394_v24 }
 0x141   : > { %1308 = vrot.lane.b32.xlu0 %v1119_v57, %s7237_s25  ;;  %v1131_v57 = vrot.slane %v7725_v17, %v7394_v24 }
 0x143   : > { %1310 = vrot.lane.b32.xlu1 %v1123_v7, %s7237_s25  ;;  %v1135_v7 = vrot.slane %v7503_v25, %v7394_v24 }
 0x145   : > { %1328 = vrot.lane.b32.xlu0 %v1159_v41, %s7237_s25  ;;  %v7738_v41 = vcombine.high %v7494_v21, %v7494_v21 }
 0x147   : > { %1330 = vrot.lane.b32.xlu1 %v1163_v44, %s7237_s25  ;;  %v1139_v44 = vrot.slane %v7540_v53, %v7394_v24 }
 0x149   : > { %1332 = vrot.lane.b32.xlu0 %v1167_v18, %s7237_s25  ;;  %v7745_v18 = vcombine.high %v7525_v36, %v7525_v36 }
 0x14b   : > { %1334 = vrot.lane.b32.xlu1 %v1171_v51, %s7237_s25  ;;  %v1175_v51 = vrot.slane %v7738_v41, %v7394_v24 }
 0x14d   : > { %1312 = vrot.lane.b32.xlu0 %v1127_v50, %s7237_s25  ;;  %v1179_v50 = vrot.slane %v7745_v18, %v7394_v24 }
 0x14f   : > { %1314 = vrot.lane.b32.xlu1 %v1131_v57, %s7237_s25  ;;  %v1215_v57 = vrot.slane %v7552_v58, %v7394_v24 }
 0x151   : > { %1316 = vrot.lane.b32.xlu0 %v1135_v7, %s7237_s25  ;;  %v1219_v7 = vrot.slane %v7567_v4, %v7394_v24 }
 0x153   : > { %1318 = vrot.lane.b32.xlu1 %v1139_v44, %s7237_s25  ;;  %v7765_v44 = vcombine.high %v7540_v53, %v7540_v53 }
 0x155   : > { %1336 = vrot.lane.b32.xlu0 %v1175_v51, %s7237_s25  ;;  %12825 = vst [vmem:[#allocation15_spill] sm:$0xff] %v7765_v44  ;;  %v1143_v51 = vrot.slane %v7760_v9, %v7394_v24 }
 0x157   : > { %1338 = vrot.lane.b32.xlu1 %v1179_v50, %s7237_s25  ;;  %v1147_v50 = vrot.slane %v7765_v44, %v7394_v24  ;;  %v7798_v44 = vcombine.high %v7561_v0, %v7561_v0  ;;  %v1199_v0 = vrot.slane %v7576_v8, %v7394_v24 }
 0x159   : > { %1356 = vrot.lane.b32.xlu0 %v1215_v57, %s7237_s25  ;;  %v7778_v57 = vcombine.high %v7552_v58, %v7552_v58  ;;  %12828 = vst [vmem:[#allocation18_spill] sm:$0xff] %v7798_v44 }
 0x15b   : > { %1358 = vrot.lane.b32.xlu1 %v1219_v7, %s7237_s25  ;;  %12826 = vst [vmem:[#allocation16_spill] sm:$0xff] %v7778_v57  ;;  %v1187_v7 = vrot.slane %v7579_v12, %v7394_v24 }
 0x15d   : > { %1320 = vrot.lane.b32.xlu0 %v1143_v51, %s7237_s25  ;;  %v7785_v51 = vcombine.high %v7567_v4, %v7567_v4 }
 0x15f   : > { %1322 = vrot.lane.b32.xlu1 %v1147_v50, %s7237_s25  ;;  %12827 = vst [vmem:[#allocation17_spill] sm:$0xff] %v7785_v51  ;;  %v1223_v50 = vrot.slane %v7778_v57, %v7394_v24  ;;  %v1227_v11 = vrot.slane %v7785_v51, %v7394_v24  ;;  %v1235_v57 = vrot.slane %v7589_v30, %v7394_v24 }
 0x160   : > { %v1191_v51 = vrot.slane %v7798_v44, %v7394_v24 }
 0x161   : > { %1340 = vrot.lane.b32.xlu0 %v1183_v10, %s7237_s25  ;;  %v1231_v10 = vrot.slane %v7564_v3, %v7394_v24 }
 0x163   : > { %1342 = vrot.lane.b32.xlu1 %v1187_v7, %s7237_s25  ;;  %v7801_v7 = vpop.permute.xlu0 %2677 }
 0x164   : > { %12829 = vst [vmem:[#allocation19_spill] sm:$0xff] %v7801_v7 }
 0x165   : > { %1360 = vrot.lane.b32.xlu0 %v1223_v50, %s7237_s25  ;;  %v7807_v50 = vcombine.high %v7579_v12, %v7579_v12  ;;  %v7822_v12 = vcombine.high %v7564_v3, %v7564_v3 }
 0x167   : > { %1362 = vrot.lane.b32.xlu1 %v1227_v11, %s7237_s25  ;;  %12830 = vst [vmem:[#allocation20_spill] sm:$0xff] %v7807_v50  ;;  %v7810_v11 = vpop.permute.xlu1 %2848  ;;  %12832 = vst [vmem:[#allocation22_spill] sm:$0xff] %v7822_v12 }
 0x168   : > { %12831 = vst [vmem:[#allocation21_spill] sm:$0xff] %v7810_v11 }
 0x169   : > { %1364 = vrot.lane.b32.xlu0 %v1231_v10, %s7237_s25  ;;  %v1195_v10 = vrot.slane %v7807_v50, %v7394_v24  ;;  %v7829_v50 = vcombine.high %v7589_v30, %v7589_v30 }
 0x16b   : > { %1366 = vrot.lane.b32.xlu1 %v1235_v57, %s7237_s25  ;;  %v7238_v57 = vmov 1983009808   ;;  %12833 = vst [vmem:[#allocation23_spill] sm:$0xff] %v7829_v50 }
 0x16c   : > { %v1728_v11 = vunpack.c.l.s4 %v7238_v57  ;;  %v1239_v57 = vrot.slane %v7822_v12, %v7394_v24 }
 0x16d   : > { %1344 = vrot.lane.b32.xlu0 %v1191_v51, %s7237_s25  ;;  %v1203_v51 = vrot.slane %v7599_v39, %v7394_v24 }
 0x16e   : > { %v1729_v58 = vunpack.c.0.s8 %v1728_v11 }
 0x16f   : > { %v1261_v7 = vpop.permute.xlu0 %1260  ;;  %1346 = vrot.lane.b32.xlu1 %v1195_v10, %s7237_s25 }
 0x170   : > { %v1445_v10 = vsel %vm1436_vm1, %v7398_v29, %v1261_v7  ;;  %v1243_v29 = vrot.slane %v7829_v50, %v7394_v24 }
 0x171   : > { %v1263_v9 = vpop.permute.xlu1 %1262  ;;  %1348 = vrot.lane.b32.xlu0 %v1199_v0, %s7237_s25  ;;  %v7840_v0 = vcombine.high %v7576_v8, %v7576_v8 }
 0x172   : > { %v1446_v44 = vsel %vm1436_vm1, %v7404_v32, %v1263_v9  ;;  %v7847_v9 = vcombine.high %v7599_v39, %v7599_v39 }
 0x173   : > { %v1245_v3 = vpop.permute.xlu0 %1244  ;;  %1350 = vrot.lane.b32.xlu1 %v1203_v51, %s7237_s25  ;;  %12834 = vst [vmem:[#allocation24_spill] sm:$0xff] %v7840_v0  ;;  %v1793_v4 = vcombine.low %v1445_v10, %v1446_v44  ;;  %v1207_v7 = vrot.slane %v7840_v0, %v7394_v24  ;;  %v7853_v51 = vsub.s32 %v1729_v58, %v7380_v16 }
 0x175   : > { %v1249_v30 = vpop.permute.xlu1 %1248  ;;  %1368 = vrot.lane.b32.xlu0 %v1239_v57, %s7237_s25  ;;  %v1211_v57 = vrot.slane %v7847_v9, %v7394_v24  ;;  %v7865_v16 = vrot.slane %v1793_v4, %v7853_v51 }
 0x177   : > { %v1265_v32 = vpop.permute.xlu0 %1264  ;;  %1370 = vrot.lane.b32.xlu1 %v1243_v29, %s7237_s25 }
 0x178   : > { %v1447_v50 = vsel %vm1436_vm1, %v7421_v40, %v1265_v32 }
 0x179   : > { %v1267_v11 = vpop.permute.xlu1 %1266  ;;  %1352 = vrot.lane.b32.xlu0 %v1207_v7, %s7237_s25 }
 0x17a   : > { %v1448_v12 = vsel %vm1436_vm1, %v7428_v46, %v1267_v11  ;;  %v1437_v46 = vsel %vm1436_vm1, %v7401_v31, %v1245_v3 }
 0x17b   : > { %v1269_v39 = vpop.permute.xlu0 %1268  ;;  %1354 = vrot.lane.b32.xlu1 %v1211_v57, %s7237_s25  ;;  %v1794_v29 = vcombine.low %v1447_v50, %v1448_v12  ;;  %s12705_s25 = smov 56  }
 0x17d   : > { %v1271_v0 = vpop.permute.xlu1 %1270  ;;  %1581 = vrot.lane.b32.xlu0 %v1445_v10, %s7239_s26  ;;  %v7868_v58 = vrot.slane %v1794_v29, %v7853_v51  ;;  %v1439_v10 = vsel %vm1436_vm1, %v7414_v37, %v1249_v30 }
 0x17f   : > { %v1247_v24 = vpop.permute.xlu0 %1246  ;;  %1583 = vrot.lane.b32.xlu1 %v1446_v44, %s7239_s26  ;;  %v1809_v40 = vcombine.low %v7865_v16, %v7868_v58 }
 0x180   : > { %v1438_v32 = vsel %vm1436_vm1, %v7441_v52, %v1247_v24  ;;  %v7905_v24 = vsel %vm1436_vm1, %v7431_v48, %v1269_v39 }
 0x181   : > { %v1251_v7 = vpop.permute.xlu1 %1250  ;;  %1565 = vrot.lane.b32.xlu0 %v1437_v46, %s7239_s26  ;;  %v1725_v4 = vcombine.low %v1437_v46, %v1438_v32 }
 0x182   : > { %v1440_v11 = vsel %vm1436_vm1, %v7459_v59, %v1251_v7 }
 0x183   : > { %v1253_v44 = vpop.permute.xlu0 %1252  ;;  %1567 = vrot.lane.b32.xlu1 %v1438_v32, %s7239_s26  ;;  %v1726_v57 = vcombine.low %v1439_v10, %v1440_v11  ;;  %v7884_v29 = vrot.slane %v1725_v4, %v7853_v51 }
 0x184   : > { %v7892_v3 = vsel %vm1436_vm1, %v7463_v61, %v1253_v44 }
 0x185   : > { %1585 = vrot.lane.b32.xlu0 %v1447_v50, %s7239_s26  ;;  %v1255_v31 = vpop.permute.xlu1 %1254  ;;  %v7888_v52 = vrot.slane %v1726_v57, %v7853_v51 }
 0x186   : > { %v7896_v37 = vsel %vm1436_vm1, %v7477_v6, %v1255_v31  ;;  %v7911_v6 = vsel %vm1436_vm1, %v7447_v54, %v1271_v0 }
 0x187   : > { %v1273_v59 = vpop.permute.xlu0 %1272  ;;  %1587 = vrot.lane.b32.xlu1 %v1448_v12, %s7239_s26  ;;  %v1741_v30 = vcombine.low %v7884_v29, %v7888_v52  ;;  %v1742_v50 = vcombine.low %v7892_v3, %v7896_v37  ;;  %v12835_v29 = vld [vmem:[#allocation7_spill] sm:$0xff] }
 0x188   : > { %v7927_v4 = vsel %vm1436_vm1, %v7491_v19, %v1273_v59 }
 0x189   : > { %1589 = vrot.lane.b32.xlu0 %v7905_v24, %s7239_s26  ;;  %v1275_v61 = vpop.permute.xlu1 %1274 }
 0x18b   : > { %v1293_v46 = vpop.permute.xlu0 %1292  ;;  %1591 = vrot.lane.b32.xlu1 %v7911_v6, %s7239_s26 }
 0x18c   : > { %v1461_v32 = vsel %vm1436_vm1, %v7509_v27, %v1293_v46 }
 0x18d   : > { %1569 = vrot.lane.b32.xlu0 %v1439_v10, %s7239_s26  ;;  %v1295_v12 = vpop.permute.xlu1 %1294 }
 0x18e   : > { %v1462_v48 = vsel %vm1436_vm1, %v7519_v34, %v1295_v12  ;;  %v7933_v34 = vsel %vm1436_vm1, %v7516_v33, %v1275_v61 }
 0x18f   : > { %v1257_v39 = vpop.permute.xlu0 %1256  ;;  %1571 = vrot.lane.b32.xlu1 %v1440_v11, %s7239_s26  ;;  %v1929_v7 = vcombine.low %v1461_v32, %v1462_v48 }
 0x191   : > { %1573 = vrot.lane.b32.xlu0 %v7892_v3, %s7239_s26  ;;  %v1259_v54 = vpop.permute.xlu1 %1258  ;;  %v7952_v61 = vrot.slane %v1929_v7, %v7853_v51 }
 0x193   : > { %v1277_v0 = vpop.permute.xlu0 %1276  ;;  %1575 = vrot.lane.b32.xlu1 %v7896_v37, %s7239_s26 }
 0x194   : > { %v1453_v10 = vsel %vm1436_vm1, %v7570_v5, %v1277_v0 }
 0x195   : > { %1593 = vrot.lane.b32.xlu0 %v7927_v4, %s7239_s26  ;;  %v1279_v27 = vpop.permute.xlu1 %1278 }
 0x196   : > { %v1454_v11 = vsel %vm1436_vm1, %v7583_v20, %v1279_v27  ;;  %v7949_v20 = vsel %vm1436_vm1, %v7547_v55, %v1257_v39 }
 0x197   : > { %v1297_v44 = vpop.permute.xlu0 %1296  ;;  %1595 = vrot.lane.b32.xlu1 %v7933_v34, %s7239_s26  ;;  %v1861_v19 = vcombine.low %v1453_v10, %v1454_v11 }
 0x198   : > { %v1463_v31 = vsel %vm1436_vm1, %v7596_v38, %v1297_v44 }
 0x199   : > { %1613 = vrot.lane.b32.xlu0 %v1461_v32, %s7239_s26  ;;  %v1299_v57 = vpop.permute.xlu1 %1298  ;;  %v7984_v0 = vrot.slane %v1861_v19, %v7853_v51 }
 0x19a   : > { %v1464_v33 = vsel %vm1436_vm1, %v7608_v45, %v1299_v57  ;;  %v7961_v45 = vsel %vm1436_vm1, %v7557_v60, %v1259_v54 }
 0x19b   : > { %v1301_v59 = vpop.permute.xlu0 %1300  ;;  %1615 = vrot.lane.b32.xlu1 %v1462_v48, %s7239_s26  ;;  %v1930_v5 = vcombine.low %v1463_v31, %v1464_v33 }
 0x19c   : > { %v7965_v12 = vsel %vm1436_vm1, %v7611_v49, %v1301_v59 }
 0x19d   : > { %1577 = vrot.lane.b32.xlu0 %v7949_v20, %s7239_s26  ;;  %v1303_v46 = vpop.permute.xlu1 %1302  ;;  %v7957_v38 = vrot.slane %v1930_v5, %v7853_v51 }
 0x19e   : > { %v7969_v55 = vsel %vm1436_vm1, %v7621_v56, %v1303_v46 }
 0x19f   : > { %v1281_v32 = vpop.permute.xlu0 %1280  ;;  %1579 = vrot.lane.b32.xlu1 %v7961_v45, %s7239_s26  ;;  %v1945_v48 = vcombine.low %v7952_v61, %v7957_v38  ;;  %v1946_v39 = vcombine.low %v7965_v12, %v7969_v55 }
 0x1a0   : > { %v1455_v49 = vsel %vm1436_vm1, %v7628_v47, %v1281_v32 }
 0x1a1   : > { %1597 = vrot.lane.b32.xlu0 %v1453_v10, %s7239_s26  ;;  %v1283_v60 = vpop.permute.xlu1 %1282 }
 0x1a2   : > { %v1456_v56 = vsel %vm1436_vm1, %v7635_v62, %v1283_v60 }
 0x1a3   : > { %v1285_v7 = vpop.permute.xlu0 %1284  ;;  %1599 = vrot.lane.b32.xlu1 %v1454_v11, %s7239_s26  ;;  %v1862_v54 = vcombine.low %v1455_v49, %v1456_v56 }
 0x1a4   : > { %v1457_v10 = vsel %vm1436_vm1, %v7638_v63, %v1285_v7 }
 0x1a5   : > { %1617 = vrot.lane.b32.xlu0 %v1463_v31, %s7239_s26  ;;  %v1287_v27 = vpop.permute.xlu1 %1286  ;;  %v7988_v44 = vrot.slane %v1862_v54, %v7853_v51 }
 0x1a6   : > { %v1458_v47 = vsel %vm1436_vm1, %v7647_v13, %v1287_v27 }
 0x1a7   : > { %v1305_v62 = vpop.permute.xlu0 %1304  ;;  %1619 = vrot.lane.b32.xlu1 %v1464_v33, %s7239_s26  ;;  %v1877_v11 = vcombine.low %v7984_v0, %v7988_v44  ;;  %v1878_v19 = vcombine.low %v1457_v10, %v1458_v47  ;;  %v12849_v44 = vld [vmem:[#allocation23_spill] sm:$0xff] }
 0x1a9   : > { %1621 = vrot.lane.b32.xlu0 %v7965_v12, %s7239_s26  ;;  %v1307_v57 = vpop.permute.xlu1 %1306 }
 0x1ab   : > { %v1325_v31 = vpop.permute.xlu0 %1324  ;;  %1623 = vrot.lane.b32.xlu1 %v7969_v55, %s7239_s26 }
 0x1ac   : > { %v1477_v13 = vsel %vm1436_vm1, %v7658_v35, %v1325_v31 }
 0x1ad   : > { %1601 = vrot.lane.b32.xlu0 %v1455_v49, %s7239_s26  ;;  %v1327_v63 = vpop.permute.xlu1 %1326 }
 0x1ae   : > { %v1478_v33 = vsel %vm1436_vm1, %v7497_v22, %v1327_v63  ;;  %v8015_v22 = vsel %vm1436_vm1, %v7654_v28, %v1305_v62  ;;  %v8035_v28 = vsel %vm1436_vm1, %v7665_v43, %v1307_v57 }
 0x1af   : > { %v1289_v59 = vpop.permute.xlu0 %1288  ;;  %1603 = vrot.lane.b32.xlu1 %v1456_v56, %s7239_s26  ;;  %v2065_v5 = vcombine.low %v1477_v13, %v1478_v33  ;;  %v8021_v56 = vrot.slane %v1878_v19, %v7853_v51 }
 0x1b0   : > { %v1459_v32 = vsel %vm1436_vm1, %v7680_v42, %v1289_v59  ;;  %v1811_v59 = vcombine.low %v7927_v4, %v7933_v34 }
 0x1b1   : > { %1605 = vrot.lane.b32.xlu0 %v1457_v10, %s7239_s26  ;;  %v1291_v46 = vpop.permute.xlu1 %1290  ;;  %v8053_v31 = vrot.slane %v2065_v5, %v7853_v51 }
 0x1b2   : > { %v1460_v60 = vsel %vm1436_vm1, %v7685_v23, %v1291_v46  ;;  %v1810_v46 = vcombine.low %v7905_v24, %v7911_v6 }
 0x1b3   : > { %v1879_v49 = vcombine.low %v1459_v32, %v1460_v60  ;;  %v1309_v7 = vpop.permute.xlu0 %1308  ;;  %1607 = vrot.lane.b32.xlu1 %v1458_v47, %s7239_s26 }
 0x1b4   : > { %v8027_v23 = vsel %vm1436_vm1, %v7486_v15, %v1309_v7  ;;  %v1818_v34 = vrot.slane %v1810_v46, %v7853_v51  ;;  %v12839_v46 = vld [vmem:[#allocation8_spill] sm:$0xff] }
 0x1b5   : > { %v8018_v35 = vrot.slane %v1879_v49, %v7853_v51  ;;  %1625 = vrot.lane.b32.xlu0 %v8015_v22, %s7239_s26  ;;  %v1311_v42 = vpop.permute.xlu1 %1310  ;;  %v1825_v49 = vrot.slane %v1811_v59, %v7853_v51 }
 0x1b6   : > { %v8031_v54 = vsel %vm1436_vm1, %v7506_v26, %v1311_v42 }
 0x1b7   : > { %v1894_v27 = vcombine.low %v8021_v56, %v8018_v35  ;;  %v1997_v10 = vcombine.low %v8027_v23, %v8031_v54  ;;  %v1329_v47 = vpop.permute.xlu0 %1328  ;;  %1627 = vrot.lane.b32.xlu1 %v8035_v28, %s7239_s26  ;;  %v1826_v6 = vcombine.low %v1818_v34, %v1825_v49 }
 0x1b8   : > { %v1479_v26 = vsel %vm1436_vm1, %v7698_v2, %v1329_v47  ;;  %v1743_v47 = vcombine.low %v7949_v20, %v7961_v45 }
 0x1b9   : > { %1645 = vrot.lane.b32.xlu0 %v1477_v13, %s7239_s26  ;;  %v1331_v15 = vpop.permute.xlu1 %1330 }
 0x1ba   : > { %v1480_v43 = vsel %vm1436_vm1, %v7705_v14, %v1331_v15 }
 0x1bb   : > { %v2066_v62 = vcombine.low %v1479_v26, %v1480_v43  ;;  %v1333_v19 = vpop.permute.xlu0 %1332  ;;  %1647 = vrot.lane.b32.xlu1 %v1478_v33, %s7239_s26 }
 0x1bd   : > { %v8050_v57 = vrot.slane %v2066_v62, %v7853_v51  ;;  %1609 = vrot.lane.b32.xlu0 %v1459_v32, %s7239_s26  ;;  %v1335_v63 = vpop.permute.xlu1 %1334 }
 0x1be   : > { %v8078_v4 = vsel %vm1436_vm1, %v7525_v36, %v1335_v63 }
 0x1bf   : > { %v2081_v13 = vcombine.low %v8053_v31, %v8050_v57  ;;  %v1313_v2 = vpop.permute.xlu0 %1312  ;;  %1611 = vrot.lane.b32.xlu1 %v1460_v60, %s7239_s26  ;;  %v8071_v60 = vsel %vm1436_vm1, %v7494_v21, %v1333_v19 }
 0x1c0   : > { %v8090_v36 = vsel %vm1436_vm1, %v7718_v1, %v1313_v2  ;;  %v1757_v1 = vrot.slane %v1743_v47, %v7853_v51  ;;  %v2082_v35 = vcombine.low %v8071_v60, %v8078_v4 }
 0x1c1   : > { %1629 = vrot.lane.b32.xlu0 %v8027_v23, %s7239_s26  ;;  %v1315_v14 = vpop.permute.xlu1 %1314 }
 0x1c3   : > { %v1317_v33 = vpop.permute.xlu0 %1316  ;;  %1631 = vrot.lane.b32.xlu1 %v8031_v54, %s7239_s26 }
 0x1c4   : > { %v8104_v58 = vsel %vm1436_vm1, %v7503_v25, %v1317_v33  ;;  %v12838_v33 = vld [vmem:[#allocation15_spill] sm:$0xff] }
 0x1c5   : > { %1649 = vrot.lane.b32.xlu0 %v1479_v26, %s7239_s26  ;;  %v1319_v5 = vpop.permute.xlu1 %1318  ;;  %v8098_v26 = vsel %vm1436_vm1, %v7725_v17, %v1315_v14  ;;  %v1750_v17 = vrot.slane %v1742_v50, %v7853_v51 }
 0x1c6   : > { %v8111_v20 = vsel %vm1436_vm1, %v7540_v53, %v1319_v5  ;;  %v1998_v0 = vcombine.low %v8090_v36, %v8098_v26 }
 0x1c7   : > { %v1337_v32 = vpop.permute.xlu0 %1336  ;;  %1651 = vrot.lane.b32.xlu1 %v1480_v43, %s7239_s26  ;;  %v1758_v25 = vcombine.low %v1750_v17, %v1757_v1 }
 0x1c8   : > { %v8126_v53 = vsel %vm1436_vm1, %v7738_v41, %v1337_v32 }
 0x1c9   : > { %1653 = vrot.lane.b32.xlu0 %v8071_v60, %s7239_s26  ;;  %v1339_v7 = vpop.permute.xlu1 %1338  ;;  %v2090_v60 = vrot.slane %v2082_v35, %v7853_v51 }
 0x1ca   : > { %v8132_v37 = vsel %vm1436_vm1, %v7745_v18, %v1339_v7  ;;  %v12837_v18 = vld [vmem:[#allocation14_spill] sm:$0xff]  ;;  %v12840_v7 = vld [vmem:[#allocation11_spill] sm:$0xff] }
 0x1cb   : > { %v1357_v24 = vpop.permute.xlu0 %1356  ;;  %1655 = vrot.lane.b32.xlu1 %v8078_v4, %s7239_s26  ;;  %v2014_v4 = vcombine.low %v8104_v58, %v8111_v20 }
 0x1cc   : > { %v8138_v52 = vsel %vm1436_vm1, %v12835_v29, %v1357_v24 }
 0x1cd   : > { %2277 = vrot.lane.b32.xlu0 %v1809_v40, %s7240_s28  ;;  %v1359_v21 = vpop.permute.xlu1 %1358 }
 0x1cf   : > { %v1321_v42 = vpop.permute.xlu0 %1320  ;;  %2279 = vrot.lane.b32.xlu1 %v1826_v6, %s7240_s28  ;;  %v12841_v6 = vld [vmem:[#allocation16_spill] sm:$0xff] }
 0x1d0   : > { %v8150_v2 = vsel %vm1436_vm1, %v12837_v18, %v1321_v42  ;;  %v1947_v42 = vcombine.low %v8015_v22, %v8035_v28  ;;  %v12844_v28 = vld [vmem:[#allocation12_spill] sm:$0xff]  ;;  %v12845_v18 = vld [vmem:[#allocation18_spill] sm:$0xff] }
 0x1d1   : > { %1633 = vrot.lane.b32.xlu0 %v8090_v36, %s7239_s26  ;;  %v1323_v15 = vpop.permute.xlu1 %1322 }
 0x1d2   : > { %v8156_v59 = vsel %vm1436_vm1, %v12838_v33, %v1323_v15  ;;  %v12842_v15 = vld [vmem:[#allocation17_spill] sm:$0xff] }
 0x1d3   : > { %v1341_v16 = vpop.permute.xlu0 %1340  ;;  %1635 = vrot.lane.b32.xlu1 %v8098_v26, %s7239_s26  ;;  %v2012_v26 = vrot.slane %v1998_v0, %v7853_v51 }
 0x1d4   : > { %v8162_v32 = vsel %vm1436_vm1, %v12839_v46, %v1341_v16 }
 0x1d5   : > { %1637 = vrot.lane.b32.xlu0 %v8104_v58, %s7239_s26  ;;  %v1343_v40 = vpop.permute.xlu1 %1342 }
 0x1d6   : > { %v8168_v34 = vsel %vm1436_vm1, %v12840_v7, %v1343_v40  ;;  %v12843_v40 = vld [vmem:[#allocation9_spill] sm:$0xff] }
 0x1d7   : > { %v1361_v45 = vpop.permute.xlu0 %1360  ;;  %1639 = vrot.lane.b32.xlu1 %v8111_v20, %s7239_s26  ;;  %v2133_v57 = vcombine.low %v8162_v32, %v8168_v34 }
 0x1d9   : > { %2269 = vrot.lane.b32.xlu0 %v1741_v30, %s7240_s28  ;;  %v1363_v43 = vpop.permute.xlu1 %1362  ;;  %v12836_v30 = vld [vmem:[#allocation10_spill] sm:$0xff] }
 0x1da   : > { %v8144_v19 = vsel %vm1436_vm1, %v12836_v30, %v1359_v21  ;;  %v8174_v21 = vsel %vm1436_vm1, %v12841_v6, %v1361_v45  ;;  %v8182_v16 = vsel %vm1436_vm1, %v12842_v15, %v1363_v43  ;;  %v1961_v45 = vrot.slane %v1947_v42, %v7853_v51 }
 0x1db   : > { %v1365_v62 = vpop.permute.xlu0 %1364  ;;  %2271 = vrot.lane.b32.xlu1 %v1758_v25, %s7240_s28  ;;  %v1954_v43 = vrot.slane %v1946_v39, %v7853_v51  ;;  %v12846_v39 = vld [vmem:[#allocation20_spill] sm:$0xff]  ;;  %v2083_v6 = vcombine.low %v8126_v53, %v8132_v37 }
 0x1dc   : > { %v8190_v17 = vsel %vm1436_vm1, %v12843_v40, %v1365_v62 }
 0x1dd   : > { %1657 = vrot.lane.b32.xlu0 %v8126_v53, %s7239_s26  ;;  %v1367_v3 = vpop.permute.xlu1 %1366  ;;  %v1962_v62 = vcombine.low %v1954_v43, %v1961_v45  ;;  %v2097_v53 = vrot.slane %v2083_v6, %v7853_v51 }
 0x1de   : > { %v8199_v25 = vsel %vm1436_vm1, %v12844_v28, %v1367_v3 }
 0x1df   : > { %v1345_v50 = vpop.permute.xlu0 %1344  ;;  %1659 = vrot.lane.b32.xlu1 %v8132_v37, %s7239_s26  ;;  %v2015_v37 = vcombine.low %v8150_v2, %v8156_v59  ;;  %v2218_v23 = vcombine.low %v8190_v17, %v8199_v25 }
 0x1e0   : > { %v1487_v12 = vsel %vm1436_vm1, %v12845_v18, %v1345_v50 }
 0x1e1   : > { %1677 = vrot.lane.b32.xlu0 %v8138_v52, %s7239_s26  ;;  %v1347_v41 = vpop.permute.xlu1 %1346 }
 0x1e2   : > { %v1488_v33 = vsel %vm1436_vm1, %v12846_v39, %v1347_v41 }
 0x1e3   : > { %v1349_v63 = vpop.permute.xlu0 %1348  ;;  %1679 = vrot.lane.b32.xlu1 %v8144_v19, %s7239_s26  ;;  %v2134_v54 = vcombine.low %v1487_v12, %v1488_v33 }
 0x1e4   : > { %v8230_v61 = vsel %vm1436_vm1, %v7576_v8, %v1349_v63  ;;  %v12848_v63 = vld [vmem:[#allocation22_spill] sm:$0xff] }
 0x1e5   : > { %1641 = vrot.lane.b32.xlu0 %v8150_v2, %s7239_s26  ;;  %v1351_v14 = vpop.permute.xlu1 %1350  ;;  %v2005_v2 = vrot.slane %v1997_v10, %v7853_v51  ;;  %v2148_v43 = vrot.slane %v2134_v54, %v7853_v51 }
 0x1e7   : > { %v1369_v5 = vpop.permute.xlu0 %1368  ;;  %1643 = vrot.lane.b32.xlu1 %v8156_v59, %s7239_s26  ;;  %v2098_v59 = vcombine.low %v2090_v60, %v2097_v53  ;;  %v2013_v20 = vcombine.low %v2005_v2, %v2012_v26 }
 0x1e9   : > { %1661 = vrot.lane.b32.xlu0 %v8162_v32, %s7239_s26  ;;  %v1371_v49 = vpop.permute.xlu1 %1370 }
 0x1eb   : > { %v1353_v24 = vpop.permute.xlu0 %1352  ;;  %1663 = vrot.lane.b32.xlu1 %v8168_v34, %s7239_s26  ;;  %v2141_v34 = vrot.slane %v2133_v57, %v7853_v51 }
 0x1ed   : > { %1681 = vrot.lane.b32.xlu0 %v8174_v21, %s7239_s26  ;;  %v1355_v47 = vpop.permute.xlu1 %1354 }
 0x1ef   : > { %v8184_v1 = vpop.permute.xlu0 %1581  ;;  %1683 = vrot.lane.b32.xlu1 %v8182_v16, %s7239_s26 }
 0x1f1   : > { %1685 = vrot.lane.b32.xlu0 %v8190_v17, %s7239_s26  ;;  %v8195_v22 = vpop.permute.xlu1 %1583 }
 0x1f2   : > { %v1827_v32 = vcombine.low %v8184_v1, %v8195_v22 }
 0x1f3   : > { %v8205_v29 = vpop.permute.xlu0 %1565  ;;  %1687 = vrot.lane.b32.xlu1 %v8199_v25, %s7239_s26  ;;  %v2226_v25 = vrot.slane %v2218_v23, %v7853_v51 }
 0x1f5   : > { %2293 = vrot.lane.b32.xlu0 %v1945_v48, %s7240_s28  ;;  %v8213_v30 = vpop.permute.xlu1 %1567  ;;  %v12847_v48 = vld [vmem:[#allocation13_spill] sm:$0xff] }
 0x1f6   : > { %v8238_v50 = vsel %vm1436_vm1, %v12847_v48, %v1351_v14  ;;  %v1499_v14 = vsel %vm1436_vm1, %v12848_v63, %v1369_v5  ;;  %v1835_v63 = vrot.slane %v1827_v32, %v7853_v51  ;;  %v1759_v6 = vcombine.low %v8205_v29, %v8213_v30 }
 0x1f7   : > { %v8215_v3 = vpop.permute.xlu0 %1585  ;;  %2295 = vrot.lane.b32.xlu1 %v1962_v62, %s7240_s28  ;;  %v2150_v62 = vcombine.low %v8230_v61, %v8238_v50 }
 0x1f8   : > { %v1767_v29 = vrot.slane %v1759_v6, %v7853_v51 }
 0x1f9   : > { %1665 = vrot.lane.b32.xlu0 %v1487_v12, %s7239_s26  ;;  %v8221_v55 = vpop.permute.xlu1 %1587  ;;  %v2158_v48 = vrot.slane %v2150_v62, %v7853_v51 }
 0x1fa   : > { %v1828_v28 = vcombine.low %v8215_v3, %v8221_v55 }
 0x1fb   : > { %v8225_v46 = vpop.permute.xlu0 %1589  ;;  %1667 = vrot.lane.b32.xlu1 %v1488_v33, %s7239_s26 }
 0x1fc   : > { %v1842_v33 = vrot.slane %v1828_v28, %v7853_v51 }
 0x1fd   : > { %1669 = vrot.lane.b32.xlu0 %v8230_v61, %s7239_s26  ;;  %v8234_v38 = vpop.permute.xlu1 %1591  ;;  %v2149_v61 = vcombine.low %v2141_v34, %v2148_v43 }
 0x1fe   : > { %v1843_v35 = vcombine.low %v1835_v63, %v1842_v33 }
 0x1ff   : > { %v8240_v7 = vpop.permute.xlu0 %1569  ;;  %1671 = vrot.lane.b32.xlu1 %v8238_v50, %s7239_s26  ;;  %v1844_v50 = vcombine.low %v8225_v46, %v8234_v38 }
 0x201   : > { %2285 = vrot.lane.b32.xlu0 %v1877_v11, %s7240_s28  ;;  %v8248_v8 = vpop.permute.xlu1 %1571  ;;  %v1500_v11 = vsel %vm1436_vm1, %v12849_v44, %v1371_v49  ;;  %v1492_v49 = vsel %vm1436_vm1, %v7847_v9, %v1355_v47  ;;  %v2201_v9 = vcombine.low %v8138_v52, %v8144_v19  ;;  %v2029_v47 = vrot.slane %v2015_v37, %v7853_v51 }
 0x202   : > { %v2219_v40 = vcombine.low %v1499_v14, %v1500_v11  ;;  %v1760_v1 = vcombine.low %v8240_v7, %v8248_v8  ;;  %v1852_v46 = vrot.slane %v1844_v50, %v7853_v51 }
 0x203   : > { %v8250_v41 = vpop.permute.xlu0 %1573  ;;  %2287 = vrot.lane.b32.xlu1 %v1894_v27, %s7240_s28  ;;  %v12850_v27 = vld [vmem:[#allocation24_spill] sm:$0xff]  ;;  %v2209_v52 = vrot.slane %v2201_v9, %v7853_v51 }
 0x204   : > { %v1491_v5 = vsel %vm1436_vm1, %v12850_v27, %v1353_v24  ;;  %v2202_v24 = vcombine.low %v8174_v21, %v8182_v16  ;;  %v2022_v21 = vrot.slane %v2014_v4, %v7853_v51  ;;  %v2233_v31 = vrot.slane %v2219_v40, %v7853_v51 }
 0x205   : > { %1689 = vrot.lane.b32.xlu0 %v1499_v14, %s7239_s26  ;;  %v8261_v42 = vpop.permute.xlu1 %1575  ;;  %v1774_v38 = vrot.slane %v1760_v1, %v7853_v51 }
 0x206   : > { %v2216_v16 = vrot.slane %v2202_v24, %v7853_v51  ;;  %v2030_v19 = vcombine.low %v2022_v21, %v2029_v47  ;;  %v2234_v12 = vcombine.low %v2226_v25, %v2233_v31  ;;  %v1776_v7 = vcombine.low %v8250_v41, %v8261_v42 }
 0x207   : > { %v1594_v56 = vpop.permute.xlu0 %1593  ;;  %1691 = vrot.lane.b32.xlu1 %v1500_v11, %s7239_s26  ;;  %v1775_v37 = vcombine.low %v1767_v29, %v1774_v38 }
 0x208   : > { %v2217_v17 = vcombine.low %v2209_v52, %v2216_v16  ;;  %v1697_v52 = vld [vmem:[%s8364_s20 + $0x20] sm:$0xff] }
 0x209   : > { %1673 = vrot.lane.b32.xlu0 %v1491_v5, %s7239_s26  ;;  %v1596_v36 = vpop.permute.xlu1 %1595 }
 0x20a   : > { %v1845_v55 = vcombine.low %v1594_v56, %v1596_v36  ;;  %v1784_v36 = vrot.slane %v1776_v7, %v7853_v51 }
 0x20b   : > { %v8284_v15 = vpop.permute.xlu0 %1613  ;;  %1675 = vrot.lane.b32.xlu1 %v1492_v49, %s7239_s26  ;;  %s12701_s26 = smov 32  }
 0x20c   : > { %v1859_v0 = vrot.slane %v1845_v55, %v7853_v51 }
 0x20d   : > { %2309 = vrot.lane.b32.xlu0 %v2081_v13, %s7240_s28  ;;  %v1616_v58 = vpop.permute.xlu1 %1615  ;;  %v2151_v13 = vcombine.low %v1491_v5, %v1492_v49 }
 0x20e   : > { %v1860_v30 = vcombine.low %v1852_v46, %v1859_v0  ;;  %v1963_v27 = vcombine.low %v8284_v15, %v1616_v58 }
 0x20f   : > { %v1578_v10 = vpop.permute.xlu0 %1577  ;;  %2311 = vrot.lane.b32.xlu1 %v2098_v59, %s7240_s28  ;;  %v2165_v3 = vrot.slane %v2151_v13, %v7853_v51 }
 0x210   : > { %v1971_v42 = vrot.slane %v1963_v27, %v7853_v51 }
 0x211   : > { %2301 = vrot.lane.b32.xlu0 %v2013_v20, %s7240_s28  ;;  %v1580_v45 = vpop.permute.xlu1 %1579  ;;  %v2166_v14 = vcombine.low %v2158_v48, %v2165_v3 }
 0x212   : > { %v1777_v44 = vcombine.low %v1578_v10, %v1580_v45 }
 0x213   : > { %v8314_v18 = vpop.permute.xlu0 %1597  ;;  %2303 = vrot.lane.b32.xlu1 %v2030_v19, %s7240_s28 }
 0x214   : > { %v1791_v5 = vrot.slane %v1777_v44, %v7853_v51  ;;  %v1694_v44 = vld [vmem:[%s8364_s20 + $0x8] sm:$0xff] }
 0x215   : > { %2325 = vrot.lane.b32.xlu0 %v2217_v17, %s7240_s28  ;;  %v8322_v39 = vpop.permute.xlu1 %1599 }
 0x216   : > { %v1792_v49 = vcombine.low %v1784_v36, %v1791_v5  ;;  %v1895_v13 = vcombine.low %v8314_v18, %v8322_v39 }
 0x217   : > { %v1618_v22 = vpop.permute.xlu0 %1617  ;;  %2327 = vrot.lane.b32.xlu1 %v2234_v12, %s7240_s28 }
 0x218   : > { %v1903_v3 = vrot.slane %v1895_v13, %v7853_v51 }
 0x219   : > { %2317 = vrot.lane.b32.xlu0 %v2149_v61, %s7240_s28  ;;  %v1620_v11 = vpop.permute.xlu1 %1619 }
 0x21a   : > { %v1964_v8 = vcombine.low %v1618_v22, %v1620_v11  ;;  %v1698_v22 = vld [vmem:[%s8364_s20 + $0x28] sm:$0xff] }
 0x21b   : > { %v1622_v56 = vpop.permute.xlu0 %1621  ;;  %2319 = vrot.lane.b32.xlu1 %v2166_v14, %s7240_s28  ;;  %v1693_v14 = vld [vmem:[%s8364_s20] sm:$0xff] }
 0x21c   : > { %v1978_v26 = vrot.slane %v1964_v8, %v7853_v51 }
 0x21d   : > { %2281 = vrot.lane.b32.xlu0 %v1843_v35, %s7240_s28  ;;  %v1624_v53 = vpop.permute.xlu1 %1623 }
 0x21e   : > { %v1979_v4 = vcombine.low %v1971_v42, %v1978_v26  ;;  %v1980_v45 = vcombine.low %v1622_v56, %v1624_v53 }
 0x21f   : > { %v1602_v41 = vpop.permute.xlu0 %1601  ;;  %2283 = vrot.lane.b32.xlu1 %v1860_v30, %s7240_s28 }
 0x220   : > { %v1988_v55 = vrot.slane %v1980_v45, %v7853_v51 }
 0x221   : > { %2273 = vrot.lane.b32.xlu0 %v1775_v37, %s7240_s28  ;;  %v1604_v60 = vpop.permute.xlu1 %1603 }
 0x222   : > { %v1896_v19 = vcombine.low %v1602_v41, %v1604_v60 }
 0x223   : > { %v1606_v24 = vpop.permute.xlu0 %1605  ;;  %2275 = vrot.lane.b32.xlu1 %v1792_v49, %s7240_s28 }
 0x224   : > { %v1910_v43 = vrot.slane %v1896_v19, %v7853_v51 }
 0x225   : > { %2297 = vrot.lane.b32.xlu0 %v1979_v4, %s7240_s28  ;;  %v1608_v15 = vpop.permute.xlu1 %1607 }
 0x226   : > { %v1912_v18 = vcombine.low %v1606_v24, %v1608_v15  ;;  %v1911_v33 = vcombine.low %v1903_v3, %v1910_v43 }
 0x227   : > { %v1626_v2 = vpop.permute.xlu0 %1625 }
 0x228   : > { %v1920_v1 = vrot.slane %v1912_v18, %v7853_v51  ;;  %v1701_v18 = vld [vmem:[%s8364_s20 + $0x40] sm:$0xff] }
 0x229   : > { %v1628_v9 = vpop.permute.xlu1 %1627 }
 0x22a   : > { %v1981_v57 = vcombine.low %v1626_v2, %v1628_v9 }
 0x22b   : > { %v8352_v59 = vpop.permute.xlu0 %1645 }
 0x22c   : > { %v1995_v62 = vrot.slane %v1981_v57, %v7853_v51 }
 0x22d   : > { %v8354_v47 = vpop.permute.xlu1 %1647 }
 0x22e   : > { %v1996_v61 = vcombine.low %v1988_v55, %v1995_v62  ;;  %v2099_v26 = vcombine.low %v8352_v59, %v8354_v47 }
 0x22f   : > { %v1610_v40 = vpop.permute.xlu0 %1609 }
 0x230   : > { %v2107_v60 = vrot.slane %v2099_v26, %v7853_v51 }
 0x231   : > { %v1612_v58 = vpop.permute.xlu1 %1611 }
 0x232   : > { %v1913_v32 = vcombine.low %v1610_v40, %v1612_v58 }
 0x233   : > { %v8356_v20 = vpop.permute.xlu0 %1629 }
 0x234   : > { %v1927_v48 = vrot.slane %v1913_v32, %v7853_v51 }
 0x235   : > { %v8358_v21 = vpop.permute.xlu1 %1631 }
 0x236   : > { %v1928_v6 = vcombine.low %v1920_v1, %v1927_v48  ;;  %v2031_v4 = vcombine.low %v8356_v20, %v8358_v21 }
 0x237   : > { %v1650_v16 = vpop.permute.xlu0 %1649 }
 0x238   : > { %v2039_v59 = vrot.slane %v2031_v4, %v7853_v51 }
 0x239   : > { %v1652_v23 = vpop.permute.xlu1 %1651 }
 0x23a   : > { %v2100_v5 = vcombine.low %v1650_v16, %v1652_v23 }
 0x23b   : > { %v8366_v54 = vpop.permute.xlu0 %1653 }
 0x23c   : > { %v2114_v41 = vrot.slane %v2100_v5, %v7853_v51  ;;  %v1706_v5 = vld [vmem:[%s8364_s20 + $0x68] sm:$0xff] }
 0x23d   : > { %v8368_v10 = vpop.permute.xlu1 %1655 }
 0x23e   : > { %v2115_v15 = vcombine.low %v2107_v60, %v2114_v41 }
 0x23f   : > { %v2278_v31 = vpop.permute.xlu0 %2277 }
 0x240   : > { %v2370_v28 = vsel %vm2365_vm2, %v1697_v52, %v2278_v31  ;;  %v1705_v31 = vld [vmem:[%s8364_s20 + $0x60] sm:$0xff] }
 0x241   : > { %v2436_v17 = vrot.slane %v2370_v28, 7  ;;  %v2280_v25 = vpop.permute.xlu1 %2279 }
 0x242   : > { %v2371_v11 = vsel %vm2365_vm2, %v1698_v22, %v2280_v25 }
 0x243   : > { %v8377_v34 = vsel %vm1436_vm1, 0.0, %v2436_v17  ;;  %v1634_v12 = vpop.permute.xlu0 %1633  ;;  %v2437_v8 = vrot.slane %v2371_v11, 7 }
 0x244   : > { %2950 = vrot.lane.b32.xlu1 %v8377_v34, %s12791_s27  ;;  %3245 = vrot.lane.b32.xlu0 %v8377_v34, %s12737_s21  ;;  %v2783_v13 = vrot.slane %v8377_v34, 2 }
 0x245   : > { %v1636_v39 = vpop.permute.xlu1 %1635  ;;  %v8422_v36 = vsel %vm1436_vm1, %v2436_v17, %v2437_v8  ;;  %v2543_v47 = vsel %vm1436_vm1, %v2437_v8, 0.0 }
 0x246   : > { %v2032_v42 = vcombine.low %v1634_v12, %v1636_v39  ;;  %v2615_v58 = vrot.slane %v2543_v47, 1  ;;  %v2613_v16 = vrot.slane %v8422_v36, 1  ;;  %v2784_v19 = vrot.slane %v8422_v36, 2 }
 0x247   : > { %v8386_v50 = vpop.permute.xlu0 %1637  ;;  %v2786_v12 = vrot.slane %v2543_v47, 2  ;;  %v2612_v39 = vrot.slane %v8377_v34, 1 }
 0x248   : > { %2289 = vrot.lane.b32.xlu0 %v1911_v33, %s7240_s28  ;;  %2299 = vrot.lane.b32.xlu1 %v1996_v61, %s7240_s28  ;;  %v2046_v2 = vrot.slane %v2032_v42, %v7853_v51  ;;  %v2616_v52 = vsel %vm2599_vm3, %v2613_v16, %v2615_v58  ;;  %v2785_v28 = vsel %vm2770_vm4, %v2783_v13, %v2784_v19 }
 0x249   : > { %v8392_v63 = vpop.permute.xlu1 %1639  ;;  %v2787_v61 = vsel %vm2770_vm4, %v2784_v19, %v2786_v12  ;;  %v2614_v48 = vsel %vm2599_vm3, %v2612_v39, %v2613_v16  ;;  %v2116_v58 = vcombine.low %v8366_v54, %v8368_v10 }
 0x24a   : > { %v2047_v40 = vcombine.low %v2039_v59, %v2046_v2 }
 0x24b   : > { %v2270_v0 = vpop.permute.xlu0 %2269 }
 0x24c   : > { %v2366_v35 = vsel %vm2365_vm2, %v1693_v14, %v2270_v0  ;;  %2291 = vrot.lane.b32.xlu1 %v1928_v6, %s7240_s28 }
 0x24d   : > { %v2430_v46 = vrot.slane %v2366_v35, 7  ;;  %v2272_v38 = vpop.permute.xlu1 %2271 }
 0x24e   : > { %v8400_v7 = vsel %vm2365_vm2, %v1694_v44, %v2272_v38 }
 0x24f   : > { %v2431_v56 = vrot.slane %v8400_v7, 7  ;;  %v8403_v29 = vpop.permute.xlu0 %1657  ;;  %v8406_v30 = vsel %vm1436_vm1, 0.0, %v2430_v46 }
 0x250   : > { %2942 = vrot.lane.b32.xlu0 %v8406_v30, %s12791_s27  ;;  %v2773_v38 = vrot.slane %v8406_v30, 2 }
 0x251   : > { %v8413_v27 = vsel %vm1436_vm1, %v2430_v46, %v2431_v56  ;;  %v8417_v53 = vpop.permute.xlu1 %1659  ;;  %v8486_v1 = vsel %vm1436_vm1, %v2431_v56, 0.0  ;;  %v2602_v56 = vrot.slane %v8406_v30, 1 }
 0x252   : > { %2944 = vrot.lane.b32.xlu1 %v8413_v27, %s12791_s27  ;;  %v2605_v6 = vrot.slane %v8486_v1, 1  ;;  %v2603_v0 = vrot.slane %v8413_v27, 1  ;;  %v2774_v35 = vrot.slane %v8413_v27, 2  ;;  %v2117_v59 = vcombine.low %v8403_v29, %v8417_v53 }
 0x253   : > { %v8419_v37 = vpop.permute.xlu0 %1677  ;;  %v2124_v53 = vrot.slane %v2116_v58, %v7853_v51 }
 0x254   : > { %3247 = vrot.lane.b32.xlu0 %v8422_v36, %s12737_s21  ;;  %v8501_v46 = vsel %vm2599_vm3, %v2603_v0, %v2605_v6  ;;  %v2775_v8 = vsel %vm2770_vm4, %v2773_v38, %v2774_v35  ;;  %v2604_v41 = vsel %vm2599_vm3, %v2602_v56, %v2603_v0 }
 0x255   : > { %v8436_v24 = vpop.permute.xlu1 %1679 }
 0x256   : > { %v2235_v13 = vcombine.low %v8419_v37, %v8436_v24 }
 0x257   : > { %v8429_v49 = vpop.permute.xlu0 %1641 }
 0x258   : > { %2952 = vrot.lane.b32.xlu0 %v8422_v36, %s12791_s27 }
 0x259   : > { %v8444_v20 = vpop.permute.xlu1 %1643 }
 0x25b   : > { %v8439_v9 = vpop.permute.xlu0 %1661 }
 0x25c   : > { %2313 = vrot.lane.b32.xlu0 %v2115_v15, %s7240_s28  ;;  %v1702_v15 = vld [vmem:[%s8364_s20 + $0x48] sm:$0xff] }
 0x25d   : > { %v8455_v57 = vpop.permute.xlu1 %1663 }
 0x25f   : > { %v8446_v21 = vpop.permute.xlu0 %1681 }
 0x260   : > { %2305 = vrot.lane.b32.xlu0 %v2047_v40, %s7240_s28 }
 0x261   : > { %v8462_v43 = vpop.permute.xlu1 %1683 }
 0x262   : > { %v2236_v10 = vcombine.low %v8446_v21, %v8462_v43  ;;  %v2243_v21 = vrot.slane %v2235_v13, %v7853_v51  ;;  %v2167_v43 = vcombine.low %v8439_v9, %v8455_v57  ;;  %v2049_v9 = vcombine.low %v8429_v49, %v8444_v20 }
 0x263   : > { %v8450_v23 = vpop.permute.xlu0 %1685 }
 0x264   : > { %2689 = vrot.lane.b32.xlu0 %v2616_v52, %s12709_s12 }
 0x265   : > { %v8477_v55 = vpop.permute.xlu1 %1687 }
 0x267   : > { %v2294_v45 = vpop.permute.xlu0 %2293 }
 0x268   : > { %v2378_v17 = vsel %vm2365_vm2, %v1705_v31, %v2294_v45  ;;  %2858 = vrot.lane.b32.xlu0 %v2785_v28, %s12707_s18  ;;  %v2250_v45 = vrot.slane %v2236_v10, %v7853_v51 }
 0x269   : > { %v2448_v25 = vrot.slane %v2378_v17, 7  ;;  %v2296_v44 = vpop.permute.xlu1 %2295 }
 0x26a   : > { %v2379_v42 = vsel %vm2365_vm2, %v1706_v5, %v2296_v44  ;;  %v2251_v37 = vcombine.low %v2243_v21, %v2250_v45 }
 0x26b   : > { %v8465_v62 = vsel %vm1436_vm1, 0.0, %v2448_v25  ;;  %v8467_v32 = vpop.permute.xlu0 %1665  ;;  %v2449_v4 = vrot.slane %v2379_v42, 7 }
 0x26c   : > { %12852 = vst [vmem:[#allocation7_spill] sm:$0xff] %v8465_v62  ;;  %3340 = vrot.lane.b32.xlu0 %v2616_v52, %s12705_s25  ;;  %3261 = vrot.lane.b32.xlu1 %v8465_v62, %s12737_s21  ;;  %v2632_v44 = vrot.slane %v8465_v62, 1 }
 0x26d   : > { %v1668_v7 = vpop.permute.xlu1 %1667  ;;  %v8528_v40 = vsel %vm1436_vm1, %v2448_v25, %v2449_v4  ;;  %v2776_v25 = vrot.slane %v8486_v1, 2  ;;  %v2048_v1 = vcombine.low %v8386_v50, %v8392_v63 }
 0x26e   : > { %12854 = vst [vmem:[#allocation14_spill] sm:$0xff] %v8528_v40  ;;  %v2804_v38 = vrot.slane %v8528_v40, 2 }
 0x26f   : > { %v8472_v3 = vpop.permute.xlu0 %1669  ;;  %v2777_v12 = vsel %vm2770_vm4, %v2774_v35, %v2776_v25  ;;  %v2056_v20 = vrot.slane %v2048_v1, %v7853_v51 }
 0x270   : > { %3054 = vrot.lane.b32.xlu0 %v2616_v52, %s12701_s26  ;;  %2966 = vrot.lane.b32.xlu1 %v8465_v62, %s12791_s27  ;;  %v2131_v52 = vrot.slane %v2117_v59, %v7853_v51 }
 0x271   : > { %v8512_v26 = vpop.permute.xlu1 %1671 }
 0x272   : > { %v2132_v54 = vcombine.low %v2124_v53, %v2131_v52 }
 0x273   : > { %v2286_v33 = vpop.permute.xlu0 %2285 }
 0x274   : > { %v2374_v22 = vsel %vm2365_vm2, %v1701_v18, %v2286_v33  ;;  %3433 = vrot.lane.b32.xlu0 %v2787_v61, %s12699_s29  ;;  %2687 = vrot.lane.b32.xlu1 %v2614_v48, %s12709_s12  ;;  %v2547_v18 = vsel %vm1436_vm1, %v2449_v4, 0.0  ;;  %v2803_v4 = vrot.slane %v8465_v62, 2 }
 0x275   : > { %v2442_v14 = vrot.slane %v2374_v22, 7  ;;  %v2288_v2 = vpop.permute.xlu1 %2287  ;;  %v2063_v22 = vrot.slane %v2049_v9, %v7853_v51  ;;  %v2806_v35 = vrot.slane %v2547_v18, 2 }
 0x276   : > { %v8533_v16 = vsel %vm2365_vm2, %v1702_v15, %v2288_v2  ;;  %v2805_v2 = vsel %vm2770_vm4, %v2803_v4, %v2804_v38 }
 0x277   : > { %v8494_v11 = vsel %vm1436_vm1, 0.0, %v2442_v14  ;;  %v8516_v60 = vpop.permute.xlu0 %1689  ;;  %v2443_v29 = vrot.slane %v8533_v16, 7  ;;  %v2064_v50 = vcombine.low %v2056_v20, %v2063_v22  ;;  %v2807_v56 = vsel %vm2770_vm4, %v2804_v38, %v2806_v35  ;;  %v1709_v16 = vld [vmem:[%s8364_s20 + $0x80] sm:$0xff] }
 0x278   : > { %12853 = vst [vmem:[#allocation10_spill] sm:$0xff] %v8494_v11  ;;  %3253 = vrot.lane.b32.xlu0 %v8494_v11, %s12737_s21  ;;  %2860 = vrot.lane.b32.xlu1 %v2787_v61, %s12707_s18  ;;  %v2622_v1 = vrot.slane %v8494_v11, 1 }
 0x279   : > { %v8550_v31 = vsel %vm1436_vm1, %v2442_v14, %v2443_v29  ;;  %v8570_v39 = vpop.permute.xlu1 %1691  ;;  %v2545_v5 = vsel %vm1436_vm1, %v2443_v29, 0.0 }
 0x27a   : > { %12855 = vst [vmem:[#allocation15_spill] sm:$0xff] %v8550_v31  ;;  %v2625_v15 = vrot.slane %v2545_v5, 1  ;;  %v2623_v59 = vrot.slane %v8550_v31, 1  ;;  %v2253_v45 = vcombine.low %v8516_v60, %v8570_v39  ;;  %v2794_v21 = vrot.slane %v8550_v31, 2 }
 0x27b   : > { %v8525_v47 = vpop.permute.xlu0 %1673 }
 0x27c   : > { %3338 = vrot.lane.b32.xlu1 %v2614_v48, %s12705_s25  ;;  %2681 = vrot.lane.b32.xlu0 %v8501_v46, %s12709_s12  ;;  %v2626_v29 = vsel %vm2599_vm3, %v2623_v59, %v2625_v15  ;;  %v2267_v60 = vrot.slane %v2253_v45, %v7853_v51  ;;  %v1718_v15 = vld [vmem:[%s8364_s20 + $0xc8] sm:$0xff] }
 0x27d   : > { %v8585_v14 = vpop.permute.xlu1 %1675 }
 0x27f   : > { %v8541_v19 = vpop.permute.xlu0 %2309 }
 0x280   : > { %3052 = vrot.lane.b32.xlu1 %v2614_v48, %s12701_s26  ;;  %2850 = vrot.lane.b32.xlu0 %v2775_v8, %s12707_s18  ;;  %v2633_v48 = vrot.slane %v8528_v40, 1 }
 0x281   : > { %v8593_v63 = vpop.permute.xlu1 %2311 }
 0x283   : > { %v2302_v17 = vpop.permute.xlu0 %2301 }
 0x284   : > { %3431 = vrot.lane.b32.xlu1 %v2785_v28, %s12699_s29  ;;  %3044 = vrot.lane.b32.xlu0 %v2604_v41, %s12701_s26  ;;  %v2382_v53 = vsel %vm2365_vm2, %v1709_v16, %v2302_v17  ;;  %v2796_v17 = vrot.slane %v2545_v5, 2  ;;  %v1721_v5 = vld [vmem:[%s8364_s20 + $0xe0] sm:$0xff] }
 0x285   : > { %v2454_v10 = vrot.slane %v2382_v53, 7 }
 0x287   : > { %v8572_v33 = vpop.permute.xlu0 %2325  ;;  %v8641_v25 = vsel %vm1436_vm1, 0.0, %v2454_v10 }
 0x288   : > { %3153 = vrot.lane.b32.xlu1 %v2785_v28, %s12703_s30  ;;  %3145 = vrot.lane.b32.xlu0 %v2775_v8, %s12703_s30  ;;  %v2168_v28 = vcombine.low %v8467_v32, %v1668_v7  ;;  %v2175_v32 = vrot.slane %v2167_v43, %v7853_v51  ;;  %v2304_v7 = vpop.permute.xlu1 %2303  ;;  %12856 = vst [vmem:[#allocation8_spill] sm:$0xff] %v8641_v25 }
 0x289   : > { %v2252_v43 = vcombine.low %v8450_v23, %v8477_v55  ;;  %v1710_v23 = vld [vmem:[%s8364_s20 + $0x88] sm:$0xff] }
 0x28a   : > { %v2182_v24 = vrot.slane %v2168_v28, %v7853_v51 }
 0x28b   : > { %v8587_v6 = vpop.permute.xlu0 %2317 }
 0x28c   : > { %3155 = vrot.lane.b32.xlu1 %v2787_v61, %s12703_s30  ;;  %3263 = vrot.lane.b32.xlu0 %v8528_v40, %s12737_s21  ;;  %v2183_v57 = vcombine.low %v2175_v32, %v2182_v24  ;;  %v2635_v61 = vrot.slane %v2547_v18, 1  ;;  %v2260_v32 = vrot.slane %v2252_v43, %v7853_v51  ;;  %v1714_v18 = vld [vmem:[%s8364_s20 + $0xa8] sm:$0xff] }
 0x28e   : > { %v2636_v49 = vsel %vm2599_vm3, %v2633_v48, %v2635_v61  ;;  %v2268_v55 = vcombine.low %v2260_v32, %v2267_v60  ;;  %v2383_v61 = vsel %vm2365_vm2, %v1710_v23, %v2304_v7 }
 0x28f   : > { %v8595_v0 = vpop.permute.xlu0 %2281  ;;  %v2455_v20 = vrot.slane %v2383_v61, 7 }
 0x290   : > { %2958 = vrot.lane.b32.xlu1 %v8494_v11, %s12791_s27  ;;  %2968 = vrot.lane.b32.xlu0 %v8528_v40, %s12791_s27 }
 0x293   : > { %v8604_v8 = vpop.permute.xlu0 %2273 }
 0x294   : > { %2315 = vrot.lane.b32.xlu1 %v2132_v54, %s7240_s28  ;;  %3255 = vrot.lane.b32.xlu0 %v8550_v31, %s12737_s21 }
 0x297   : > { %v8612_v42 = vpop.permute.xlu0 %2297 }
 0x298   : > { %2679 = vrot.lane.b32.xlu1 %v2604_v41, %s12709_s12  ;;  %2960 = vrot.lane.b32.xlu0 %v8550_v31, %s12791_s27  ;;  %v8610_v41 = vpop.permute.xlu1 %2327 }
 0x29c   : > { %2852 = vrot.lane.b32.xlu1 %v2777_v12, %s12707_s18  ;;  %2329 = vrot.lane.b32.xlu0 %v2251_v37, %s7240_s28  ;;  %v8624_v52 = vpop.permute.xlu1 %2319 }
 0x29d   : > { %v2391_v43 = vsel %vm2365_vm2, %v1718_v15, %v8624_v52 }
 0x2a0   : > { %3046 = vrot.lane.b32.xlu1 %v8501_v46, %s12701_s26  ;;  %2321 = vrot.lane.b32.xlu0 %v2183_v57, %s7240_s28  ;;  %v2634_v46 = vsel %vm2599_vm3, %v2632_v44, %v2633_v48  ;;  %v8632_v13 = vpop.permute.xlu1 %2283  ;;  %v1713_v57 = vld [vmem:[%s8364_s20 + $0xa0] sm:$0xff]  ;;  %v2387_v48 = vsel %vm2365_vm2, %v1714_v18, %v8593_v63 }
 0x2a1   : > { %v2461_v44 = vrot.slane %v2387_v48, 7 }
 0x2a4   : > { %3147 = vrot.lane.b32.xlu1 %v2777_v12, %s12703_s30  ;;  %2705 = vrot.lane.b32.xlu0 %v2636_v49, %s12709_s12  ;;  %v8650_v37 = vpop.permute.xlu1 %2275  ;;  %v2797_v12 = vsel %vm2770_vm4, %v2794_v21, %v2796_v17  ;;  %v1717_v17 = vld [vmem:[%s8364_s20 + $0xc0] sm:$0xff] }
 0x2a8   : > { %2307 = vrot.lane.b32.xlu1 %v2064_v50, %s7240_s28  ;;  %3356 = vrot.lane.b32.xlu0 %v2636_v49, %s12705_s25  ;;  %v2624_v50 = vsel %vm2599_vm3, %v2622_v1, %v2623_v59 }
 0x2ac   : > { %2703 = vrot.lane.b32.xlu1 %v2634_v46, %s12709_s12  ;;  %3070 = vrot.lane.b32.xlu0 %v2636_v49, %s12701_s26  ;;  %v8676_v49 = vsel %vm2365_vm2, %v1713_v57, %v8541_v19  ;;  %v8688_v19 = vsel %vm1436_vm1, %v2454_v10, %v2455_v20  ;;  %v8714_v10 = vsel %vm1436_vm1, %v2455_v20, 0.0 }
 0x2ad   : > { %v2460_v63 = vrot.slane %v8676_v49, 7  ;;  %12858 = vst [vmem:[#allocation16_spill] sm:$0xff] %v8688_v19  ;;  %v2645_v23 = vrot.slane %v8714_v10, 1  ;;  %v2643_v57 = vrot.slane %v8688_v19, 1 }
 0x2af   : > { %v8691_v7 = vsel %vm1436_vm1, %v2460_v63, %v2461_v44 }
 0x2b0   : > { %3354 = vrot.lane.b32.xlu1 %v2634_v46, %s12705_s25  ;;  %3449 = vrot.lane.b32.xlu0 %v2807_v56, %s12699_s29  ;;  %v2653_v53 = vrot.slane %v8691_v7, 1 }
 0x2b4   : > { %3068 = vrot.lane.b32.xlu1 %v2634_v46, %s12701_s26  ;;  %3171 = vrot.lane.b32.xlu0 %v2807_v56, %s12703_s30  ;;  %v1722_v46 = vld [vmem:[%s8364_s20 + $0xe8] sm:$0xff] }
 0x2b5   : > { %v2395_v4 = vsel %vm2365_vm2, %v1722_v46, %v8610_v41  ;;  %v2793_v41 = vrot.slane %v8494_v11, 2  ;;  %v2184_v46 = vcombine.low %v8472_v3, %v8512_v26 }
 0x2b6   : > { %v8619_v58 = vpop.permute.xlu0 %3245  ;;  %v8661_v39 = vpop.permute.xlu1 %2950  ;;  %v2473_v45 = vrot.slane %v2395_v4, 7 }
 0x2b7   : > { %v2795_v32 = vsel %vm2770_vm4, %v2793_v41, %v2794_v21  ;;  %v2467_v21 = vrot.slane %v2391_v43, 7  ;;  %v1695_v43 = vld [vmem:[%s8364_s20 + $0x10] sm:$0xff] }
 0x2b8   : > { %3447 = vrot.lane.b32.xlu1 %v2805_v2, %s12699_s29  ;;  %2876 = vrot.lane.b32.xlu0 %v2807_v56, %s12707_s18  ;;  %v8694_v56 = vsel %vm1436_vm1, %v2461_v44, 0.0  ;;  %v8744_v61 = vsel %vm1436_vm1, %v2473_v45, 0.0 }
 0x2b9   : > { %v2655_v16 = vrot.slane %v8694_v56, 1  ;;  %12860 = vst [vmem:[#allocation9_spill] sm:$0xff] %v8744_v61  ;;  %v2675_v20 = vrot.slane %v8744_v61, 1 }
 0x2ba   : > { %v8630_v54 = vpop.permute.xlu0 %2289  ;;  %v8679_v35 = vpop.permute.xlu1 %2299 }
 0x2bb   : > { %v8735_v18 = vsel %vm2599_vm3, %v2653_v53, %v2655_v16 }
 0x2bc   : > { %3169 = vrot.lane.b32.xlu1 %v2805_v2, %s12703_s30  ;;  %2697 = vrot.lane.b32.xlu0 %v2626_v29, %s12709_s12 }
 0x2c0   : > { %2874 = vrot.lane.b32.xlu1 %v2805_v2, %s12707_s18  ;;  %3348 = vrot.lane.b32.xlu0 %v2626_v29, %s12705_s25  ;;  %v8703_v2 = vpop.permute.xlu1 %2291 }
 0x2c2   : > { %v8638_v28 = vpop.permute.xlu0 %2942 }
 0x2c4   : > { %3269 = vrot.lane.b32.xlu1 %v8641_v25, %s12737_s21  ;;  %3062 = vrot.lane.b32.xlu0 %v2626_v29, %s12701_s26  ;;  %v8710_v29 = vsel %vm2365_vm2, %v1721_v5, %v8572_v33  ;;  %v8724_v60 = vpop.permute.xlu1 %2944  ;;  %v1699_v5 = vld [vmem:[%s8364_s20 + $0x30] sm:$0xff] }
 0x2c5   : > { %v12673_v33 = vrot.slane %v8710_v29, 7  ;;  %v2372_v41 = vsel %vm2365_vm2, %v1699_v5, %v8595_v0  ;;  %v2368_v0 = vsel %vm2365_vm2, %v1695_v43, %v8604_v8 }
 0x2c6   : > { %v8652_v24 = vpop.permute.xlu0 %3247 }
 0x2c7   : > { %12857 = vst [vmem:[#allocation11_spill] sm:$0xff] %v8652_v24  ;;  %v8741_v52 = vsel %vm1436_vm1, %v12673_v33, %v2473_v45 }
 0x2c8   : > { %2974 = vrot.lane.b32.xlu1 %v8641_v25, %s12791_s27  ;;  %3441 = vrot.lane.b32.xlu0 %v2797_v12, %s12699_s29  ;;  %12859 = vst [vmem:[#allocation17_spill] sm:$0xff] %v8741_v52  ;;  %v12671_v44 = vrot.slane %v8741_v52, 1  ;;  %v12876_v62 = vrot.slane %v8741_v52, 1 }
 0x2ca   : > { %v8663_v9 = vpop.permute.xlu0 %2952  ;;  %v8784_v16 = vsel %vm2599_vm3, %v12671_v44, %v2675_v20  ;;  %v2439_v44 = vrot.slane %v2372_v41, 7  ;;  %v2642_v41 = vrot.slane %v8641_v25, 1 }
 0x2cb   : > { %12866 = vst [vmem:[#allocation23_spill] sm:$0xff] %v8784_v16 }
 0x2cc   : > { %3163 = vrot.lane.b32.xlu0 %v2797_v12, %s12703_s30  ;;  %2331 = vrot.lane.b32.xlu1 %v2268_v55, %s7240_s28  ;;  %v8732_v55 = vsel %vm2365_vm2, %v1717_v17, %v8587_v6  ;;  %v2185_v6 = vcombine.low %v8525_v47, %v8585_v14  ;;  %v8769_v14 = vsel %vm1436_vm1, %v2467_v21, 0.0  ;;  %v2192_v17 = vrot.slane %v2184_v46, %v7853_v51 }
 0x2cd   : > { %v12672_v48 = vrot.slane %v8732_v55, 7  ;;  %12864 = vst [vmem:[#allocation13_spill] sm:$0xff] %v8769_v14  ;;  %v2665_v26 = vrot.slane %v8769_v14, 1 }
 0x2ce   : > { %v8672_v22 = vpop.permute.xlu0 %2313  ;;  %v2199_v4 = vrot.slane %v2185_v6, %v7853_v51 }
 0x2cf   : > { %v8766_v47 = vsel %vm1436_vm1, %v12672_v48, %v2467_v21  ;;  %v8795_v21 = vsel %vm1436_vm1, 0.0, %v2460_v63 }
 0x2d0   : > { %2868 = vrot.lane.b32.xlu0 %v2797_v12, %s12707_s18  ;;  %2695 = vrot.lane.b32.xlu1 %v2624_v50, %s12709_s12  ;;  %12863 = vst [vmem:[#allocation20_spill] sm:$0xff] %v8766_v47  ;;  %v2663_v45 = vrot.slane %v8766_v47, 1  ;;  %v2652_v63 = vrot.slane %v8795_v21, 1 }
 0x2d2   : > { %v8685_v38 = vpop.permute.xlu0 %2305  ;;  %v8802_v51 = vsel %vm2599_vm3, %v2663_v45, %v2665_v26  ;;  %v2433_v26 = vrot.slane %v2368_v0, 7 }
 0x2d3   : > { %12868 = vst [vmem:[#allocation25_spill] sm:$0xff] %v8802_v51 }
 0x2d4   : > { %3346 = vrot.lane.b32.xlu1 %v2624_v50, %s12705_s25  ;;  %3271 = vrot.lane.b32.xlu0 %v8688_v19, %s12737_s21  ;;  %v8833_v0 = vsel %vm1436_vm1, 0.0, %v2433_v26 }
 0x2d6   : > { %v8705_v59 = vpop.permute.xlu0 %2689 }
 0x2d8   : > { %3060 = vrot.lane.b32.xlu1 %v2624_v50, %s12701_s26  ;;  %2976 = vrot.lane.b32.xlu0 %v8688_v19, %s12791_s27  ;;  %v8758_v50 = vsel %vm2599_vm3, %v2643_v57, %v2645_v23  ;;  %v2200_v23 = vcombine.low %v2192_v17, %v2199_v4  ;;  %v8816_v4 = vsel %vm1436_vm1, 0.0, %v2439_v44  ;;  %v8819_v17 = vsel %vm2599_vm3, %v2652_v63, %v2653_v53 }
 0x2d9   : > { %12870 = vst [vmem:[#allocation27_spill] sm:$0xff] %v8816_v4  ;;  %v2644_v53 = vsel %vm2599_vm3, %v2642_v41, %v2643_v57  ;;  %v12872_v57 = vrot.slane %v8710_v29, 7  ;;  %v2617_v31 = vrot.slane %v8816_v4, 1 }
 0x2da   : > { %v8726_v12 = vpop.permute.xlu0 %2858 }
 0x2db   : > { %v8855_v41 = vsel %vm1436_vm1, 0.0, %v12872_v57 }
 0x2dc   : > { %3439 = vrot.lane.b32.xlu1 %v2795_v32, %s12699_s29  ;;  %2721 = vrot.lane.b32.xlu0 %v8735_v18, %s12709_s12  ;;  %12873 = vst [vmem:[#allocation29_spill] sm:$0xff] %v8855_v41 }
 0x2de   : > { %v8752_v1 = vpop.permute.xlu0 %3340  ;;  %v8754_v49 = vpop.permute.xlu1 %3261 }
 0x2df   : > { %12861 = vst [vmem:[#allocation12_spill] sm:$0xff] %v8752_v1  ;;  %12862 = vst [vmem:[#allocation18_spill] sm:$0xff] %v8754_v49 }
 0x2e0   : > { %3161 = vrot.lane.b32.xlu1 %v2795_v32, %s12703_s30  ;;  %2713 = vrot.lane.b32.xlu0 %v8758_v50, %s12709_s12 }
 0x2e2   : > { %v8776_v15 = vpop.permute.xlu0 %3054  ;;  %v8778_v3 = vpop.permute.xlu1 %2966 }
 0x2e3   : > { %12865 = vst [vmem:[#allocation22_spill] sm:$0xff] %v8778_v3 }
 0x2e4   : > { %2866 = vrot.lane.b32.xlu1 %v2795_v32, %s12707_s18  ;;  %2737 = vrot.lane.b32.xlu0 %v8784_v16, %s12709_s12  ;;  %v1700_v32 = vld [vmem:[%s8364_s20 + $0x38] sm:$0xff] }
 0x2e5   : > { %v2373_v8 = vsel %vm2365_vm2, %v1700_v32, %v8632_v13  ;;  %v1696_v13 = vld [vmem:[%s8364_s20 + $0x18] sm:$0xff] }
 0x2e6   : > { %v8797_v6 = vpop.permute.xlu0 %3433  ;;  %v8799_v20 = vpop.permute.xlu1 %2687  ;;  %v2440_v48 = vrot.slane %v2373_v8, 7  ;;  %v2369_v8 = vsel %vm2365_vm2, %v1696_v13, %v8650_v37  ;;  %v2672_v37 = vrot.slane %v8855_v41, 1 }
 0x2e7   : > { %12867 = vst [vmem:[#allocation24_spill] sm:$0xff] %v8797_v6  ;;  %v2434_v40 = vrot.slane %v2369_v8, 7 }
 0x2e8   : > { %2323 = vrot.lane.b32.xlu1 %v2200_v23, %s7240_s28  ;;  %2729 = vrot.lane.b32.xlu0 %v8802_v51, %s12709_s12  ;;  %v8845_v33 = vsel %vm1436_vm1, %v2439_v44, %v2440_v48  ;;  %v12874_v44 = vrot.slane %v8732_v55, 7  ;;  %v8877_v8 = vsel %vm2599_vm3, %v2672_v37, %v12876_v62  ;;  %v2544_v41 = vsel %vm1436_vm1, %v2440_v48, 0.0  ;;  %v1707_v48 = vld [vmem:[%s8364_s20 + $0x70] sm:$0xff] }
 0x2e9   : > { %12871 = vst [vmem:[#allocation28_spill] sm:$0xff] %v8845_v33  ;;  %12877 = vst [vmem:[#allocation31_spill] sm:$0xff] %v8877_v8  ;;  %v2620_v52 = vrot.slane %v2544_v41, 1  ;;  %v2789_v49 = vrot.slane %v8845_v33, 2  ;;  %v2791_v14 = vrot.slane %v2544_v41, 2  ;;  %v2542_v51 = vsel %vm1436_vm1, %v2434_v40, 0.0 }
 0x2ea   : > { %v8811_v46 = vpop.permute.xlu0 %3253  ;;  %v8813_v5 = vpop.permute.xlu1 %2860  ;;  %v8868_v13 = vsel %vm1436_vm1, 0.0, %v12874_v44  ;;  %v2610_v47 = vrot.slane %v2542_v51, 1 }
 0x2eb   : > { %12869 = vst [vmem:[#allocation26_spill] sm:$0xff] %v8811_v46  ;;  %12875 = vst [vmem:[#allocation30_spill] sm:$0xff] %v8868_v13  ;;  %v2662_v55 = vrot.slane %v8868_v13, 1 }
 0x2ec   : > { %2719 = vrot.lane.b32.xlu1 %v8819_v17, %s12709_s12  ;;  %3249 = vrot.lane.b32.xlu0 %v8816_v4, %s12737_s21 }
 0x2ed   : > { %v8893_v62 = vsel %vm2599_vm3, %v2662_v55, %v2663_v45  ;;  %v8909_v45 = vsel %vm2365_vm2, %v1707_v48, %v8612_v42  ;;  %v2788_v55 = vrot.slane %v8816_v4, 2 }
 0x2ee   : > { %v8828_v43 = vpop.permute.xlu0 %2681  ;;  %v8830_v23 = vpop.permute.xlu1 %3338  ;;  %12879 = vst [vmem:[#allocation33_spill] sm:$0xff] %v8893_v62 }
 0x2f0   : > { %2711 = vrot.lane.b32.xlu1 %v2644_v53, %s12709_s12  ;;  %3241 = vrot.lane.b32.xlu0 %v8833_v0, %s12737_s21 }
 0x2f2   : > { %v8840_v32 = vpop.permute.xlu0 %2850  ;;  %v8842_v63 = vpop.permute.xlu1 %3052 }
 0x2f4   : > { %3362 = vrot.lane.b32.xlu1 %v2644_v53, %s12705_s25  ;;  %3251 = vrot.lane.b32.xlu0 %v8845_v33, %s12737_s21 }
 0x2f6   : > { %v8857_v61 = vpop.permute.xlu0 %3044  ;;  %v8859_v16 = vpop.permute.xlu1 %3431 }
 0x2f8   : > { %3076 = vrot.lane.b32.xlu1 %v2644_v53, %s12701_s26  ;;  %2956 = vrot.lane.b32.xlu0 %v8845_v33, %s12791_s27  ;;  %v8880_v53 = vsel %vm1436_vm1, %v2433_v26, %v2434_v40  ;;  %v2618_v26 = vrot.slane %v8845_v33, 1 }
 0x2f9   : > { %v12698_v41 = vrot.slane %v8880_v53, 1 }
 0x2fa   : > { %v8870_v29 = vpop.permute.xlu0 %3145  ;;  %v8872_v57 = vpop.permute.xlu1 %3153  ;;  %v2621_v13 = vsel %vm2599_vm3, %v2618_v26, %v2620_v52  ;;  %v2790_v52 = vsel %vm2770_vm4, %v2788_v55, %v2789_v49  ;;  %v2619_v33 = vsel %vm2599_vm3, %v2617_v31, %v2618_v26  ;;  %v2778_v31 = vrot.slane %v8833_v0, 2 }
 0x2fc   : > { %2735 = vrot.lane.b32.xlu1 %v8877_v8, %s12709_s12  ;;  %3243 = vrot.lane.b32.xlu0 %v8880_v53, %s12737_s21 }
 0x2fe   : > { %v8888_v44 = vpop.permute.xlu0 %3263  ;;  %v8890_v3 = vpop.permute.xlu1 %3155 }
 0x2ff   : > { %12878 = vst [vmem:[#allocation32_spill] sm:$0xff] %v8888_v44 }
 0x300   : > { %2727 = vrot.lane.b32.xlu1 %v8893_v62, %s12709_s12  ;;  %2948 = vrot.lane.b32.xlu0 %v8880_v53, %s12791_s27 }
 0x302   : > { %v8901_v37 = vpop.permute.xlu0 %2968  ;;  %v8903_v8 = vpop.permute.xlu1 %2958 }
 0x303   : > { %12880 = vst [vmem:[#allocation34_spill] sm:$0xff] %v8901_v37  ;;  %12881 = vst [vmem:[#allocation35_spill] sm:$0xff] %v8903_v8  ;;  %v2451_v37 = vrot.slane %v8909_v45, 7 }
 0x304   : > { %2954 = vrot.lane.b32.xlu1 %v8816_v4, %s12791_s27  ;;  %2693 = vrot.lane.b32.xlu0 %v2621_v13, %s12709_s12  ;;  %v2611_v4 = vsel %vm2599_vm3, %v12698_v41, %v2610_v47 }
 0x305   : > { %v8929_v11 = vsel %vm1436_vm1, 0.0, %v2451_v37 }
 0x306   : > { %v8915_v62 = vpop.permute.xlu0 %3255  ;;  %v8917_v44 = vpop.permute.xlu1 %2315  ;;  %12884 = vst [vmem:[#allocation38_spill] sm:$0xff] %v8929_v11 }
 0x307   : > { %12882 = vst [vmem:[#allocation36_spill] sm:$0xff] %v8915_v62  ;;  %v2779_v62 = vrot.slane %v8880_v53, 2 }
 0x308   : > { %2946 = vrot.lane.b32.xlu1 %v8833_v0, %s12791_s27  ;;  %2862 = vrot.lane.b32.xlu0 %v2790_v52, %s12707_s18 }
 0x309   : > { %v8968_v26 = vsel %vm2770_vm4, %v2778_v31, %v2779_v62  ;;  %v2781_v31 = vrot.slane %v2542_v51, 2 }
 0x30a   : > { %v8924_v42 = vpop.permute.xlu0 %2960  ;;  %v8926_v48 = vpop.permute.xlu1 %2679 }
 0x30b   : > { %12883 = vst [vmem:[#allocation37_spill] sm:$0xff] %v8924_v42  ;;  %v8994_v24 = vsel %vm2770_vm4, %v2779_v62, %v2781_v31 }
 0x30c   : > { %3265 = vrot.lane.b32.xlu1 %v8929_v11, %s12737_s21  ;;  %3344 = vrot.lane.b32.xlu0 %v2621_v13, %s12705_s25 }
 0x30e   : > { %v8934_v45 = vpop.permute.xlu0 %2329  ;;  %v8936_v55 = vpop.permute.xlu1 %2852 }
 0x30f   : > { %12885 = vst [vmem:[#allocation39_spill] sm:$0xff] %v8934_v45  ;;  %v2792_v45 = vsel %vm2770_vm4, %v2789_v49, %v2791_v14 }
 0x310   : > { %2970 = vrot.lane.b32.xlu1 %v8929_v11, %s12791_s27  ;;  %3058 = vrot.lane.b32.xlu0 %v2621_v13, %s12701_s26 }
 0x312   : > { %v8943_v42 = vpop.permute.xlu0 %2321  ;;  %v8945_v8 = vpop.permute.xlu1 %3046 }
 0x314   : > { %2691 = vrot.lane.b32.xlu1 %v2619_v33, %s12709_s12  ;;  %3437 = vrot.lane.b32.xlu0 %v2792_v45, %s12699_s29 }
 0x316   : > { %v8952_v40 = vpop.permute.xlu0 %2705  ;;  %v8954_v13 = vpop.permute.xlu1 %3147 }
 0x317   : > { %12886 = vst [vmem:[#allocation40_spill] sm:$0xff] %v8952_v40  ;;  %v1708_v40 = vld [vmem:[%s8364_s20 + $0x78] sm:$0xff] }
 0x318   : > { %2864 = vrot.lane.b32.xlu1 %v2792_v45, %s12707_s18  ;;  %2685 = vrot.lane.b32.xlu0 %v2611_v4, %s12709_s12  ;;  %v2381_v46 = vsel %vm2365_vm2, %v1708_v40, %v8679_v35  ;;  %v1704_v35 = vld [vmem:[%s8364_s20 + $0x58] sm:$0xff]  ;;  %s12912_s12 = smov 56  }
 0x31a   : > { %v8963_v49 = vpop.permute.xlu0 %3356  ;;  %v8965_v14 = vpop.permute.xlu1 %2307 }
 0x31b   : > { %12887 = vst [vmem:[#allocation41_spill] sm:$0xff] %v8963_v49 }
 0x31c   : > { %2854 = vrot.lane.b32.xlu0 %v8968_v26, %s12707_s18  ;;  %3342 = vrot.lane.b32.xlu1 %v2619_v33, %s12705_s25  ;;  %s12915_s18 = smov 32  }
 0x31e   : > { %v8973_v47 = vpop.permute.xlu0 %3070  ;;  %v8975_v41 = vpop.permute.xlu1 %2703 }
 0x31f   : > { %12888 = vst [vmem:[#allocation42_spill] sm:$0xff] %v8973_v47  ;;  %12889 = vst [vmem:[#allocation43_spill] sm:$0xff] %v8975_v41  ;;  %v1703_v47 = vld [vmem:[%s8364_s20 + $0x50] sm:$0xff] }
 0x320   : > { %3336 = vrot.lane.b32.xlu0 %v2611_v4, %s12705_s25  ;;  %3056 = vrot.lane.b32.xlu1 %v2619_v33, %s12701_s26  ;;  %v2452_v33 = vrot.slane %v2381_v46, 7  ;;  %v9011_v46 = vsel %vm2365_vm2, %v1704_v35, %v8703_v2  ;;  %v2559_v35 = vld [vmem:[%s12645_s4 + $0x10] sm:$0xff]  ;;  %s12918_s25 = smov 64  }
 0x322   : > { %v8980_v49 = vpop.permute.xlu0 %3449  ;;  %v8982_v6 = vpop.permute.xlu1 %3354 }
 0x323   : > { %12890 = vst [vmem:[#allocation44_spill] sm:$0xff] %v8980_v49  ;;  %12891 = vst [vmem:[#allocation45_spill] sm:$0xff] %v8982_v6  ;;  %v2376_v49 = vsel %vm2365_vm2, %v1703_v47, %v8630_v54  ;;  %v12905_v6 = vrot.slane %v8880_v53, 1 }
 0x324   : > { %3050 = vrot.lane.b32.xlu0 %v2611_v4, %s12701_s26  ;;  %3435 = vrot.lane.b32.xlu1 %v2790_v52, %s12699_s29  ;;  %v2445_v40 = vrot.slane %v2376_v49, 7  ;;  %v2446_v49 = vrot.slane %v9011_v46, 7  ;;  %v2560_v46 = vld [vmem:[%s12645_s4 + $0x18] sm:$0xff]  ;;  %s12906_s26 = smov 8  }
 0x326   : > { %v8989_v41 = vpop.permute.xlu0 %3171  ;;  %v8991_v1 = vpop.permute.xlu1 %3068  ;;  %v9027_v2 = vsel %vm1436_vm1, 0.0, %v2445_v40 }
 0x327   : > { %12892 = vst [vmem:[#allocation46_spill] sm:$0xff] %v8989_v41  ;;  %12893 = vst [vmem:[#allocation47_spill] sm:$0xff] %v8991_v1  ;;  %v9007_v1 = vsel %vm1436_vm1, %v2451_v37, %v2452_v33  ;;  %v2558_v37 = vld [vmem:[%s12645_s4 + $0x8] sm:$0xff] }
 0x328   : > { %3429 = vrot.lane.b32.xlu0 %v8994_v24, %s12699_s29  ;;  %3157 = vrot.lane.b32.xlu1 %v2790_v52, %s12703_s30  ;;  %12896 = vst [vmem:[#allocation50_spill] sm:$0xff] %v9007_v1  ;;  %v2557_v52 = vld [vmem:[%s12645_s4] sm:$0xff]  ;;  %12899 = vst [vmem:[#allocation53_spill] sm:$0xff] %v9027_v2  ;;  %v2638_v41 = vrot.slane %v9007_v1, 1  ;;  %s12909_s29 = smov 16  }
 0x329   : > { %v7080_v47 = vpack.c.bf16 %v2558_v37, %v2557_v52  ;;  %v9045_v52 = vsel %vm1436_vm1, %v2445_v40, %v2446_v49  ;;  %v7084_v37 = vpack.c.bf16 %v2560_v46, %v2559_v35  ;;  %v2607_v40 = vrot.slane %v8833_v0, 1 }
 0x32a   : > { %v9002_v51 = vpop.permute.xlu0 %2876  ;;  %v9004_v4 = vpop.permute.xlu1 %3447  ;;  %12902 = vst [vmem:[#allocation56_spill] sm:$0xff] %v9045_v52 }
 0x32b   : > { %12894 = vst [vmem:[#allocation48_spill] sm:$0xff] %v9002_v51  ;;  %12895 = vst [vmem:[#allocation49_spill] sm:$0xff] %v9004_v4  ;;  %7081 = vmatprep.subr.bf16.mxu1 %v7080_v47  ;;  %v2561_v51 = vld [vmem:[%s12645_s4 + $0x20] sm:$0xff] }
 0x32c   : > { %3267 = vrot.lane.b32.xlu0 %v9007_v1, %s12737_s21  ;;  %3159 = vrot.lane.b32.xlu1 %v2792_v45, %s12703_s30  ;;  %s12921_s30 = smov 40  }
 0x32d   : > { %7083 = vmatpush3.bf16.msra.mxu1 %v7080_v47  ;;  %v2562_v47 = vld [vmem:[%s12645_s4 + $0x28] sm:$0xff] }
 0x32e   : > { %v9016_v54 = vpop.permute.xlu0 %2697  ;;  %v9018_v62 = vpop.permute.xlu1 %3169  ;;  %7085 = vmatprep.subr.bf16.mxu1 %v7084_v37 }
 0x32f   : > { %12897 = vst [vmem:[#allocation51_spill] sm:$0xff] %v9016_v54  ;;  %12898 = vst [vmem:[#allocation52_spill] sm:$0xff] %v9018_v62  ;;  %v7088_v62 = vpack.c.bf16 %v2562_v47, %v2561_v51  ;;  %v2563_v51 = vld [vmem:[%s12645_s4 + $0x30] sm:$0xff]  ;;  %v2564_v47 = vld [vmem:[%s12645_s4 + $0x38] sm:$0xff] }
 0x330   : > { %2972 = vrot.lane.b32.xlu0 %v9007_v1, %s12791_s27  ;;  %3257 = vrot.lane.b32.xlu1 %v9027_v2, %s12737_s21 }
 0x331   : > { %7087 = vmatpush3.bf16.msra.mxu1 %v7084_v37  ;;  %v7092_v37 = vpack.c.bf16 %v2564_v47, %v2563_v51 }
 0x332   : > { %v9034_v45 = vpop.permute.xlu0 %3348  ;;  %v9036_v31 = vpop.permute.xlu1 %2874  ;;  %7089 = vmatprep.subr.bf16.mxu1 %v7088_v62 }
 0x333   : > { %12900 = vst [vmem:[#allocation54_spill] sm:$0xff] %v9034_v45  ;;  %12901 = vst [vmem:[#allocation55_spill] sm:$0xff] %v9036_v31  ;;  %v2548_v31 = vsel %vm1436_vm1, %v2452_v33, 0.0  ;;  %v2609_v33 = vsel %vm2599_vm3, %v2607_v40, %v12905_v6 }
 0x334   : > { %3259 = vrot.lane.b32.xlu0 %v9045_v52, %s12737_s21  ;;  %2962 = vrot.lane.b32.xlu1 %v9027_v2, %s12791_s27  ;;  %v2640_v4 = vrot.slane %v2548_v31, 1  ;;  %v2811_v47 = vrot.slane %v2548_v31, 2 }
 0x335   : > { %7091 = vmatpush3.bf16.msra.mxu1 %v7088_v62 }
 0x336   : > { %v9059_v35 = vpop.permute.xlu0 %3062  ;;  %v9061_v46 = vpop.permute.xlu1 %3269  ;;  %v2641_v40 = vsel %vm2599_vm3, %v2638_v41, %v2640_v4  ;;  %7093 = vmatprep.subr.bf16.mxu1 %v7092_v37 }
 0x337   : > { %12903 = vst [vmem:[#allocation57_spill] sm:$0xff] %v9059_v35  ;;  %12904 = vst [vmem:[#allocation58_spill] sm:$0xff] %v9061_v46  ;;  %v2565_v35 = vld [vmem:[%s12645_s4 + $0x40] sm:$0xff] }
 0x338   : > { %2964 = vrot.lane.b32.xlu0 %v9045_v52, %s12791_s27  ;;  %2683 = vrot.lane.b32.xlu1 %v2609_v33, %s12906_s26 }
 0x339   : > { %7095 = vmatpush3.bf16.msra.mxu1 %v7092_v37 }
 0x33a   : > { %v9076_v46 = vpop.permute.xlu0 %3441  ;;  %v9078_v6 = vpop.permute.xlu1 %2974  ;;  %6964 = vmatprep.subr.mxu1 %v2565_v35 }
 0x33b   : > { %12907 = vst [vmem:[#allocation59_spill] sm:$0xff] %v9076_v46  ;;  %12908 = vst [vmem:[#allocation60_spill] sm:$0xff] %v9078_v6  ;;  %v2809_v6 = vrot.slane %v9007_v1, 2  ;;  %v12712_v1 = vrot.slane %v9045_v52, 1 }
 0x33c   : > { %2709 = vrot.lane.b32.xlu0 %v2641_v40, %s12906_s26  ;;  %2856 = vrot.lane.b32.xlu1 %v8994_v24, %s12909_s29 }
 0x33d   : > { %6965 = vmatpush3.msra.mxu1 %v2565_v35  ;;  %v2546_v35 = vsel %vm1436_vm1, %v2446_v49, 0.0  ;;  %v2637_v49 = vrot.slane %v8929_v11, 1 }
 0x33e   : > { %v9087_v54 = vpop.permute.xlu0 %3163  ;;  %v9089_v51 = vpop.permute.xlu1 %2331 }
 0x33f   : > { %12910 = vst [vmem:[#allocation61_spill] sm:$0xff] %v9087_v54  ;;  %12911 = vst [vmem:[#allocation62_spill] sm:$0xff] %v9089_v51  ;;  %v2812_v51 = vsel %vm2770_vm4, %v2809_v6, %v2811_v47  ;;  %v2630_v47 = vrot.slane %v2546_v35, 1 }
 0x340   : > { %3360 = vrot.lane.b32.xlu0 %v2641_v40, %s12912_s12  ;;  %3334 = vrot.lane.b32.xlu1 %v2609_v33, %s12912_s12 }
 0x342   : > { %v9093_v4 = vpop.permute.xlu0 %2868  ;;  %v9095_v62 = vpop.permute.xlu1 %2695 }
 0x343   : > { %12913 = vst [vmem:[#allocation63_spill] sm:$0xff] %v9093_v4  ;;  %12914 = vst [vmem:[#allocation64_spill] sm:$0xff] %v9095_v62  ;;  %v1712_v4 = vld [vmem:[%s8364_s20 + $0x98] sm:$0xff] }
 0x344   : > { %3074 = vrot.lane.b32.xlu0 %v2641_v40, %s12915_s18  ;;  %3048 = vrot.lane.b32.xlu1 %v2609_v33, %s12915_s18 }
 0x346   : > { %v9100_v54 = vpop.permute.xlu0 %3271  ;;  %v9102_v37 = vpop.permute.xlu1 %3346 }
 0x347   : > { %12916 = vst [vmem:[#allocation65_spill] sm:$0xff] %v9100_v54  ;;  %12917 = vst [vmem:[#allocation66_spill] sm:$0xff] %v9102_v37 }
 0x348   : > { %3453 = vrot.lane.b32.xlu0 %v2812_v51, %s12918_s25  ;;  %3427 = vrot.lane.b32.xlu1 %v8968_v26, %s12918_s25 }
 0x34a   : > { %v9108_v62 = vpop.permute.xlu0 %2976  ;;  %v9110_v31 = vpop.permute.xlu1 %3060 }
 0x34b   : > { %12919 = vst [vmem:[#allocation67_spill] sm:$0xff] %v9108_v62  ;;  %12920 = vst [vmem:[#allocation68_spill] sm:$0xff] %v9110_v31 }
 0x34c   : > { %3175 = vrot.lane.b32.xlu0 %v2812_v51, %s12921_s30  ;;  %3149 = vrot.lane.b32.xlu1 %v8968_v26, %s12921_s30  ;;  %v2631_v26 = vsel %vm2599_vm3, %v12712_v1, %v2630_v47  ;;  %v2801_v1 = vrot.slane %v2546_v35, 2 }
 0x34e   : > { %v9116_v33 = vpop.permute.xlu0 %2721  ;;  %v9118_v40 = vpop.permute.xlu1 %3439 }
 0x34f   : > { %12922 = vst [vmem:[#allocation69_spill] sm:$0xff] %v9116_v33  ;;  %12923 = vst [vmem:[#allocation70_spill] sm:$0xff] %v9118_v40  ;;  %v2639_v33 = vsel %vm2599_vm3, %v2637_v49, %v2638_v41  ;;  %v12714_v41 = vrot.slane %v9045_v52, 2  ;;  %v1715_v49 = vld [vmem:[%s8364_s20 + $0xb0] sm:$0xff] }
 0x350   : > { %2880 = vrot.lane.b32.xlu0 %v2812_v51, %s12909_s29  ;;  %3151 = vrot.lane.b32.xlu1 %v8994_v24, %s12921_s30  ;;  %v9158_v35 = vsel %vm2365_vm2, %v1715_v49, %v8672_v22 }
 0x352   : > { %v9125_v62 = vpop.permute.xlu0 %2713  ;;  %v9127_v54 = vpop.permute.xlu1 %3161 }
 0x353   : > { %12924 = vst [vmem:[#allocation71_spill] sm:$0xff] %v9125_v62  ;;  %12925 = vst [vmem:[#allocation72_spill] sm:$0xff] %v9127_v54  ;;  %v1716_v62 = vld [vmem:[%s8364_s20 + $0xb8] sm:$0xff] }
 0x354   : > { %2701 = vrot.lane.b32.xlu0 %v2631_v26, %s12906_s26  ;;  %2707 = vrot.lane.b32.xlu1 %v2639_v33, %s12906_s26 }
 0x356   : > { %v9135_v51 = vpop.permute.xlu0 %2737  ;;  %v9137_v24 = vpop.permute.xlu1 %2866 }
 0x357   : > { %12926 = vst [vmem:[#allocation73_spill] sm:$0xff] %v9135_v51  ;;  %12927 = vst [vmem:[#allocation74_spill] sm:$0xff] %v9137_v24  ;;  %v2389_v51 = vsel %vm2365_vm2, %v1716_v62, %v8917_v44  ;;  %v2808_v24 = vrot.slane %v8929_v11, 2  ;;  %v2385_v62 = vsel %vm2365_vm2, %v1712_v4, %v8965_v14  ;;  %v1720_v11 = vld [vmem:[%s8364_s20 + $0xd8] sm:$0xff] }
 0x358   : > { %3352 = vrot.lane.b32.xlu0 %v2631_v26, %s12912_s12  ;;  %3358 = vrot.lane.b32.xlu1 %v2639_v33, %s12912_s12  ;;  %v2464_v44 = vrot.slane %v2389_v51, 7 }
 0x35a   : > { %v9142_v54 = vpop.permute.xlu0 %2729  ;;  %v2324_v47 = vpop.permute.xlu1 %2323  ;;  %v9183_v51 = vsel %vm1436_vm1, %v2464_v44, 0.0 }
 0x35b   : > { %12928 = vst [vmem:[#allocation75_spill] sm:$0xff] %v9142_v54  ;;  %v1711_v54 = vld [vmem:[%s8364_s20 + $0x90] sm:$0xff]  ;;  %12931 = vst [vmem:[#allocation78_spill] sm:$0xff] %v9183_v51  ;;  %v2393_v14 = vsel %vm2365_vm2, %v1720_v11, %v2324_v47  ;;  %v2627_v47 = vrot.slane %v9027_v2, 1 }
 0x35c   : > { %3066 = vrot.lane.b32.xlu0 %v2631_v26, %s12915_s18  ;;  %3072 = vrot.lane.b32.xlu1 %v2639_v33, %s12915_s18  ;;  %v2802_v26 = vsel %vm2770_vm4, %v12714_v41, %v2801_v1  ;;  %v2810_v33 = vsel %vm2770_vm4, %v2808_v24, %v2809_v6  ;;  %v9177_v1 = vsel %vm2365_vm2, %v1711_v54, %v8685_v38  ;;  %v1719_v24 = vld [vmem:[%s8364_s20 + $0xd0] sm:$0xff]  ;;  %v2458_v41 = vrot.slane %v2385_v62, 7 }
 0x35d   : > { %v2457_v4 = vrot.slane %v9177_v1, 7  ;;  %v2660_v54 = vrot.slane %v9183_v51, 1  ;;  %v2470_v11 = vrot.slane %v2393_v14, 7 }
 0x35e   : > { %v9152_v31 = vpop.permute.xlu0 %3249  ;;  %v9154_v46 = vpop.permute.xlu1 %2719  ;;  %v9202_v40 = vsel %vm1436_vm1, %v2458_v41, 0.0 }
 0x35f   : > { %12929 = vst [vmem:[#allocation76_spill] sm:$0xff] %v9154_v46  ;;  %v2463_v46 = vrot.slane %v9158_v35, 7  ;;  %v9199_v62 = vsel %vm1436_vm1, %v2457_v4, %v2458_v41  ;;  %v12937_v41 = vrot.slane %v9045_v52, 1 }
 0x360   : > { %3445 = vrot.lane.b32.xlu0 %v2802_v26, %s12918_s25  ;;  %3451 = vrot.lane.b32.xlu1 %v2810_v33, %s12918_s25  ;;  %12934 = vst [vmem:[#allocation81_spill] sm:$0xff] %v9199_v62 }
 0x361   : > { %v9180_v6 = vsel %vm1436_vm1, %v2463_v46, %v2464_v44  ;;  %v2392_v44 = vsel %vm2365_vm2, %v1719_v24, %v8943_v42  ;;  %v2650_v42 = vrot.slane %v9202_v40, 1  ;;  %v2629_v14 = vsel %vm2599_vm3, %v2627_v47, %v12937_v41 }
 0x362   : > { %v9171_v22 = vpop.permute.xlu0 %3241  ;;  %v9173_v49 = vpop.permute.xlu1 %2711  ;;  %v2469_v1 = vrot.slane %v2392_v44, 7  ;;  %v9223_v44 = vsel %vm1436_vm1, %v2470_v11, 0.0 }
 0x363   : > { %12930 = vst [vmem:[#allocation77_spill] sm:$0xff] %v9173_v49  ;;  %v2658_v49 = vrot.slane %v9180_v6, 1  ;;  %12939 = vst [vmem:[#allocation85_spill] sm:$0xff] %v9223_v44  ;;  %v2670_v45 = vrot.slane %v9223_v44, 1 }
 0x364   : > { %3167 = vrot.lane.b32.xlu0 %v2802_v26, %s12921_s30  ;;  %3173 = vrot.lane.b32.xlu1 %v2810_v33, %s12921_s30 }
 0x365   : > { %v9213_v24 = vsel %vm2599_vm3, %v2658_v49, %v2660_v54 }
 0x366   : > { %v9190_v35 = vpop.permute.xlu0 %3251  ;;  %v9192_v38 = vpop.permute.xlu1 %3362  ;;  %12936 = vst [vmem:[#allocation83_spill] sm:$0xff] %v9213_v24 }
 0x367   : > { %12932 = vst [vmem:[#allocation79_spill] sm:$0xff] %v9190_v35  ;;  %12933 = vst [vmem:[#allocation80_spill] sm:$0xff] %v9192_v38 }
 0x368   : > { %2872 = vrot.lane.b32.xlu0 %v2802_v26, %s12909_s29  ;;  %2878 = vrot.lane.b32.xlu1 %v2810_v33, %s12909_s29  ;;  %v2648_v26 = vrot.slane %v9199_v62, 1  ;;  %v9220_v33 = vsel %vm1436_vm1, %v2469_v1, %v2470_v11 }
 0x369   : > { %12938 = vst [vmem:[#allocation84_spill] sm:$0xff] %v9220_v33  ;;  %v2668_v41 = vrot.slane %v9220_v33, 1  ;;  %v12944_v33 = vrot.slane %v9045_v52, 2 }
 0x36a   : > { %v9207_v38 = vpop.permute.xlu0 %2956  ;;  %v9209_v51 = vpop.permute.xlu1 %3076  ;;  %v2651_v47 = vsel %vm2599_vm3, %v2648_v26, %v2650_v42  ;;  %v2798_v42 = vrot.slane %v9027_v2, 2 }
 0x36b   : > { %12935 = vst [vmem:[#allocation82_spill] sm:$0xff] %v9209_v51 }
 0x36c   : > { %2725 = vrot.lane.b32.xlu0 %v9213_v24, %s12906_s26  ;;  %2699 = vrot.lane.b32.xlu1 %v2629_v14, %s12906_s26  ;;  %v9242_v24 = vsel %vm2599_vm3, %v2668_v41, %v2670_v45  ;;  %v2800_v35 = vsel %vm2770_vm4, %v2798_v42, %v12944_v33  ;;  %v9268_v33 = vsel %vm1436_vm1, 0.0, %v2463_v46 }
 0x36d   : > { %12942 = vst [vmem:[#allocation88_spill] sm:$0xff] %v9242_v24  ;;  %12946 = vst [vmem:[#allocation91_spill] sm:$0xff] %v9268_v33 }
 0x36e   : > { %v9228_v51 = vpop.permute.xlu0 %3243  ;;  %v9230_v54 = vpop.permute.xlu1 %2735 }
 0x36f   : > { %12940 = vst [vmem:[#allocation86_spill] sm:$0xff] %v9230_v54 }
 0x370   : > { %2717 = vrot.lane.b32.xlu0 %v2651_v47, %s12906_s26  ;;  %3350 = vrot.lane.b32.xlu1 %v2629_v14, %s12912_s12 }
 0x372   : > { %v9237_v11 = vpop.permute.xlu0 %2948  ;;  %v9239_v37 = vpop.permute.xlu1 %2727 }
 0x373   : > { %12941 = vst [vmem:[#allocation87_spill] sm:$0xff] %v9239_v37  ;;  %v2816_v37 = vrot.slane %v8714_v10, 2  ;;  %v2657_v10 = vrot.slane %v9268_v33, 1 }
 0x374   : > { %3064 = vrot.lane.b32.xlu1 %v2629_v14, %s12915_s18  ;;  %2733 = vrot.lane.b32.xlu0 %v9242_v24, %s12906_s26  ;;  %v2814_v24 = vrot.slane %v8688_v19, 2  ;;  %v9279_v19 = vsel %vm1436_vm1, 0.0, %v2457_v4 }
 0x375   : > { %12948 = vst [vmem:[#allocation93_spill] sm:$0xff] %v9279_v19  ;;  %v9286_v46 = vsel %vm2599_vm3, %v2657_v10, %v2658_v49 }
 0x376   : > { %v9248_v54 = vpop.permute.xlu0 %2693  ;;  %v9250_v44 = vpop.permute.xlu1 %2954  ;;  %v2817_v52 = vsel %vm2770_vm4, %v2814_v24, %v2816_v37  ;;  %12950 = vst [vmem:[#allocation95_spill] sm:$0xff] %v9286_v46  ;;  %v2647_v37 = vrot.slane %v9279_v19, 1 }
 0x377   : > { %12943 = vst [vmem:[#allocation89_spill] sm:$0xff] %v9248_v54 }
 0x378   : > { %3443 = vrot.lane.b32.xlu1 %v2800_v35, %s12918_s25  ;;  %3364 = vrot.lane.b32.xlu0 %v8758_v50, %s12912_s12 }
 0x37a   : > { %v9258_v45 = vpop.permute.xlu0 %2862  ;;  %v9260_v14 = vpop.permute.xlu1 %2946 }
 0x37b   : > { %12945 = vst [vmem:[#allocation90_spill] sm:$0xff] %v9258_v45  ;;  %v2649_v45 = vsel %vm2599_vm3, %v2647_v37, %v2648_v26 }
 0x37c   : > { %3165 = vrot.lane.b32.xlu1 %v2800_v35, %s12921_s30  ;;  %3078 = vrot.lane.b32.xlu0 %v8758_v50, %s12915_s18 }
 0x37e   : > { %v9270_v42 = vpop.permute.xlu0 %3344  ;;  %v9272_v2 = vpop.permute.xlu1 %3265 }
 0x37f   : > { %12947 = vst [vmem:[#allocation92_spill] sm:$0xff] %v9272_v2 }
 0x380   : > { %2870 = vrot.lane.b32.xlu1 %v2800_v35, %s12909_s29  ;;  %3457 = vrot.lane.b32.xlu0 %v2817_v52, %s12918_s25  ;;  %v9293_v35 = vsel %vm1436_vm1, 0.0, %v2469_v1  ;;  %v2813_v1 = vrot.slane %v8641_v25, 2 }
 0x381   : > { %12951 = vst [vmem:[#allocation96_spill] sm:$0xff] %v9293_v35  ;;  %v2667_v49 = vrot.slane %v9293_v35, 1  ;;  %v2821_v35 = vrot.slane %v9202_v40, 2 }
 0x382   : > { %v9281_v54 = vpop.permute.xlu0 %3058  ;;  %v9283_v50 = vpop.permute.xlu1 %2970 }
 0x383   : > { %12949 = vst [vmem:[#allocation94_spill] sm:$0xff] %v9283_v50 }
 0x384   : > { %2723 = vrot.lane.b32.xlu1 %v9286_v46, %s12906_s26  ;;  %3179 = vrot.lane.b32.xlu0 %v2817_v52, %s12921_s30  ;;  %v9308_v46 = vsel %vm2599_vm3, %v2667_v49, %v2668_v41 }
 0x385   : > { %12955 = vst [vmem:[#allocation100_spill] sm:$0xff] %v9308_v46 }
 0x386   : > { %v9295_v2 = vpop.permute.xlu0 %3437  ;;  %v9297_v4 = vpop.permute.xlu1 %2691 }
 0x387   : > { %12952 = vst [vmem:[#allocation97_spill] sm:$0xff] %v9295_v2  ;;  %12953 = vst [vmem:[#allocation98_spill] sm:$0xff] %v9297_v4 }
 0x388   : > { %2715 = vrot.lane.b32.xlu1 %v2649_v45, %s12906_s26  ;;  %2884 = vrot.lane.b32.xlu0 %v2817_v52, %s12909_s29  ;;  %v2815_v52 = vsel %vm2770_vm4, %v2813_v1, %v2814_v24  ;;  %v2819_v24 = vrot.slane %v9199_v62, 2 }
 0x38a   : > { %v9303_v10 = vpop.permute.xlu0 %2685  ;;  %v9305_v50 = vpop.permute.xlu1 %2864  ;;  %v2822_v4 = vsel %vm2770_vm4, %v2819_v24, %v2821_v35 }
 0x38b   : > { %12954 = vst [vmem:[#allocation99_spill] sm:$0xff] %v9305_v50 }
 0x38c   : > { %3275 = vrot.lane.b32.xlu0 %v9199_v62, %s12737_s21  ;;  %2731 = vrot.lane.b32.xlu1 %v9308_v46, %s12906_s26 }
 0x38e   : > { %v2855_v26 = vpop.permute.xlu0 %2854  ;;  %v9315_v37 = vpop.permute.xlu1 %3342 }
 0x390   : > { %2980 = vrot.lane.b32.xlu0 %v9199_v62, %s12791_s27  ;;  %3455 = vrot.lane.b32.xlu1 %v2815_v52, %s12918_s25 }
 0x392   : > { %v9321_v41 = vpop.permute.xlu0 %3336  ;;  %v9323_v49 = vpop.permute.xlu1 %3056 }
 0x394   : > { %3368 = vrot.lane.b32.xlu0 %v2651_v47, %s12912_s12  ;;  %3177 = vrot.lane.b32.xlu1 %v2815_v52, %s12921_s30 }
 0x396   : > { %v9327_v46 = vpop.permute.xlu0 %3050  ;;  %v9329_v25 = vpop.permute.xlu1 %3435 }
 0x397   : > { %12956 = vst [vmem:[#allocation101_spill] sm:$0xff] %v9329_v25  ;;  %v12965_v25 = vld [vmem:[#allocation21_spill] sm:$0xff] }
 0x398   : > { %3082 = vrot.lane.b32.xlu0 %v2651_v47, %s12915_s18  ;;  %2882 = vrot.lane.b32.xlu1 %v2815_v52, %s12909_s29 }
 0x39a   : > { %v9335_v1 = vpop.permute.xlu0 %3429  ;;  %v9337_v50 = vpop.permute.xlu1 %3157 }
 0x39c   : > { %3461 = vrot.lane.b32.xlu0 %v2822_v4, %s12918_s25  ;;  %3273 = vrot.lane.b32.xlu1 %v9279_v19, %s12737_s21 }
 0x39e   : > { %v9343_v33 = vpop.permute.xlu0 %3267  ;;  %v9345_v40 = vpop.permute.xlu1 %3159 }
 0x39f   : > { %12957 = vst [vmem:[#allocation102_spill] sm:$0xff] %v9343_v33  ;;  %v2818_v33 = vrot.slane %v9279_v19, 2 }
 0x3a0   : > { %3183 = vrot.lane.b32.xlu0 %v2822_v4, %s12921_s30  ;;  %2978 = vrot.lane.b32.xlu1 %v9279_v19, %s12791_s27 }
 0x3a2   : > { %v9350_v47 = vpop.permute.xlu0 %2972  ;;  %v9352_v52 = vpop.permute.xlu1 %3257 }
 0x3a3   : > { %12958 = vst [vmem:[#allocation103_spill] sm:$0xff] %v9350_v47  ;;  %12959 = vst [vmem:[#allocation104_spill] sm:$0xff] %v9352_v52  ;;  %v2820_v52 = vsel %vm2770_vm4, %v2818_v33, %v2819_v24  ;;  %v2826_v24 = vrot.slane %v8694_v56, 2 }
 0x3a4   : > { %2888 = vrot.lane.b32.xlu0 %v2822_v4, %s12909_s29  ;;  %3366 = vrot.lane.b32.xlu1 %v2649_v45, %s12912_s12 }
 0x3a6   : > { %v9356_v35 = vpop.permute.xlu0 %3259  ;;  %v9358_v62 = vpop.permute.xlu1 %2962 }
 0x3a7   : > { %12960 = vst [vmem:[#allocation105_spill] sm:$0xff] %v9356_v35  ;;  %12961 = vst [vmem:[#allocation106_spill] sm:$0xff] %v9358_v62 }
 0x3a8   : > { %3279 = vrot.lane.b32.xlu0 %v8691_v7, %s12737_s21  ;;  %3080 = vrot.lane.b32.xlu1 %v2649_v45, %s12915_s18  ;;  %v12964_v45 = vld [vmem:[#allocation19_spill] sm:$0xff] }
 0x3a9   : > { %v3520_v19 = vsel %vm12740_vm0, 0.0, %v12964_v45 }
 0x3aa   : > { %v9364_v2 = vpop.permute.xlu0 %2964  ;;  %v2684_v47 = vpop.permute.xlu1 %2683  ;;  %v9388_v45 = vsel %vm12739_vm5, %v3520_v19, %v12965_v25  ;;  %v3524_v25 = vsel %vm12740_vm0, %v8880_v53, %v9303_v10  ;;  %v12966_v19 = vrot.slane %v8691_v7, 2 }
 0x3ab   : > { %12962 = vst [vmem:[#allocation107_spill] sm:$0xff] %v9364_v2  ;;  %v3523_v2 = vsel %vm12740_vm0, %v8833_v0, %v2684_v47  ;;  %v3584_v56 = vsel %vm3583_vm6, %v9388_v45, %v8638_v28 }
 0x3ac   : > { %2984 = vrot.lane.b32.xlu0 %v8691_v7, %s12791_s27  ;;  %3459 = vrot.lane.b32.xlu1 %v2820_v52, %s12918_s25  ;;  %v3555_v0 = vsel %vm12739_vm5, %v3523_v2, %v2855_v26  ;;  %v2827_v28 = vsel %vm2770_vm4, %v12966_v19, %v2826_v24  ;;  %v3521_v26 = vsel %vm12740_vm0, %v8406_v30, %v8926_v48 }
 0x3ae   : > { %v9370_v4 = vpop.permute.xlu0 %2709  ;;  %v2857_v62 = vpop.permute.xlu1 %2856 }
 0x3af   : > { %12963 = vst [vmem:[#allocation108_spill] sm:$0xff] %v9370_v4 }
 0x3b0   : > { %3372 = vrot.lane.b32.xlu0 %v8735_v18, %s12912_s12  ;;  %3181 = vrot.lane.b32.xlu1 %v2820_v52, %s12921_s30 }
 0x3b2   : > { %v9377_v35 = vpop.permute.xlu0 %3360  ;;  %v3335_v33 = vpop.permute.xlu1 %3334 }
 0x3b4   : > { %3086 = vrot.lane.b32.xlu0 %v8735_v18, %s12915_s18  ;;  %2886 = vrot.lane.b32.xlu1 %v2820_v52, %s12909_s29  ;;  %v3585_v18 = vsel %vm3583_vm6, %v9388_v45, %v8724_v60  ;;  %v3617_v52 = vsel %vm3616_vm7, %v3584_v56, %v8857_v61  ;;  %v3556_v60 = vsel %vm12739_vm5, %v3524_v25, %v2857_v62 }
 0x3b5   : > { %v3650_v2 = vsel %vm12745_vm8, %v3617_v52, %v8870_v29  ;;  %v3618_v61 = vsel %vm3616_vm7, %v3585_v18, %v8945_v8  ;;  %v3588_v29 = vsel %vm3583_vm6, %v3555_v0, %v8661_v39  ;;  %v3525_v8 = vsel %vm12740_vm0, %v8377_v34, %v8799_v20  ;;  %v12967_v52 = vld [vmem:[#allocation11_spill] sm:$0xff] }
 0x3b6   : > { %v9394_v47 = vpop.permute.xlu0 %3074  ;;  %v3049_v4 = vpop.permute.xlu1 %3048  ;;  %v3683_v53 = vsel %vm12744_vm9, %v3650_v2, %v9171_v22  ;;  %v3651_v30 = vsel %vm12745_vm8, %v3618_v61, %v8954_v13  ;;  %v3589_v39 = vsel %vm3583_vm6, %v3556_v60, %v8663_v9  ;;  %v3553_v13 = vsel %vm12739_vm5, %v3521_v26, %v8840_v32  ;;  %v12970_v2 = vld [vmem:[#allocation26_spill] sm:$0xff]  ;;  %v12971_v61 = vld [vmem:[#allocation24_spill] sm:$0xff] }
 0x3b7   : > { %v3716_v48 = vsel %vm12743_vm10, %v3683_v53, %v3335_v33  ;;  %v3684_v22 = vsel %vm12744_vm9, %v3651_v30, %v9228_v51  ;;  %v3621_v56 = vsel %vm3616_vm7, %v3588_v29, %v8842_v63  ;;  %v3586_v34 = vsel %vm3583_vm6, %v3553_v13, %v9260_v14 }
 0x3b8   : > { %3465 = vrot.lane.b32.xlu0 %v2827_v28, %s12918_s25  ;;  %3277 = vrot.lane.b32.xlu1 %v8795_v21, %s12737_s21  ;;  %v3717_v33 = vsel %vm12743_vm10, %v3684_v22, %v9321_v41  ;;  %v3526_v20 = vsel %vm12740_vm0, %v8422_v36, %v8705_v59  ;;  %v3622_v32 = vsel %vm3616_vm7, %v3589_v39, %v8776_v15  ;;  %v12975_v22 = vld [vmem:[#allocation66_spill] sm:$0xff] }
 0x3b9   : > { %v3750_v9 = vsel %vm12742_vm11, %v3717_v33, %v9335_v1  ;;  %v3619_v63 = vsel %vm3616_vm7, %v3586_v34, %v3049_v4  ;;  %v3522_v14 = vsel %vm12740_vm0, %v8413_v27, %v8828_v43  ;;  %v3557_v1 = vsel %vm12739_vm5, %v3525_v8, %v8726_v12 }
 0x3ba   : > { %v9425_v62 = vpop.permute.xlu0 %3453  ;;  %v3428_v10 = vpop.permute.xlu1 %3427  ;;  %v3654_v36 = vsel %vm12745_vm8, %v3621_v56, %v8872_v57  ;;  %v3558_v59 = vsel %vm12739_vm5, %v3526_v20, %v8813_v5  ;;  %v3554_v15 = vsel %vm12739_vm5, %v3522_v14, %v8936_v55  ;;  %v3590_v12 = vsel %vm3583_vm6, %v3557_v1, %v9250_v44  ;;  %v12977_v56 = vld [vmem:[#allocation54_spill] sm:$0xff]  ;;  %v12980_v14 = vld [vmem:[#allocation59_spill] sm:$0xff] }
 0x3bb   : > { %v3749_v24 = vsel %vm12742_vm11, %v3716_v48, %v3428_v10  ;;  %v3587_v27 = vsel %vm3583_vm6, %v3554_v15, %v9237_v11  ;;  %v3655_v5 = vsel %vm12745_vm8, %v3622_v32, %v8890_v3  ;;  %v3687_v44 = vsel %vm12744_vm9, %v3654_v36, %v9152_v31  ;;  %v12974_v10 = vld [vmem:[#allocation101_spill] sm:$0xff]  ;;  %v12979_v20 = vld [vmem:[#allocation70_spill] sm:$0xff] }
 0x3bc   : > { %3187 = vrot.lane.b32.xlu0 %v2827_v28, %s12921_s30  ;;  %2982 = vrot.lane.b32.xlu1 %v8795_v21, %s12791_s27  ;;  %v3620_v57 = vsel %vm3616_vm7, %v3587_v27, %v9327_v46  ;;  %v3591_v3 = vsel %vm3583_vm6, %v3558_v59, %v9207_v38  ;;  %v2829_v59 = vrot.slane %v9180_v6, 2 }
 0x3bd   : > { %6966 = vmatprep.mubr.msk.f32.mxu1 %vm12741_vm12, %v3749_v24  ;;  %v3624_v46 = vsel %vm3616_vm7, %v3591_v3, %v9281_v54  ;;  %v2823_v54 = vrot.slane %v8795_v21, 2  ;;  %v12985_v3 = vld [vmem:[#allocation95_spill] sm:$0xff] }
 0x3be   : > { %6967 = vmatmul.mubr.msk.f32.vlgmr.msra.gmra.mrb[0].mxu1 %vm12741_vm12, %v3750_v9  ;;  %v9456_v51 = vpop.permute.xlu0 %3175  ;;  %v3150_v41 = vpop.permute.xlu1 %3149  ;;  %v3657_v38 = vsel %vm12745_vm8, %v3624_v46, %v9345_v40  ;;  %v12972_v40 = vrot.slane %v8691_v7, 2  ;;  %v12978_v9 = vld [vmem:[#allocation83_spill] sm:$0xff]  ;;  %v12986_v46 = vld [vmem:[#allocation90_spill] sm:$0xff] }
 0x3bf   : > { %v3652_v0 = vsel %vm12745_vm8, %v3619_v63, %v3150_v41 }
 0x3c0   : > { %v3685_v4 = vsel %vm12744_vm9, %v3652_v0, %v8619_v58  ;;  %2892 = vrot.lane.b32.xlu0 %v2827_v28, %s12909_s29  ;;  %3370 = vrot.lane.b32.xlu1 %v8819_v17, %s12912_s12  ;;  %v3623_v58 = vsel %vm3616_vm7, %v3590_v12, %v9323_v49  ;;  %v3720_v28 = vsel %vm12743_vm10, %v3687_v44, %v9315_v37  ;;  %v12973_v37 = vld [vmem:[#allocation36_spill] sm:$0xff]  ;;  %v12981_v0 = vld [vmem:[#allocation78_spill] sm:$0xff]  ;;  %v12982_v12 = vld [vmem:[#allocation91_spill] sm:$0xff] }
 0x3c1   : > { %v3718_v43 = vsel %vm12743_vm10, %v3685_v4, %v8830_v23  ;;  %v3656_v23 = vsel %vm12745_vm8, %v3623_v58, %v9337_v50  ;;  %v12969_v50 = vld [vmem:[#allocation12_spill] sm:$0xff]  ;;  %v2825_v29 = vsel %vm2770_vm4, %v2823_v54, %v12972_v40  ;;  %v3690_v48 = vsel %vm12744_vm9, %v3657_v38, %v12973_v37  ;;  %v12992_v40 = vld [vmem:[#allocation37_spill] sm:$0xff] }
 0x3c2   : > { %v9487_v55 = vpop.permute.xlu0 %2880  ;;  %v3152_v18 = vpop.permute.xlu1 %3151  ;;  %v3751_v11 = vsel %vm12742_vm11, %v3718_v43, %v8859_v16  ;;  %v12968_v16 = vld [vmem:[#allocation79_spill] sm:$0xff]  ;;  %v3689_v26 = vsel %vm12744_vm9, %v3656_v23, %v12970_v2  ;;  %v3753_v8 = vsel %vm12742_vm11, %v3720_v28, %v12974_v10  ;;  %v3723_v34 = vsel %vm12743_vm10, %v3690_v48, %v12977_v56  ;;  %v12989_v38 = vld [vmem:[#allocation20_spill] sm:$0xff] }
 0x3c3   : > { %v3653_v49 = vsel %vm12745_vm8, %v3620_v57, %v3152_v18  ;;  %6969 = vmatprep.mubr.msk.f32.mxu1 %vm12741_vm12, %v3751_v11  ;;  %v3688_v31 = vsel %vm12744_vm9, %v3655_v5, %v12968_v16  ;;  %v3722_v39 = vsel %vm12743_vm10, %v3689_v26, %v12975_v22  ;;  %v3756_v1 = vsel %vm12742_vm11, %v3723_v34, %v12980_v14  ;;  %v12983_v18 = vld [vmem:[#allocation98_spill] sm:$0xff]  ;;  %v12984_v11 = vld [vmem:[#allocation27_spill] sm:$0xff]  ;;  %v12988_v16 = vld [vmem:[#allocation28_spill] sm:$0xff] }
 0x3c4   : > { %v3686_v25 = vsel %vm12744_vm9, %v3653_v49, %v12967_v52  ;;  %3283 = vrot.lane.b32.xlu0 %v9180_v6, %s12737_s21  ;;  %3084 = vrot.lane.b32.xlu1 %v8819_v17, %s12915_s18  ;;  %v3721_v30 = vsel %vm12743_vm10, %v3688_v31, %v9270_v42  ;;  %v12976_v42 = vld [vmem:[#allocation97_spill] sm:$0xff]  ;;  %v3755_v32 = vsel %vm12742_vm11, %v3722_v39, %v12979_v20  ;;  %v2831_v36 = vrot.slane %v12981_v0, 2  ;;  %v12991_v28 = vld [vmem:[#allocation35_spill] sm:$0xff]  ;;  %v12997_v56 = vld [vmem:[#allocation56_spill] sm:$0xff] }
 0x3c5   : > { %v3719_v19 = vsel %vm12743_vm10, %v3686_v25, %v12969_v50  ;;  %v3754_v33 = vsel %vm12742_vm11, %v3721_v30, %v12976_v42  ;;  %v3527_v44 = vsel %vm12740_vm0, %v12984_v11, %v12983_v18  ;;  %v12987_v25 = vld [vmem:[#allocation89_spill] sm:$0xff]  ;;  %v12990_v50 = vld [vmem:[#allocation99_spill] sm:$0xff]  ;;  %v2828_v54 = vrot.slane %v12982_v12, 2  ;;  %v12993_v30 = vld [vmem:[#allocation68_spill] sm:$0xff] }
 0x3c6   : > { %v9518_v60 = vpop.permute.xlu0 %2701  ;;  %v9520_v17 = vpop.permute.xlu1 %2707  ;;  %v3752_v53 = vsel %vm12742_vm11, %v3719_v19, %v12971_v61  ;;  %v2832_v27 = vsel %vm2770_vm4, %v2829_v59, %v2831_v36  ;;  %v3559_v52 = vsel %vm12739_vm5, %v3527_v44, %v12986_v46  ;;  %v3528_v31 = vsel %vm12740_vm0, %v12988_v16, %v12987_v25  ;;  %v12995_v22 = vld [vmem:[#allocation15_spill] sm:$0xff]  ;;  %v12996_v42 = vld [vmem:[#allocation57_spill] sm:$0xff]  ;;  %v13005_v46 = vld [vmem:[#allocation10_spill] sm:$0xff] }
 0x3c7   : > { %6970 = vmatmul.mubr.msk.f32.gmra.mrb[2].mxu1 %vm12741_vm12, %v3752_v53  ;;  %v3560_v19 = vsel %vm12739_vm5, %v3528_v31, %v12990_v50  ;;  %v3592_v2 = vsel %vm3583_vm6, %v3559_v52, %v12991_v28  ;;  %v2830_v53 = vsel %vm2770_vm4, %v2828_v54, %v2829_v59  ;;  %v3532_v34 = vsel %vm12740_vm0, %v12997_v56, %v9518_v60  ;;  %v13000_v0 = vld [vmem:[#allocation25_spill] sm:$0xff]  ;;  %v13003_v11 = vld [vmem:[#allocation107_spill] sm:$0xff] }
 0x3c8   : > { %2988 = vrot.lane.b32.xlu0 %v9180_v6, %s12791_s27  ;;  %3463 = vrot.lane.b32.xlu1 %v2825_v29, %s12918_s25  ;;  %v3625_v37 = vsel %vm3616_vm7, %v3592_v2, %v12993_v30  ;;  %v13001_v36 = vld [vmem:[#allocation13_spill] sm:$0xff]  ;;  %v2834_v44 = vrot.slane %v12989_v38, 2 }
 0x3c9   : > { %6972 = vmatprep.mubr.msk.f32.mxu1 %vm12741_vm12, %v3753_v8  ;;  %v12994_v8 = vld [vmem:[#allocation51_spill] sm:$0xff]  ;;  %v2836_v59 = vrot.slane %v13001_v36, 2  ;;  %v13007_v54 = vld [vmem:[#allocation105_spill] sm:$0xff] }
 0x3ca   : > { %v9540_v24 = vpop.permute.xlu0 %3352  ;;  %v9542_v13 = vpop.permute.xlu1 %3358  ;;  %v3530_v39 = vsel %vm12740_vm0, %v12995_v22, %v12994_v8 }
 0x3cb   : > { %6973 = vmatmul.mubr.msk.f32.gmra.mrb[4].mxu1 %vm12741_vm12, %v3754_v33 }
 0x3cc   : > { %3376 = vrot.lane.b32.xlu0 %v12978_v9, %s12912_s12  ;;  %3185 = vrot.lane.b32.xlu1 %v2825_v29, %s12921_s30 }
 0x3cd   : > { %6975 = vmatprep.mubr.msk.f32.mxu1 %vm12741_vm12, %v3755_v32  ;;  %v12999_v32 = vld [vmem:[#allocation72_spill] sm:$0xff] }
 0x3ce   : > { %v3067_v63 = vpop.permute.xlu0 %3066  ;;  %v9555_v41 = vpop.permute.xlu1 %3072  ;;  %v3658_v14 = vsel %vm12745_vm8, %v3625_v37, %v12999_v32  ;;  %v13009_v37 = vld [vmem:[#allocation74_spill] sm:$0xff] }
 0x3cf   : > { %6976 = vmatmul.mubr.msk.f32.gmra.mrb[6].mxu1 %vm12741_vm12, %v3756_v1 }
 0x3d0   : > { %3090 = vrot.lane.b32.xlu0 %v12978_v9, %s12915_s18  ;;  %2890 = vrot.lane.b32.xlu1 %v2825_v29, %s12909_s29  ;;  %v3593_v29 = vsel %vm3583_vm6, %v3560_v19, %v12992_v40  ;;  %v12998_v9 = vld [vmem:[#allocation63_spill] sm:$0xff]  ;;  %v13008_v40 = vld [vmem:[#allocation34_spill] sm:$0xff] }
 0x3d1   : > { %v3626_v33 = vsel %vm3616_vm7, %v3593_v29, %v12996_v42  ;;  %v3562_v20 = vsel %vm12739_vm5, %v3530_v39, %v12998_v9  ;;  %v13011_v39 = vld [vmem:[#allocation32_spill] sm:$0xff] }
 0x3d2   : > { %v3446_v15 = vpop.permute.xlu0 %3445  ;;  %v9565_v4 = vpop.permute.xlu1 %3451  ;;  %v3595_v60 = vsel %vm3583_vm6, %v3562_v20, %v13003_v11  ;;  %v13013_v20 = vld [vmem:[#allocation18_spill] sm:$0xff]  ;;  %v13018_v11 = vld [vmem:[#allocation53_spill] sm:$0xff] }
 0x3d3   : > { %v3628_v16 = vsel %vm3616_vm7, %v3595_v60, %v3067_v63 }
 0x3d4   : > { %3469 = vrot.lane.b32.xlu0 %v2832_v27, %s12918_s25  ;;  %3281 = vrot.lane.b32.xlu1 %v12982_v12, %s12737_s21 }
 0x3d6   : > { %v3168_v5 = vpop.permute.xlu0 %3167  ;;  %v9571_v43 = vpop.permute.xlu1 %3173 }
 0x3d7   : > { %v3661_v2 = vsel %vm12745_vm8, %v3628_v16, %v3168_v5 }
 0x3d8   : > { %3191 = vrot.lane.b32.xlu0 %v2832_v27, %s12921_s30  ;;  %2986 = vrot.lane.b32.xlu1 %v12982_v12, %s12791_s27  ;;  %v3694_v42 = vsel %vm12744_vm9, %v3661_v2, %v13011_v39 }
 0x3da   : > { %v2873_v58 = vpop.permute.xlu0 %2872  ;;  %v9576_v57 = vpop.permute.xlu1 %2878 }
 0x3db   : > { %v3564_v1 = vsel %vm12739_vm5, %v3532_v34, %v2873_v58  ;;  %v13006_v58 = vld [vmem:[#allocation61_spill] sm:$0xff] }
 0x3dc   : > { %2896 = vrot.lane.b32.xlu0 %v2832_v27, %s12909_s29  ;;  %3374 = vrot.lane.b32.xlu1 %v12985_v3, %s12912_s12  ;;  %v13002_v27 = vld [vmem:[#allocation104_spill] sm:$0xff]  ;;  %v3659_v25 = vsel %vm12745_vm8, %v3626_v33, %v13006_v58  ;;  %v3597_v29 = vsel %vm3583_vm6, %v3564_v1, %v13008_v40  ;;  %v13012_v33 = vld [vmem:[#allocation42_spill] sm:$0xff] }
 0x3dd   : > { %v3691_v18 = vsel %vm12744_vm9, %v3658_v14, %v13002_v27  ;;  %v3692_v28 = vsel %vm12744_vm9, %v3659_v25, %v13007_v54  ;;  %v3630_v56 = vsel %vm3616_vm7, %v3597_v29, %v13012_v33  ;;  %v13014_v14 = vld [vmem:[#allocation30_spill] sm:$0xff]  ;;  %v13017_v27 = vld [vmem:[#allocation41_spill] sm:$0xff]  ;;  %v13024_v40 = vld [vmem:[#allocation52_spill] sm:$0xff] }
 0x3de   : > { %v9584_v23 = vpop.permute.xlu0 %2725  ;;  %v2700_v49 = vpop.permute.xlu1 %2699  ;;  %v3725_v63 = vsel %vm12743_vm10, %v3692_v28, %v9540_v24  ;;  %v13020_v25 = vld [vmem:[#allocation22_spill] sm:$0xff]  ;;  %v13023_v28 = vld [vmem:[#allocation47_spill] sm:$0xff] }
 0x3df   : > { %v3758_v5 = vsel %vm12742_vm11, %v3725_v63, %v3446_v15  ;;  %v2837_v15 = vsel %vm2770_vm4, %v2834_v44, %v2836_v59  ;;  %v3531_v59 = vsel %vm12740_vm0, %v13018_v11, %v2700_v49 }
 0x3e0   : > { %3287 = vrot.lane.b32.xlu0 %v12989_v38, %s12737_s21  ;;  %3088 = vrot.lane.b32.xlu1 %v12985_v3, %s12915_s18  ;;  %v13004_v3 = vld [vmem:[#allocation64_spill] sm:$0xff] }
 0x3e1   : > { %v3529_v52 = vsel %vm12740_vm0, %v13005_v46, %v13004_v3  ;;  %v13019_v46 = vld [vmem:[#allocation49_spill] sm:$0xff] }
 0x3e2   : > { %v9600_v26 = vpop.permute.xlu0 %2717  ;;  %v3351_v61 = vpop.permute.xlu1 %3350  ;;  %v3561_v8 = vsel %vm12739_vm5, %v3529_v52, %v13009_v37 }
 0x3e3   : > { %v3724_v31 = vsel %vm12743_vm10, %v3691_v18, %v3351_v61  ;;  %v13010_v61 = vld [vmem:[#allocation106_spill] sm:$0xff]  ;;  %v3727_v18 = vsel %vm12743_vm10, %v3694_v42, %v13017_v27  ;;  %v13028_v42 = vld [vmem:[#allocation33_spill] sm:$0xff]  ;;  %v13034_v27 = vld [vmem:[#allocation48_spill] sm:$0xff] }
 0x3e4   : > { %2992 = vrot.lane.b32.xlu0 %v12989_v38, %s12791_s27  ;;  %3467 = vrot.lane.b32.xlu1 %v2830_v53, %s12918_s25  ;;  %v3594_v22 = vsel %vm3583_vm6, %v3561_v8, %v13010_v61  ;;  %v13025_v8 = vld [vmem:[#allocation92_spill] sm:$0xff] }
 0x3e6   : > { %v9610_v48 = vpop.permute.xlu0 %2733  ;;  %v3065_v10 = vpop.permute.xlu1 %3064 }
 0x3e7   : > { %v3627_v24 = vsel %vm3616_vm7, %v3594_v22, %v3065_v10  ;;  %v13015_v10 = vld [vmem:[#allocation46_spill] sm:$0xff]  ;;  %v13026_v22 = vld [vmem:[#allocation43_spill] sm:$0xff] }
 0x3e8   : > { %3380 = vrot.lane.b32.xlu0 %v13000_v0, %s12912_s12  ;;  %3189 = vrot.lane.b32.xlu1 %v2830_v53, %s12921_s30  ;;  %v3663_v1 = vsel %vm12745_vm8, %v3630_v56, %v13015_v10  ;;  %v13029_v56 = vld [vmem:[#allocation55_spill] sm:$0xff]  ;;  %v13031_v10 = vld [vmem:[#allocation40_spill] sm:$0xff] }
 0x3ea   : > { %v9641_v50 = vpop.permute.xlu0 %3364  ;;  %v3444_v19 = vpop.permute.xlu1 %3443 }
 0x3eb   : > { %v3757_v30 = vsel %vm12742_vm11, %v3724_v31, %v3444_v19  ;;  %v13021_v31 = vld [vmem:[#allocation44_spill] sm:$0xff]  ;;  %v13022_v19 = vld [vmem:[#allocation102_spill] sm:$0xff] }
 0x3ec   : > { %3094 = vrot.lane.b32.xlu0 %v13000_v0, %s12915_s18  ;;  %2894 = vrot.lane.b32.xlu1 %v2830_v53, %s12909_s29  ;;  %v13016_v0 = vld [vmem:[#allocation45_spill] sm:$0xff]  ;;  %v3760_v49 = vsel %vm12742_vm11, %v3727_v18, %v13021_v31  ;;  %v3696_v54 = vsel %vm12744_vm9, %v3663_v1, %v13022_v19  ;;  %v13032_v1 = vld [vmem:[#allocation14_spill] sm:$0xff]  ;;  %v13035_v18 = vld [vmem:[#allocation103_spill] sm:$0xff] }
 0x3ed   : > { %6978 = vmatprep.mubr.msk.f32.mxu1 %vm12741_vm12, %v3757_v30  ;;  %v3729_v61 = vsel %vm12743_vm10, %v3696_v54, %v9377_v35  ;;  %v13037_v31 = vld [vmem:[#allocation80_spill] sm:$0xff]  ;;  %v13038_v19 = vld [vmem:[#allocation65_spill] sm:$0xff] }
 0x3ee   : > { %6979 = vmatmul.mubr.msk.f32.gmra.mrb[8].mxu1 %vm12741_vm12, %v3758_v5  ;;  %v9666_v34 = vpop.permute.xlu0 %3078  ;;  %v3166_v53 = vpop.permute.xlu1 %3165  ;;  %v13027_v5 = vld [vmem:[#allocation7_spill] sm:$0xff] }
 0x3ef   : > { %v3660_v9 = vsel %vm12745_vm8, %v3627_v24, %v3166_v53  ;;  %v3533_v39 = vsel %vm12740_vm0, %v13027_v5, %v13026_v22  ;;  %v13041_v5 = vld [vmem:[#allocation96_spill] sm:$0xff] }
 0x3f0   : > { %v3693_v32 = vsel %vm12744_vm9, %v3660_v9, %v13013_v20  ;;  %3473 = vrot.lane.b32.xlu0 %v2837_v15, %s12918_s25  ;;  %3285 = vrot.lane.b32.xlu1 %v13014_v14, %s12737_s21  ;;  %v3565_v24 = vsel %vm12739_vm5, %v3533_v39, %v13029_v56  ;;  %v13030_v9 = vld [vmem:[#allocation94_spill] sm:$0xff] }
 0x3f1   : > { %v3726_v36 = vsel %vm12743_vm10, %v3693_v32, %v13016_v0  ;;  %v3598_v35 = vsel %vm3583_vm6, %v3565_v24, %v13030_v9  ;;  %v3762_v32 = vsel %vm12742_vm11, %v3729_v61, %v9425_v62  ;;  %v13042_v24 = vld [vmem:[#allocation38_spill] sm:$0xff]  ;;  %v13043_v9 = vld [vmem:[#allocation100_spill] sm:$0xff] }
 0x3f2   : > { %v3458_v60 = vpop.permute.xlu0 %3457  ;;  %v2871_v3 = vpop.permute.xlu1 %2870  ;;  %v3759_v52 = vsel %vm12742_vm11, %v3726_v36, %v13019_v46  ;;  %v13033_v36 = vld [vmem:[#allocation84_spill] sm:$0xff]  ;;  %v13036_v46 = vld [vmem:[#allocation58_spill] sm:$0xff] }
 0x3f3   : > { %v3563_v58 = vsel %vm12739_vm5, %v3531_v59, %v2871_v3  ;;  %6981 = vmatprep.mubr.msk.f32.mxu1 %vm12741_vm12, %v3759_v52  ;;  %v2839_v61 = vrot.slane %v13033_v36, 2 }
 0x3f4   : > { %v3596_v16 = vsel %vm3583_vm6, %v3563_v58, %v13020_v25  ;;  %3195 = vrot.lane.b32.xlu0 %v2837_v15, %s12921_s30  ;;  %2990 = vrot.lane.b32.xlu1 %v13014_v14, %s12791_s27 }
 0x3f5   : > { %v3629_v2 = vsel %vm3616_vm7, %v3596_v16, %v13023_v28  ;;  %6982 = vmatmul.mubr.msk.f32.gmra.mrb[10].mxu1 %vm12741_vm12, %v3760_v49 }
 0x3f6   : > { %v3662_v29 = vsel %vm12745_vm8, %v3629_v2, %v13024_v40  ;;  %v9703_v30 = vpop.permute.xlu0 %3179  ;;  %v9705_v37 = vpop.permute.xlu1 %2723 }
 0x3f7   : > { %v3695_v63 = vsel %vm12744_vm9, %v3662_v29, %v13025_v8  ;;  %v13040_v8 = vld [vmem:[#allocation85_spill] sm:$0xff] }
 0x3f8   : > { %2900 = vrot.lane.b32.xlu0 %v2837_v15, %s12909_s29  ;;  %3378 = vrot.lane.b32.xlu1 %v13028_v42, %s12912_s12  ;;  %v3728_v33 = vsel %vm12743_vm10, %v3695_v63, %v9542_v13  ;;  %v3631_v13 = vsel %vm3616_vm7, %v3598_v35, %v9555_v41  ;;  %v2833_v41 = vrot.slane %v13014_v14, 2  ;;  %v2841_v63 = vrot.slane %v13040_v8, 2 }
 0x3f9   : > { %v3761_v53 = vsel %vm12742_vm11, %v3728_v33, %v9565_v4  ;;  %v3534_v4 = vsel %vm12740_vm0, %v13032_v1, %v13031_v10  ;;  %v3664_v0 = vsel %vm12745_vm8, %v3631_v13, %v9571_v43  ;;  %v13044_v10 = vld [vmem:[#allocation108_spill] sm:$0xff]  ;;  %v13045_v1 = vld [vmem:[#allocation50_spill] sm:$0xff] }
 0x3fa   : > { %v9725_v20 = vpop.permute.xlu0 %2884  ;;  %6984 = vmatprep.mubr.msk.f32.mxu1 %vm12741_vm12, %v3761_v53  ;;  %v9728_v15 = vpop.permute.xlu1 %2715  ;;  %v3566_v62 = vsel %vm12739_vm5, %v3534_v4, %v13034_v27  ;;  %v3697_v52 = vsel %vm12744_vm9, %v3664_v0, %v13036_v46  ;;  %v2835_v58 = vsel %vm2770_vm4, %v2833_v41, %v2834_v44  ;;  %v3535_v53 = vsel %vm12740_vm0, %v13042_v24, %v9520_v17  ;;  %v13046_v0 = vld [vmem:[#allocation60_spill] sm:$0xff]  ;;  %v13047_v17 = vld [vmem:[#allocation17_spill] sm:$0xff] }
 0x3fb   : > { %6985 = vmatmul.mubr.msk.f32.gmra.mrb[12].mxu1 %vm12741_vm12, %v3762_v32  ;;  %v3599_v11 = vsel %vm3583_vm6, %v3566_v62, %v13035_v18  ;;  %v3567_v35 = vsel %vm12739_vm5, %v3535_v53, %v9576_v57  ;;  %v3536_v4 = vsel %vm12740_vm0, %v13045_v1, %v13044_v10  ;;  %v2838_v57 = vrot.slane %v13041_v5, 2  ;;  %v13054_v10 = vld [vmem:[#allocation39_spill] sm:$0xff] }
 0x3fc   : > { %3291 = vrot.lane.b32.xlu0 %v13033_v36, %s12737_s21  ;;  %3092 = vrot.lane.b32.xlu1 %v13028_v42, %s12915_s18  ;;  %v3632_v43 = vsel %vm3616_vm7, %v3599_v11, %v9394_v47  ;;  %v3730_v47 = vsel %vm12743_vm10, %v3697_v52, %v13037_v31  ;;  %v3600_v27 = vsel %vm3583_vm6, %v3567_v35, %v13046_v0  ;;  %v13048_v11 = vld [vmem:[#allocation82_spill] sm:$0xff]  ;;  %v13049_v52 = vld [vmem:[#allocation67_spill] sm:$0xff] }
 0x3fd   : > { %v3665_v25 = vsel %vm12745_vm8, %v3632_v43, %v9456_v51  ;;  %v13039_v51 = vld [vmem:[#allocation88_spill] sm:$0xff]  ;;  %v3568_v62 = vsel %vm12739_vm5, %v3536_v4, %v9487_v55  ;;  %v3633_v43 = vsel %vm3616_vm7, %v3600_v27, %v13048_v11  ;;  %v2840_v46 = vsel %vm2770_vm4, %v2838_v57, %v2839_v61  ;;  %v13053_v35 = vld [vmem:[#allocation62_spill] sm:$0xff] }
 0x3fe   : > { %v9749_v59 = vpop.permute.xlu0 %3275  ;;  %v9751_v3 = vpop.permute.xlu1 %2731  ;;  %v3698_v54 = vsel %vm12744_vm9, %v3665_v25, %v13038_v19 }
 0x3ff   : > { %v3731_v44 = vsel %vm12743_vm10, %v3698_v54, %v9641_v50 }
 0x400   : > { %2996 = vrot.lane.b32.xlu0 %v13033_v36, %s12791_s27  ;;  %3471 = vrot.lane.b32.xlu1 %v2835_v58, %s12918_s25  ;;  %v3764_v2 = vsel %vm12742_vm11, %v3731_v44, %v3458_v60  ;;  %v2842_v60 = vsel %vm2770_vm4, %v2839_v61, %v2841_v63  ;;  %v2844_v63 = vrot.slane %v13047_v17, 2 }
 0x402   : > { %v9765_v16 = vpop.permute.xlu0 %2980  ;;  %v3456_v49 = vpop.permute.xlu1 %3455 }
 0x403   : > { %v3763_v28 = vsel %vm12742_vm11, %v3730_v47, %v3456_v49 }
 0x404   : > { %3384 = vrot.lane.b32.xlu0 %v13039_v51, %s12912_s12  ;;  %3193 = vrot.lane.b32.xlu1 %v2835_v58, %s12921_s30 }
 0x405   : > { %6987 = vmatprep.mubr.msk.f32.mxu1 %vm12741_vm12, %v3763_v28 }
 0x406   : > { %6988 = vmatmul.mubr.msk.f32.gmra.mrb[14].mxu1 %vm12741_vm12, %v3764_v2  ;;  %v3369_v40 = vpop.permute.xlu0 %3368  ;;  %v3178_v29 = vpop.permute.xlu1 %3177  ;;  %v13050_v2 = vld [vmem:[#allocation23_spill] sm:$0xff] }
 0x407   : > { %v3666_v25 = vsel %vm12745_vm8, %v3633_v43, %v3178_v29 }
 0x408   : > { %3098 = vrot.lane.b32.xlu0 %v13039_v51, %s12915_s18  ;;  %2898 = vrot.lane.b32.xlu1 %v2835_v58, %s12909_s29  ;;  %v3601_v58 = vsel %vm3583_vm6, %v3568_v62, %v13049_v52  ;;  %v13055_v62 = vld [vmem:[#allocation31_spill] sm:$0xff] }
 0x409   : > { %v3634_v55 = vsel %vm3616_vm7, %v3601_v58, %v9666_v34  ;;  %v13056_v58 = vld [vmem:[#allocation77_spill] sm:$0xff] }
 0x40a   : > { %v9785_v50 = vpop.permute.xlu0 %3082  ;;  %v9787_v22 = vpop.permute.xlu1 %2882  ;;  %v3667_v47 = vsel %vm12745_vm8, %v3634_v55, %v9703_v30 }
 0x40b   : > { %v3700_v28 = vsel %vm12744_vm9, %v3667_v47, %v9749_v59  ;;  %v13051_v59 = vld [vmem:[#allocation9_spill] sm:$0xff] }
 0x40c   : > { %3477 = vrot.lane.b32.xlu0 %v2842_v60, %s12918_s25  ;;  %3289 = vrot.lane.b32.xlu1 %v13041_v5, %s12737_s21  ;;  %v3733_v51 = vsel %vm12743_vm10, %v3700_v28, %v3369_v40  ;;  %v2846_v8 = vrot.slane %v13051_v59, 2 }
 0x40e   : > { %v3462_v39 = vpop.permute.xlu0 %3461  ;;  %v3274_v42 = vpop.permute.xlu1 %3273 }
 0x40f   : > { %v3699_v31 = vsel %vm12744_vm9, %v3666_v25, %v3274_v42  ;;  %v3766_v34 = vsel %vm12742_vm11, %v3733_v51, %v3462_v39  ;;  %v13052_v39 = vld [vmem:[#allocation29_spill] sm:$0xff]  ;;  %v1724_v42 = vld [vmem:[%s8364_s20 + $0xf8] sm:$0xff] }
 0x410   : > { %3199 = vrot.lane.b32.xlu0 %v2842_v60, %s12921_s30  ;;  %2994 = vrot.lane.b32.xlu1 %v13041_v5, %s12791_s27  ;;  %v13057_v25 = vld [vmem:[#allocation8_spill] sm:$0xff] }
 0x411   : > { %v3537_v55 = vsel %vm12740_vm0, %v13057_v25, %v13056_v58 }
 0x412   : > { %v9796_v33 = vpop.permute.xlu0 %3183  ;;  %v9798_v56 = vpop.permute.xlu1 %2978  ;;  %v3569_v47 = vsel %vm12739_vm5, %v3537_v55, %v9787_v22 }
 0x414   : > { %2904 = vrot.lane.b32.xlu0 %v2842_v60, %s12909_s29  ;;  %3382 = vrot.lane.b32.xlu1 %v13043_v9, %s12912_s12  ;;  %v2847_v60 = vsel %vm2770_vm4, %v2844_v63, %v2846_v8 }
 0x416   : > { %v9808_v32 = vpop.permute.xlu0 %2888  ;;  %v3367_v13 = vpop.permute.xlu1 %3366 }
 0x417   : > { %v3732_v49 = vsel %vm12743_vm10, %v3699_v31, %v3367_v13  ;;  %v2397_v13 = vsel %vm2365_vm2, %v1724_v42, %v13053_v35  ;;  %v2843_v31 = vrot.slane %v13052_v39, 2 }
 0x418   : > { %3295 = vrot.lane.b32.xlu0 %v13047_v17, %s12737_s21  ;;  %3096 = vrot.lane.b32.xlu1 %v13043_v9, %s12915_s18  ;;  %v1723_v9 = vld [vmem:[%s8364_s20 + $0xf0] sm:$0xff]  ;;  %v2476_v27 = vrot.slane %v2397_v13, 7  ;;  %s6842_s20 = sshll.u32 %s7324_s17, 8  ;;  %s7247_s17 = smov [#allocation2]  }
 0x419   : > { %v2396_v1 = vsel %vm2365_vm2, %v1723_v9, %v13054_v10  ;;  %s12601_s11 = scalar_lea.hbm %s12651_s10, %s6842_s20 }
 0x41a   : > { %v9822_v41 = vpop.permute.xlu0 %3279  ;;  %v9824_v18 = vpop.permute.xlu1 %3080  ;;  %v2475_v57 = vrot.slane %v2396_v1, 7  ;;  %v2556_v52 = vsel %vm1436_vm1, %v2476_v27, 0.0 }
 0x41b   : > { %v3042_v59 = vrot.slane %v2556_v52, 1 }
 0x41c   : > { %3000 = vrot.lane.b32.xlu0 %v13047_v17, %s12791_s27  ;;  %3475 = vrot.lane.b32.xlu1 %v2840_v46, %s12918_s25 }
 0x41e   : > { %v9841_v19 = vpop.permute.xlu0 %2984  ;;  %v3460_v54 = vpop.permute.xlu1 %3459 }
 0x41f   : > { %v3765_v44 = vsel %vm12742_vm11, %v3732_v49, %v3460_v54  ;;  %v13058_v49 = vld [vmem:[#allocation71_spill] sm:$0xff]  ;;  %v13059_v54 = vld [vmem:[#allocation16_spill] sm:$0xff] }
 0x420   : > { %3388 = vrot.lane.b32.xlu0 %v13050_v2, %s12912_s12  ;;  %3197 = vrot.lane.b32.xlu1 %v2840_v46, %s12921_s30  ;;  %v3538_v28 = vsel %vm12740_vm0, %v13059_v54, %v13058_v49 }
 0x421   : > { %6990 = vmatprep.mubr.msk.f32.mxu1 %vm12741_vm12, %v3765_v44  ;;  %v3602_v44 = vsel %vm3583_vm6, %v3569_v47, %v9798_v56  ;;  %v3570_v8 = vsel %vm12739_vm5, %v3538_v28, %v9725_v20  ;;  %v13062_v28 = vld [vmem:[#allocation93_spill] sm:$0xff] }
 0x422   : > { %6991 = vmatmul.mubr.msk.f32.gmra.mrb[16].mxu1 %vm12741_vm12, %v3766_v34  ;;  %v3373_v30 = vpop.permute.xlu0 %3372  ;;  %v3182_v29 = vpop.permute.xlu1 %3181  ;;  %v2845_v34 = vsel %vm2770_vm4, %v2843_v31, %v2844_v63  ;;  %v3603_v42 = vsel %vm3583_vm6, %v3570_v8, %v9765_v16 }
 0x423   : > { %v3636_v56 = vsel %vm3616_vm7, %v3603_v42, %v9785_v50 }
 0x424   : > { %3102 = vrot.lane.b32.xlu0 %v13050_v2, %s12915_s18  ;;  %2902 = vrot.lane.b32.xlu1 %v2840_v46, %s12909_s29  ;;  %v9885_v46 = vsel %vm1436_vm1, %v2475_v57, %v2476_v27  ;;  %v3143_v27 = vrot.slane %v2556_v52, 2 }
 0x425   : > { %v3040_v22 = vrot.slane %v9885_v46, 1 }
 0x426   : > { %v9858_v40 = vpop.permute.xlu0 %3086  ;;  %v9860_v61 = vpop.permute.xlu1 %2886 }
 0x427   : > { %v3043_v10 = vsel %vm2599_vm3, %v3040_v22, %v3042_v59 }
 0x428   : > { %3481 = vrot.lane.b32.xlu0 %v2847_v60, %s12918_s25  ;;  %3293 = vrot.lane.b32.xlu1 %v13052_v39, %s12737_s21 }
 0x42a   : > { %v3466_v24 = vpop.permute.xlu0 %3465  ;;  %v3278_v53 = vpop.permute.xlu1 %3277 }
 0x42c   : > { %3203 = vrot.lane.b32.xlu0 %v2847_v60, %s12921_s30  ;;  %2998 = vrot.lane.b32.xlu1 %v13052_v39, %s12791_s27 }
 0x42e   : > { %v9875_v4 = vpop.permute.xlu0 %3187  ;;  %v9877_v0 = vpop.permute.xlu1 %2982 }
 0x430   : > { %2908 = vrot.lane.b32.xlu0 %v2847_v60, %s12909_s29  ;;  %3386 = vrot.lane.b32.xlu1 %v13055_v62, %s12912_s12  ;;  %v3635_v60 = vsel %vm3616_vm7, %v3602_v44, %v9824_v18  ;;  %v3669_v18 = vsel %vm12745_vm8, %v3636_v56, %v9796_v33  ;;  %v3539_v44 = vsel %vm12740_vm0, %v13062_v28, %v9728_v15 }
 0x431   : > { %v3668_v9 = vsel %vm12745_vm8, %v3635_v60, %v3182_v29  ;;  %v3702_v29 = vsel %vm12744_vm9, %v3669_v18, %v9822_v41  ;;  %v3141_v41 = vrot.slane %v9885_v46, 2  ;;  %v3571_v8 = vsel %vm12739_vm5, %v3539_v44, %v9860_v61 }
 0x432   : > { %v9882_v11 = vpop.permute.xlu0 %2892  ;;  %v3371_v43 = vpop.permute.xlu1 %3370  ;;  %v3701_v20 = vsel %vm12744_vm9, %v3668_v9, %v3278_v53  ;;  %v3735_v1 = vsel %vm12743_vm10, %v3702_v29, %v3373_v30  ;;  %v3604_v42 = vsel %vm3583_vm6, %v3571_v8, %v9877_v0 }
 0x433   : > { %v3734_v63 = vsel %vm12743_vm10, %v3701_v20, %v3371_v43  ;;  %v3768_v50 = vsel %vm12742_vm11, %v3735_v1, %v3466_v24  ;;  %v3144_v43 = vsel %vm2770_vm4, %v3141_v41, %v3143_v27  ;;  %v2540_v24 = vsel %vm1436_vm1, 0.0, %v2475_v57  ;;  %v13061_v57 = vld [vmem:[#allocation6_spill] sm:$0xff] }
 0x434   : > { %3299 = vrot.lane.b32.xlu0 %v9885_v46, %s12737_s21  ;;  %3100 = vrot.lane.b32.xlu1 %v13055_v62, %s12915_s18  ;;  %v3039_v52 = vrot.slane %v2540_v24, 1  ;;  %v3140_v60 = vrot.slane %v2540_v24, 2 }
 0x436   : > { %v9903_v51 = vpop.permute.xlu0 %3283  ;;  %v3085_v2 = vpop.permute.xlu1 %3084  ;;  %v3041_v47 = vsel %vm2599_vm3, %v3039_v52, %v3040_v22  ;;  %v3142_v18 = vsel %vm2770_vm4, %v3140_v60, %v3141_v41  ;;  %v13066_v52 = vld [vmem:[#allocation69_spill] sm:$0xff] }
 0x437   : > { %v3637_v20 = vsel %vm3616_vm7, %v3604_v42, %v3085_v2 }
 0x438   : > { %3004 = vrot.lane.b32.xlu0 %v9885_v46, %s12791_s27  ;;  %3479 = vrot.lane.b32.xlu1 %v2845_v34, %s12918_s25  ;;  %v13060_v46 = vmov 0.0  }
 0x43a   : > { %v9923_v35 = vpop.permute.xlu0 %2988  ;;  %v3464_v16 = vpop.permute.xlu1 %3463 }
 0x43b   : > { %v3767_v13 = vsel %vm12742_vm11, %v3734_v63, %v3464_v16 }
 0x43c   : > { %3392 = vrot.lane.b32.xlu0 %v3043_v10, %s12912_s12  ;;  %3201 = vrot.lane.b32.xlu1 %v2845_v34, %s12921_s30 }
 0x43d   : > { %6993 = vmatprep.mubr.msk.f32.mxu1 %vm12741_vm12, %v3767_v13 }
 0x43e   : > { %6994 = vmatmul.mubr.msk.f32.gmra.mrb[18].mxu1 %vm12741_vm12, %v3768_v50  ;;  %v3377_v33 = vpop.permute.xlu0 %3376  ;;  %v3186_v53 = vpop.permute.xlu1 %3185  ;;  %v13064_v50 = vld [vmem:[#allocation5_spill] sm:$0xff] }
 0x43f   : > { %v3670_v61 = vsel %vm12745_vm8, %v3637_v20, %v3186_v53 }
 0x440   : > { %3106 = vrot.lane.b32.xlu0 %v3043_v10, %s12915_s18  ;;  %2906 = vrot.lane.b32.xlu1 %v2845_v34, %s12909_s29  ;;  %v13063_v34 = vld [vmem:[#allocation81_spill] sm:$0xff] }
 0x441   : > { %v3540_v59 = vsel %vm12740_vm0, %v13063_v34, %v9600_v26 }
 0x442   : > { %v9938_v30 = vpop.permute.xlu0 %3090  ;;  %v2891_v62 = vpop.permute.xlu1 %2890  ;;  %v3572_v22 = vsel %vm12739_vm5, %v3540_v59, %v9808_v32 }
 0x443   : > { %v3605_v15 = vsel %vm3583_vm6, %v3572_v22, %v9841_v19 }
 0x444   : > { %3485 = vrot.lane.b32.xlu0 %v3144_v43, %s12918_s25  ;;  %3297 = vrot.lane.b32.xlu1 %v2540_v24, %s12737_s21  ;;  %v3638_v26 = vsel %vm3616_vm7, %v3605_v15, %v9858_v40 }
 0x445   : > { %v3671_v32 = vsel %vm12745_vm8, %v3638_v26, %v9875_v4 }
 0x446   : > { %v3470_v58 = vpop.permute.xlu0 %3469  ;;  %v3282_v25 = vpop.permute.xlu1 %3281  ;;  %v3704_v63 = vsel %vm12744_vm9, %v3671_v32, %v9903_v51 }
 0x447   : > { %v3703_v0 = vsel %vm12744_vm9, %v3670_v61, %v3282_v25  ;;  %v3737_v29 = vsel %vm12743_vm10, %v3704_v63, %v3377_v33  ;;  %v13065_v25 = vld [vmem:[#allocation76_spill] sm:$0xff]  ;;  %v3543_v63 = vsel %vm12740_vm0, %v12982_v12, %v9705_v37 }
 0x448   : > { %3002 = vrot.lane.b32.xlu1 %v2540_v24, %s12791_s27  ;;  %3301 = vrot.lane.b32.xlu0 %v13060_v46, %s12737_s21  ;;  %v3770_v13 = vsel %vm12742_vm11, %v3737_v29, %v3470_v58  ;;  %v3541_v46 = vsel %vm12740_vm0, %v8795_v21, %v13065_v25  ;;  %s13074_s21 = smov 48  }
 0x44a   : > { %v3192_v55 = vpop.permute.xlu0 %3191  ;;  %v2987_v31 = vpop.permute.xlu1 %2986 }
 0x44c   : > { %3390 = vrot.lane.b32.xlu1 %v3041_v47, %s12912_s12  ;;  %3487 = vrot.lane.b32.xlu0 %v13061_v57, %s12918_s25 }
 0x44e   : > { %v9951_v49 = vpop.permute.xlu0 %2896  ;;  %v3375_v54 = vpop.permute.xlu1 %3374 }
 0x44f   : > { %v3736_v19 = vsel %vm12743_vm10, %v3703_v0, %v3375_v54 }
 0x450   : > { %3104 = vrot.lane.b32.xlu1 %v3041_v47, %s12915_s18  ;;  %v3573_v47 = vsel %vm12739_vm5, %v3541_v46, %v2891_v62 }
 0x451   : > { %v3606_v54 = vsel %vm3583_vm6, %v3573_v47, %v2987_v31 }
 0x452   : > { %v3288_v9 = vpop.permute.xlu0 %3287  ;;  %v3089_v56 = vpop.permute.xlu1 %3088 }
 0x453   : > { %v3639_v59 = vsel %vm3616_vm7, %v3606_v54, %v3089_v56 }
 0x454   : > { %3483 = vrot.lane.b32.xlu1 %v3142_v18, %s12918_s25 }
 0x456   : > { %v2993_v2 = vpop.permute.xlu0 %2992  ;;  %v3468_v16 = vpop.permute.xlu1 %3467 }
 0x457   : > { %v3769_v40 = vsel %vm12742_vm11, %v3736_v19, %v3468_v16  ;;  %v3544_v19 = vsel %vm12740_vm0, %v9180_v6, %v9584_v23 }
 0x458   : > { %3205 = vrot.lane.b32.xlu1 %v3142_v18, %s12921_s30  ;;  %6996 = vmatprep.mubr.msk.f32.mxu1 %vm12741_vm12, %v3769_v40  ;;  %v3576_v29 = vsel %vm12739_vm5, %v3544_v19, %v9951_v49  ;;  %v13067_v19 = vld [vmem:[#allocation87_spill] sm:$0xff] }
 0x459   : > { %6997 = vmatmul.mubr.msk.f32.gmra.mrb[20].mxu1 %vm12741_vm12, %v3770_v13 }
 0x45a   : > { %v3381_v4 = vpop.permute.xlu0 %3380  ;;  %v3190_v10 = vpop.permute.xlu1 %3189 }
 0x45b   : > { %v3672_v8 = vsel %vm12745_vm8, %v3639_v59, %v3190_v10  ;;  %v3609_v10 = vsel %vm3583_vm6, %v3576_v29, %v2993_v2 }
 0x45c   : > { %3207 = vrot.lane.b32.xlu1 %v3144_v43, %s12921_s30  ;;  %v3542_v43 = vsel %vm12740_vm0, %v8691_v7, %v13066_v52 }
 0x45d   : > { %v3574_v57 = vsel %vm12739_vm5, %v3542_v43, %v9882_v11 }
 0x45e   : > { %v3095_v51 = vpop.permute.xlu0 %3094  ;;  %v2895_v1 = vpop.permute.xlu1 %2894  ;;  %v3607_v34 = vsel %vm3583_vm6, %v3574_v57, %v9923_v35 }
 0x45f   : > { %v3640_v21 = vsel %vm3616_vm7, %v3607_v34, %v9938_v30  ;;  %v3575_v16 = vsel %vm12739_vm5, %v3543_v63, %v2895_v1  ;;  %v3642_v12 = vsel %vm3616_vm7, %v3609_v10, %v3095_v51 }
 0x460   : > { %3394 = vrot.lane.b32.xlu1 %v13064_v50, %s12912_s12  ;;  %v3673_v7 = vsel %vm12745_vm8, %v3640_v21, %v3192_v55 }
 0x461   : > { %v3706_v11 = vsel %vm12744_vm9, %v3673_v7, %v3288_v9 }
 0x462   : > { %v3474_v33 = vpop.permute.xlu0 %3473  ;;  %v3286_v53 = vpop.permute.xlu1 %3285  ;;  %v3739_v35 = vsel %vm12743_vm10, %v3706_v11, %v3381_v4 }
 0x463   : > { %v3705_v62 = vsel %vm12744_vm9, %v3672_v8, %v3286_v53  ;;  %v3772_v56 = vsel %vm12742_vm11, %v3739_v35, %v3474_v33 }
 0x466   : > { %v3196_v27 = vpop.permute.xlu0 %3195  ;;  %v2991_v41 = vpop.permute.xlu1 %2990 }
 0x467   : > { %v3608_v40 = vsel %vm3583_vm6, %v3575_v16, %v2991_v41  ;;  %v3675_v6 = vsel %vm12745_vm8, %v3642_v12, %v3196_v27  ;;  %v3545_v16 = vsel %vm12740_vm0, %v13014_v14, %v13067_v19 }
 0x46a   : > { %v9989_v24 = vpop.permute.xlu0 %2900  ;;  %v3379_v58 = vpop.permute.xlu1 %3378 }
 0x46b   : > { %v3738_v31 = vsel %vm12743_vm10, %v3705_v62, %v3379_v58 }
 0x46e   : > { %v3292_v28 = vpop.permute.xlu0 %3291  ;;  %v3093_v44 = vpop.permute.xlu1 %3092 }
 0x46f   : > { %v3641_v50 = vsel %vm3616_vm7, %v3608_v40, %v3093_v44  ;;  %v3708_v1 = vsel %vm12744_vm9, %v3675_v6, %v3292_v28  ;;  %v13068_v40 = vld [vmem:[#allocation75_spill] sm:$0xff] }
 0x470   : > { %v3546_v10 = vsel %vm12740_vm0, %v12989_v38, %v13068_v40 }
 0x472   : > { %v10011_v60 = vpop.permute.xlu0 %2996  ;;  %v3472_v22 = vpop.permute.xlu1 %3471 }
 0x473   : > { %v3771_v42 = vsel %vm12742_vm11, %v3738_v31, %v3472_v22 }
 0x474   : > { %6999 = vmatprep.mubr.msk.f32.mxu1 %vm12741_vm12, %v3771_v42 }
 0x475   : > { %7000 = vmatmul.mubr.msk.f32.gmra.mrb[22].mxu1 %vm12741_vm12, %v3772_v56 }
 0x476   : > { %v3385_v30 = vpop.permute.xlu0 %3384  ;;  %v3194_v55 = vpop.permute.xlu1 %3193 }
 0x477   : > { %v3674_v37 = vsel %vm12745_vm8, %v3641_v50, %v3194_v55  ;;  %v3741_v41 = vsel %vm12743_vm10, %v3708_v1, %v3385_v30 }
 0x47a   : > { %v10018_v15 = vpop.permute.xlu0 %3098  ;;  %v2899_v9 = vpop.permute.xlu1 %2898 }
 0x47b   : > { %v3577_v50 = vsel %vm12739_vm5, %v3545_v16, %v2899_v9 }
 0x47e   : > { %v3478_v20 = vpop.permute.xlu0 %3477  ;;  %v3290_v18 = vpop.permute.xlu1 %3289 }
 0x47f   : > { %v3707_v23 = vsel %vm12744_vm9, %v3674_v37, %v3290_v18  ;;  %v3774_v58 = vsel %vm12742_vm11, %v3741_v41, %v3478_v20  ;;  %v3578_v37 = vsel %vm12739_vm5, %v3546_v10, %v9989_v24 }
 0x480   : > { %v3611_v14 = vsel %vm3583_vm6, %v3578_v37, %v10011_v60 }
 0x481   : > { %v3644_v38 = vsel %vm3616_vm7, %v3611_v14, %v10018_v15 }
 0x482   : > { %v10020_v26 = vpop.permute.xlu0 %3199  ;;  %v2995_v61 = vpop.permute.xlu1 %2994 }
 0x483   : > { %v3610_v6 = vsel %vm3583_vm6, %v3577_v50, %v2995_v61  ;;  %v3677_v41 = vsel %vm12745_vm8, %v3644_v38, %v10020_v26 }
 0x486   : > { %v10022_v32 = vpop.permute.xlu0 %2904  ;;  %v3383_v0 = vpop.permute.xlu1 %3382 }
 0x487   : > { %v3740_v49 = vsel %vm12743_vm10, %v3707_v23, %v3383_v0 }
 0x48a   : > { %v10034_v13 = vpop.permute.xlu0 %3295  ;;  %v3097_v4 = vpop.permute.xlu1 %3096 }
 0x48b   : > { %v3710_v61 = vsel %vm12744_vm9, %v3677_v41, %v10034_v13 }
 0x48e   : > { %v10044_v33 = vpop.permute.xlu0 %3000  ;;  %v3476_v53 = vpop.permute.xlu1 %3475 }
 0x48f   : > { %v3773_v2 = vsel %vm12742_vm11, %v3740_v49, %v3476_v53  ;;  %v3643_v49 = vsel %vm3616_vm7, %v3610_v6, %v3097_v4 }
 0x490   : > { %7002 = vmatprep.mubr.msk.f32.mxu1 %vm12741_vm12, %v3773_v2 }
 0x491   : > { %v10050_v51 = vpop.f32.mrb[0].mxu1  ;;  %7003 = vmatmul.mubr.msk.f32.gmra.mrb[24].mxu1 %vm12741_vm12, %v3774_v58 }
 0x492   : > { %v4104_v27 = vsel %vm12740_vm0, %v10050_v51, 0.0  ;;  %v10055_v25 = vpop.f32.mrb[1].mxu1  ;;  %v3389_v46 = vpop.permute.xlu0 %3388 }
 0x493   : > { %v4103_v52 = vsel %vm12740_vm0, %v10055_v25, 0.0  ;;  %v3198_v43 = vpop.permute.xlu1 %3197  ;;  %v3743_v60 = vsel %vm12743_vm10, %v3710_v61, %v3389_v46  ;;  %v3547_v46 = vsel %vm12740_vm0, %v13041_v5, %v9751_v3 }
 0x494   : > { %v4105_v47 = vadd.f32 %v4104_v27, %v4103_v52  ;;  %v3676_v9 = vsel %vm12745_vm8, %v3643_v49, %v3198_v43  ;;  %v13070_v49 = vld [vmem:[#allocation86_spill] sm:$0xff] }
 0x495   : > { %v3549_v38 = vsel %vm12740_vm0, %v13052_v39, %v13070_v49 }
 0x496   : > { %v10059_v57 = vpop.permute.xlu0 %3102 }
 0x497   : > { %v2903_v54 = vpop.permute.xlu1 %2902 }
 0x49a   : > { %v10061_v28 = vpop.f32.mrb[2].mxu1  ;;  %v3482_v59 = vpop.permute.xlu0 %3481 }
 0x49b   : > { %v3294_v44 = vpop.permute.xlu1 %3293  ;;  %v10063_v34 = vpop.f32.mrb[3].mxu1  ;;  %v4108_v7 = vsel %vm12740_vm0, %v10061_v28, 0.0  ;;  %v3776_v27 = vsel %vm12742_vm11, %v3743_v60, %v3482_v59  ;;  %v3548_v59 = vsel %vm12740_vm0, %v13033_v36, %v9610_v48 }
 0x49c   : > { %v4106_v21 = vsel %vm12740_vm0, %v10063_v34, 0.0  ;;  %v3709_v24 = vsel %vm12744_vm9, %v3676_v9, %v3294_v44 }
 0x49d   : > { %v4107_v8 = vadd.f32 %v4106_v21, %v4105_v47 }
 0x49e   : > { %v10069_v62 = vpop.f32.mrb[4].mxu1  ;;  %v3204_v56 = vpop.permute.xlu0 %3203 }
 0x49f   : > { %v2999_v11 = vpop.permute.xlu1 %2998  ;;  %v10071_v31 = vpop.f32.mrb[5].mxu1  ;;  %v4109_v22 = vadd.f32 %v4108_v7, %v4107_v8  ;;  %v4112_v30 = vsel %vm12740_vm0, %v10069_v62, 0.0 }
 0x4a0   : > { %v4110_v35 = vsel %vm12740_vm0, %v10071_v31, 0.0 }
 0x4a1   : > { %v4111_v42 = vadd.f32 %v4110_v35, %v4109_v22  ;;  %v3579_v22 = vsel %vm12739_vm5, %v3547_v46, %v2903_v54 }
 0x4a2   : > { %v10077_v55 = vpop.f32.mrb[6].mxu1  ;;  %v2909_v53 = vpop.permute.xlu0 %2908 }
 0x4a3   : > { %v3387_v20 = vpop.permute.xlu1 %3386  ;;  %v10079_v18 = vpop.f32.mrb[7].mxu1  ;;  %v4113_v0 = vadd.f32 %v4112_v30, %v4111_v42  ;;  %v4116_v12 = vsel %vm12740_vm0, %v10077_v55, 0.0  ;;  %v3580_v42 = vsel %vm12739_vm5, %v3548_v59, %v10022_v32  ;;  %v3612_v30 = vsel %vm3583_vm6, %v3579_v22, %v2999_v11 }
 0x4a4   : > { %v4114_v63 = vsel %vm12740_vm0, %v10079_v18, 0.0  ;;  %v3742_v2 = vsel %vm12743_vm10, %v3709_v24, %v3387_v20  ;;  %v3613_v3 = vsel %vm3583_vm6, %v3580_v42, %v10044_v33 }
 0x4a5   : > { %v4115_v29 = vadd.f32 %v4114_v63, %v4113_v0  ;;  %v3646_v48 = vsel %vm3616_vm7, %v3613_v3, %v10059_v57 }
 0x4a6   : > { %v3300_v15 = vpop.permute.xlu0 %3299  ;;  %v3679_v54 = vsel %vm12745_vm8, %v3646_v48, %v3204_v56 }
 0x4a7   : > { %v3101_v23 = vpop.permute.xlu1 %3100  ;;  %v4117_v1 = vadd.f32 %v4116_v12, %v4115_v29  ;;  %v3712_v29 = vsel %vm12744_vm9, %v3679_v54, %v3300_v15 }
 0x4a8   : > { %v3645_v5 = vsel %vm3616_vm7, %v3612_v30, %v3101_v23 }
 0x4aa   : > { %v3005_v43 = vpop.permute.xlu0 %3004 }
 0x4ab   : > { %v3480_v58 = vpop.permute.xlu1 %3479 }
 0x4ac   : > { %v3775_v4 = vsel %vm12742_vm11, %v3742_v2, %v3480_v58 }
 0x4ad   : > { %7005 = vmatprep.mubr.msk.f32.mxu1 %vm12741_vm12, %v3775_v4 }
 0x4ae   : > { %7006 = vmatmul.mubr.msk.f32.gmra.mrb[26].mxu1 %vm12741_vm12, %v3776_v27  ;;  %v3393_v44 = vpop.permute.xlu0 %3392 }
 0x4af   : > { %v3202_v26 = vpop.permute.xlu1 %3201  ;;  %v3745_v10 = vsel %vm12743_vm10, %v3712_v29, %v3393_v44 }
 0x4b0   : > { %v3678_v36 = vsel %vm12745_vm8, %v3645_v5, %v3202_v26 }
 0x4b2   : > { %v3107_v8 = vpop.permute.xlu0 %3106 }
 0x4b3   : > { %v2907_v52 = vpop.permute.xlu1 %2906 }
 0x4b4   : > { %v3581_v24 = vsel %vm12739_vm5, %v3549_v38, %v2907_v52 }
 0x4b6   : > { %v3486_v11 = vpop.permute.xlu0 %3485 }
 0x4b7   : > { %v3298_v47 = vpop.permute.xlu1 %3297  ;;  %v3778_v12 = vsel %vm12742_vm11, %v3745_v10, %v3486_v11 }
 0x4b8   : > { %v3711_v19 = vsel %vm12744_vm9, %v3678_v36, %v3298_v47 }
 0x4ba   : > { %v10163_v60 = vpop.permute.xlu0 %3301 }
 0x4bb   : > { %v3003_v13 = vpop.permute.xlu1 %3002  ;;  %13071 = vst [vmem:[#allocation19_spill] sm:$0xff] %v10163_v60 }
 0x4bc   : > { %v3614_v58 = vsel %vm3583_vm6, %v3581_v24, %v3003_v13 }
 0x4be   : > { %v10177_v44 = vpop.permute.xlu0 %3487 }
 0x4bf   : > { %v3391_v21 = vpop.permute.xlu1 %3390  ;;  %13072 = vst [vmem:[#allocation21_spill] sm:$0xff] %v10177_v44 }
 0x4c0   : > { %v3744_v33 = vsel %vm12743_vm10, %v3711_v19, %v3391_v21 }
 0x4c1   : > { %v10115_v7 = vpop.f32.mrb[8].mxu1 }
 0x4c2   : > { %v10121_v35 = vpop.f32.mrb[9].mxu1  ;;  %v4120_v32 = vsel %vm12740_vm0, %v10115_v7, 0.0 }
 0x4c3   : > { %v4118_v20 = vsel %vm12740_vm0, %v10121_v35, 0.0  ;;  %v3105_v0 = vpop.permute.xlu1 %3104 }
 0x4c4   : > { %v4119_v63 = vadd.f32 %v4118_v20, %v4117_v1  ;;  %v13069_v1 = vld [vmem:[#allocation73_spill] sm:$0xff]  ;;  %v3647_v39 = vsel %vm3616_vm7, %v3614_v58, %v3105_v0 }
 0x4c5   : > { %v3550_v14 = vsel %vm12740_vm0, %v13047_v17, %v13069_v1 }
 0x4c6   : > { %v4121_v16 = vadd.f32 %v4120_v32, %v4119_v63  ;;  %v3582_v41 = vsel %vm12739_vm5, %v3550_v14, %v2909_v53 }
 0x4c7   : > { %v3484_v40 = vpop.permute.xlu1 %3483  ;;  %v3615_v2 = vsel %vm3583_vm6, %v3582_v41, %v3005_v43 }
 0x4c8   : > { %v3777_v57 = vsel %vm12742_vm11, %v3744_v33, %v3484_v40  ;;  %v10142_v50 = vpop.f32.mrb[10].mxu1  ;;  %v3648_v17 = vsel %vm3616_vm7, %v3615_v2, %v3107_v8 }
 0x4c9   : > { %v10145_v37 = vpop.f32.mrb[11].mxu1  ;;  %7008 = vmatprep.mubr.msk.f32.mxu1 %vm12741_vm12, %v3777_v57  ;;  %v4124_v9 = vsel %vm12740_vm0, %v10142_v50, 0.0 }
 0x4ca   : > { %v4122_v56 = vsel %vm12740_vm0, %v10145_v37, 0.0  ;;  %7009 = vmatmul.mubr.msk.f32.gmra.mrb[28].mxu1 %vm12741_vm12, %v3778_v12 }
 0x4cb   : > { %v4123_v6 = vadd.f32 %v4122_v56, %v4121_v16  ;;  %v3206_v23 = vpop.permute.xlu1 %3205 }
 0x4cc   : > { %v3680_v53 = vsel %vm12745_vm8, %v3647_v39, %v3206_v23 }
 0x4cd   : > { %v4125_v61 = vadd.f32 %v4124_v9, %v4123_v6  ;;  %v3713_v8 = vsel %vm12744_vm9, %v3680_v53, %v10163_v60 }
 0x4ce   : > { %v10165_v4 = vpop.f32.mrb[12].mxu1 }
 0x4cf   : > { %v3208_v27 = vpop.permute.xlu1 %3207  ;;  %v10169_v15 = vpop.f32.mrb[13].mxu1  ;;  %v4128_v47 = vsel %vm12740_vm0, %v10165_v4, 0.0 }
 0x4d0   : > { %v3681_v26 = vsel %vm12745_vm8, %v3648_v17, %v3208_v27  ;;  %v4126_v52 = vsel %vm12740_vm0, %v10169_v15, 0.0 }
 0x4d1   : > { %v4127_v43 = vadd.f32 %v4126_v52, %v4125_v61  ;;  %v3714_v13 = vsel %vm12744_vm9, %v3681_v26, %v10163_v60 }
 0x4d3   : > { %v10181_v21 = vpop.permute.xlu1 %3394  ;;  %v4129_v46 = vadd.f32 %v4128_v47, %v4127_v43 }
 0x4d4   : > { %13073 = vst [vmem:[#allocation11_spill] sm:$0xff] %v10181_v21  ;;  %v3746_v59 = vsel %vm12743_vm10, %v3713_v8, %v10181_v21  ;;  %v3747_v22 = vsel %vm12743_vm10, %v3714_v13, %v10181_v21 }
 0x4d5   : > { %v3779_v42 = vsel %vm12742_vm11, %v3746_v59, %v10177_v44  ;;  %v3780_v30 = vsel %vm12742_vm11, %v3747_v22, %v10177_v44 }
 0x4d6   : > { %7011 = vmatprep.mubr.msk.f32.mxu1 %vm12741_vm12, %v3779_v42 }
 0x4d7   : > { %7012 = vmatmul.mubr.msk.f32.gmra.mrb[30].mxu1 %vm12741_vm12, %v3780_v30 }
 0x4d9   : > { %v10195_v20 = vpop.f32.mrb[14].mxu1 }
 0x4da   : > { %v10197_v0 = vpop.f32.mrb[15].mxu1  ;;  %v4132_v63 = vsel %vm12740_vm0, %v10195_v20, 0.0 }
 0x4db   : > { %v4130_v3 = vsel %vm12740_vm0, %v10197_v0, 0.0 }
 0x4dc   : > { %v4131_v5 = vadd.f32 %v4130_v3, %v4129_v46 }
 0x4de   : > { %v4133_v48 = vadd.f32 %v4132_v63, %v4131_v5 }
 0x4f5   : > { %v10203_v36 = vpop.f32.mrb[16].mxu1 }
 0x4f6   : > { %v10205_v32 = vpop.f32.mrb[17].mxu1  ;;  %v4136_v19 = vsel %vm12740_vm0, %v10203_v36, 0.0 }
 0x4f7   : > { %v4134_v54 = vsel %vm12740_vm0, %v10205_v32, 0.0 }
 0x4f8   : > { %v4135_v11 = vadd.f32 %v4134_v54, %v4133_v48 }
 0x4fa   : > { %v4137_v16 = vadd.f32 %v4136_v19, %v4135_v11 }
 0x511   : > { %v10211_v29 = vpop.f32.mrb[18].mxu1 }
 0x512   : > { %v10213_v33 = vpop.f32.mrb[19].mxu1  ;;  %v4140_v57 = vsel %vm12740_vm0, %v10211_v29, 0.0 }
 0x513   : > { %v4138_v40 = vsel %vm12740_vm0, %v10213_v33, 0.0 }
 0x514   : > { %v4139_v10 = vadd.f32 %v4138_v40, %v4137_v16 }
 0x516   : > { %v4141_v12 = vadd.f32 %v4140_v57, %v4139_v10 }
 0x52c   : > { %v10219_v56 = vpop.f32.mrb[20].mxu1 }
 0x52d   : > { %v4044_v6 = vpop.f32.mrb[21].mxu1  ;;  %v4144_v14 = vsel %vm12740_vm0, %v10219_v56, 0.0 }
 0x52e   : > { %v4142_v23 = vsel %vm12740_vm0, %v4044_v6, 0.0 }
 0x52f   : > { %v4143_v1 = vadd.f32 %v4142_v23, %v4141_v12 }
 0x531   : > { %v4145_v49 = vadd.f32 %v4144_v14, %v4143_v1 }
 0x548   : > { %v7001_v38 = vpop.f32.mrb[22].mxu1 }
 0x549   : > { %v4054_v9 = vpop.f32.mrb[23].mxu1  ;;  %v4148_v61 = vsel %vm12740_vm0, %v7001_v38, 0.0 }
 0x54a   : > { %v4146_v41 = vsel %vm12740_vm0, %v4054_v9, 0.0 }
 0x54b   : > { %v4147_v24 = vadd.f32 %v4146_v41, %v4145_v49 }
 0x54d   : > { %v4149_v2 = vadd.f32 %v4148_v61, %v4147_v24 }
 0x564   : > { %v7004_v58 = vpop.f32.mrb[24].mxu1 }
 0x565   : > { %v4064_v17 = vpop.f32.mrb[25].mxu1  ;;  %v4152_v53 = vsel %vm12740_vm0, %v7004_v58, 0.0 }
 0x566   : > { %v4150_v39 = vsel %vm12740_vm0, %v4064_v17, 0.0 }
 0x567   : > { %v4151_v27 = vadd.f32 %v4150_v39, %v4149_v2 }
 0x569   : > { %v4153_v26 = vadd.f32 %v4152_v53, %v4151_v27 }
 0x581   : > { %v7007_v52 = vpop.f32.mrb[26].mxu1 }
 0x582   : > { %v4074_v43 = vpop.f32.mrb[27].mxu1  ;;  %v4156_v8 = vsel %vm12740_vm0, %v7007_v52, 0.0 }
 0x583   : > { %v4154_v47 = vsel %vm12740_vm0, %v4074_v43, 0.0 }
 0x584   : > { %v4155_v13 = vadd.f32 %v4154_v47, %v4153_v26 }
 0x586   : > { %v4157_v46 = vadd.f32 %v4156_v8, %v4155_v13 }
 0x59d   : > { %v7010_v59 = vpop.f32.mrb[28].mxu1 }
 0x59e   : > { %v4084_v22 = vpop.f32.mrb[29].mxu1  ;;  %v4160_v3 = vsel %vm12740_vm0, %v7010_v59, 0.0 }
 0x59f   : > { %v4158_v42 = vsel %vm12740_vm0, %v4084_v22, 0.0 }
 0x5a0   : > { %v4159_v30 = vadd.f32 %v4158_v42, %v4157_v46 }
 0x5a2   : > { %v4161_v5 = vadd.f32 %v4160_v3, %v4159_v30 }
 0x5aa   : > { %v7013_v63 = vpop.f32.mrb[30].mxu1 }
 0x5ab   : > { %v4094_v48 = vpop.f32.mrb[31].mxu1  ;;  %v4164_v19 = vsel %vm12740_vm0, %v7013_v63, 0.0 }
 0x5ac   : > { %v4162_v54 = vsel %vm12740_vm0, %v4094_v48, 0.0 }
 0x5ad   : > { %v4163_v11 = vadd.f32 %v4162_v54, %v4161_v5 }
 0x5af   : > { %v4165_v16 = vadd.f32 %v4164_v19, %v4163_v11 }
 0x5b1   : > { %v4166_v40 = vrot.slane %v4165_v16, 4 }
 0x5b3   : > { %v4167_v10 = vadd.f32 %v4166_v40, %v4165_v16 }
 0x5b5   : > { %v4168_v57 = vrot.slane %v4167_v10, 2 }
 0x5b7   : > { %v4169_v12 = vadd.f32 %v4168_v57, %v4167_v10 }
 0x5b9   : > { %v4170_v23 = vrot.slane %v4169_v12, 1 }
 0x5bb   : > { %v4171_v1 = vadd.f32 %v4170_v23, %v4169_v12 }
 0x5bd   : > { %v4173_v14 = vmul.f32 0.00390625, %v4171_v1 }
 0x5bf   : > { %v10235_v49 = vsub.f32 %v10055_v25, %v4173_v14  ;;  %v10238_v41 = vsub.f32 %v10050_v51, %v4173_v14  ;;  %v10241_v24 = vsub.f32 %v10063_v34, %v4173_v14  ;;  %v10244_v61 = vsub.f32 %v10061_v28, %v4173_v14 }
 0x5c0   : > { %v10247_v2 = vsub.f32 %v10071_v31, %v4173_v14  ;;  %v10250_v39 = vsub.f32 %v10069_v62, %v4173_v14  ;;  %v10253_v27 = vsub.f32 %v10079_v18, %v4173_v14  ;;  %v10256_v25 = vsub.f32 %v10077_v55, %v4173_v14 }
 0x5c1   : > { %v10259_v51 = vsub.f32 %v10121_v35, %v4173_v14  ;;  %v10262_v34 = vsub.f32 %v10115_v7, %v4173_v14  ;;  %v10265_v28 = vsub.f32 %v10145_v37, %v4173_v14  ;;  %v10268_v31 = vsub.f32 %v10142_v50, %v4173_v14 }
 0x5c2   : > { %v10271_v62 = vsub.f32 %v10169_v15, %v4173_v14  ;;  %v10274_v18 = vsub.f32 %v10165_v4, %v4173_v14  ;;  %v10277_v55 = vsub.f32 %v10197_v0, %v4173_v14  ;;  %v10280_v35 = vsub.f32 %v10195_v20, %v4173_v14 }
 0x5c3   : > { %v10283_v7 = vsub.f32 %v10205_v32, %v4173_v14  ;;  %v10286_v37 = vsub.f32 %v10203_v36, %v4173_v14  ;;  %v10289_v50 = vsub.f32 %v10213_v33, %v4173_v14  ;;  %v10292_v15 = vsub.f32 %v10211_v29, %v4173_v14 }
 0x5c4   : > { %v10294_v4 = vsub.f32 %v4044_v6, %v4173_v14  ;;  %v10297_v0 = vsub.f32 %v10219_v56, %v4173_v14  ;;  %v10299_v53 = vsub.f32 %v4054_v9, %v4173_v14  ;;  %v10301_v20 = vsub.f32 %v7001_v38, %v4173_v14 }
 0x5c5   : > { %v10303_v32 = vsub.f32 %v4064_v17, %v4173_v14  ;;  %v10305_v26 = vsub.f32 %v7004_v58, %v4173_v14  ;;  %v10307_v36 = vsub.f32 %v4074_v43, %v4173_v14  ;;  %v10309_v33 = vsub.f32 %v7007_v52, %v4173_v14 }
 0x5c6   : > { %v10311_v47 = vsub.f32 %v4084_v22, %v4173_v14  ;;  %v10313_v29 = vsub.f32 %v7010_v59, %v4173_v14  ;;  %v10315_v6 = vsub.f32 %v4094_v48, %v4173_v14  ;;  %v10317_v56 = vsub.f32 %v7013_v63, %v4173_v14 }
 0x5c7   : > { %v4206_v38 = vmul.f32 %v10235_v49, %v10235_v49  ;;  %v4207_v9 = vmul.f32 %v10238_v41, %v10238_v41  ;;  %v4208_v58 = vmul.f32 %v10241_v24, %v10241_v24  ;;  %v4209_v17 = vmul.f32 %v10244_v61, %v10244_v61 }
 0x5c8   : > { %v4210_v8 = vmul.f32 %v10247_v2, %v10247_v2  ;;  %v4211_v22 = vmul.f32 %v10250_v39, %v10250_v39  ;;  %v4212_v3 = vmul.f32 %v10253_v27, %v10253_v27  ;;  %v4213_v48 = vmul.f32 %v10256_v25, %v10256_v25 }
 0x5c9   : > { %v4238_v52 = vsel %vm12740_vm0, %v4206_v38, 0.0  ;;  %v4239_v43 = vsel %vm12740_vm0, %v4207_v9, 0.0  ;;  %v4241_v46 = vsel %vm12740_vm0, %v4208_v58, 0.0  ;;  %v4243_v42 = vsel %vm12740_vm0, %v4209_v17, 0.0 }
 0x5ca   : > { %v4240_v13 = vadd.f32 %v4239_v43, %v4238_v52  ;;  %v4245_v5 = vsel %vm12740_vm0, %v4210_v8, 0.0  ;;  %v4247_v54 = vsel %vm12740_vm0, %v4211_v22, 0.0  ;;  %v4214_v19 = vmul.f32 %v10259_v51, %v10259_v51 }
 0x5cb   : > { %v4249_v16 = vsel %vm12740_vm0, %v4212_v3, 0.0  ;;  %v4215_v10 = vmul.f32 %v10262_v34, %v10262_v34  ;;  %v4251_v57 = vsel %vm12740_vm0, %v4213_v48, 0.0  ;;  %v4216_v23 = vmul.f32 %v10265_v28, %v10265_v28 }
 0x5cc   : > { %v4242_v59 = vadd.f32 %v4241_v46, %v4240_v13  ;;  %v4253_v1 = vsel %vm12740_vm0, %v4214_v19, 0.0  ;;  %v4217_v38 = vmul.f32 %v10268_v31, %v10268_v31  ;;  %v4218_v17 = vmul.f32 %v10271_v62, %v10271_v62 }
 0x5cd   : > { %v4255_v9 = vsel %vm12740_vm0, %v4215_v10, 0.0  ;;  %v4257_v52 = vsel %vm12740_vm0, %v4216_v23, 0.0  ;;  %v4219_v13 = vmul.f32 %v10274_v18, %v10274_v18 }
 0x5ce   : > { %v4244_v30 = vadd.f32 %v4243_v42, %v4242_v59  ;;  %v4259_v8 = vsel %vm12740_vm0, %v4217_v38, 0.0  ;;  %v4220_v59 = vmul.f32 %v10277_v55, %v10277_v55  ;;  %v4261_v22 = vsel %vm12740_vm0, %v4218_v17, 0.0 }
 0x5cf   : > { %v4263_v3 = vsel %vm12740_vm0, %v4219_v13, 0.0 }
 0x5d0   : > { %v4246_v63 = vadd.f32 %v4245_v5, %v4244_v30  ;;  %v4221_v30 = vmul.f32 %v10280_v35, %v10280_v35  ;;  %v4265_v48 = vsel %vm12740_vm0, %v4220_v59, 0.0 }
 0x5d2   : > { %v4248_v11 = vadd.f32 %v4247_v54, %v4246_v63  ;;  %v4222_v63 = vmul.f32 %v10283_v7, %v10283_v7  ;;  %v4267_v19 = vsel %vm12740_vm0, %v4221_v30, 0.0 }
 0x5d4   : > { %v4250_v40 = vadd.f32 %v4249_v16, %v4248_v11  ;;  %v4223_v11 = vmul.f32 %v10286_v37, %v10286_v37  ;;  %v4269_v10 = vsel %vm12740_vm0, %v4222_v63, 0.0 }
 0x5d6   : > { %v4252_v12 = vadd.f32 %v4251_v57, %v4250_v40  ;;  %v4224_v40 = vmul.f32 %v10289_v50, %v10289_v50  ;;  %v4271_v23 = vsel %vm12740_vm0, %v4223_v11, 0.0 }
 0x5d8   : > { %v4254_v14 = vadd.f32 %v4253_v1, %v4252_v12  ;;  %v4225_v12 = vmul.f32 %v10292_v15, %v10292_v15  ;;  %v4273_v38 = vsel %vm12740_vm0, %v4224_v40, 0.0 }
 0x5da   : > { %v4256_v58 = vadd.f32 %v4255_v9, %v4254_v14  ;;  %v4226_v14 = vmul.f32 %v10294_v4, %v10294_v4  ;;  %v4275_v17 = vsel %vm12740_vm0, %v4225_v12, 0.0 }
 0x5dc   : > { %v4258_v43 = vadd.f32 %v4257_v52, %v4256_v58  ;;  %v4227_v58 = vmul.f32 %v10297_v0, %v10297_v0  ;;  %v4277_v13 = vsel %vm12740_vm0, %v4226_v14, 0.0 }
 0x5de   : > { %v4260_v46 = vadd.f32 %v4259_v8, %v4258_v43  ;;  %v4228_v43 = vmul.f32 %v10299_v53, %v10299_v53  ;;  %v4279_v59 = vsel %vm12740_vm0, %v4227_v58, 0.0 }
 0x5e0   : > { %v4262_v42 = vadd.f32 %v4261_v22, %v4260_v46  ;;  %v4229_v46 = vmul.f32 %v10301_v20, %v10301_v20  ;;  %v4281_v30 = vsel %vm12740_vm0, %v4228_v43, 0.0 }
 0x5e2   : > { %v4264_v5 = vadd.f32 %v4263_v3, %v4262_v42  ;;  %v4230_v42 = vmul.f32 %v10303_v32, %v10303_v32  ;;  %v4283_v63 = vsel %vm12740_vm0, %v4229_v46, 0.0 }
 0x5e4   : > { %v4266_v54 = vadd.f32 %v4265_v48, %v4264_v5  ;;  %v4231_v5 = vmul.f32 %v10305_v26, %v10305_v26  ;;  %v4285_v11 = vsel %vm12740_vm0, %v4230_v42, 0.0 }
 0x5e6   : > { %v4268_v16 = vadd.f32 %v4267_v19, %v4266_v54  ;;  %v4232_v54 = vmul.f32 %v10307_v36, %v10307_v36  ;;  %v4287_v40 = vsel %vm12740_vm0, %v4231_v5, 0.0 }
 0x5e8   : > { %v4270_v57 = vadd.f32 %v4269_v10, %v4268_v16  ;;  %v4233_v16 = vmul.f32 %v10309_v33, %v10309_v33  ;;  %v4289_v12 = vsel %vm12740_vm0, %v4232_v54, 0.0 }
 0x5ea   : > { %v4272_v1 = vadd.f32 %v4271_v23, %v4270_v57  ;;  %v4234_v57 = vmul.f32 %v10311_v47, %v10311_v47  ;;  %v4291_v14 = vsel %vm12740_vm0, %v4233_v16, 0.0  ;;  %v10420_v16 = vld [vmem:[%s12646_s5] ss:$0 sm:$0xff] }
 0x5ec   : > { %v4274_v9 = vadd.f32 %v4273_v38, %v4272_v1  ;;  %v4235_v1 = vmul.f32 %v10313_v29, %v10313_v29  ;;  %v4293_v58 = vsel %vm12740_vm0, %v4234_v57, 0.0 }
 0x5ee   : > { %v4276_v52 = vadd.f32 %v4275_v17, %v4274_v9  ;;  %v4236_v9 = vmul.f32 %v10315_v6, %v10315_v6  ;;  %v4295_v43 = vsel %vm12740_vm0, %v4235_v1, 0.0 }
 0x5f0   : > { %v4278_v8 = vadd.f32 %v4277_v13, %v4276_v52  ;;  %v4237_v52 = vmul.f32 %v10317_v56, %v10317_v56 }
 0x5f2   : > { %v4280_v22 = vadd.f32 %v4279_v59, %v4278_v8  ;;  %v4297_v8 = vsel %vm12740_vm0, %v4236_v9, 0.0  ;;  %v4299_v59 = vsel %vm12740_vm0, %v4237_v52, 0.0 }
 0x5f4   : > { %v4282_v3 = vadd.f32 %v4281_v30, %v4280_v22 }
 0x5f6   : > { %v4284_v48 = vadd.f32 %v4283_v63, %v4282_v3 }
 0x5f8   : > { %v4286_v19 = vadd.f32 %v4285_v11, %v4284_v48 }
 0x5fa   : > { %v4288_v10 = vadd.f32 %v4287_v40, %v4286_v19 }
 0x5fc   : > { %v4290_v23 = vadd.f32 %v4289_v12, %v4288_v10  ;;  %v10427_v10 = vld [vmem:[%s12647_s6] ss:$0 sm:$0xff] }
 0x5fe   : > { %v4292_v38 = vadd.f32 %v4291_v14, %v4290_v23 }
 0x600   : > { %v4294_v17 = vadd.f32 %v4293_v58, %v4292_v38 }
 0x602   : > { %v4296_v13 = vadd.f32 %v4295_v43, %v4294_v17 }
 0x604   : > { %v4298_v46 = vadd.f32 %v4297_v8, %v4296_v13 }
 0x606   : > { %v4300_v22 = vadd.f32 %v4299_v59, %v4298_v46 }
 0x608   : > { %v4301_v42 = vrot.slane %v4300_v22, 4 }
 0x60a   : > { %v4302_v30 = vadd.f32 %v4301_v42, %v4300_v22 }
 0x60c   : > { %v4303_v3 = vrot.slane %v4302_v30, 2 }
 0x60e   : > { %v4304_v5 = vadd.f32 %v4303_v3, %v4302_v30 }
 0x610   : > { %v4305_v63 = vrot.slane %v4304_v5, 1 }
 0x612   : > { %v4306_v48 = vadd.f32 %v4305_v63, %v4304_v5 }
 0x614   : > { %v4307_v54 = vmul.f32 0.00390625, %v4306_v48 }
 0x616   : > { %v4308_v11 = vadd.f32 1e-05, %v4307_v54 }
 0x618   : > { %7165 = vrsqrt.f32 %v4308_v11 }
 0x622   : > { %v10415_v19 = vpop.eup %7165 }
 0x623   : > { %v4340_v40 = vmul.f32 %v10415_v19, %v10315_v6  ;;  %v4310_v23 = vmul.f32 %v10415_v19, %v10235_v49  ;;  %v4311_v1 = vmul.f32 %v10415_v19, %v10238_v41  ;;  %v4312_v14 = vmul.f32 %v10415_v19, %v10241_v24 }
 0x624   : > { %v4313_v6 = vmul.f32 %v10415_v19, %v10244_v61  ;;  %v4322_v38 = vmul.f32 %v10415_v19, %v10271_v62  ;;  %v4323_v9 = vmul.f32 %v10415_v19, %v10274_v18  ;;  %v4324_v58 = vmul.f32 %v10415_v19, %v10277_v55 }
 0x625   : > { %v4378_v57 = vmul.f32 %v10420_v16, %v4340_v40  ;;  %v4325_v49 = vmul.f32 %v10415_v19, %v10280_v35  ;;  %v4326_v41 = vmul.f32 %v10415_v19, %v10283_v7  ;;  %v4327_v24 = vmul.f32 %v10415_v19, %v10286_v37 }
 0x626   : > { %v4328_v61 = vmul.f32 %v10415_v19, %v10289_v50  ;;  %v4329_v62 = vmul.f32 %v10415_v19, %v10292_v15  ;;  %v4330_v18 = vmul.f32 %v10415_v19, %v10294_v4  ;;  %v4331_v55 = vmul.f32 %v10415_v19, %v10297_v0 }
 0x627   : > { %v10431_v12 = vadd.f32 %v10427_v10, %v4378_v57  ;;  %v4332_v35 = vmul.f32 %v10415_v19, %v10299_v53  ;;  %v4333_v7 = vmul.f32 %v10415_v19, %v10301_v20  ;;  %v4348_v37 = vmul.f32 %v10420_v16, %v4310_v23 }
 0x628   : > { %v4334_v50 = vmul.f32 %v10415_v19, %v10303_v32  ;;  %v4335_v15 = vmul.f32 %v10415_v19, %v10305_v26  ;;  %v4336_v4 = vmul.f32 %v10415_v19, %v10307_v36  ;;  %v4337_v0 = vmul.f32 %v10415_v19, %v10309_v33 }
 0x629   : > { %v4338_v53 = vmul.f32 %v10415_v19, %v10311_v47  ;;  %v4339_v20 = vmul.f32 %v10415_v19, %v10313_v29  ;;  %v4341_v17 = vmul.f32 %v10415_v19, %v10317_v56  ;;  %v4386_v32 = vadd.f32 %v10427_v10, %v4348_v37 }
 0x62a   : > { %v4349_v52 = vmul.f32 %v10420_v16, %v4311_v1  ;;  %v4350_v26 = vmul.f32 %v10420_v16, %v4312_v14  ;;  %v4351_v36 = vmul.f32 %v10420_v16, %v4313_v6  ;;  %v4360_v43 = vmul.f32 %v10420_v16, %v4322_v38 }
 0x62b   : > { %vm4418_vm13 = vcmp.ge.f32.partialorder %v4386_v32, 0.0  ;;  %v4450_v33 = vmul.f32 0.1, %v4386_v32  ;;  %v4361_v47 = vmul.f32 %v10420_v16, %v4323_v9  ;;  %v4362_v13 = vmul.f32 %v10420_v16, %v4324_v58 }
 0x62c   : > { %v4363_v29 = vmul.f32 %v10420_v16, %v4325_v49  ;;  %v4364_v56 = vmul.f32 %v10420_v16, %v4326_v41  ;;  %v4365_v8 = vmul.f32 %v10420_v16, %v4327_v24  ;;  %v4366_v46 = vmul.f32 %v10420_v16, %v4328_v61 }
 0x62d   : > { %v4482_v59 = vsel %vm4418_vm13, %v4386_v32, %v4450_v33  ;;  %v4367_v22 = vmul.f32 %v10420_v16, %v4329_v62  ;;  %v4368_v42 = vmul.f32 %v10420_v16, %v4330_v18  ;;  %v4369_v30 = vmul.f32 %v10420_v16, %v4331_v55 }
 0x62e   : > { %v4546_v3 = vrot.slane %v4482_v59, 7  ;;  %v4370_v5 = vmul.f32 %v10420_v16, %v4332_v35  ;;  %v4371_v63 = vmul.f32 %v10420_v16, %v4333_v7  ;;  %v4372_v48 = vmul.f32 %v10420_v16, %v4334_v50 }
 0x62f   : > { %v4373_v54 = vmul.f32 %v10420_v16, %v4335_v15  ;;  %v4374_v11 = vmul.f32 %v10420_v16, %v4336_v4  ;;  %v4375_v40 = vmul.f32 %v10420_v16, %v4337_v0  ;;  %v4376_v57 = vmul.f32 %v10420_v16, %v4338_v53 }
 0x630   : > { %v10502_v23 = vsel %vm1436_vm1, 0.0, %v4546_v3  ;;  %v4377_v1 = vmul.f32 %v10420_v16, %v4339_v20  ;;  %v4379_v14 = vmul.f32 %v10420_v16, %v4341_v17  ;;  %v4387_v6 = vadd.f32 %v10427_v10, %v4349_v52 }
 0x631   : > { %5045 = vrot.lane.b32.xlu1 %v10502_v23, %s12791_s27  ;;  %v4388_v58 = vadd.f32 %v10427_v10, %v4350_v26  ;;  %v4389_v49 = vadd.f32 %v10427_v10, %v4351_v36  ;;  %v10514_v41 = vadd.f32 %v10427_v10, %v4360_v43  ;;  %v10518_v61 = vadd.f32 %v10427_v10, %v4361_v47 }
 0x632   : > { %vm4419_vm14 = vcmp.ge.f32.partialorder %v4387_v6, 0.0  ;;  %v4451_v38 = vmul.f32 0.1, %v4387_v6  ;;  %v10521_v62 = vadd.f32 %v10427_v10, %v4362_v13  ;;  %v10524_v18 = vadd.f32 %v10427_v10, %v4363_v29 }
 0x633   : > { %v10527_v55 = vadd.f32 %v10427_v10, %v4364_v56  ;;  %v10530_v35 = vadd.f32 %v10427_v10, %v4365_v8  ;;  %v10533_v7 = vadd.f32 %v10427_v10, %v4366_v46  ;;  %v10536_v37 = vadd.f32 %v10427_v10, %v4367_v22 }
 0x634   : > { %v10509_v9 = vsel %vm4419_vm14, %v4387_v6, %v4451_v38  ;;  %v10544_v15 = vadd.f32 %v10427_v10, %v4368_v42  ;;  %v10547_v4 = vadd.f32 %v10427_v10, %v4369_v30  ;;  %v10550_v0 = vadd.f32 %v10427_v10, %v4370_v5 }
 0x635   : > { %v4547_v24 = vrot.slane %v10509_v9, 7  ;;  %v4314_v53 = vmul.f32 %v10415_v19, %v10247_v2  ;;  %v10557_v20 = vadd.f32 %v10427_v10, %v4371_v63  ;;  %v10560_v17 = vadd.f32 %v10427_v10, %v4372_v48 }
 0x636   : > { %v10563_v32 = vadd.f32 %v10427_v10, %v4373_v54  ;;  %v10566_v52 = vadd.f32 %v10427_v10, %v4374_v11  ;;  %v10569_v26 = vadd.f32 %v10427_v10, %v4375_v40  ;;  %v10572_v2 = vadd.f32 %v10427_v10, %v4376_v57 }
 0x637   : > { %v10541_v50 = vsel %vm1436_vm1, %v4546_v3, %v4547_v24  ;;  %v10575_v36 = vadd.f32 %v10427_v10, %v4377_v1  ;;  %v10578_v43 = vadd.f32 %v10427_v10, %v4379_v14  ;;  %vm4420_vm15 = vcmp.ge.f32.partialorder %v4388_v58, 0.0 }
 0x638   : > { %5047 = vrot.lane.b32.xlu0 %v10541_v50, %s12791_s27  ;;  %vm4421_vm2 = vcmp.ge.f32.partialorder %v4389_v49, 0.0  ;;  %v4315_v33 = vmul.f32 %v10415_v19, %v10250_v39  ;;  %v4452_v47 = vmul.f32 0.1, %v4388_v58  ;;  %v4453_v13 = vmul.f32 0.1, %v4389_v49 }
 0x639   : > { %v4352_v8 = vmul.f32 %v10420_v16, %v4314_v53  ;;  %v4316_v22 = vmul.f32 %v10415_v19, %v10253_v27  ;;  %v4317_v42 = vmul.f32 %v10415_v19, %v10256_v25  ;;  %v4318_v3 = vmul.f32 %v10415_v19, %v10259_v51 }
 0x63a   : > { %v4484_v29 = vsel %vm4420_vm15, %v4388_v58, %v4452_v47  ;;  %v10582_v56 = vsel %vm4421_vm2, %v4389_v49, %v4453_v13  ;;  %v4353_v30 = vmul.f32 %v10420_v16, %v4315_v33  ;;  %v4319_v5 = vmul.f32 %v10415_v19, %v10262_v34 }
 0x63b   : > { %v4549_v46 = vrot.slane %v4484_v29, 7  ;;  %v12764_v59 = vrot.slane %v10582_v56, 7  ;;  %v4390_v27 = vadd.f32 %v10427_v10, %v4352_v8  ;;  %v4354_v25 = vmul.f32 %v10420_v16, %v4316_v22 }
 0x63c   : > { %v4355_v63 = vmul.f32 %v10420_v16, %v4317_v42  ;;  %v4391_v48 = vadd.f32 %v10427_v10, %v4353_v30  ;;  %v4320_v54 = vmul.f32 %v10415_v19, %v10265_v28  ;;  %v4321_v51 = vmul.f32 %v10415_v19, %v10268_v31 }
 0x63d   : > { %v10594_v39 = vsel %vm1436_vm1, %v4549_v46, %v12764_v59  ;;  %v4356_v11 = vmul.f32 %v10420_v16, %v4318_v3  ;;  %v4357_v34 = vmul.f32 %v10420_v16, %v4319_v5  ;;  %v4454_v40 = vmul.f32 0.1, %v4390_v27 }
 0x63e   : > { %5346 = vrot.lane.b32.xlu1 %v10594_v39, %s13074_s21  ;;  %v4392_v57 = vadd.f32 %v10427_v10, %v4354_v25  ;;  %v4393_v1 = vadd.f32 %v10427_v10, %v4355_v63  ;;  %vm4422_vm13 = vcmp.ge.f32.partialorder %v4390_v27, 0.0  ;;  %v4455_v14 = vmul.f32 0.1, %v4391_v48 }
 0x63f   : > { %vm4423_vm14 = vcmp.ge.f32.partialorder %v4391_v48, 0.0  ;;  %v10617_v28 = vmul.f32 %v10420_v16, %v4320_v54  ;;  %v10620_v6 = vmul.f32 %v10420_v16, %v4321_v51  ;;  %v10623_v31 = vadd.f32 %v10427_v10, %v4356_v11 }
 0x640   : > { %v10626_v19 = vadd.f32 %v10427_v10, %v4357_v34  ;;  %v4486_v38 = vsel %vm4422_vm13, %v4390_v27, %v4454_v40  ;;  %vm4424_vm15 = vcmp.ge.f32.partialorder %v4392_v57, 0.0  ;;  %vm4425_vm2 = vcmp.ge.f32.partialorder %v4393_v1, 0.0 }
 0x641   : > { %v10629_v58 = vsel %vm1436_vm1, 0.0, %v4549_v46  ;;  %v10631_v49 = vsel %vm4423_vm14, %v4391_v48, %v4455_v14  ;;  %vm4430_vm5 = vcmp.ge.f32.partialorder %v10514_v41, 0.0  ;;  %vm4431_vm0 = vcmp.ge.f32.partialorder %v10518_v61, 0.0 }
 0x642   : > { %5051 = vrot.lane.b32.xlu1 %v10594_v39, %s12791_s27  ;;  %vm4432_vm12 = vcmp.ge.f32.partialorder %v10521_v62, 0.0  ;;  %v4456_v16 = vmul.f32 0.1, %v4392_v57  ;;  %5344 = vrot.lane.b32.xlu0 %v10629_v58, %s13074_s21  ;;  %vm4433_vm11 = vcmp.ge.f32.partialorder %v10524_v18, 0.0  ;;  %v4457_v53 = vmul.f32 0.1, %v4393_v1 }
 0x643   : > { %v4462_v33 = vmul.f32 0.1, %v10514_v41  ;;  %v4552_v47 = vrot.slane %v4486_v38, 7  ;;  %vm4426_vm13 = vcmp.ge.f32.partialorder %v10623_v31, 0.0  ;;  %vm4434_vm14 = vcmp.ge.f32.partialorder %v10527_v55, 0.0 }
 0x644   : > { %vm4435_vm10 = vcmp.ge.f32.partialorder %v10530_v35, 0.0  ;;  %v4463_v13 = vmul.f32 0.1, %v10518_v61  ;;  %v12755_v29 = vrot.slane %v10631_v49, 7  ;;  %vm4436_vm9 = vcmp.ge.f32.partialorder %v10533_v7, 0.0 }
 0x645   : > { %vm4437_vm8 = vcmp.ge.f32.partialorder %v10536_v37, 0.0  ;;  %v4464_v8 = vmul.f32 0.1, %v10521_v62  ;;  %v4465_v46 = vmul.f32 0.1, %v10524_v18  ;;  %v4488_v27 = vsel %vm4424_vm15, %v4392_v57, %v4456_v16 }
 0x646   : > { %v4458_v22 = vmul.f32 0.1, %v10623_v31  ;;  %v4466_v42 = vmul.f32 0.1, %v10527_v55  ;;  %v4467_v30 = vmul.f32 0.1, %v10530_v35  ;;  %5049 = vrot.lane.b32.xlu0 %v10629_v58, %s12791_s27  ;;  %v10657_v3 = vsel %vm1436_vm1, %v4552_v47, %v12755_v29 }
 0x647   : > { %v4468_v5 = vmul.f32 0.1, %v10533_v7  ;;  %5350 = vrot.lane.b32.xlu1 %v10657_v3, %s13074_s21  ;;  %v10664_v25 = vsel %vm4425_vm2, %v4393_v1, %v4457_v53  ;;  %v10669_v63 = vsel %vm4430_vm5, %v10514_v41, %v4462_v33  ;;  %v4459_v48 = vmul.f32 0.1, %v10626_v19 }
 0x648   : > { %v4469_v54 = vmul.f32 0.1, %v10536_v37  ;;  %v10676_v51 = vsel %vm4431_vm0, %v10518_v61, %v4463_v13  ;;  %v4564_v11 = vrot.slane %v10669_v63, 7  ;;  %v10680_v34 = vsel %vm1436_vm1, 0.0, %v4552_v47 }
 0x649   : > { %v12749_v40 = vrot.slane %v10676_v51, 7  ;;  %v10686_v41 = vsel %vm4432_vm12, %v10521_v62, %v4464_v8  ;;  %v10691_v57 = vsel %vm4433_vm11, %v10524_v18, %v4465_v46  ;;  %v4555_v61 = vrot.slane %v4488_v27, 7 }
 0x64a   : > { %5348 = vrot.lane.b32.xlu0 %v10680_v34, %s13074_s21  ;;  %v12754_v1 = vrot.slane %v10664_v25, 7  ;;  %v4567_v14 = vrot.slane %v10686_v41, 7  ;;  %v12748_v38 = vrot.slane %v10691_v57, 7  ;;  %v10710_v18 = vsel %vm4434_vm14, %v10527_v55, %v4466_v42 }
 0x64b   : > { %5055 = vrot.lane.b32.xlu1 %v10657_v3, %s12791_s27  ;;  %v10705_v62 = vsel %vm1436_vm1, %v4564_v11, %v12749_v40  ;;  %v10715_v16 = vsel %vm4435_vm10, %v10530_v35, %v4467_v30  ;;  %v10720_v53 = vsel %vm4436_vm9, %v10533_v7, %v4468_v5  ;;  %vm4427_vm0 = vcmp.ge.f32.partialorder %v10626_v19, 0.0 }
 0x64c   : > { %13075 = vst [vmem:[#allocation79_spill] sm:$0xff] %v10705_v62  ;;  %v10728_v33 = vsel %vm1436_vm1, %v4567_v14, %v12748_v38  ;;  %v4570_v55 = vrot.slane %v10710_v18, 7  ;;  %v12747_v47 = vrot.slane %v10715_v16, 7  ;;  %v10735_v35 = vsel %vm4437_vm8, %v10536_v37, %v4469_v54 }
 0x64d   : > { %v4573_v7 = vrot.slane %v10720_v53, 7  ;;  %v10743_v13 = vsel %vm1436_vm1, %v4555_v61, %v12754_v1  ;;  %v12746_v37 = vrot.slane %v10735_v35, 7  ;;  %v4396_v46 = vadd.f32 %v10427_v10, %v10617_v28 }
 0x64e   : > { %5053 = vrot.lane.b32.xlu0 %v10680_v34, %s12791_s27  ;;  %v10750_v8 = vsel %vm1436_vm1, %v4570_v55, %v12747_v47  ;;  %v4397_v42 = vadd.f32 %v10427_v10, %v10620_v6  ;;  %v4490_v30 = vsel %vm4426_vm13, %v10623_v31, %v4458_v22  ;;  %v10763_v5 = vsel %vm4427_vm0, %v10626_v19, %v4459_v48 }
 0x64f   : > { %5354 = vrot.lane.b32.xlu1 %v10743_v13, %s13074_s21  ;;  %v10770_v27 = vsel %vm1436_vm1, %v4573_v7, %v12746_v37  ;;  %v10773_v28 = vsel %vm1436_vm1, 0.0, %v4555_v61  ;;  %v4558_v10 = vrot.slane %v4490_v30, 7  ;;  %v12753_v6 = vrot.slane %v10763_v5, 7 }
 0x650   : > { %v4460_v31 = vmul.f32 0.1, %v4396_v46  ;;  %v4461_v22 = vmul.f32 0.1, %v4397_v42  ;;  %vm4428_vm5 = vcmp.ge.f32.partialorder %v4396_v46, 0.0  ;;  %vm4429_vm8 = vcmp.ge.f32.partialorder %v4397_v42, 0.0 }
 0x651   : > { %v4470_v19 = vmul.f32 0.1, %v10544_v15  ;;  %vm4438_vm9 = vcmp.ge.f32.partialorder %v10544_v15, 0.0  ;;  %v10787_v48 = vsel %vm1436_vm1, %v4558_v10, %v12753_v6  ;;  %v4471_v30 = vmul.f32 0.1, %v10547_v4 }
 0x652   : > { %5352 = vrot.lane.b32.xlu0 %v10773_v28, %s13074_s21  ;;  %13076 = vst [vmem:[#allocation12_spill] sm:$0xff] %v10787_v48  ;;  %v4492_v54 = vsel %vm4428_vm5, %v4396_v46, %v4460_v31  ;;  %v10791_v61 = vsel %vm4429_vm8, %v4397_v42, %v4461_v22  ;;  %vm4439_vm10 = vcmp.ge.f32.partialorder %v10547_v4, 0.0  ;;  %v10799_v47 = vsel %vm1436_vm1, 0.0, %v4558_v10 }
 0x653   : > { %5059 = vrot.lane.b32.xlu1 %v10743_v13, %s12791_s27  ;;  %v10795_v37 = vsel %vm4438_vm9, %v10544_v15, %v4470_v19  ;;  %v4561_v38 = vrot.slane %v4492_v54, 7  ;;  %v12752_v40 = vrot.slane %v10791_v61, 7  ;;  %v10808_v42 = vsel %vm4439_vm10, %v10547_v4, %v4471_v30 }
 0x654   : > { %v12751_v46 = vrot.slane %v10795_v37, 7  ;;  %v12750_v15 = vrot.slane %v10808_v42, 7  ;;  %v4473_v22 = vmul.f32 0.1, %v10557_v20  ;;  %vm4441_vm11 = vcmp.ge.f32.partialorder %v10557_v20, 0.0 }
 0x655   : > { %v10816_v10 = vsel %vm1436_vm1, %v4561_v38, %v12752_v40  ;;  %v10828_v31 = vsel %vm1436_vm1, 0.0, %v4561_v38  ;;  %v4472_v19 = vmul.f32 0.1, %v10550_v0  ;;  %v4475_v38 = vmul.f32 0.1, %v10563_v32 }
 0x656   : > { %5057 = vrot.lane.b32.xlu0 %v10773_v28, %s12791_s27  ;;  %13077 = vst [vmem:[#allocation26_spill] sm:$0xff] %v10816_v10  ;;  %v10825_v4 = vsel %vm1436_vm1, %v12751_v46, %v12750_v15  ;;  %13079 = vst [vmem:[#allocation36_spill] sm:$0xff] %v10828_v31  ;;  %v10843_v54 = vsel %vm4441_vm11, %v10557_v20, %v4473_v22  ;;  %vm4443_vm12 = vcmp.ge.f32.partialorder %v10563_v32, 0.0  ;;  %v10849_v30 = vsel %vm1436_vm1, 0.0, %v4564_v11 }
 0x657   : > { %5358 = vrot.lane.b32.xlu1 %v10787_v48, %s13074_s21  ;;  %13078 = vst [vmem:[#allocation24_spill] sm:$0xff] %v10825_v4  ;;  %13080 = vst [vmem:[#allocation101_spill] sm:$0xff] %v10843_v54  ;;  %v4477_v15 = vmul.f32 0.1, %v10569_v26  ;;  %vm4445_vm15 = vcmp.ge.f32.partialorder %v10569_v26, 0.0  ;;  %v12756_v40 = vrot.slane %v10843_v54, 7  ;;  %v10861_v20 = vsel %vm4443_vm12, %v10563_v32, %v4475_v38 }
 0x658   : > { %13081 = vst [vmem:[#allocation66_spill] sm:$0xff] %v10849_v30  ;;  %v4474_v46 = vmul.f32 0.1, %v10560_v17  ;;  %vm4440_vm2 = vcmp.ge.f32.partialorder %v10550_v0, 0.0  ;;  %13082 = vst [vmem:[#allocation97_spill] sm:$0xff] %v10861_v20  ;;  %vm4442_vm13 = vcmp.ge.f32.partialorder %v10560_v17, 0.0 }
 0x659   : > { %v10864_v63 = vsel %vm4440_vm2, %v10550_v0, %v4472_v19  ;;  %v4476_v11 = vmul.f32 0.1, %v10566_v52  ;;  %v10869_v6 = vsel %vm4445_vm15, %v10569_v26, %v4477_v15  ;;  %vm4444_vm14 = vcmp.ge.f32.partialorder %v10566_v52, 0.0 }
 0x65a   : > { %5356 = vrot.lane.b32.xlu0 %v10799_v47, %s13074_s21  ;;  %13083 = vst [vmem:[#allocation54_spill] sm:$0xff] %v10864_v63  ;;  %v12763_v22 = vrot.slane %v10864_v63, 7  ;;  %13084 = vst [vmem:[#allocation83_spill] sm:$0xff] %v10869_v6  ;;  %v12757_v32 = vrot.slane %v10861_v20, 7  ;;  %v10886_v26 = vsel %vm4442_vm13, %v10560_v17, %v4474_v46  ;;  %vm4449_vm0 = vcmp.ge.f32.partialorder %v10578_v43, 0.0 }
 0x65b   : > { %5063 = vrot.lane.b32.xlu1 %v10787_v48, %s12791_s27  ;;  %13086 = vst [vmem:[#allocation59_spill] sm:$0xff] %v10886_v26  ;;  %v4479_v15 = vmul.f32 0.1, %v10575_v36  ;;  %v4481_v19 = vmul.f32 0.1, %v10578_v43  ;;  %v12758_v38 = vrot.slane %v10869_v6, 7 }
 0x65c   : > { %v10883_v0 = vsel %vm1436_vm1, %v12763_v22, %v12756_v40  ;;  %v10895_v1 = vsel %vm1436_vm1, 0.0, %v4567_v14  ;;  %v12760_v29 = vrot.slane %v10886_v26, 7  ;;  %v10899_v40 = vsel %vm4444_vm14, %v10566_v52, %v4476_v11 }
 0x65d   : > { %13085 = vst [vmem:[#allocation70_spill] sm:$0xff] %v10883_v0  ;;  %13087 = vst [vmem:[#allocation78_spill] sm:$0xff] %v10899_v40  ;;  %vm4447_vm5 = vcmp.ge.f32.partialorder %v10575_v36, 0.0  ;;  %v12759_v41 = vrot.slane %v10899_v40, 7  ;;  %v4478_v52 = vmul.f32 0.1, %v10572_v2  ;;  %v4513_v14 = vsel %vm4449_vm0, %v10578_v43, %v4481_v19 }
 0x65e   : > { %5061 = vrot.lane.b32.xlu0 %v10799_v47, %s12791_s27  ;;  %v10911_v17 = vsel %vm1436_vm1, %v12760_v29, %v12757_v32  ;;  %v10917_v46 = vsel %vm4447_vm5, %v10575_v36, %v4479_v15  ;;  %vm4446_vm8 = vcmp.ge.f32.partialorder %v10572_v2, 0.0  ;;  %v4592_v32 = vrot.slane %v4513_v14, 7 }
 0x65f   : > { %5362 = vrot.lane.b32.xlu1 %v10816_v10, %s13074_s21  ;;  %13088 = vst [vmem:[#allocation91_spill] sm:$0xff] %v10911_v17  ;;  %13089 = vst [vmem:[#allocation98_spill] sm:$0xff] %v10917_v46  ;;  %v10924_v11 = vsel %vm1436_vm1, %v12759_v41, %v12758_v38  ;;  %v12761_v43 = vrot.slane %v10917_v46, 7  ;;  %v10933_v36 = vsel %vm4446_vm8, %v10572_v2, %v4478_v52  ;;  %vm4448_vm9 = vcmp.ge.f32.partialorder %v10431_v12, 0.0 }
 0x660   : > { %13090 = vst [vmem:[#allocation27_spill] sm:$0xff] %v10924_v11  ;;  %13091 = vst [vmem:[#allocation95_spill] sm:$0xff] %v10933_v36  ;;  %v4480_v15 = vmul.f32 0.1, %v10431_v12  ;;  %v10940_v19 = vsel %vm1436_vm1, 0.0, %v4570_v55  ;;  %v12762_v14 = vrot.slane %v10933_v36, 7 }
 0x661   : > { %v4672_v52 = vsel %vm1436_vm1, %v4592_v32, 0.0  ;;  %v4714_v22 = vrot.slane %v10502_v23, 1  ;;  %v4724_v60 = vrot.slane %v10680_v34, 1  ;;  %v4745_v46 = vrot.slane %v10705_v62, 1 }
 0x662   : > { %5360 = vrot.lane.b32.xlu0 %v10828_v31, %s13074_s21  ;;  %v4512_v38 = vsel %vm4448_vm9, %v10431_v12, %v4480_v15  ;;  %v10954_v18 = vsel %vm1436_vm1, %v12762_v14, %v12761_v43  ;;  %v5145_v15 = vrot.slane %v4672_v52, 1  ;;  %v4750_v36 = vrot.slane %v10728_v33, 1 }
 0x663   : > { %5067 = vrot.lane.b32.xlu1 %v10816_v10, %s12791_s27  ;;  %v4591_v2 = vrot.slane %v4512_v38, 7  ;;  %13092 = vst [vmem:[#allocation90_spill] sm:$0xff] %v10954_v18  ;;  %v5246_v38 = vrot.slane %v4672_v52, 2  ;;  %v10980_v52 = vsel %vm1436_vm1, %v4547_v24, 0.0  ;;  %v4744_v18 = vrot.slane %v10849_v30, 1 }
 0x664   : > { %v4717_v9 = vrot.slane %v10980_v52, 1  ;;  %v4749_v6 = vrot.slane %v10895_v1, 1  ;;  %v4755_v11 = vrot.slane %v10750_v8, 1  ;;  %v4754_v40 = vrot.slane %v10940_v19, 1 }
 0x665   : > { %v10959_v55 = vsel %vm1436_vm1, %v4591_v2, %v4592_v32  ;;  %v10962_v12 = vsel %vm1436_vm1, 0.0, %v4591_v2  ;;  %v4715_v32 = vrot.slane %v10541_v50, 1  ;;  %v10975_v2 = vsel %vm1436_vm1, 0.0, %v4573_v7 }
 0x666   : > { %5065 = vrot.lane.b32.xlu0 %v10828_v31, %s12791_s27  ;;  %13093 = vst [vmem:[#allocation89_spill] sm:$0xff] %v10959_v55  ;;  %13094 = vst [vmem:[#allocation28_spill] sm:$0xff] %v10962_v12  ;;  %v5142_v41 = vrot.slane %v10962_v12, 1  ;;  %v5243_v29 = vrot.slane %v10962_v12, 2  ;;  %v5143_v43 = vrot.slane %v10959_v55, 1  ;;  %v5244_v14 = vrot.slane %v10959_v55, 2 }
 0x667   : > { %5366 = vrot.lane.b32.xlu1 %v10705_v62, %s13074_s21  ;;  %v11002_v24 = vsel %vm2599_vm3, %v4714_v22, %v4715_v32  ;;  %v13100_v22 = vrot.slane %v10631_v49, 7  ;;  %v4740_v55 = vrot.slane %v10816_v10, 1  ;;  %v4739_v12 = vrot.slane %v10828_v31, 1 }
 0x668   : > { %v10985_v59 = vsel %vm2599_vm3, %v5142_v41, %v5143_v43  ;;  %v10988_v44 = vsel %vm2770_vm4, %v5243_v29, %v5244_v14  ;;  %v10991_v21 = vsel %vm2599_vm3, %v5143_v43, %v5145_v15  ;;  %v10994_v53 = vsel %vm2770_vm4, %v5244_v14, %v5246_v38 }
 0x669   : > { %13095 = vst [vmem:[#allocation20_spill] sm:$0xff] %v10985_v59  ;;  %13096 = vst [vmem:[#allocation99_spill] sm:$0xff] %v10988_v44  ;;  %v13099_v29 = vrot.slane %v10582_v56, 7  ;;  %v4720_v41 = vrot.slane %v10594_v39, 1  ;;  %v4719_v43 = vrot.slane %v10629_v58, 1  ;;  %v11014_v14 = vsel %vm2599_vm3, %v4715_v32, %v4717_v9 }
 0x66a   : > { %5364 = vrot.lane.b32.xlu0 %v10849_v30, %s13074_s21  ;;  %13097 = vst [vmem:[#allocation35_spill] sm:$0xff] %v10991_v21  ;;  %13098 = vst [vmem:[#allocation37_spill] sm:$0xff] %v10994_v53  ;;  %v11025_v38 = vsel %vm1436_vm1, %v13100_v22, 0.0  ;;  %v4730_v53 = vrot.slane %v10743_v13, 1  ;;  %v4729_v44 = vrot.slane %v10773_v28, 1  ;;  %v4735_v21 = vrot.slane %v10787_v48, 1 }
 0x66b   : > { %5071 = vrot.lane.b32.xlu1 %v10705_v62, %s12791_s27  ;;  %v11007_v7 = vsel %vm1436_vm1, %v13099_v29, 0.0  ;;  %v11020_v56 = vsel %vm2599_vm3, %v4719_v43, %v4720_v41  ;;  %v4725_v29 = vrot.slane %v10657_v3, 1  ;;  %v4727_v9 = vrot.slane %v11025_v38, 1 }
 0x66c   : > { %v4722_v15 = vrot.slane %v11007_v7, 1  ;;  %v13101_v43 = vrot.slane %v10664_v25, 7  ;;  %v13102_v25 = vrot.slane %v10763_v5, 7  ;;  %v4734_v59 = vrot.slane %v10799_v47, 1 }
 0x66d   : > { %v11038_v49 = vsel %vm2599_vm3, %v4724_v60, %v4725_v29  ;;  %v11056_v60 = vsel %vm2599_vm3, %v4729_v44, %v4730_v53  ;;  %v13103_v5 = vrot.slane %v10791_v61, 7  ;;  %v13104_v61 = vrot.slane %v10676_v51, 7 }
 0x66e   : > { %5069 = vrot.lane.b32.xlu0 %v10849_v30, %s12791_s27  ;;  %v11032_v32 = vsel %vm2599_vm3, %v4720_v41, %v4722_v15  ;;  %v11043_v22 = vsel %vm1436_vm1, %v13101_v43, 0.0  ;;  %v11050_v41 = vsel %vm2599_vm3, %v4725_v29, %v4727_v9  ;;  %v11061_v43 = vsel %vm1436_vm1, %v13102_v25, 0.0 }
 0x66f   : > { %5370 = vrot.lane.b32.xlu1 %v10728_v33, %s13074_s21  ;;  %v4732_v15 = vrot.slane %v11043_v22, 1  ;;  %v4737_v9 = vrot.slane %v11061_v43, 1  ;;  %v11074_v44 = vsel %vm2599_vm3, %v4734_v59, %v4735_v21  ;;  %v11079_v25 = vsel %vm1436_vm1, %v13103_v5, 0.0 }
 0x670   : > { %v11092_v59 = vsel %vm2599_vm3, %v4739_v12, %v4740_v55  ;;  %v11097_v5 = vsel %vm1436_vm1, %v13104_v61, 0.0  ;;  %v11110_v51 = vsel %vm2599_vm3, %v4744_v18, %v4745_v46  ;;  %v13105_v12 = vrot.slane %v10691_v57, 7 }
 0x671   : > { %v11068_v29 = vsel %vm2599_vm3, %v4730_v53, %v4732_v15  ;;  %v11086_v53 = vsel %vm2599_vm3, %v4735_v21, %v4737_v9  ;;  %v4742_v15 = vrot.slane %v11079_v25, 1  ;;  %v4747_v9 = vrot.slane %v11097_v5, 1 }
 0x672   : > { %5368 = vrot.lane.b32.xlu0 %v10895_v1, %s13074_s21  ;;  %v11115_v61 = vsel %vm1436_vm1, %v13105_v12, 0.0  ;;  %v11128_v57 = vsel %vm2599_vm3, %v4749_v6, %v4750_v36  ;;  %v13106_v18 = vrot.slane %v10715_v16, 7  ;;  %v11146_v16 = vsel %vm2599_vm3, %v4754_v40, %v4755_v11 }
 0x673   : > { %5075 = vrot.lane.b32.xlu1 %v10728_v33, %s12791_s27  ;;  %v11104_v21 = vsel %vm2599_vm3, %v4740_v55, %v4742_v15  ;;  %v11122_v55 = vsel %vm2599_vm3, %v4745_v46, %v4747_v9  ;;  %v4752_v15 = vrot.slane %v11115_v61, 1  ;;  %v13107_v6 = vrot.slane %v10735_v35, 7 }
 0x674   : > { %v11133_v12 = vsel %vm1436_vm1, %v13106_v18, 0.0  ;;  %v4760_v20 = vrot.slane %v10770_v27, 1  ;;  %v4759_v17 = vrot.slane %v10975_v2, 1  ;;  %v13111_v54 = vrot.slane %v10808_v42, 7 }
 0x675   : > { %v11140_v46 = vsel %vm2599_vm3, %v4750_v36, %v4752_v15  ;;  %v4757_v9 = vrot.slane %v11133_v12, 1  ;;  %v11151_v18 = vsel %vm1436_vm1, %v13107_v6, 0.0  ;;  %v13109_v15 = vrot.slane %v10795_v37, 7 }
 0x676   : > { %5073 = vrot.lane.b32.xlu0 %v10895_v1, %s12791_s27  ;;  %13108 = vst [vmem:[#allocation68_spill] sm:$0xff] %v11151_v18  ;;  %v4762_v35 = vrot.slane %v11151_v18, 1  ;;  %v11171_v6 = vsel %vm2599_vm3, %v4759_v17, %v4760_v20  ;;  %v11176_v0 = vsel %vm1436_vm1, %v13111_v54, 0.0  ;;  %v4765_v37 = vrot.slane %v10825_v4, 1  ;;  %v4673_v17 = vld [vmem:[%s12648_s7] sm:$0xff] }
 0x677   : > { %5374 = vrot.lane.b32.xlu1 %v10750_v8, %s13074_s21  ;;  %v11162_v26 = vsel %vm1436_vm1, 0.0, %v13109_v15  ;;  %v11165_v40 = vsel %vm2599_vm3, %v4755_v11, %v4757_v9  ;;  %13112 = vst [vmem:[#allocation15_spill] sm:$0xff] %v11176_v0  ;;  %v4767_v9 = vrot.slane %v11176_v0, 1  ;;  %v4879_v4 = vrot.slane %v10502_v23, 2 }
 0x678   : > { %13110 = vst [vmem:[#allocation51_spill] sm:$0xff] %v11162_v26  ;;  %v4764_v15 = vrot.slane %v11162_v26, 1  ;;  %v11183_v11 = vsel %vm2599_vm3, %v4760_v20, %v4762_v35  ;;  %v4674_v20 = vld [vmem:[%s12648_s7 + $0x8] sm:$0xff]  ;;  %v4675_v26 = vld [vmem:[%s12648_s7 + $0x10] sm:$0xff]  ;;  %vm13153_vm10 = vcmask 326656   ;;  %vm13154_vm11 = vcmask 392192  }
 0x679   : > { %13113 = vst [vmem:[#allocation57_spill] sm:$0xff] %v11183_v11  ;;  %v7096_v35 = vpack.c.bf16 %v4674_v20, %v4673_v17  ;;  %v11204_v0 = vsel %vm2599_vm3, %v4765_v37, %v4767_v9  ;;  %v4676_v17 = vld [vmem:[%s12648_s7 + $0x18] sm:$0xff]  ;;  %vm13155_vm12 = vcmask 457728   ;;  %vm13156_vm15 = vmmov %vm13153_vm10  ;;  %vm13157_vm2 = vcmask 523264  }
 0x67a   : > { %5372 = vrot.lane.b32.xlu0 %v10940_v19, %s13074_s21  ;;  %v11193_v54 = vsel %vm2599_vm3, %v4764_v15, %v4765_v37  ;;  %13115 = vst [vmem:[#allocation63_spill] sm:$0xff] %v11204_v0  ;;  %v4880_v15 = vrot.slane %v10541_v50, 2  ;;  %v7100_v9 = vpack.c.bf16 %v4676_v17, %v4675_v26  ;;  %vm13158_vm13 = vcmask 588800   ;;  %vm13159_vm14 = vmmov %vm13154_vm11 }
 0x67b   : > { %5079 = vrot.lane.b32.xlu1 %v10750_v8, %s12791_s27  ;;  %13114 = vst [vmem:[#allocation56_spill] sm:$0xff] %v11193_v54  ;;  %7097 = vmatprep.subr.bf16.mxu0 %v7096_v35  ;;  %vm13160_vm0 = vmmov %vm13155_vm12  ;;  %vm13163_vm9 = vcmask 64512  }
 0x67c   : > { %7099 = vmatpush3.bf16.msra.mxu0 %v7096_v35  ;;  %v4881_v35 = vsel %vm2770_vm4, %v4879_v4, %v4880_v15  ;;  %vm13161_vm5 = vmmov %vm13157_vm2 }
 0x67d   : > { %7101 = vmatprep.subr.bf16.mxu0 %v7100_v9  ;;  %vm13162_vm8 = vmmov %vm13158_vm13 }
 0x67e   : > { %5077 = vrot.lane.b32.xlu0 %v10940_v19, %s12791_s27 }
 0x67f   : > { %5378 = vrot.lane.b32.xlu1 %v10770_v27, %s13074_s21 }
 0x680   : > { %7103 = vmatpush3.bf16.msra.mxu0 %v7100_v9 }
 0x682   : > { %5376 = vrot.lane.b32.xlu0 %v10975_v2, %s13074_s21 }
 0x683   : > { %5083 = vrot.lane.b32.xlu1 %v10770_v27, %s12791_s27 }
 0x686   : > { %5081 = vrot.lane.b32.xlu0 %v10975_v2, %s12791_s27 }
 0x687   : > { %4789 = vrot.lane.b32.xlu1 %v11002_v24, %s12906_s26 }
 0x68a   : > { %4791 = vrot.lane.b32.xlu0 %v11014_v14, %s12906_s26 }
 0x68b   : > { %4793 = vrot.lane.b32.xlu1 %v11020_v56, %s12906_s26 }
 0x68e   : > { %4795 = vrot.lane.b32.xlu0 %v11032_v32, %s12906_s26 }
 0x68f   : > { %4797 = vrot.lane.b32.xlu1 %v11038_v49, %s12906_s26 }
 0x692   : > { %4799 = vrot.lane.b32.xlu0 %v11050_v41, %s12906_s26 }
 0x693   : > { %4801 = vrot.lane.b32.xlu1 %v11056_v60, %s12906_s26 }
 0x696   : > { %4803 = vrot.lane.b32.xlu0 %v11068_v29, %s12906_s26 }
 0x697   : > { %4805 = vrot.lane.b32.xlu1 %v11074_v44, %s12906_s26 }
 0x69a   : > { %4807 = vrot.lane.b32.xlu0 %v11086_v53, %s12906_s26 }
 0x69b   : > { %4809 = vrot.lane.b32.xlu1 %v11092_v59, %s12906_s26 }
 0x69e   : > { %4811 = vrot.lane.b32.xlu0 %v11104_v21, %s12906_s26 }
 0x69f   : > { %4813 = vrot.lane.b32.xlu1 %v11110_v51, %s12906_s26 }
 0x6a2   : > { %4815 = vrot.lane.b32.xlu0 %v11122_v55, %s12906_s26 }
 0x6a3   : > { %4817 = vrot.lane.b32.xlu1 %v11128_v57, %s12906_s26  ;;  %v11157_v36 = vpop.permute.xlu1 %5045 }
 0x6a6   : > { %4819 = vrot.lane.b32.xlu0 %v11140_v46, %s12906_s26 }
 0x6a7   : > { %4821 = vrot.lane.b32.xlu1 %v11146_v16, %s12906_s26 }
 0x6aa   : > { %4823 = vrot.lane.b32.xlu0 %v11165_v40, %s12906_s26  ;;  %v11190_v42 = vpop.permute.xlu0 %5047 }
 0x6ab   : > { %4825 = vrot.lane.b32.xlu1 %v11171_v6, %s12906_s26 }
 0x6ae   : > { %4827 = vrot.lane.b32.xlu0 %v11183_v11, %s12906_s26 }
 0x6af   : > { %4829 = vrot.lane.b32.xlu1 %v11193_v54, %s12906_s26  ;;  %v4677_v54 = vld [vmem:[%s12648_s7 + $0x20] sm:$0xff] }
 0x6b0   : > { %v11186_v63 = vpop.permute.xlu1 %5346 }
 0x6b2   : > { %4831 = vrot.lane.b32.xlu0 %v11204_v0, %s12906_s26  ;;  %v4882_v0 = vrot.slane %v10980_v52, 2  ;;  %v4679_v52 = vld [vmem:[%s12648_s7 + $0x30] sm:$0xff] }
 0x6b3   : > { %5147 = vrot.lane.b32.xlu1 %v11002_v24, %s12915_s18  ;;  %v4678_v24 = vld [vmem:[%s12648_s7 + $0x28] sm:$0xff] }
 0x6b4   : > { %v11218_v37 = vpop.permute.xlu1 %5051  ;;  %v11220_v20 = vpop.permute.xlu0 %5344  ;;  %v7104_v26 = vpack.c.bf16 %v4678_v24, %v4677_v54  ;;  %v4883_v4 = vsel %vm2770_vm4, %v4880_v15, %v4882_v0  ;;  %v4681_v0 = vld [vmem:[%s12648_s7 + $0x40] sm:$0xff] }
 0x6b6   : > { %5149 = vrot.lane.b32.xlu0 %v11014_v14, %s12915_s18  ;;  %7105 = vmatprep.subr.bf16.mxu0 %v7104_v26  ;;  %v4680_v14 = vld [vmem:[%s12648_s7 + $0x38] sm:$0xff] }
 0x6b7   : > { %5248 = vrot.lane.b32.xlu1 %v4881_v35, %s12921_s30  ;;  %7107 = vmatpush3.bf16.msra.mxu0 %v7104_v26  ;;  %v7108_v54 = vpack.c.bf16 %v4680_v14, %v4679_v52  ;;  %v4884_v26 = vrot.slane %v10629_v58, 2  ;;  %v4885_v52 = vrot.slane %v10594_v39, 2 }
 0x6b8   : > { %v11233_v17 = vpop.permute.xlu0 %5049 }
 0x6b9   : > { %v11235_v18 = vpop.permute.xlu1 %5350  ;;  %7109 = vmatprep.subr.bf16.mxu0 %v7108_v54 }
 0x6ba   : > { %4954 = vrot.lane.b32.xlu0 %v4881_v35, %s12909_s29 }
 0x6bb   : > { %5250 = vrot.lane.b32.xlu1 %v4883_v4, %s12921_s30  ;;  %7111 = vmatpush3.bf16.msra.mxu0 %v7108_v54 }
 0x6bc   : > { %v11246_v9 = vpop.permute.xlu0 %5348  ;;  %7030 = vmatprep.subr.mxu0 %v4681_v0 }
 0x6bd   : > { %v11248_v24 = vpop.permute.xlu1 %5055 }
 0x6be   : > { %5434 = vrot.lane.b32.xlu0 %v11020_v56, %s12912_s12 }
 0x6bf   : > { %4956 = vrot.lane.b32.xlu1 %v4883_v4, %s12909_s29  ;;  %7031 = vmatpush3.msra.mxu0 %v4681_v0  ;;  %v4886_v4 = vsel %vm2770_vm4, %v4884_v26, %v4885_v52 }
 0x6c0   : > { %v11256_v15 = vpop.permute.xlu0 %5053 }
 0x6c1   : > { %v11258_v35 = vpop.permute.xlu1 %5354 }
 0x6c2   : > { %13116 = vst [vmem:[#allocation72_spill] sm:$0xff] %v11258_v35  ;;  %5151 = vrot.lane.b32.xlu0 %v11020_v56, %s12915_s18  ;;  %v4887_v35 = vrot.slane %v11007_v7, 2 }
 0x6c3   : > { %5436 = vrot.lane.b32.xlu1 %v11032_v32, %s12912_s12 }
 0x6c4   : > { %v11266_v14 = vpop.permute.xlu0 %5352  ;;  %v4888_v0 = vsel %vm2770_vm4, %v4885_v52, %v4887_v35 }
 0x6c5   : > { %v11269_v54 = vpop.permute.xlu1 %5059 }
 0x6c6   : > { %13117 = vst [vmem:[#allocation25_spill] sm:$0xff] %v11269_v54  ;;  %5524 = vrot.lane.b32.xlu0 %v4886_v4, %s12918_s25 }
 0x6c7   : > { %5153 = vrot.lane.b32.xlu1 %v11032_v32, %s12915_s18 }
 0x6c8   : > { %v11275_v11 = vpop.permute.xlu0 %5057 }
 0x6c9   : > { %v11277_v56 = vpop.permute.xlu1 %5358 }
 0x6ca   : > { %13118 = vst [vmem:[#allocation13_spill] sm:$0xff] %v11277_v56  ;;  %5252 = vrot.lane.b32.xlu0 %v4886_v4, %s12921_s30  ;;  %v4889_v56 = vrot.slane %v10680_v34, 2 }
 0x6cb   : > { %5526 = vrot.lane.b32.xlu1 %v4888_v0, %s12918_s25 }
 0x6cc   : > { %v11282_v26 = vpop.permute.xlu0 %5356 }
 0x6cd   : > { %v11284_v54 = vpop.permute.xlu1 %5063 }
 0x6ce   : > { %13119 = vst [vmem:[#allocation104_spill] sm:$0xff] %v11284_v54  ;;  %4958 = vrot.lane.b32.xlu0 %v4886_v4, %s12909_s29  ;;  %v4890_v54 = vrot.slane %v10657_v3, 2 }
 0x6cf   : > { %5254 = vrot.lane.b32.xlu1 %v4888_v0, %s12921_s30 }
 0x6d0   : > { %v11288_v7 = vpop.permute.xlu0 %5061 }
 0x6d1   : > { %13120 = vst [vmem:[#allocation107_spill] sm:$0xff] %v11288_v7  ;;  %v11290_v32 = vpop.permute.xlu1 %5362 }
 0x6d2   : > { %13121 = vst [vmem:[#allocation64_spill] sm:$0xff] %v11290_v32  ;;  %5438 = vrot.lane.b32.xlu0 %v11038_v49, %s12912_s12  ;;  %v4891_v32 = vsel %vm2770_vm4, %v4889_v56, %v4890_v54 }
 0x6d3   : > { %4960 = vrot.lane.b32.xlu1 %v4888_v0, %s12909_s29  ;;  %v4892_v0 = vrot.slane %v11025_v38, 2 }
 0x6d4   : > { %v11295_v35 = vpop.permute.xlu0 %5360 }
 0x6d5   : > { %13122 = vst [vmem:[#allocation10_spill] sm:$0xff] %v11295_v35  ;;  %v11297_v52 = vpop.permute.xlu1 %5067 }
 0x6d6   : > { %13123 = vst [vmem:[#allocation61_spill] sm:$0xff] %v11297_v52  ;;  %5155 = vrot.lane.b32.xlu0 %v11038_v49, %s12915_s18  ;;  %v4893_v49 = vsel %vm2770_vm4, %v4890_v54, %v4892_v0 }
 0x6d7   : > { %5440 = vrot.lane.b32.xlu1 %v11050_v41, %s12912_s12 }
 0x6d8   : > { %v11305_v4 = vpop.permute.xlu0 %5065 }
 0x6d9   : > { %v11308_v7 = vpop.permute.xlu1 %5366 }
 0x6da   : > { %13124 = vst [vmem:[#allocation105_spill] sm:$0xff] %v11308_v7  ;;  %5528 = vrot.lane.b32.xlu0 %v4891_v32, %s12918_s25 }
 0x6db   : > { %5157 = vrot.lane.b32.xlu1 %v11050_v41, %s12915_s18 }
 0x6dc   : > { %v11314_v52 = vpop.permute.xlu0 %5364 }
 0x6dd   : > { %13125 = vst [vmem:[#allocation34_spill] sm:$0xff] %v11314_v52  ;;  %v11316_v35 = vpop.permute.xlu1 %5071  ;;  %v4904_v52 = vrot.slane %v10828_v31, 2  ;;  %v4915_v31 = vrot.slane %v10728_v33, 2 }
 0x6de   : > { %13126 = vst [vmem:[#allocation74_spill] sm:$0xff] %v11316_v35  ;;  %5256 = vrot.lane.b32.xlu0 %v4891_v32, %s12921_s30  ;;  %v4894_v35 = vrot.slane %v10773_v28, 2 }
 0x6df   : > { %5530 = vrot.lane.b32.xlu1 %v4893_v49, %s12918_s25 }
 0x6e0   : > { %v11321_v56 = vpop.permute.xlu0 %5069 }
 0x6e1   : > { %13127 = vst [vmem:[#allocation106_spill] sm:$0xff] %v11321_v56  ;;  %v11323_v7 = vpop.permute.xlu1 %5370 }
 0x6e2   : > { %13128 = vst [vmem:[#allocation32_spill] sm:$0xff] %v11323_v7  ;;  %4962 = vrot.lane.b32.xlu0 %v4891_v32, %s12909_s29  ;;  %v4895_v7 = vrot.slane %v10743_v13, 2 }
 0x6e3   : > { %5258 = vrot.lane.b32.xlu1 %v4893_v49, %s12921_s30 }
 0x6e4   : > { %v11327_v38 = vpop.permute.xlu0 %5368 }
 0x6e5   : > { %13129 = vst [vmem:[#allocation42_spill] sm:$0xff] %v11327_v38  ;;  %v11329_v41 = vpop.permute.xlu1 %5075 }
 0x6e6   : > { %13130 = vst [vmem:[#allocation18_spill] sm:$0xff] %v11329_v41  ;;  %5442 = vrot.lane.b32.xlu0 %v11056_v60, %s12912_s12  ;;  %v4896_v41 = vsel %vm2770_vm4, %v4894_v35, %v4895_v7 }
 0x6e7   : > { %4964 = vrot.lane.b32.xlu1 %v4893_v49, %s12909_s29  ;;  %v4897_v49 = vrot.slane %v11043_v22, 2 }
 0x6e8   : > { %v11334_v54 = vpop.permute.xlu0 %5073 }
 0x6e9   : > { %13131 = vst [vmem:[#allocation30_spill] sm:$0xff] %v11334_v54  ;;  %v11336_v0 = vpop.permute.xlu1 %5374 }
 0x6ea   : > { %13132 = vst [vmem:[#allocation46_spill] sm:$0xff] %v11336_v0  ;;  %5159 = vrot.lane.b32.xlu0 %v11056_v60, %s12915_s18  ;;  %v4898_v60 = vsel %vm2770_vm4, %v4895_v7, %v4897_v49 }
 0x6eb   : > { %5444 = vrot.lane.b32.xlu1 %v11068_v29, %s12912_s12 }
 0x6ec   : > { %v11344_v32 = vpop.permute.xlu0 %5372 }
 0x6ed   : > { %13133 = vst [vmem:[#allocation45_spill] sm:$0xff] %v11344_v32  ;;  %v11347_v38 = vpop.permute.xlu1 %5079 }
 0x6ee   : > { %13134 = vst [vmem:[#allocation41_spill] sm:$0xff] %v11347_v38  ;;  %5532 = vrot.lane.b32.xlu0 %v4896_v41, %s12918_s25 }
 0x6ef   : > { %5161 = vrot.lane.b32.xlu1 %v11068_v29, %s12915_s18 }
 0x6f0   : > { %v11353_v0 = vpop.permute.xlu0 %5077 }
 0x6f1   : > { %13135 = vst [vmem:[#allocation53_spill] sm:$0xff] %v11353_v0  ;;  %v11355_v54 = vpop.permute.xlu1 %5378 }
 0x6f2   : > { %13136 = vst [vmem:[#allocation49_spill] sm:$0xff] %v11355_v54  ;;  %5260 = vrot.lane.b32.xlu0 %v4896_v41, %s12921_s30  ;;  %v4899_v54 = vrot.slane %v10799_v47, 2 }
 0x6f3   : > { %5534 = vrot.lane.b32.xlu1 %v4898_v60, %s12918_s25 }
 0x6f4   : > { %v11360_v35 = vpop.permute.xlu0 %5376 }
 0x6f5   : > { %13137 = vst [vmem:[#allocation22_spill] sm:$0xff] %v11360_v35  ;;  %v11362_v38 = vpop.permute.xlu1 %5083 }
 0x6f6   : > { %13138 = vst [vmem:[#allocation44_spill] sm:$0xff] %v11362_v38  ;;  %4966 = vrot.lane.b32.xlu0 %v4896_v41, %s12909_s29  ;;  %v4900_v38 = vrot.slane %v10787_v48, 2  ;;  %v4905_v48 = vrot.slane %v10816_v10, 2 }
 0x6f7   : > { %5262 = vrot.lane.b32.xlu1 %v4898_v60, %s12921_s30 }
 0x6f8   : > { %v11366_v22 = vpop.permute.xlu0 %5081 }
 0x6f9   : > { %13139 = vst [vmem:[#allocation102_spill] sm:$0xff] %v11366_v22  ;;  %v11368_v29 = vpop.permute.xlu1 %4789  ;;  %v4901_v22 = vsel %vm2770_vm4, %v4899_v54, %v4900_v38 }
 0x6fa   : > { %5446 = vrot.lane.b32.xlu0 %v11074_v44, %s12912_s12 }
 0x6fb   : > { %4968 = vrot.lane.b32.xlu1 %v4898_v60, %s12909_s29  ;;  %v4902_v60 = vrot.slane %v11061_v43, 2 }
 0x6fc   : > { %v11373_v7 = vpop.permute.xlu0 %4791 }
 0x6fd   : > { %v11375_v49 = vpop.permute.xlu1 %4793 }
 0x6fe   : > { %5163 = vrot.lane.b32.xlu0 %v11074_v44, %s12915_s18  ;;  %v4903_v44 = vsel %vm2770_vm4, %v4900_v38, %v4902_v60 }
 0x6ff   : > { %5448 = vrot.lane.b32.xlu1 %v11086_v53, %s12912_s12 }
 0x700   : > { %v11383_v41 = vpop.permute.xlu0 %4795 }
 0x701   : > { %v11386_v35 = vpop.permute.xlu1 %4797 }
 0x702   : > { %5536 = vrot.lane.b32.xlu0 %v4901_v22, %s12918_s25 }
 0x703   : > { %5165 = vrot.lane.b32.xlu1 %v11086_v53, %s12915_s18 }
 0x704   : > { %v11392_v0 = vpop.permute.xlu0 %4799 }
 0x705   : > { %v11394_v32 = vpop.permute.xlu1 %4801 }
 0x706   : > { %5264 = vrot.lane.b32.xlu0 %v4901_v22, %s12921_s30 }
 0x707   : > { %5538 = vrot.lane.b32.xlu1 %v4903_v44, %s12918_s25 }
 0x708   : > { %v11399_v54 = vpop.permute.xlu0 %4803 }
 0x709   : > { %v11401_v56 = vpop.permute.xlu1 %4805 }
 0x70a   : > { %4970 = vrot.lane.b32.xlu0 %v4901_v22, %s12909_s29 }
 0x70b   : > { %5266 = vrot.lane.b32.xlu1 %v4903_v44, %s12921_s30 }
 0x70c   : > { %v11405_v43 = vpop.permute.xlu0 %4807 }
 0x70d   : > { %13140 = vst [vmem:[#allocation47_spill] sm:$0xff] %v11405_v43  ;;  %v11407_v53 = vpop.permute.xlu1 %4809 }
 0x70e   : > { %13141 = vst [vmem:[#allocation52_spill] sm:$0xff] %v11407_v53  ;;  %5450 = vrot.lane.b32.xlu0 %v11092_v59, %s12912_s12  ;;  %v4906_v53 = vsel %vm2770_vm4, %v4904_v52, %v4905_v48 }
 0x70f   : > { %4972 = vrot.lane.b32.xlu1 %v4903_v44, %s12909_s29  ;;  %v4907_v44 = vrot.slane %v11079_v25, 2 }
 0x710   : > { %v11412_v38 = vpop.permute.xlu0 %4811 }
 0x711   : > { %13142 = vst [vmem:[#allocation92_spill] sm:$0xff] %v11412_v38  ;;  %v11414_v60 = vpop.permute.xlu1 %4813  ;;  %v4914_v38 = vrot.slane %v10895_v1, 2 }
 0x712   : > { %13143 = vst [vmem:[#allocation43_spill] sm:$0xff] %v11414_v60  ;;  %5167 = vrot.lane.b32.xlu0 %v11092_v59, %s12915_s18  ;;  %v4908_v59 = vsel %vm2770_vm4, %v4905_v48, %v4907_v44 }
 0x713   : > { %5452 = vrot.lane.b32.xlu1 %v11104_v21, %s12912_s12 }
 0x714   : > { %v11422_v22 = vpop.permute.xlu0 %4815 }
 0x715   : > { %13144 = vst [vmem:[#allocation7_spill] sm:$0xff] %v11422_v22  ;;  %v11425_v43 = vpop.permute.xlu1 %4817 }
 0x716   : > { %13145 = vst [vmem:[#allocation33_spill] sm:$0xff] %v11425_v43  ;;  %5540 = vrot.lane.b32.xlu0 %v4906_v53, %s12918_s25 }
 0x717   : > { %5169 = vrot.lane.b32.xlu1 %v11104_v21, %s12915_s18 }
 0x718   : > { %v11431_v60 = vpop.permute.xlu0 %4819 }
 0x719   : > { %13146 = vst [vmem:[#allocation55_spill] sm:$0xff] %v11431_v60  ;;  %v11433_v10 = vpop.permute.xlu1 %4821 }
 0x71a   : > { %13147 = vst [vmem:[#allocation94_spill] sm:$0xff] %v11433_v10  ;;  %5268 = vrot.lane.b32.xlu0 %v4906_v53, %s12921_s30 }
 0x71b   : > { %5542 = vrot.lane.b32.xlu1 %v4908_v59, %s12918_s25 }
 0x71c   : > { %v11438_v52 = vpop.permute.xlu0 %4823 }
 0x71d   : > { %13148 = vst [vmem:[#allocation40_spill] sm:$0xff] %v11438_v52  ;;  %v11440_v43 = vpop.permute.xlu1 %4825  ;;  %v4909_v52 = vrot.slane %v10849_v30, 2 }
 0x71e   : > { %13149 = vst [vmem:[#allocation14_spill] sm:$0xff] %v11440_v43  ;;  %4974 = vrot.lane.b32.xlu0 %v4906_v53, %s12909_s29  ;;  %v4910_v43 = vrot.slane %v10705_v62, 2 }
 0x71f   : > { %5270 = vrot.lane.b32.xlu1 %v4908_v59, %s12921_s30 }
 0x720   : > { %v11444_v25 = vpop.permute.xlu0 %4827 }
 0x721   : > { %13150 = vst [vmem:[#allocation84_spill] sm:$0xff] %v11444_v25  ;;  %v11446_v21 = vpop.permute.xlu1 %4829 }
 0x722   : > { %13151 = vst [vmem:[#allocation48_spill] sm:$0xff] %v11446_v21  ;;  %5454 = vrot.lane.b32.xlu0 %v11110_v51, %s12912_s12  ;;  %v4911_v21 = vsel %vm2770_vm4, %v4909_v52, %v4910_v43  ;;  %v5674_v52 = vsel %vm3583_vm6, %v9388_v45, %v11157_v36 }
 0x723   : > { %4976 = vrot.lane.b32.xlu1 %v4908_v59, %s12909_s29  ;;  %v4912_v59 = vrot.slane %v11097_v5, 2 }
 0x724   : > { %v11451_v48 = vpop.permute.xlu0 %4831 }
 0x725   : > { %13152 = vst [vmem:[#allocation103_spill] sm:$0xff] %v11451_v48  ;;  %v5148_v44 = vpop.permute.xlu1 %5147 }
 0x726   : > { %5171 = vrot.lane.b32.xlu0 %v11110_v51, %s12915_s18  ;;  %v4913_v51 = vsel %vm2770_vm4, %v4910_v43, %v4912_v59  ;;  %v5706_v5 = vsel %vm3616_vm7, %v5674_v52, %v5148_v44  ;;  %v5675_v43 = vsel %vm3583_vm6, %v9388_v45, %v11190_v42 }
 0x727   : > { %5456 = vrot.lane.b32.xlu1 %v11122_v55, %s12912_s12 }
 0x728   : > { %v5150_v53 = vpop.permute.xlu0 %5149 }
 0x729   : > { %v5249_v25 = vpop.permute.xlu1 %5248 }
 0x72a   : > { %5544 = vrot.lane.b32.xlu0 %v4911_v21, %s12918_s25 }
 0x72b   : > { %5173 = vrot.lane.b32.xlu1 %v11122_v55, %s12915_s18  ;;  %v5738_v55 = vsel %vm13153_vm10, %v5706_v5, %v5249_v25  ;;  %vm13164_vm10 = vcmask 130048  }
 0x72c   : > { %v4955_v48 = vpop.permute.xlu0 %4954  ;;  %v5770_v36 = vsel %vm13154_vm11, %v5738_v55, %v11220_v20  ;;  %v4916_v20 = vsel %vm2770_vm4, %v4914_v38, %v4915_v31  ;;  %vm13165_vm11 = vmmov %vm13163_vm9 }
 0x72d   : > { %v5251_v10 = vpop.permute.xlu1 %5250 }
 0x72e   : > { %5272 = vrot.lane.b32.xlu0 %v4911_v21, %s12921_s30 }
 0x72f   : > { %5546 = vrot.lane.b32.xlu1 %v4913_v51, %s12918_s25 }
 0x730   : > { %v5435_v60 = vpop.permute.xlu0 %5434 }
 0x731   : > { %v4957_v62 = vpop.permute.xlu1 %4956  ;;  %v5802_v44 = vsel %vm13155_vm12, %v5770_v36, %v5435_v60  ;;  %v5615_v36 = vsel %vm13165_vm11, %v10541_v50, %v11373_v7  ;;  %vm13166_vm12 = vmmov %vm13164_vm10 }
 0x732   : > { %4978 = vrot.lane.b32.xlu0 %v4911_v21, %s12909_s29  ;;  %v5707_v21 = vsel %vm3616_vm7, %v5675_v43, %v5150_v53 }
 0x733   : > { %5274 = vrot.lane.b32.xlu1 %v4913_v51, %s12921_s30  ;;  %v5739_v25 = vsel %vm13156_vm15, %v5707_v21, %v5251_v10 }
 0x734   : > { %v5152_v22 = vpop.permute.xlu0 %5151  ;;  %v5771_v45 = vsel %vm13159_vm14, %v5739_v25, %v11186_v63 }
 0x735   : > { %v5437_v30 = vpop.permute.xlu1 %5436 }
 0x736   : > { %5458 = vrot.lane.b32.xlu0 %v11128_v57, %s12912_s12  ;;  %v5803_v10 = vsel %vm13160_vm0, %v5771_v45, %v5437_v30  ;;  %v5614_v30 = vsel %vm13163_vm9, %v10502_v23, %v11368_v29  ;;  %v4920_v45 = vrot.slane %v10750_v8, 2 }
 0x737   : > { %4980 = vrot.lane.b32.xlu1 %v4913_v51, %s12909_s29  ;;  %v5644_v38 = vsel %vm13164_vm10, %v5614_v30, %v4955_v48 }
 0x738   : > { %v5525_v59 = vpop.permute.xlu0 %5524 }
 0x739   : > { %v5834_v52 = vsel %vm13157_vm2, %v5802_v44, %v5525_v59  ;;  %v5154_v5 = vpop.permute.xlu1 %5153  ;;  %vm13167_vm2 = vmmov %vm13159_vm14 }
 0x73a   : > { %5175 = vrot.lane.b32.xlu0 %v11128_v57, %s12915_s18  ;;  %7032 = vmatprep.mubr.msk.f32.mxu0 %vm13158_vm13, %v5834_v52  ;;  %v4917_v57 = vrot.slane %v11115_v61, 2  ;;  %vm13168_vm13 = vmmov %vm13160_vm0  ;;  %v4919_v52 = vrot.slane %v10940_v19, 2 }
 0x73b   : > { %5460 = vrot.lane.b32.xlu1 %v11140_v46, %s12912_s12  ;;  %vm13169_vm14 = vmmov %vm13156_vm15 }
 0x73c   : > { %v5253_v42 = vpop.permute.xlu0 %5252  ;;  %v4918_v63 = vsel %vm2770_vm4, %v4915_v31, %v4917_v57  ;;  %v5645_v31 = vsel %vm13166_vm12, %v5615_v36, %v4957_v62  ;;  %vm13170_vm0 = vmmov %vm13161_vm5  ;;  %vm13176_vm12 = vcmask 64512  }
 0x73d   : > { %v5527_v60 = vpop.permute.xlu1 %5526  ;;  %vm13173_vm9 = vmmov %vm13168_vm13 }
 0x73e   : > { %5548 = vrot.lane.b32.xlu0 %v4916_v20, %s12918_s25  ;;  %v5835_v53 = vsel %vm13161_vm5, %v5803_v10, %v5527_v60  ;;  %vm13171_vm5 = vmmov %vm13162_vm8 }
 0x73f   : > { %5177 = vrot.lane.b32.xlu1 %v11140_v46, %s12915_s18  ;;  %7033 = vmatmul.mubr.msk.f32.vlgmr.msra.gmra.mrb[8].mxu0 %vm13162_vm8, %v5835_v53  ;;  %v5676_v46 = vsel %vm3583_vm6, %v5644_v38, %v11233_v17  ;;  %v5677_v17 = vsel %vm3583_vm6, %v5645_v31, %v11218_v37  ;;  %vm13172_vm8 = vmmov %vm13167_vm2 }
 0x740   : > { %v4959_v51 = vpop.permute.xlu0 %4958  ;;  %v5708_v23 = vsel %vm3616_vm7, %v5676_v46, %v5152_v22  ;;  %v5709_v50 = vsel %vm3616_vm7, %v5677_v17, %v5154_v5  ;;  %vm13174_vm10 = vmmov %vm13170_vm0 }
 0x741   : > { %v5255_v55 = vpop.permute.xlu1 %5254  ;;  %v5740_v29 = vsel %vm13156_vm15, %v5708_v23, %v5253_v42  ;;  %v4921_v42 = vsel %vm2770_vm4, %v4919_v52, %v4920_v45  ;;  %vm13175_vm11 = vmmov %vm13171_vm5  ;;  %vm13177_vm15 = vcmask 130048  }
 0x742   : > { %5276 = vrot.lane.b32.xlu0 %v4916_v20, %s12921_s30  ;;  %v5772_v44 = vsel %vm13167_vm2, %v5740_v29, %v11246_v9  ;;  %v5741_v22 = vsel %vm13169_vm14, %v5709_v50, %v5255_v55  ;;  %vm13178_vm2 = vmmov %vm13176_vm12  ;;  %v4924_v29 = vrot.slane %v10975_v2, 2 }
 0x743   : > { %5550 = vrot.lane.b32.xlu1 %v4918_v63, %s12918_s25  ;;  %v5773_v37 = vsel %vm13172_vm8, %v5741_v22, %v11235_v18  ;;  %v5616_v18 = vsel %vm13176_vm12, %v10629_v58, %v11375_v49  ;;  %v13190_v22 = vld [vmem:[#allocation68_spill] sm:$0xff] }
 0x744   : > { %v5439_v61 = vpop.permute.xlu0 %5438  ;;  %v5646_v55 = vsel %vm13177_vm15, %v5616_v18, %v4959_v51 }
 0x745   : > { %v4961_v43 = vpop.permute.xlu1 %4960  ;;  %v5804_v7 = vsel %vm13168_vm13, %v5772_v44, %v5439_v61  ;;  %vm13179_vm13 = vmmov %vm13177_vm15 }
 0x746   : > { %4982 = vrot.lane.b32.xlu0 %v4916_v20, %s12909_s29 }
 0x747   : > { %5278 = vrot.lane.b32.xlu1 %v4918_v63, %s12921_s30 }
 0x748   : > { %v5156_v48 = vpop.permute.xlu0 %5155 }
 0x749   : > { %v5441_v21 = vpop.permute.xlu1 %5440 }
 0x74a   : > { %5462 = vrot.lane.b32.xlu0 %v11146_v16, %s12912_s12  ;;  %v5805_v5 = vsel %vm13173_vm9, %v5773_v37, %v5441_v21 }
 0x74b   : > { %4984 = vrot.lane.b32.xlu1 %v4918_v63, %s12909_s29  ;;  %v5617_v63 = vsel %vm13178_vm2, %v10594_v39, %v11383_v41 }
 0x74c   : > { %v5529_v62 = vpop.permute.xlu0 %5528  ;;  %v5647_v49 = vsel %vm13179_vm13, %v5617_v63, %v4961_v43  ;;  %vm13192_vm13 = vcmask 64512   ;;  %v13204_v63 = vld [vmem:[#allocation24_spill] sm:$0xff] }
 0x74d   : > { %v5836_v59 = vsel %vm13170_vm0, %v5804_v7, %v5529_v62  ;;  %v5158_v25 = vpop.permute.xlu1 %5157  ;;  %vm13180_vm0 = vmmov %vm13172_vm8  ;;  %v5618_v52 = vsel %vm13192_vm13, %v10680_v34, %v11386_v35 }
 0x74e   : > { %5179 = vrot.lane.b32.xlu0 %v11146_v16, %s12915_s18  ;;  %7035 = vmatprep.mubr.msk.f32.mxu0 %vm13171_vm5, %v5836_v59  ;;  %v4922_v16 = vrot.slane %v11133_v12, 2  ;;  %vm13181_vm5 = vmmov %vm13173_vm9 }
 0x74f   : > { %5464 = vrot.lane.b32.xlu1 %v11165_v40, %s12912_s12  ;;  %vm13182_vm8 = vmmov %vm13169_vm14 }
 0x750   : > { %v5257_v9 = vpop.permute.xlu0 %5256  ;;  %v4923_v57 = vsel %vm2770_vm4, %v4920_v45, %v4922_v16  ;;  %vm13183_vm9 = vmmov %vm13174_vm10 }
 0x751   : > { %v5531_v10 = vpop.permute.xlu1 %5530  ;;  %vm13188_vm12 = vmmov %vm13181_vm5 }
 0x752   : > { %5552 = vrot.lane.b32.xlu0 %v4921_v42, %s12918_s25  ;;  %v5837_v20 = vsel %vm13174_vm10, %v5805_v5, %v5531_v10  ;;  %vm13184_vm10 = vmmov %vm13175_vm11 }
 0x753   : > { %5181 = vrot.lane.b32.xlu1 %v11165_v40, %s12915_s18  ;;  %7036 = vmatmul.mubr.msk.f32.gmra.mrb[10].mxu0 %vm13175_vm11, %v5837_v20  ;;  %v5678_v40 = vsel %vm3583_vm6, %v5646_v55, %v11256_v15  ;;  %v5679_v15 = vsel %vm3583_vm6, %v5647_v49, %v11248_v24  ;;  %v13185_v24 = vld [vmem:[#allocation57_spill] sm:$0xff]  ;;  %vm13187_vm11 = vmmov %vm13180_vm0 }
 0x754   : > { %v4963_v60 = vpop.permute.xlu0 %4962  ;;  %v5710_v58 = vsel %vm3616_vm7, %v5678_v40, %v5156_v48  ;;  %v5711_v39 = vsel %vm3616_vm7, %v5679_v15, %v5158_v25  ;;  %v4925_v48 = vrot.slane %v10770_v27, 2  ;;  %vm13189_vm15 = vmmov %vm13183_vm9 }
 0x755   : > { %v5259_v53 = vpop.permute.xlu1 %5258  ;;  %v5742_v51 = vsel %vm13169_vm14, %v5710_v58, %v5257_v9  ;;  %vm13191_vm2 = vmmov %vm13184_vm10  ;;  %vm13193_vm14 = vcmask 130048  }
 0x756   : > { %5280 = vrot.lane.b32.xlu0 %v4921_v42, %s12921_s30  ;;  %v5774_v46 = vsel %vm13180_vm0, %v5742_v51, %v11266_v14  ;;  %v5743_v36 = vsel %vm13182_vm8, %v5711_v39, %v5259_v53  ;;  %v13186_v14 = vld [vmem:[#allocation72_spill] sm:$0xff]  ;;  %v4926_v50 = vsel %vm2770_vm4, %v4924_v29, %v4925_v48  ;;  %v5648_v37 = vsel %vm13193_vm14, %v5618_v52, %v4963_v60  ;;  %vm13194_vm0 = vmmov %vm13192_vm13  ;;  %v13196_v53 = vld [vmem:[#allocation51_spill] sm:$0xff] }
 0x757   : > { %5554 = vrot.lane.b32.xlu1 %v4923_v57, %s12918_s25  ;;  %v5775_v21 = vsel %vm13187_vm11, %v5743_v36, %v13186_v14  ;;  %v5619_v10 = vsel %vm13194_vm0, %v10657_v3, %v11392_v0  ;;  %v13214_v14 = vld [vmem:[#allocation107_spill] sm:$0xff]  ;;  %v13219_v52 = vld [vmem:[#allocation10_spill] sm:$0xff] }
 0x758   : > { %v5443_v12 = vpop.permute.xlu0 %5442 }
 0x759   : > { %v4965_v30 = vpop.permute.xlu1 %4964  ;;  %v5806_v41 = vsel %vm13181_vm5, %v5774_v46, %v5443_v12  ;;  %vm13195_vm5 = vmmov %vm13193_vm14 }
 0x75a   : > { %4986 = vrot.lane.b32.xlu0 %v4921_v42, %s12909_s29  ;;  %v5680_v42 = vsel %vm3583_vm6, %v5648_v37, %v11275_v11  ;;  %v5649_v35 = vsel %vm13195_vm5, %v5619_v10, %v4965_v30  ;;  %v13197_v11 = vld [vmem:[#allocation25_spill] sm:$0xff]  ;;  %vm13211_vm5 = vcmask 64512   ;;  %v13225_v10 = vld [vmem:[#allocation64_spill] sm:$0xff] }
 0x75b   : > { %5282 = vrot.lane.b32.xlu1 %v4923_v57, %s12921_s30  ;;  %v5681_v18 = vsel %vm3583_vm6, %v5649_v35, %v13197_v11  ;;  %v5620_v36 = vsel %vm13211_vm5, %v10773_v28, %v11394_v32 }
 0x75c   : > { %v5160_v38 = vpop.permute.xlu0 %5159 }
 0x75d   : > { %v5445_v61 = vpop.permute.xlu1 %5444  ;;  %v5712_v34 = vsel %vm3616_vm7, %v5680_v42, %v5160_v38 }
 0x75e   : > { %5466 = vrot.lane.b32.xlu0 %v11171_v6, %s12912_s12  ;;  %v5807_v44 = vsel %vm13188_vm12, %v5775_v21, %v5445_v61  ;;  %v13208_v61 = vld [vmem:[#allocation56_spill] sm:$0xff] }
 0x75f   : > { %4988 = vrot.lane.b32.xlu1 %v4923_v57, %s12909_s29 }
 0x760   : > { %v5533_v43 = vpop.permute.xlu0 %5532 }
 0x761   : > { %v5838_v23 = vsel %vm13183_vm9, %v5806_v41, %v5533_v43  ;;  %v5162_v31 = vpop.permute.xlu1 %5161  ;;  %vm13198_vm9 = vmmov %vm13187_vm11  ;;  %v4929_v41 = vrot.slane %v13196_v53, 2  ;;  %v4930_v43 = vrot.slane %v13204_v63, 2 }
 0x762   : > { %5183 = vrot.lane.b32.xlu0 %v11171_v6, %s12915_s18  ;;  %7038 = vmatprep.mubr.msk.f32.mxu0 %vm13184_vm10, %v5838_v23  ;;  %v4927_v6 = vrot.slane %v13190_v22, 2  ;;  %v5713_v3 = vsel %vm3616_vm7, %v5681_v18, %v5162_v31  ;;  %vm13199_vm10 = vmmov %vm13188_vm12  ;;  %v13213_v31 = vld [vmem:[#allocation63_spill] sm:$0xff] }
 0x763   : > { %5468 = vrot.lane.b32.xlu1 %v13185_v24, %s12912_s12  ;;  %vm13200_vm11 = vmmov %vm13182_vm8 }
 0x764   : > { %v5261_v17 = vpop.permute.xlu0 %5260  ;;  %v4928_v45 = vsel %vm2770_vm4, %v4925_v48, %v4927_v6  ;;  %vm13201_vm12 = vmmov %vm13189_vm15  ;;  %v4931_v48 = vsel %vm2770_vm4, %v4929_v41, %v4930_v43  ;;  %v13238_v41 = vld [vmem:[#allocation12_spill] sm:$0xff] }
 0x765   : > { %v5535_v7 = vpop.permute.xlu1 %5534  ;;  %v5744_v20 = vsel %vm13182_vm8, %v5712_v34, %v5261_v17  ;;  %vm13207_vm13 = vmmov %vm13199_vm10  ;;  %vm13212_vm8 = vcmask 130048   ;;  %v13215_v17 = vld [vmem:[#allocation15_spill] sm:$0xff] }
 0x766   : > { %5556 = vrot.lane.b32.xlu0 %v4926_v50, %s12918_s25  ;;  %v5839_v62 = vsel %vm13189_vm15, %v5807_v44, %v5535_v7  ;;  %v5776_v57 = vsel %vm13198_vm9, %v5744_v20, %v11282_v26  ;;  %vm13203_vm15 = vmmov %vm13191_vm2  ;;  %v13205_v26 = vld [vmem:[#allocation13_spill] sm:$0xff]  ;;  %v4932_v44 = vrot.slane %v13215_v17, 2 }
 0x767   : > { %5185 = vrot.lane.b32.xlu1 %v13185_v24, %s12915_s18  ;;  %7039 = vmatmul.mubr.msk.f32.gmra.mrb[12].mxu0 %vm13191_vm2, %v5839_v62  ;;  %vm13206_vm2 = vmmov %vm13198_vm9 }
 0x768   : > { %v4967_v59 = vpop.permute.xlu0 %4966  ;;  %vm13209_vm14 = vmmov %vm13201_vm12  ;;  %v4933_v6 = vsel %vm2770_vm4, %v4930_v43, %v4932_v44  ;;  %v13242_v44 = vld [vmem:[#allocation34_spill] sm:$0xff] }
 0x769   : > { %v5263_v25 = vpop.permute.xlu1 %5262  ;;  %vm13210_vm0 = vmmov %vm13203_vm15  ;;  %v5650_v23 = vsel %vm13212_vm8, %v5620_v36, %v4967_v59  ;;  %v13218_v59 = vld [vmem:[#allocation104_spill] sm:$0xff] }
 0x76a   : > { %5284 = vrot.lane.b32.xlu0 %v4926_v50, %s12921_s30  ;;  %v5745_v12 = vsel %vm13200_vm11, %v5713_v3, %v5263_v25  ;;  %v5682_v21 = vsel %vm3583_vm6, %v5650_v23, %v13214_v14  ;;  %vm13216_vm9 = vmmov %vm13211_vm5 }
 0x76b   : > { %5558 = vrot.lane.b32.xlu1 %v4928_v45, %s12918_s25  ;;  %v5777_v58 = vsel %vm13206_vm2, %v5745_v12, %v13205_v26  ;;  %v5621_v28 = vsel %vm13216_vm9, %v10743_v13, %v11399_v54  ;;  %v13232_v12 = vld [vmem:[#allocation70_spill] sm:$0xff] }
 0x76c   : > { %v5447_v9 = vpop.permute.xlu0 %5446 }
 0x76d   : > { %v4969_v5 = vpop.permute.xlu1 %4968  ;;  %v5808_v0 = vsel %vm13199_vm10, %v5776_v57, %v5447_v9  ;;  %vm13217_vm10 = vmmov %vm13212_vm8 }
 0x76e   : > { %4990 = vrot.lane.b32.xlu0 %v4926_v50, %s12909_s29  ;;  %v5651_v50 = vsel %vm13217_vm10, %v5621_v28, %v4969_v5  ;;  %vm13233_vm10 = vcmask 64512  }
 0x76f   : > { %5286 = vrot.lane.b32.xlu1 %v4928_v45, %s12921_s30  ;;  %v5683_v25 = vsel %vm3583_vm6, %v5651_v50, %v13218_v59  ;;  %v13248_v59 = vld [vmem:[#allocation105_spill] sm:$0xff] }
 0x770   : > { %v5164_v16 = vpop.permute.xlu0 %5163 }
 0x771   : > { %v5449_v60 = vpop.permute.xlu1 %5448  ;;  %v5714_v32 = vsel %vm3616_vm7, %v5682_v21, %v5164_v16  ;;  %v13228_v16 = vld [vmem:[#allocation54_spill] sm:$0xff]  ;;  %v13241_v21 = vld [vmem:[#allocation61_spill] sm:$0xff] }
 0x772   : > { %5380 = vrot.lane.b32.xlu0 %v13196_v53, %s13074_s21  ;;  %v5809_v51 = vsel %vm13207_vm13, %v5777_v58, %v5449_v60  ;;  %v13229_v60 = vrot.slane %v13228_v16, 7  ;;  %v13235_v58 = vld [vmem:[#allocation101_spill] sm:$0xff] }
 0x773   : > { %4992 = vrot.lane.b32.xlu1 %v4928_v45, %s12909_s29 }
 0x774   : > { %v5537_v55 = vpop.permute.xlu0 %5536  ;;  %v11678_v11 = vsel %vm1436_vm1, 0.0, %v13229_v60 }
 0x775   : > { %v5840_v30 = vsel %vm13201_vm12, %v5808_v0, %v5537_v55  ;;  %v5166_v40 = vpop.permute.xlu1 %5165  ;;  %vm13220_vm12 = vmmov %vm13206_vm2  ;;  %v4769_v55 = vrot.slane %v11678_v11, 1 }
 0x776   : > { %5085 = vrot.lane.b32.xlu0 %v13196_v53, %s13202_s0  ;;  %7041 = vmatprep.mubr.msk.f32.mxu0 %vm13203_vm15, %v5840_v30  ;;  %v5715_v54 = vsel %vm3616_vm7, %v5683_v25, %v5166_v40  ;;  %vm13221_vm15 = vmmov %vm13207_vm13  ;;  %v4770_v30 = vrot.slane %v13232_v12, 1  ;;  %v5622_v40 = vsel %vm13233_vm10, %v10799_v47, %v11401_v56  ;;  %v13237_v56 = vld [vmem:[#allocation47_spill] sm:$0xff] }
 0x777   : > { %5382 = vrot.lane.b32.xlu1 %v13204_v63, %s13074_s21  ;;  %vm13222_vm2 = vmmov %vm13200_vm11 }
 0x778   : > { %v5265_v49 = vpop.permute.xlu0 %5264  ;;  %vm13223_vm13 = vmmov %vm13209_vm14 }
 0x779   : > { %v5539_v38 = vpop.permute.xlu1 %5538  ;;  %v5746_v7 = vsel %vm13200_vm11, %v5714_v32, %v5265_v49  ;;  %vm13227_vm5 = vmmov %vm13221_vm15  ;;  %vm13234_vm11 = vcmask 130048   ;;  %v13236_v49 = vrot.slane %v13235_v58, 7 }
 0x77a   : > { %5470 = vrot.lane.b32.xlu0 %v13208_v61, %s12912_s12  ;;  %v5841_v15 = vsel %vm13209_vm14, %v5809_v51, %v5539_v38  ;;  %v5778_v13 = vsel %vm13220_vm12, %v5746_v7, %v13219_v52  ;;  %vm13224_vm14 = vmmov %vm13210_vm0 }
 0x77b   : > { %5087 = vrot.lane.b32.xlu1 %v13204_v63, %s13202_s0  ;;  %7042 = vmatmul.mubr.msk.f32.gmra.mrb[14].mxu0 %vm13210_vm0, %v5841_v15  ;;  %vm13226_vm0 = vmmov %vm13220_vm12  ;;  %v4668_v51 = vsel %vm1436_vm1, %v13236_v49, 0.0  ;;  %v13262_v49 = vld [vmem:[#allocation59_spill] sm:$0xff] }
 0x77c   : > { %v4971_v46 = vpop.permute.xlu0 %4970  ;;  %vm13230_vm8 = vmmov %vm13223_vm13  ;;  %v4772_v47 = vrot.slane %v4668_v51, 1 }
 0x77d   : > { %v5267_v39 = vpop.permute.xlu1 %5266  ;;  %vm13231_vm9 = vmmov %vm13224_vm14  ;;  %v5652_v26 = vsel %vm13234_vm11, %v5622_v40, %v4971_v46 }
 0x77e   : > { %5187 = vrot.lane.b32.xlu0 %v13208_v61, %s12915_s18  ;;  %v5747_v9 = vsel %vm13222_vm2, %v5715_v54, %v5267_v39  ;;  %v4771_v61 = vsel %vm2599_vm3, %v4769_v55, %v4770_v30  ;;  %v5684_v39 = vsel %vm3583_vm6, %v5652_v26, %v11305_v4  ;;  %vm13239_vm12 = vmmov %vm13233_vm10  ;;  %v4934_v4 = vrot.slane %v11678_v11, 2  ;;  %v13259_v55 = vld [vmem:[#allocation26_spill] sm:$0xff] }
 0x77f   : > { %5472 = vrot.lane.b32.xlu1 %v13213_v31, %s12912_s12  ;;  %v5779_v34 = vsel %vm13226_vm0, %v5747_v9, %v13225_v10  ;;  %v5623_v46 = vsel %vm13239_vm12, %v13238_v41, %v13237_v56  ;;  %v4773_v14 = vsel %vm2599_vm3, %v4770_v30, %v4772_v47  ;;  %v13253_v10 = vld [vmem:[#allocation52_spill] sm:$0xff]  ;;  %v13265_v56 = vld [vmem:[#allocation42_spill] sm:$0xff] }
 0x780   : > { %v5451_v29 = vpop.permute.xlu0 %5450 }
 0x781   : > { %v4973_v24 = vpop.permute.xlu1 %4972  ;;  %v5810_v45 = vsel %vm13221_vm15, %v5778_v13, %v5451_v29  ;;  %vm13240_vm15 = vmmov %vm13234_vm11 }
 0x782   : > { %5560 = vrot.lane.b32.xlu0 %v4931_v48, %s12918_s25  ;;  %v5653_v36 = vsel %vm13240_vm15, %v5623_v46, %v4973_v24  ;;  %vm13255_vm15 = vcmask 64512  }
 0x783   : > { %5189 = vrot.lane.b32.xlu1 %v13213_v31, %s12915_s18  ;;  %v5685_v17 = vsel %vm3583_vm6, %v5653_v36, %v13241_v21 }
 0x784   : > { %v5168_v62 = vpop.permute.xlu0 %5167 }
 0x785   : > { %v5453_v22 = vpop.permute.xlu1 %5452  ;;  %v5716_v43 = vsel %vm3616_vm7, %v5684_v39, %v5168_v62  ;;  %v13264_v39 = vld [vmem:[#allocation74_spill] sm:$0xff] }
 0x786   : > { %5288 = vrot.lane.b32.xlu0 %v4931_v48, %s12921_s30  ;;  %v5811_v20 = vsel %vm13227_vm5, %v5779_v34, %v5453_v22  ;;  %v13254_v34 = vld [vmem:[#allocation36_spill] sm:$0xff] }
 0x787   : > { %5562 = vrot.lane.b32.xlu1 %v4933_v6, %s12918_s25 }
 0x788   : > { %v5541_v37 = vpop.permute.xlu0 %5540 }
 0x789   : > { %v5842_v5 = vsel %vm13223_vm13, %v5810_v45, %v5541_v37  ;;  %v5170_v42 = vpop.permute.xlu1 %5169  ;;  %vm13243_vm13 = vmmov %vm13226_vm0  ;;  %v4937_v45 = vrot.slane %v4668_v51, 2  ;;  %v13263_v51 = vrot.slane %v13262_v49, 7 }
 0x78a   : > { %4994 = vrot.lane.b32.xlu0 %v4931_v48, %s12909_s29  ;;  %7044 = vmatprep.mubr.msk.f32.mxu0 %vm13224_vm14, %v5842_v5  ;;  %v4935_v48 = vrot.slane %v13232_v12, 2  ;;  %v5717_v24 = vsel %vm3616_vm7, %v5685_v17, %v5170_v42  ;;  %vm13244_vm14 = vmmov %vm13227_vm5 }
 0x78b   : > { %5290 = vrot.lane.b32.xlu1 %v4933_v6, %s12921_s30  ;;  %vm13245_vm0 = vmmov %vm13222_vm2 }
 0x78c   : > { %v5269_v35 = vpop.permute.xlu0 %5268  ;;  %vm13246_vm5 = vmmov %vm13230_vm8  ;;  %v4936_v22 = vsel %vm2770_vm4, %v4934_v4, %v4935_v48  ;;  %v4938_v5 = vsel %vm2770_vm4, %v4935_v48, %v4937_v45  ;;  %v13270_v4 = vld [vmem:[#allocation91_spill] sm:$0xff] }
 0x78d   : > { %v5543_v18 = vpop.permute.xlu1 %5542  ;;  %v5748_v23 = vsel %vm13222_vm2, %v5716_v43, %v5269_v35  ;;  %vm13250_vm10 = vmmov %vm13244_vm14  ;;  %v5624_v35 = vsel %vm13255_vm15, %v13254_v34, %v13253_v10  ;;  %vm13256_vm2 = vcmask 130048   ;;  %v4775_v48 = vrot.slane %v13270_v4, 1 }
 0x78e   : > { %5384 = vrot.lane.b32.xlu0 %v11678_v11, %s13074_s21  ;;  %v5843_v57 = vsel %vm13230_vm8, %v5811_v20, %v5543_v18  ;;  %v5780_v28 = vsel %vm13243_vm13, %v5748_v23, %v13242_v44  ;;  %vm13247_vm8 = vmmov %vm13231_vm9  ;;  %v13257_v18 = vld [vmem:[#allocation106_spill] sm:$0xff]  ;;  %v13274_v44 = vld [vmem:[#allocation32_spill] sm:$0xff] }
 0x78f   : > { %4996 = vrot.lane.b32.xlu1 %v4933_v6, %s12909_s29  ;;  %7045 = vmatmul.mubr.msk.f32.gmra.mrb[16].mxu0 %vm13231_vm9, %v5843_v57  ;;  %vm13249_vm9 = vmmov %vm13243_vm13 }
 0x790   : > { %v4975_v3 = vpop.permute.xlu0 %4974  ;;  %vm13251_vm11 = vmmov %vm13246_vm5 }
 0x791   : > { %v5271_v0 = vpop.permute.xlu1 %5270  ;;  %vm13252_vm12 = vmmov %vm13247_vm8  ;;  %v5654_v20 = vsel %vm13256_vm2, %v5624_v35, %v4975_v3  ;;  %v13283_v35 = vld [vmem:[#allocation30_spill] sm:$0xff] }
 0x792   : > { %5089 = vrot.lane.b32.xlu0 %v11678_v11, %s13202_s0  ;;  %v5749_v7 = vsel %vm13245_vm0, %v5717_v24, %v5271_v0  ;;  %v5686_v57 = vsel %vm3583_vm6, %v5654_v20, %v13257_v18  ;;  %v13258_v0 = vld [vmem:[#allocation92_spill] sm:$0xff]  ;;  %vm13260_vm13 = vmmov %vm13255_vm15  ;;  %v13285_v18 = vld [vmem:[#allocation79_spill] sm:$0xff] }
 0x793   : > { %5386 = vrot.lane.b32.xlu1 %v13232_v12, %s13074_s21  ;;  %v5781_v25 = vsel %vm13249_vm9, %v5749_v7, %v13248_v59  ;;  %v5625_v30 = vsel %vm13260_vm13, %v13259_v55, %v13258_v0 }
 0x794   : > { %v5455_v38 = vpop.permute.xlu0 %5454 }
 0x795   : > { %v4977_v15 = vpop.permute.xlu1 %4976  ;;  %v5812_v32 = vsel %vm13244_vm14, %v5780_v28, %v5455_v38  ;;  %vm13261_vm14 = vmmov %vm13256_vm2  ;;  %v11754_v38 = vsel %vm1436_vm1, 0.0, %v13263_v51  ;;  %v13289_v51 = vld [vmem:[#allocation45_spill] sm:$0xff] }
 0x796   : > { %5474 = vrot.lane.b32.xlu0 %v4771_v61, %s12912_s12  ;;  %v5655_v26 = vsel %vm13261_vm14, %v5625_v30, %v4977_v15  ;;  %vm13281_vm14 = vcmask 64512  }
 0x797   : > { %5091 = vrot.lane.b32.xlu1 %v13232_v12, %s13202_s0  ;;  %v5687_v47 = vsel %vm3583_vm6, %v5655_v26, %v13264_v39 }
 0x798   : > { %v5172_v31 = vpop.permute.xlu0 %5171 }
 0x799   : > { %v5457_v29 = vpop.permute.xlu1 %5456  ;;  %v5718_v40 = vsel %vm3616_vm7, %v5686_v57, %v5172_v31 }
 0x79a   : > { %5191 = vrot.lane.b32.xlu0 %v4771_v61, %s12915_s18  ;;  %v5813_v13 = vsel %vm13250_vm10, %v5781_v25, %v5457_v29  ;;  %v4774_v29 = vrot.slane %v11754_v38, 1  ;;  %v4939_v25 = vrot.slane %v11754_v38, 2 }
 0x79b   : > { %5476 = vrot.lane.b32.xlu1 %v4773_v14, %s12912_s12 }
 0x79c   : > { %v5545_v50 = vpop.permute.xlu0 %5544 }
 0x79d   : > { %v5844_v62 = vsel %vm13246_vm5, %v5812_v32, %v5545_v50  ;;  %v5174_v6 = vpop.permute.xlu1 %5173  ;;  %vm13266_vm5 = vmmov %vm13249_vm9  ;;  %v4776_v50 = vsel %vm2599_vm3, %v4774_v29, %v4775_v48 }
 0x79e   : > { %5564 = vrot.lane.b32.xlu0 %v4936_v22, %s12918_s25  ;;  %7047 = vmatprep.mubr.msk.f32.mxu0 %vm13247_vm8, %v5844_v62  ;;  %v5719_v15 = vsel %vm3616_vm7, %v5687_v47, %v5174_v6  ;;  %vm13267_vm8 = vmmov %vm13250_vm10 }
 0x79f   : > { %4833 = vrot.lane.b32.xlu1 %v4771_v61, %s12906_s26  ;;  %vm13268_vm9 = vmmov %vm13245_vm0 }
 0x7a0   : > { %v5273_v52 = vpop.permute.xlu0 %5272  ;;  %vm13269_vm10 = vmmov %vm13251_vm11 }
 0x7a1   : > { %v5547_v54 = vpop.permute.xlu1 %5546  ;;  %v5750_v3 = vsel %vm13245_vm0, %v5718_v40, %v5273_v52  ;;  %vm13276_vm15 = vmmov %vm13267_vm8  ;;  %v4940_v52 = vrot.slane %v13270_v4, 2  ;;  %vm13282_vm0 = vcmask 130048  }
 0x7a2   : > { %5193 = vrot.lane.b32.xlu0 %v4773_v14, %s12915_s18  ;;  %v5845_v37 = vsel %vm13251_vm11, %v5813_v13, %v5547_v54  ;;  %v5782_v41 = vsel %vm13266_vm5, %v5750_v3, %v13265_v56  ;;  %vm13271_vm11 = vmmov %vm13252_vm12  ;;  %v13279_v13 = vld [vmem:[#allocation43_spill] sm:$0xff]  ;;  %v13280_v54 = vld [vmem:[#allocation66_spill] sm:$0xff] }
 0x7a3   : > { %5292 = vrot.lane.b32.xlu1 %v4936_v22, %s12921_s30  ;;  %7048 = vmatmul.mubr.msk.f32.gmra.mrb[18].mxu0 %vm13252_vm12, %v5845_v37  ;;  %vm13275_vm12 = vmmov %vm13266_vm5  ;;  %v5626_v45 = vsel %vm13281_vm14, %v13280_v54, %v13279_v13  ;;  %v4941_v10 = vsel %vm2770_vm4, %v4939_v25, %v4940_v52  ;;  %v13288_v3 = vld [vmem:[#allocation18_spill] sm:$0xff]  ;;  %v13306_v25 = vld [vmem:[#allocation53_spill] sm:$0xff] }
 0x7a4   : > { %v4979_v9 = vpop.permute.xlu0 %4978  ;;  %vm13277_vm2 = vmmov %vm13269_vm10  ;;  %v13309_v54 = vld [vmem:[#allocation83_spill] sm:$0xff] }
 0x7a5   : > { %v5275_v42 = vpop.permute.xlu1 %5274  ;;  %vm13278_vm13 = vmmov %vm13271_vm11 }
 0x7a6   : > { %5566 = vrot.lane.b32.xlu0 %v4938_v5, %s12918_s25  ;;  %v5751_v36 = vsel %vm13268_vm9, %v5719_v15, %v5275_v42  ;;  %vm13286_vm5 = vmmov %vm13281_vm14 }
 0x7a7   : > { %4835 = vrot.lane.b32.xlu1 %v4773_v14, %s12906_s26  ;;  %v13272_v14 = vld [vmem:[#allocation97_spill] sm:$0xff]  ;;  %v5783_v28 = vsel %vm13275_vm12, %v5751_v36, %v13274_v44 }
 0x7a8   : > { %v5459_v16 = vpop.permute.xlu0 %5458  ;;  %v13273_v21 = vrot.slane %v13272_v14, 7  ;;  %v13300_v14 = vld [vmem:[#allocation78_spill] sm:$0xff] }
 0x7a9   : > { %v4981_v60 = vpop.permute.xlu1 %4980  ;;  %v5814_v46 = vsel %vm13267_vm8, %v5782_v41, %v5459_v16  ;;  %v13284_v16 = vld [vmem:[#allocation7_spill] sm:$0xff]  ;;  %vm13287_vm8 = vmmov %vm13282_vm0 }
 0x7aa   : > { %4998 = vrot.lane.b32.xlu0 %v4936_v22, %s12909_s29  ;;  %v4669_v17 = vsel %vm1436_vm1, %v13273_v21, 0.0  ;;  %v5627_v57 = vsel %vm13286_vm5, %v13285_v18, %v13284_v16  ;;  %v13301_v21 = vrot.slane %v13300_v14, 7  ;;  %v13312_v16 = vld [vmem:[#allocation41_spill] sm:$0xff] }
 0x7ab   : > { %5294 = vrot.lane.b32.xlu1 %v4938_v5, %s12921_s30  ;;  %v4777_v22 = vrot.slane %v4669_v17, 1  ;;  %v4942_v26 = vrot.slane %v4669_v17, 2 }
 0x7ac   : > { %v5176_v58 = vpop.permute.xlu0 %5175  ;;  %v11832_v17 = vsel %vm1436_vm1, 0.0, %v13301_v21  ;;  %v13324_v21 = vld [vmem:[#allocation94_spill] sm:$0xff] }
 0x7ad   : > { %v5461_v61 = vpop.permute.xlu1 %5460  ;;  %v4778_v37 = vsel %vm2599_vm3, %v4775_v48, %v4777_v22  ;;  %v4943_v41 = vsel %vm2770_vm4, %v4940_v52, %v4942_v26  ;;  %v13305_v22 = vld [vmem:[#allocation27_spill] sm:$0xff] }
 0x7ae   : > { %5388 = vrot.lane.b32.xlu0 %v11754_v38, %s13074_s21  ;;  %v5815_v32 = vsel %vm13276_vm15, %v5783_v28, %v5461_v61  ;;  %v13302_v28 = vld [vmem:[#allocation33_spill] sm:$0xff] }
 0x7af   : > { %5000 = vrot.lane.b32.xlu1 %v4938_v5, %s12909_s29  ;;  %v5656_v5 = vsel %vm13282_vm0, %v5626_v45, %v4979_v9  ;;  %v5657_v9 = vsel %vm13287_vm8, %v5627_v57, %v4981_v60  ;;  %vm13303_vm8 = vcmask 64512   ;;  %v13310_v45 = vrot.slane %v13309_v54, 7  ;;  %v13313_v57 = vld [vmem:[#allocation22_spill] sm:$0xff] }
 0x7b0   : > { %v5549_v43 = vpop.permute.xlu0 %5548  ;;  %v5688_v20 = vsel %vm3583_vm6, %v5656_v5, %v13283_v35  ;;  %v5689_v49 = vsel %vm3583_vm6, %v5657_v9, %v13288_v3  ;;  %v4944_v3 = vrot.slane %v11832_v17, 2 }
 0x7b1   : > { %v5846_v23 = vsel %vm13269_vm10, %v5814_v46, %v5549_v43  ;;  %v5178_v31 = vpop.permute.xlu1 %5177  ;;  %v5720_v0 = vsel %vm3616_vm7, %v5688_v20, %v5176_v58  ;;  %vm13290_vm10 = vmmov %vm13275_vm12  ;;  %v13295_v46 = vld [vmem:[#allocation46_spill] sm:$0xff] }
 0x7b2   : > { %5093 = vrot.lane.b32.xlu0 %v11754_v38, %s13202_s0  ;;  %7050 = vmatprep.mubr.msk.f32.mxu0 %vm13271_vm11, %v5846_v23  ;;  %v5721_v58 = vsel %vm3616_vm7, %v5689_v49, %v5178_v31  ;;  %vm13291_vm11 = vmmov %vm13276_vm15  ;;  %v4945_v49 = vrot.slane %v13305_v22, 2 }
 0x7b3   : > { %5390 = vrot.lane.b32.xlu1 %v13270_v4, %s13074_s21  ;;  %vm13292_vm12 = vmmov %vm13268_vm9 }
 0x7b4   : > { %v5277_v24 = vpop.permute.xlu0 %5276  ;;  %vm13293_vm15 = vmmov %vm13277_vm2 }
 0x7b5   : > { %v5551_v7 = vpop.permute.xlu1 %5550  ;;  %v5752_v55 = vsel %vm13268_vm9, %v5720_v0, %v5277_v24  ;;  %vm13297_vm14 = vmmov %vm13291_vm11  ;;  %v5628_v24 = vsel %vm13303_vm8, %v10895_v1, %v13302_v28  ;;  %vm13304_vm9 = vcmask 130048   ;;  %v13307_v1 = vld [vmem:[#allocation55_spill] sm:$0xff] }
 0x7b6   : > { %5478 = vrot.lane.b32.xlu0 %v4776_v50, %s12912_s12  ;;  %v5847_v62 = vsel %vm13277_vm2, %v5815_v32, %v5551_v7  ;;  %v5784_v61 = vsel %vm13290_vm10, %v5752_v55, %v13289_v51  ;;  %vm13294_vm2 = vmmov %vm13278_vm13 }
 0x7b7   : > { %5095 = vrot.lane.b32.xlu1 %v13270_v4, %s13202_s0  ;;  %7051 = vmatmul.mubr.msk.f32.gmra.mrb[20].mxu0 %vm13278_vm13, %v5847_v62  ;;  %vm13296_vm13 = vmmov %vm13290_vm10  ;;  %v4779_v62 = vrot.slane %v11832_v17, 1 }
 0x7b8   : > { %v4983_v6 = vpop.permute.xlu0 %4982  ;;  %vm13298_vm0 = vmmov %vm13293_vm15 }
 0x7b9   : > { %v5279_v59 = vpop.permute.xlu1 %5278  ;;  %vm13299_vm5 = vmmov %vm13294_vm2  ;;  %v5658_v32 = vsel %vm13304_vm9, %v5628_v24, %v4983_v6 }
 0x7ba   : > { %5195 = vrot.lane.b32.xlu0 %v4776_v50, %s12915_s18  ;;  %v5753_v47 = vsel %vm13292_vm12, %v5721_v58, %v5279_v59  ;;  %v4780_v59 = vrot.slane %v13305_v22, 1  ;;  %v5690_v52 = vsel %vm3583_vm6, %v5658_v32, %v13306_v25  ;;  %vm13308_vm10 = vmmov %vm13303_vm8  ;;  %v13327_v32 = vld [vmem:[#allocation95_spill] sm:$0xff]  ;;  %v13329_v25 = vld [vmem:[#allocation102_spill] sm:$0xff] }
 0x7bb   : > { %5480 = vrot.lane.b32.xlu1 %v4778_v37, %s12912_s12  ;;  %v5785_v43 = vsel %vm13296_vm13, %v5753_v47, %v13295_v46  ;;  %v5629_v13 = vsel %vm13308_vm10, %v10728_v33, %v13307_v1  ;;  %v4946_v47 = vsel %vm2770_vm4, %v4944_v3, %v4945_v49  ;;  %v13330_v1 = vld [vmem:[#allocation40_spill] sm:$0xff] }
 0x7bc   : > { %v5463_v42 = vpop.permute.xlu0 %5462  ;;  %v4781_v35 = vsel %vm2599_vm3, %v4779_v62, %v4780_v59 }
 0x7bd   : > { %v4985_v34 = vpop.permute.xlu1 %4984  ;;  %v5816_v39 = vsel %vm13291_vm11, %v5784_v61, %v5463_v42  ;;  %vm13311_vm11 = vmmov %vm13304_vm9  ;;  %v13319_v61 = vld [vmem:[#allocation49_spill] sm:$0xff] }
 0x7be   : > { %5568 = vrot.lane.b32.xlu0 %v4941_v10, %s12918_s25  ;;  %v5659_v5 = vsel %vm13311_vm11, %v5629_v13, %v4985_v34  ;;  %vm13325_vm11 = vcmask 64512  }
 0x7bf   : > { %4837 = vrot.lane.b32.xlu1 %v4776_v50, %s12906_s26  ;;  %v5691_v18 = vsel %vm3583_vm6, %v5659_v5, %v13312_v16 }
 0x7c0   : > { %v5180_v30 = vpop.permute.xlu0 %5179 }
 0x7c1   : > { %v5465_v40 = vpop.permute.xlu1 %5464  ;;  %v5722_v6 = vsel %vm3616_vm7, %v5690_v52, %v5180_v30 }
 0x7c2   : > { %5197 = vrot.lane.b32.xlu0 %v4778_v37, %s12915_s18  ;;  %v5817_v23 = vsel %vm13297_vm14, %v5785_v43, %v5465_v40 }
 0x7c3   : > { %5296 = vrot.lane.b32.xlu1 %v4941_v10, %s12921_s30 }
 0x7c4   : > { %v5553_v60 = vpop.permute.xlu0 %5552 }
 0x7c5   : > { %v5848_v56 = vsel %vm13293_vm15, %v5816_v39, %v5553_v60  ;;  %v5182_v15 = vpop.permute.xlu1 %5181  ;;  %vm13314_vm15 = vmmov %vm13296_vm13 }
 0x7c6   : > { %5570 = vrot.lane.b32.xlu0 %v4943_v41, %s12918_s25  ;;  %7053 = vmatprep.mubr.msk.f32.mxu0 %vm13294_vm2, %v5848_v56  ;;  %v5723_v34 = vsel %vm3616_vm7, %v5691_v18, %v5182_v15  ;;  %vm13315_vm2 = vmmov %vm13297_vm14  ;;  %v13338_v18 = vld [vmem:[#allocation44_spill] sm:$0xff] }
 0x7c7   : > { %4839 = vrot.lane.b32.xlu1 %v4778_v37, %s12906_s26  ;;  %v4670_v37 = vsel %vm1436_vm1, %v13310_v45, 0.0  ;;  %vm13316_vm13 = vmmov %vm13292_vm12  ;;  %v13332_v45 = vld [vmem:[#allocation90_spill] sm:$0xff] }
 0x7c8   : > { %v5281_v36 = vpop.permute.xlu0 %5280  ;;  %v4782_v33 = vrot.slane %v4670_v37, 1  ;;  %vm13317_vm14 = vmmov %vm13298_vm0  ;;  %v4947_v43 = vrot.slane %v4670_v37, 2  ;;  %v4785_v37 = vrot.slane %v13332_v45, 1 }
 0x7c9   : > { %v5555_v31 = vpop.permute.xlu1 %5554  ;;  %v5754_v42 = vsel %vm13292_vm12, %v5722_v6, %v5281_v36  ;;  %vm13321_vm8 = vmmov %vm13315_vm2  ;;  %vm13326_vm12 = vcmask 130048  }
 0x7ca   : > { %5002 = vrot.lane.b32.xlu0 %v4941_v10, %s12909_s29  ;;  %v5849_v29 = vsel %vm13298_vm0, %v5817_v23, %v5555_v31  ;;  %v5786_v0 = vsel %vm13314_vm15, %v5754_v42, %v13313_v57  ;;  %vm13318_vm0 = vmmov %vm13299_vm5  ;;  %v4783_v51 = vsel %vm2599_vm3, %v4780_v59, %v4782_v33  ;;  %v4948_v23 = vsel %vm2770_vm4, %v4945_v49, %v4947_v43 }
 0x7cb   : > { %5298 = vrot.lane.b32.xlu1 %v4943_v41, %s12921_s30  ;;  %7054 = vmatmul.mubr.msk.f32.gmra.mrb[22].mxu0 %vm13299_vm5, %v5849_v29  ;;  %vm13320_vm5 = vmmov %vm13314_vm15 }
 0x7cc   : > { %v11827_v48 = vpop.permute.xlu0 %4986  ;;  %vm13322_vm9 = vmmov %vm13317_vm14 }
 0x7cd   : > { %v5283_v44 = vpop.permute.xlu1 %5282  ;;  %vm13323_vm10 = vmmov %vm13318_vm0 }
 0x7ce   : > { %5392 = vrot.lane.b32.xlu0 %v11832_v17, %s13074_s21  ;;  %v5755_v30 = vsel %vm13316_vm13, %v5723_v34, %v5283_v44  ;;  %v5630_v44 = vsel %vm13325_vm11, %v10940_v19, %v13324_v21  ;;  %vm13331_vm15 = vmmov %vm13325_vm11 }
 0x7cf   : > { %5004 = vrot.lane.b32.xlu1 %v4943_v41, %s12909_s29  ;;  %v5787_v58 = vsel %vm13320_vm5, %v5755_v30, %v13319_v61  ;;  %v5660_v24 = vsel %vm13326_vm12, %v5630_v44, %v11827_v48  ;;  %v5631_v48 = vsel %vm13331_vm15, %v10750_v8, %v13330_v1  ;;  %v13335_v8 = vld [vmem:[#allocation98_spill] sm:$0xff] }
 0x7d0   : > { %v5467_v50 = vpop.permute.xlu0 %5466  ;;  %v5692_v52 = vsel %vm3583_vm6, %v5660_v24, %v13329_v25 }
 0x7d1   : > { %v11841_v7 = vpop.permute.xlu1 %4988  ;;  %v5818_v9 = vsel %vm13315_vm2, %v5786_v0, %v5467_v50  ;;  %v13328_v50 = vrot.slane %v13327_v32, 7  ;;  %vm13333_vm2 = vmmov %vm13326_vm12 }
 0x7d2   : > { %5097 = vrot.lane.b32.xlu0 %v11832_v17, %s13202_s0  ;;  %v5661_v5 = vsel %vm13333_vm2, %v5631_v48, %v11841_v7 }
 0x7d3   : > { %5394 = vrot.lane.b32.xlu1 %v13305_v22, %s13074_s21  ;;  %v11907_v62 = vsel %vm1436_vm1, 0.0, %v13328_v50  ;;  %v5693_v7 = vsel %vm3583_vm6, %v5661_v5, %v13338_v18 }
 0x7d4   : > { %v5184_v10 = vpop.permute.xlu0 %5183  ;;  %v4784_v54 = vrot.slane %v11907_v62, 1  ;;  %v4949_v61 = vrot.slane %v11907_v62, 2 }
 0x7d5   : > { %v5469_v20 = vpop.permute.xlu1 %5468  ;;  %v5724_v13 = vsel %vm3616_vm7, %v5692_v52, %v5184_v10  ;;  %v13336_v10 = vrot.slane %v13335_v8, 7 }
 0x7d6   : > { %5482 = vrot.lane.b32.xlu0 %v4781_v35, %s12912_s12  ;;  %v5819_v60 = vsel %vm13321_vm8, %v5787_v58, %v5469_v20  ;;  %v4786_v0 = vsel %vm2599_vm3, %v4784_v54, %v4785_v37 }
 0x7d7   : > { %5099 = vrot.lane.b32.xlu1 %v13305_v22, %s13202_s0  ;;  %v4671_v20 = vsel %vm1436_vm1, %v13336_v10, 0.0  ;;  %vm13341_vm1 = vmmov %vm13316_vm13  ;;  %v13359_v10 = vld [vmem:[#allocation89_spill] sm:$0xff] }
 0x7d8   : > { %v5557_v55 = vpop.permute.xlu0 %5556  ;;  %v4952_v43 = vrot.slane %v4671_v20, 2 }
 0x7d9   : > { %v5850_v40 = vsel %vm13317_vm14, %v5818_v9, %v5557_v55  ;;  %v5186_v26 = vpop.permute.xlu1 %5185  ;;  %vm13334_vm14 = vmmov %vm13320_vm5  ;;  %v4787_v55 = vrot.slane %v4671_v20, 1 }
 0x7da   : > { %5199 = vrot.lane.b32.xlu0 %v4781_v35, %s12915_s18  ;;  %7056 = vmatprep.mubr.msk.f32.mxu0 %vm13318_vm0, %v5850_v40  ;;  %vm13337_vm0 = vmmov %vm13321_vm8  ;;  %v5725_v9 = vsel %vm3616_vm7, %v5693_v7, %v5186_v26  ;;  %v4950_v26 = vrot.slane %v13332_v45, 2 }
 0x7db   : > { %5484 = vrot.lane.b32.xlu1 %v4783_v51, %s12912_s12  ;;  %vm13339_vm5 = vmmov %vm13322_vm9 }
 0x7dc   : > { %v5285_v39 = vpop.permute.xlu0 %5284  ;;  %vm13340_vm8 = vmmov %vm13323_vm10 }
 0x7dd   : > { %v5559_v56 = vpop.permute.xlu1 %5558  ;;  %v5756_v42 = vsel %vm13316_vm13, %v5724_v13, %v5285_v39  ;;  %vm13344_vm11 = vmmov %vm13339_vm5  ;;  %v4788_v39 = vsel %vm2599_vm3, %v4785_v37, %v4787_v55  ;;  %v13350_v13 = vld [vmem:[#allocation28_spill] sm:$0xff] }
 0x7de   : > { %5572 = vrot.lane.b32.xlu0 %v4946_v47, %s12918_s25  ;;  %v5851_v41 = vsel %vm13322_vm9, %v5819_v60, %v5559_v56  ;;  %vm13342_vm9 = vmmov %vm13334_vm14 }
 0x7df   : > { %4841 = vrot.lane.b32.xlu1 %v4781_v35, %s12906_s26  ;;  %7057 = vmatmul.mubr.msk.f32.gmra.mrb[24].mxu0 %vm13323_vm10, %v5851_v41  ;;  %vm13343_vm10 = vmmov %vm13337_vm0 }
 0x7e0   : > { %v11886_v15 = vpop.permute.xlu0 %4990  ;;  %vm13345_vm12 = vmmov %vm13340_vm8 }
 0x7e1   : > { %v5287_v46 = vpop.permute.xlu1 %5286  ;;  %vm13347_vm3 = vmmov %vm13331_vm15 }
 0x7e2   : > { %5201 = vrot.lane.b32.xlu0 %v4783_v51, %s12915_s18  ;;  %v5757_v30 = vsel %vm13341_vm1, %v5725_v9, %v5287_v46  ;;  %vm13348_vm15 = vmmov %vm13333_vm2 }
 0x7e3   : > { %5300 = vrot.lane.b32.xlu1 %v4946_v47, %s12921_s30  ;;  %vm13351_vm2 = vmmov %vm13342_vm9 }
 0x7e4   : > { %v5381_v36 = vpop.permute.xlu0 %5380  ;;  %vm13352_vm13 = vmmov %vm13337_vm0 }
 0x7e5   : > { %v11891_v31 = vpop.permute.xlu1 %4992  ;;  %v5788_v35 = vsel %vm13334_vm14, %v5756_v42, %v5381_v36  ;;  %vm13353_vm14 = vmmov %vm13339_vm5 }
 0x7e6   : > { %5574 = vrot.lane.b32.xlu0 %v4948_v23, %s12918_s25 }
 0x7e7   : > { %4843 = vrot.lane.b32.xlu1 %v4783_v51, %s12906_s26 }
 0x7e8   : > { %v11895_v29 = vpop.permute.xlu0 %5085 }
 0x7e9   : > { %v5383_v14 = vpop.permute.xlu1 %5382 }
 0x7ea   : > { %5006 = vrot.lane.b32.xlu0 %v4946_v47, %s12909_s29  ;;  %v5789_v40 = vsel %vm13342_vm9, %v5757_v30, %v5383_v14  ;;  %v4951_v47 = vsel %vm2770_vm4, %v4949_v61, %v4950_v26 }
 0x7eb   : > { %5302 = vrot.lane.b32.xlu1 %v4948_v23, %s12921_s30 }
 0x7ec   : > { %v5471_v28 = vpop.permute.xlu0 %5470 }
 0x7ed   : > { %v11909_v59 = vpop.permute.xlu1 %5087  ;;  %v5820_v33 = vsel %vm13337_vm0, %v5788_v35, %v5471_v28  ;;  %v13346_v28 = vld [vmem:[#allocation14_spill] sm:$0xff]  ;;  %vm13355_vm0 = vmmov %vm13347_vm3 }
 0x7ee   : > { %5396 = vrot.lane.b32.xlu0 %v11907_v62, %s13074_s21  ;;  %v5632_v24 = vsel %vm13347_vm3, %v10975_v2, %v13346_v28  ;;  %vm13360_vm9 = vmmov %vm13355_vm0 }
 0x7ef   : > { %5008 = vrot.lane.b32.xlu1 %v4948_v23, %s12909_s29  ;;  %v4953_v23 = vsel %vm2770_vm4, %v4950_v26, %v4952_v43  ;;  %v5662_v32 = vsel %vm13348_vm15, %v5632_v24, %v11886_v15  ;;  %vm13349_vm4 = vmmov %vm13341_vm1  ;;  %v13369_v26 = vld [vmem:[#allocation37_spill] sm:$0xff] }
 0x7f0   : > { %v5188_v19 = vpop.permute.xlu0 %5187  ;;  %v5694_v50 = vsel %vm3583_vm6, %v5662_v32, %v11895_v29  ;;  %v13354_v29 = vld [vmem:[#allocation84_spill] sm:$0xff]  ;;  %vm13358_vm1 = vmmov %vm13355_vm0 }
 0x7f1   : > { %v5473_v6 = vpop.permute.xlu1 %5472  ;;  %v5726_v52 = vsel %vm3616_vm7, %v5694_v50, %v5188_v19  ;;  %v5633_v19 = vsel %vm13355_vm0, %v10770_v27, %v13354_v29  ;;  %vm13365_vm3 = vmmov %vm13353_vm14 }
 0x7f2   : > { %5101 = vrot.lane.b32.xlu0 %v11907_v62, %s13202_s0  ;;  %v5821_v49 = vsel %vm13343_vm10, %v5789_v40, %v5473_v6  ;;  %vm13361_vm10 = vmmov %vm13349_vm4 }
 0x7f3   : > { %5398 = vrot.lane.b32.xlu1 %v13332_v45, %s13074_s21 }
 0x7f4   : > { %v5561_v16 = vpop.permute.xlu0 %5560 }
 0x7f5   : > { %v5852_v57 = vsel %vm13339_vm5, %v5820_v33, %v5561_v16  ;;  %v11938_v34 = vpop.permute.xlu1 %5189  ;;  %vm13356_vm5 = vmmov %vm13340_vm8 }
 0x7f6   : > { %5486 = vrot.lane.b32.xlu0 %v4786_v0, %s12912_s12  ;;  %7059 = vmatprep.mubr.msk.f32.mxu0 %vm13340_vm8, %v5852_v57  ;;  %vm13357_vm8 = vmmov %vm13348_vm15  ;;  %v13362_v57 = vld [vmem:[#allocation20_spill] sm:$0xff] }
 0x7f7   : > { %5103 = vrot.lane.b32.xlu1 %v13332_v45, %s13202_s0  ;;  %v5663_v42 = vsel %vm13357_vm8, %v5633_v19, %v11891_v31  ;;  %vm13366_vm15 = vmmov %vm13356_vm5 }
 0x7f8   : > { %v5289_v3 = vpop.permute.xlu0 %5288  ;;  %v5695_v27 = vsel %vm3583_vm6, %v5663_v42, %v11909_v59 }
 0x7f9   : > { %v5563_v51 = vpop.permute.xlu1 %5562  ;;  %v5758_v48 = vsel %vm13349_vm4, %v5726_v52, %v5289_v3  ;;  %v5727_v16 = vsel %vm3616_vm7, %v5695_v27, %v11938_v34  ;;  %v13367_v34 = vld [vmem:[#allocation35_spill] sm:$0xff]  ;;  %vm13370_vm4 = vmmov %vm13355_vm0 }
 0x7fa   : > { %5203 = vrot.lane.b32.xlu0 %v4786_v0, %s12915_s18  ;;  %v5853_v58 = vsel %vm13344_vm11, %v5821_v49, %v5563_v51  ;;  %vm13363_vm11 = vmmov %vm13351_vm2  ;;  %v13368_v49 = vld [vmem:[#allocation99_spill] sm:$0xff] }
 0x7fb   : > { %5488 = vrot.lane.b32.xlu1 %v4788_v39, %s12912_s12  ;;  %7060 = vmatmul.mubr.msk.f32.gmra.mrb[26].mxu0 %vm13345_vm12, %v5853_v58  ;;  %vm13364_vm12 = vmmov %vm13352_vm13 }
 0x7fc   : > { %v11955_v60 = vpop.permute.xlu0 %4994 }
 0x7fd   : > { %v5291_v56 = vpop.permute.xlu1 %5290 }
 0x7fe   : > { %5576 = vrot.lane.b32.xlu0 %v4951_v47, %s12918_s25  ;;  %v5759_v7 = vsel %vm13361_vm10, %v5727_v16, %v5291_v56 }
 0x7ff   : > { %4845 = vrot.lane.b32.xlu1 %v4786_v0, %s12906_s26 }
 0x800   : > { %v5385_v41 = vpop.permute.xlu0 %5384 }
 0x801   : > { %v11960_v46 = vpop.permute.xlu1 %4996  ;;  %v5790_v2 = vsel %vm13351_vm2, %v5758_v48, %v5385_v41  ;;  %vm13372_vm2 = vmmov %vm13355_vm0 }
 0x802   : > { %5205 = vrot.lane.b32.xlu0 %v4788_v39, %s12915_s18 }
 0x803   : > { %5304 = vrot.lane.b32.xlu1 %v4951_v47, %s12921_s30 }
 0x804   : > { %v11964_v36 = vpop.permute.xlu0 %5089 }
 0x805   : > { %v5387_v14 = vpop.permute.xlu1 %5386 }
 0x806   : > { %5578 = vrot.lane.b32.xlu0 %v4953_v23, %s12918_s25  ;;  %v5791_v0 = vsel %vm13363_vm11, %v5759_v7, %v5387_v14 }
 0x807   : > { %4847 = vrot.lane.b32.xlu1 %v4788_v39, %s12906_s26  ;;  %s7173_s26 = sshll.u32 %s7247_s17, 4  ;;  %s7174_s26 = int_to_ptr.vmem [resolvable:$false] %s7173_s26 }
 0x808   : > { %v5475_v21 = vpop.permute.xlu0 %5474 }
 0x809   : > { %v11969_v44 = vpop.permute.xlu1 %5091  ;;  %v5822_v15 = vsel %vm13352_vm13, %v5790_v2, %v5475_v21  ;;  %v13371_v21 = vld [vmem:[#allocation48_spill] sm:$0xff]  ;;  %vm13373_vm13 = vmmov %vm13355_vm0 }
 0x80a   : > { %5010 = vrot.lane.b32.xlu0 %v4951_v47, %s12909_s29  ;;  %v5634_v28 = vsel %vm13372_vm2, %v13196_v53, %v13371_v21  ;;  %vm13375_vm0 = vmmov %vm13361_vm10 }
 0x80b   : > { %5306 = vrot.lane.b32.xlu1 %v4953_v23, %s12921_s30  ;;  %vm13381_vm10 = vmmov %vm13366_vm15 }
 0x80c   : > { %v5192_v25 = vpop.permute.xlu0 %5191 }
 0x80d   : > { %v5477_v1 = vpop.permute.xlu1 %5476 }
 0x80e   : > { %5400 = vrot.lane.b32.xlu0 %v13350_v13, %s13074_s21  ;;  %v5823_v59 = vsel %vm13364_vm12, %v5791_v0, %v5477_v1 }
 0x80f   : > { %5012 = vrot.lane.b32.xlu1 %v4953_v23, %s12909_s29  ;;  %s7175_s29 = scalar_lea.vmem %s7174_s26, 512 }
 0x810   : > { %v5565_v6 = vpop.permute.xlu0 %5564 }
 0x811   : > { %v5854_v54 = vsel %vm13353_vm14, %v5822_v15, %v5565_v6  ;;  %v11988_v37 = vpop.permute.xlu1 %4833  ;;  %vm13374_vm14 = vmmov %vm13357_vm8 }
 0x812   : > { %5105 = vrot.lane.b32.xlu0 %v13350_v13, %s13202_s0  ;;  %7062 = vmatprep.mubr.msk.f32.mxu0 %vm13356_vm5, %v5854_v54  ;;  %v11996_v5 = vpop.f32.mrb[8].mxu0  ;;  %v5664_v32 = vsel %vm13374_vm14, %v5634_v28, %v11955_v60  ;;  %vm13376_vm5 = vmmov %vm13363_vm11  ;;  %v13379_v60 = vld [vmem:[#allocation103_spill] sm:$0xff] }
 0x813   : > { %v6188_v35 = vsel %vm13358_vm1, %v11996_v5, 0.0  ;;  %v12002_v8 = vpop.f32.mrb[9].mxu0  ;;  %5402 = vrot.lane.b32.xlu1 %v13359_v10, %s13074_s21  ;;  %v5696_v52 = vsel %vm3583_vm6, %v5664_v32, %v11964_v36  ;;  %vm13377_vm8 = vmmov %vm13364_vm12 }
 0x814   : > { %v5194_v20 = vpop.permute.xlu0 %5193  ;;  %v6187_v33 = vsel %vm13360_vm9, %v12002_v8, 0.0  ;;  %v5728_v48 = vsel %vm3616_vm7, %v5696_v52, %v5192_v25  ;;  %vm13378_vm1 = vmmov %vm13365_vm3 }
 0x815   : > { %v6189_v18 = vadd.f32 %v6188_v35, %v6187_v33  ;;  %v5293_v31 = vpop.permute.xlu1 %5292  ;;  %vm13380_vm9 = vmmov %vm13372_vm2 }
 0x816   : > { %5490 = vrot.lane.b32.xlu0 %v13362_v57, %s12912_s12  ;;  %v5760_v2 = vsel %vm13375_vm0, %v5728_v48, %v5293_v31  ;;  %v5635_v19 = vsel %vm13380_vm9, %v13204_v63, %v13379_v60  ;;  %vm13382_vm11 = vmmov %vm13374_vm14 }
 0x817   : > { %5107 = vrot.lane.b32.xlu1 %v13359_v10, %s13202_s0  ;;  %v5665_v36 = vsel %vm13382_vm11, %v5635_v19, %v11960_v46  ;;  %vm13383_vm12 = vmmov %vm13375_vm0 }
 0x818   : > { %v5567_v9 = vpop.permute.xlu0 %5566  ;;  %v5697_v25 = vsel %vm3583_vm6, %v5665_v36, %v11969_v44  ;;  %vm13387_vm2 = vmmov %vm13381_vm10 }
 0x819   : > { %v5855_v55 = vsel %vm13365_vm3, %v5823_v59, %v5567_v9  ;;  %v12020_v30 = vpop.permute.xlu1 %4835  ;;  %v5729_v35 = vsel %vm3616_vm7, %v5697_v25, %v5194_v20  ;;  %vm13384_vm3 = vmmov %vm13376_vm5 }
 0x81a   : > { %5207 = vrot.lane.b32.xlu0 %v13362_v57, %s12915_s18  ;;  %7063 = vmatmul.mubr.msk.f32.gmra.mrb[28].mxu0 %vm13366_vm15, %v5855_v55  ;;  %vm13385_vm15 = vmmov %vm13377_vm8 }
 0x81b   : > { %5492 = vrot.lane.b32.xlu1 %v13367_v34, %s12912_s12  ;;  %vm13389_vm14 = vmmov %vm13380_vm9 }
 0x81c   : > { %v4999_v40 = vpop.permute.xlu0 %4998  ;;  %vm13390_vm0 = vmmov %vm13380_vm9 }
 0x81d   : > { %v5295_v3 = vpop.permute.xlu1 %5294 }
 0x81e   : > { %5580 = vrot.lane.b32.xlu0 %v13368_v49, %s12918_s25  ;;  %v5761_v27 = vsel %vm13383_vm12, %v5729_v35, %v5295_v3 }
 0x81f   : > { %5209 = vrot.lane.b32.xlu1 %v13367_v34, %s12915_s18  ;;  %s365_s18 = sand.u32 1, %s7223_s14  }
 0x820   : > { %v5389_v51 = vpop.permute.xlu0 %5388  ;;  %s6664_s0 = scalar_lea.sflag [#allocation3], %s365_s18 }
 0x821   : > { %v12031_v61 = vpop.permute.xlu1 %5000  ;;  %v5792_v15 = vsel %vm13376_vm5, %v5760_v2, %v5389_v51  ;;  %vm13391_vm5 = vmmov %vm13382_vm11 }
 0x822   : > { %5308 = vrot.lane.b32.xlu0 %v13368_v49, %s12921_s30 }
 0x823   : > { %5582 = vrot.lane.b32.xlu1 %v13369_v26, %s12918_s25  ;;  %s6753_s25 = sshll.u32 %s365_s18, 4 }
 0x824   : > { %v5094_v58 = vpop.permute.xlu0 %5093 }
 0x825   : > { %v5391_v39 = vpop.permute.xlu1 %5390 }
 0x826   : > { %5310 = vrot.lane.b32.xlu0 %v13369_v26, %s12921_s30  ;;  %v12039_v47 = vpop.f32.mrb[10].mxu0  ;;  %v5793_v33 = vsel %vm13384_vm3, %v5761_v27, %v5391_v39  ;;  %v5636_v39 = vsel %vm13390_vm0, %v11678_v11, %v11988_v37  ;;  %s367_s30 = scalar_lea.vmem [#allocation2], %s6753_s25 }
 0x827   : > { %v12041_v56 = vpop.f32.mrb[11].mxu0  ;;  %v6192_v24 = vsel %vm13373_vm13, %v12039_v47, 0.0  ;;  %vm13388_vm13 = vmmov %vm13380_vm9  ;;  %s6678_s21 = sshll.u32 %s367_s30, 4  ;;  %s12596_s21 = int_to_ptr.vmem [resolvable:$true] %s6678_s21 }
 0x828   : > { %v5479_v41 = vpop.permute.xlu0 %5478  ;;  %v6190_v43 = vsel %vm13370_vm4, %v12041_v56, 0.0  ;;  %vm13386_vm4 = vmmov %vm13378_vm1  ;;  %s7169_s1 = scalar_lea.vmem %s12596_s21, 256  ;;  %p7176_p0 = scmp.lt.s32.totalorder %s12596_s21, %s7174_s26 }
 0x829   : > { %v6191_v23 = vadd.f32 %v6190_v43, %v6189_v18  ;;  %v12045_v14 = vpop.permute.xlu1 %5095  ;;  %v5824_v53 = vsel %vm13377_vm8, %v5792_v15, %v5479_v41  ;;  %v5666_v41 = vsel %vm13391_vm5, %v5636_v39, %v4999_v40  ;;  %vm13392_vm8 = vmmov %vm13383_vm12  ;;  %p7170_p11 = scmp.ne.s32.totalorder %s12596_s21, %s7169_s1  ;;  %p7177_p1 = scmp.lt.s32.totalorder %s7175_s29, %s7169_s1 }
 0x82a   : > { %v5698_v43 = vsel %vm3583_vm6, %v5666_v41, %v5094_v58  ;;  %vm13394_vm9 = vmmov %vm13385_vm15 }
 0x82b   : > { %v6193_v50 = vadd.f32 %v6192_v24, %v6191_v23  ;;  %vm13396_vm11 = vmmov %vm13386_vm4  ;;  %p7171_p12 = pnand %p7170_p11, %p7341_p5  ;;  %p7178_p2 = por %p7177_p1, %p7176_p0 }
 0x82c   : > { %v5196_v1 = vpop.permute.xlu0 %5195  ;;  %vm13397_vm12 = vmmov %vm13390_vm0 }
 0x82d   : > { %v5481_v13 = vpop.permute.xlu1 %5480  ;;  %v5730_v21 = vsel %vm3616_vm7, %v5698_v43, %v5196_v1  ;;  %v5637_v1 = vsel %vm13397_vm12, %v13232_v12, %v12020_v30  ;;  %p7172_p13 = pneg %p7171_p12 }
 0x82e   : > { %v5825_v16 = vsel %vm13385_vm15, %v5793_v33, %v5481_v13  ;;  %vm13399_vm15 = vmmov %vm13387_vm2 }
 0x82f   : > { %p7179_p3 = pnand %p7178_p2, %p7172_p13 }
 0x830   : > { %v5569_v6 = vpop.permute.xlu0 %5568 }
 0x831   : > { %v5856_v54 = vsel %vm13378_vm1, %v5824_v53, %v5569_v6  ;;  %v12061_v29 = vpop.permute.xlu1 %4837  ;;  %vm13393_vm1 = vmmov %vm13384_vm3 }
 0x832   : > { %7065 = vmatprep.mubr.msk.f32.mxu0 %vm13381_vm10, %v5856_v54  ;;  %vm13395_vm10 = vmmov %vm13390_vm0 }
 0x833   : > { %vm13398_vm3 = vmmov %vm13390_vm0 }
 0x834   : > { %v5198_v42 = vpop.permute.xlu0 %5197  ;;  %vm13404_vm0 = vmmov %vm13396_vm11 }
 0x835   : > { %v5297_v10 = vpop.permute.xlu1 %5296 }
 0x836   : > { %v5762_v24 = vsel %vm13392_vm8, %v5730_v21, %v5297_v10 }
 0x838   : > { %v5571_v18 = vpop.permute.xlu0 %5570 }
 0x839   : > { %v5857_v63 = vsel %vm13386_vm4, %v5825_v16, %v5571_v18  ;;  %v12076_v31 = vpop.permute.xlu1 %4839  ;;  %vm13400_vm4 = vmmov %vm13391_vm5 }
 0x83a   : > { %7066 = vmatmul.mubr.msk.f32.gmra.mrb[30].mxu0 %vm13387_vm2, %v5857_v63  ;;  %v12079_v46 = vpop.f32.mrb[12].mxu0  ;;  %v5667_v15 = vsel %vm13400_vm4, %v5637_v1, %v12031_v61  ;;  %vm13401_vm2 = vmmov %vm13392_vm8 }
 0x83b   : > { %v12081_v44 = vpop.f32.mrb[13].mxu0  ;;  %v6196_v59 = vsel %vm13389_vm14, %v12079_v46, 0.0  ;;  %v5699_v6 = vsel %vm3583_vm6, %v5667_v15, %v12045_v14  ;;  %vm13403_vm14 = vmmov %vm13394_vm9 }
 0x83c   : > { %v5003_v7 = vpop.permute.xlu0 %5002  ;;  %v6194_v20 = vsel %vm13388_vm13, %v12081_v44, 0.0  ;;  %v5731_v60 = vsel %vm3616_vm7, %v5699_v6, %v5198_v42  ;;  %vm13402_vm13 = vmmov %vm13393_vm1 }
 0x83d   : > { %v6195_v57 = vadd.f32 %v6194_v20, %v6193_v50  ;;  %v5299_v0 = vpop.permute.xlu1 %5298  ;;  %vm13405_vm5 = vmmov %vm13399_vm15 }
 0x83e   : > { %v5763_v36 = vsel %vm13401_vm2, %v5731_v60, %v5299_v0  ;;  %vm13406_vm8 = vmmov %vm13398_vm3 }
 0x83f   : > { %v6197_v9 = vadd.f32 %v6196_v59, %v6195_v57  ;;  %vm13411_vm12 = vmmov %vm13402_vm13 }
 0x840   : > { %v5393_v55 = vpop.permute.xlu0 %5392 }
 0x841   : > { %v12087_v34 = vpop.permute.xlu1 %5004  ;;  %v5794_v50 = vsel %vm13393_vm1, %v5762_v24, %v5393_v55  ;;  %vm13407_vm1 = vmmov %vm13398_vm3 }
 0x844   : > { %v5098_v3 = vpop.permute.xlu0 %5097 }
 0x845   : > { %v5395_v49 = vpop.permute.xlu1 %5394 }
 0x846   : > { %v5795_v12 = vsel %vm13402_vm13, %v5763_v36, %v5395_v49 }
 0x848   : > { %v5483_v51 = vpop.permute.xlu0 %5482 }
 0x849   : > { %v12089_v26 = vpop.permute.xlu1 %5099  ;;  %v5826_v48 = vsel %vm13394_vm9, %v5794_v50, %v5483_v51  ;;  %vm13408_vm9 = vmmov %vm13407_vm1 }
 0x84a   : > { %v5638_v49 = vsel %vm13408_vm9, %v11754_v38, %v12061_v29 }
 0x84c   : > { %v5200_v23 = vpop.permute.xlu0 %5199 }
 0x84d   : > { %v5485_v28 = vpop.permute.xlu1 %5484 }
 0x84e   : > { %v12098_v32 = vpop.f32.mrb[14].mxu0  ;;  %v5827_v30 = vsel %vm13403_vm14, %v5795_v12, %v5485_v28 }
 0x84f   : > { %v12101_v52 = vpop.f32.mrb[15].mxu0  ;;  %v6200_v2 = vsel %vm13398_vm3, %v12098_v32, 0.0  ;;  %vm13412_vm3 = vmmov %vm13403_vm14 }
 0x850   : > { %v5573_v13 = vpop.permute.xlu0 %5572  ;;  %v6198_v11 = vsel %vm13395_vm10, %v12101_v52, 0.0  ;;  %vm13409_vm10 = vmmov %vm13400_vm4 }
 0x851   : > { %v5858_v37 = vsel %vm13396_vm11, %v5826_v48, %v5573_v13  ;;  %v6199_v40 = vadd.f32 %v6198_v11, %v6197_v9  ;;  %v12107_v58 = vpop.permute.xlu1 %4841  ;;  %v5668_v51 = vsel %vm13409_vm10, %v5638_v49, %v5003_v7  ;;  %vm13410_vm11 = vmmov %vm13401_vm2 }
 0x852   : > { %7068 = vmatprep.mubr.msk.f32.mxu0 %vm13399_vm15, %v5858_v37  ;;  %v5700_v39 = vsel %vm3583_vm6, %v5668_v51, %v5098_v3  ;;  %vm13413_vm15 = vmmov %vm13404_vm0 }
 0x853   : > { %v6201_v53 = vadd.f32 %v6200_v2, %v6199_v40  ;;  %v5732_v43 = vsel %vm3616_vm7, %v5700_v39, %v5200_v23  ;;  %vm13414_vm4 = vmmov %vm13407_vm1 }
 0x854   : > { %v5202_v54 = vpop.permute.xlu0 %5201  ;;  %v5639_v38 = vsel %vm13414_vm4, %v13270_v4, %v12076_v31  ;;  %vm13415_vm2 = vmmov %vm13405_vm5 }
 0x855   : > { %v5301_v19 = vpop.permute.xlu1 %5300  ;;  %vm13416_vm13 = vmmov %vm13409_vm10 }
 0x856   : > { %v5764_v28 = vsel %vm13410_vm11, %v5732_v43, %v5301_v19  ;;  %v5669_v29 = vsel %vm13416_vm13, %v5639_v38, %v12087_v34  ;;  %vm13417_vm14 = vmmov %vm13410_vm11 }
 0x857   : > { %v5701_v7 = vsel %vm3583_vm6, %v5669_v29, %v12089_v26  ;;  %vm13422_vm9 = vmmov %vm13414_vm4 }
 0x858   : > { %v5575_v25 = vpop.permute.xlu0 %5574  ;;  %v5733_v23 = vsel %vm3616_vm7, %v5701_v7, %v5202_v54  ;;  %vm13423_vm10 = vmmov %vm13415_vm2 }
 0x859   : > { %v5859_v35 = vsel %vm13404_vm0, %v5827_v30, %v5575_v25  ;;  %v12124_v10 = vpop.permute.xlu1 %4843  ;;  %vm13418_vm0 = vmmov %vm13411_vm12 }
 0x85a   : > { %7069 = vmatmul.mubr.msk.f32.gmra.mrb[32].mxu0 %vm13405_vm5, %v5859_v35  ;;  %vm13419_vm5 = vmmov %vm13412_vm3 }
 0x85b   : > { %vm13424_vm11 = vmmov %vm13414_vm4 }
 0x85c   : > { %v5007_v61 = vpop.permute.xlu0 %5006 }
 0x85d   : > { %v5303_v27 = vpop.permute.xlu1 %5302 }
 0x85e   : > { %v5765_v40 = vsel %vm13417_vm14, %v5733_v23, %v5303_v27 }
 0x860   : > { %v5397_v14 = vpop.permute.xlu0 %5396 }
 0x861   : > { %v12127_v33 = vpop.permute.xlu1 %5008  ;;  %v5796_v24 = vsel %vm13411_vm12, %v5764_v28, %v5397_v14  ;;  %vm13425_vm12 = vmmov %vm13416_vm13 }
 0x862   : > { %v12129_v42 = vpop.f32.mrb[16].mxu0  ;;  %vm13430_vm13 = vmmov %vm13418_vm0 }
 0x863   : > { %v12131_v16 = vpop.f32.mrb[17].mxu0  ;;  %v6204_v0 = vsel %vm13407_vm1, %v12129_v42, 0.0 }
 0x864   : > { %v5102_v18 = vpop.permute.xlu0 %5101  ;;  %v6202_v63 = vsel %vm13406_vm8, %v12131_v16, 0.0  ;;  %vm13420_vm8 = vmmov %vm13407_vm1 }
 0x865   : > { %v6203_v20 = vadd.f32 %v6202_v63, %v6201_v53  ;;  %v5399_v57 = vpop.permute.xlu1 %5398  ;;  %vm13421_vm1 = vmmov %vm13413_vm15  ;;  %v5640_v63 = vsel %vm13424_vm11, %v11832_v17, %v12107_v58 }
 0x866   : > { %v5797_v2 = vsel %vm13418_vm0, %v5765_v40, %v5399_v57  ;;  %v5670_v57 = vsel %vm13425_vm12, %v5640_v63, %v5007_v61  ;;  %vm13432_vm0 = vmmov %vm13419_vm5 }
 0x867   : > { %v6205_v59 = vadd.f32 %v6204_v0, %v6203_v20  ;;  %vm13438_vm11 = vmmov %vm13430_vm13 }
 0x868   : > { %v5487_v9 = vpop.permute.xlu0 %5486 }
 0x869   : > { %v5104_v55 = vpop.permute.xlu1 %5103  ;;  %v5828_v50 = vsel %vm13412_vm3, %v5796_v24, %v5487_v9  ;;  %vm13426_vm3 = vmmov %vm13414_vm4 }
 0x86a   : > { %vm13428_vm4 = vmmov %vm13426_vm3 }
 0x86c   : > { %v5204_v41 = vpop.permute.xlu0 %5203 }
 0x86d   : > { %v5489_v21 = vpop.permute.xlu1 %5488 }
 0x86e   : > { %v5829_v4 = vsel %vm13419_vm5, %v5797_v2, %v5489_v21  ;;  %v13443_v2 = vld [vmem:[#allocation19_spill] sm:$0xff] }
 0x870   : > { %v5577_v48 = vpop.permute.xlu0 %5576 }
 0x871   : > { %v5860_v13 = vsel %vm13413_vm15, %v5828_v50, %v5577_v48  ;;  %v4846_v11 = vpop.permute.xlu1 %4845  ;;  %vm13427_vm15 = vmmov %vm13417_vm14 }
 0x872   : > { %7071 = vmatprep.mubr.msk.f32.mxu0 %vm13415_vm2, %v5860_v13  ;;  %vm13429_vm2 = vmmov %vm13426_vm3 }
 0x873   : > { %v5641_v58 = vsel %vm13429_vm2, %v13305_v22, %v12124_v10  ;;  %vm13431_vm14 = vmmov %vm13425_vm12 }
 0x874   : > { %v5206_v3 = vpop.permute.xlu0 %5205  ;;  %v5671_v28 = vsel %vm13431_vm14, %v5641_v58, %v12127_v33  ;;  %vm13433_vm5 = vmmov %vm13429_vm2 }
 0x875   : > { %v5305_v37 = vpop.permute.xlu1 %5304  ;;  %v5703_v50 = vsel %vm3583_vm6, %v5671_v28, %v5104_v55  ;;  %v5642_v48 = vsel %vm13433_vm5, %v11907_v62, %v4846_v11 }
 0x876   : > { %v12157_v1 = vpop.f32.mrb[18].mxu0  ;;  %v5735_v29 = vsel %vm3616_vm7, %v5703_v50, %v5206_v3 }
 0x877   : > { %v12160_v15 = vpop.f32.mrb[19].mxu0  ;;  %v6208_v54 = vsel %vm13422_vm9, %v12157_v1, 0.0  ;;  %vm13436_vm9 = vmmov %vm13423_vm10 }
 0x878   : > { %v5579_v31 = vpop.permute.xlu0 %5578  ;;  %v6206_v34 = vsel %vm13420_vm8, %v12160_v15, 0.0  ;;  %vm13434_vm8 = vmmov %vm13421_vm1 }
 0x879   : > { %v5861_v26 = vsel %vm13421_vm1, %v5829_v4, %v5579_v31  ;;  %v6207_v53 = vadd.f32 %v6206_v34, %v6205_v59  ;;  %v4848_v6 = vpop.permute.xlu1 %4847  ;;  %v5702_v59 = vsel %vm3583_vm6, %v5670_v57, %v5102_v18  ;;  %vm13435_vm1 = vmmov %vm13425_vm12 }
 0x87a   : > { %7072 = vmatmul.mubr.msk.f32.gmra.mrb[34].mxu0 %vm13423_vm10, %v5861_v26  ;;  %v5734_v51 = vsel %vm3616_vm7, %v5702_v59, %v5204_v41  ;;  %vm13437_vm10 = vmmov %vm13427_vm15  ;;  %v13447_v26 = vld [vmem:[#allocation11_spill] sm:$0xff] }
 0x87b   : > { %v6209_v60 = vadd.f32 %v6208_v54, %v6207_v53  ;;  %v5766_v21 = vsel %vm13427_vm15, %v5734_v51, %v5305_v37  ;;  %vm13439_vm12 = vmmov %vm13429_vm2  ;;  %v13448_v54 = vld [vmem:[#allocation21_spill] sm:$0xff] }
 0x87c   : > { %v5011_v19 = vpop.permute.xlu0 %5010  ;;  %v5643_v62 = vsel %vm13439_vm12, %v13332_v45, %v4848_v6  ;;  %vm13441_vm15 = vmmov %vm13437_vm10 }
 0x87d   : > { %v5307_v36 = vpop.permute.xlu1 %5306  ;;  %v5672_v22 = vsel %vm13435_vm1, %v5642_v48, %v5011_v19  ;;  %vm13444_vm2 = vmmov %vm13438_vm11 }
 0x87e   : > { %v5767_v10 = vsel %vm13437_vm10, %v5735_v29, %v5307_v36  ;;  %vm13446_vm14 = vmmov %vm13436_vm9 }
 0x87f   : > { %vm13449_vm5 = vmmov %vm13434_vm8 }
 0x880   : > { %v5401_v12 = vpop.permute.xlu0 %5400 }
 0x881   : > { %v5013_v30 = vpop.permute.xlu1 %5012  ;;  %v5798_v61 = vsel %vm13430_vm13, %v5766_v21, %v5401_v12  ;;  %vm13445_vm13 = vmmov %vm13434_vm8 }
 0x884   : > { %v5106_v25 = vpop.permute.xlu0 %5105 }
 0x885   : > { %v5403_v35 = vpop.permute.xlu1 %5402  ;;  %v5704_v33 = vsel %vm3583_vm6, %v5672_v22, %v5106_v25 }
 0x886   : > { %v5799_v7 = vsel %vm13438_vm11, %v5767_v10, %v5403_v35 }
 0x888   : > { %v5491_v27 = vpop.permute.xlu0 %5490 }
 0x889   : > { %v5108_v14 = vpop.permute.xlu1 %5107  ;;  %v5830_v24 = vsel %vm13432_vm0, %v5798_v61, %v5491_v27 }
 0x88a   : > { %v12172_v20 = vpop.f32.mrb[20].mxu0 }
 0x88b   : > { %v12175_v0 = vpop.f32.mrb[21].mxu0  ;;  %v6212_v17 = vsel %vm13428_vm4, %v12172_v20, 0.0  ;;  %vm13442_vm4 = vmmov %vm13435_vm1 }
 0x88c   : > { %v5208_v9 = vpop.permute.xlu0 %5207  ;;  %v6210_v49 = vsel %vm13426_vm3, %v12175_v0, 0.0  ;;  %vm13440_vm3 = vmmov %vm13432_vm0  ;;  %v5673_v40 = vsel %vm13442_vm4, %v5643_v62, %v5013_v30 }
 0x88d   : > { %v6211_v39 = vadd.f32 %v6210_v49, %v6209_v60  ;;  %v5493_v43 = vpop.permute.xlu1 %5492  ;;  %v5736_v55 = vsel %vm3616_vm7, %v5704_v33, %v5208_v9  ;;  %v5705_v34 = vsel %vm3583_vm6, %v5673_v40, %v5108_v14  ;;  %vm13451_vm1 = vmmov %vm13436_vm9 }
 0x88e   : > { %v5831_v11 = vsel %vm13440_vm3, %v5799_v7, %v5493_v43  ;;  %vm13453_vm6 = vmmov %vm13432_vm0 }
 0x88f   : > { %v6213_v18 = vadd.f32 %v6212_v17, %v6211_v39  ;;  %vm13455_vm11 = vmmov %vm13451_vm1 }
 0x890   : > { %v5581_v41 = vpop.permute.xlu0 %5580 }
 0x891   : > { %v5862_v13 = vsel %vm13434_vm8, %v5830_v24, %v5581_v41  ;;  %v5210_v38 = vpop.permute.xlu1 %5209  ;;  %vm13450_vm8 = vmmov %vm13437_vm10 }
 0x892   : > { %7074 = vmatprep.mubr.msk.f32.mxu0 %vm13436_vm9, %v5862_v13  ;;  %v5737_v45 = vsel %vm3616_vm7, %v5705_v34, %v5210_v38  ;;  %vm13452_vm9 = vmmov %vm13444_vm2 }
 0x893   : > { %vm13454_vm10 = vmmov %vm13449_vm5 }
 0x894   : > { %v5309_v23 = vpop.permute.xlu0 %5308  ;;  %vm13456_vm7 = vmmov %vm13439_vm12 }
 0x895   : > { %v5768_v3 = vsel %vm13441_vm15, %v5736_v55, %v5309_v23  ;;  %v5583_v37 = vpop.permute.xlu1 %5582  ;;  %vm13457_vm12 = vmmov %vm13456_vm7 }
 0x896   : > { %v5800_v4 = vsel %vm13444_vm2, %v5768_v3, %v13443_v2  ;;  %v5863_v31 = vsel %vm13445_vm13, %v5831_v11, %v5583_v37  ;;  %vm13458_vm3 = vmmov %vm13456_vm7 }
 0x897   : > { %7075 = vmatmul.mubr.msk.f32.gmra.mrb[36].mxu0 %vm13446_vm14, %v5863_v31  ;;  %v5832_v53 = vsel %vm13432_vm0, %v5800_v4, %v13447_v26  ;;  %vm13459_vm15 = vmmov %vm13458_vm3 }
 0x898   : > { %v5311_v6 = vpop.permute.xlu0 %5310  ;;  %v5864_v60 = vsel %vm13449_vm5, %v5832_v53, %v13448_v54  ;;  %vm13460_vm4 = vmmov %vm13458_vm3 }
 0x899   : > { %v5769_v19 = vsel %vm13450_vm8, %v5737_v45, %v5311_v6  ;;  %7077 = vmatprep.mubr.msk.f32.mxu0 %vm13451_vm1, %v5864_v60  ;;  %vm13461_vm2 = vmmov %vm13458_vm3 }
 0x89a   : > { %v5801_v36 = vsel %vm13452_vm9, %v5769_v19, %v13443_v2  ;;  %vm13462_vm13 = vmmov %vm13461_vm2 }
 0x89b   : > { %v5833_v12 = vsel %vm13453_vm6, %v5801_v36, %v13447_v26  ;;  %vm13463_vm14 = vmmov %vm13461_vm2 }
 0x89c   : > { %v5865_v30 = vsel %vm13454_vm10, %v5833_v12, %v13448_v54  ;;  %vm13464_vm0 = vmmov %vm13461_vm2 }
 0x89d   : > { %7078 = vmatmul.mubr.msk.f32.gmra.mrb[38].mxu0 %vm13455_vm11, %v5865_v30  ;;  %vm13465_vm5 = vmmov %vm13464_vm0 }
 0x89e   : > { %v12226_v25 = vpop.f32.mrb[22].mxu0  ;;  %vm13466_vm8 = vmmov %vm13464_vm0 }
 0x89f   : > { %v12228_v35 = vpop.f32.mrb[23].mxu0  ;;  %v6216_v63 = vsel %vm13457_vm12, %v12226_v25, 0.0  ;;  %vm13467_vm1 = vmmov %vm13464_vm0 }
 0x8a0   : > { %v6214_v27 = vsel %vm13456_vm7, %v12228_v35, 0.0  ;;  %vm13468_vm9 = vmmov %vm13464_vm0 }
 0x8a1   : > { %v6215_v14 = vadd.f32 %v6214_v27, %v6213_v18  ;;  %vm13469_vm6 = vmmov %vm13464_vm0 }
 0x8a2   : > { %vm13470_vm10 = vmmov %vm13464_vm0 }
 0x8a3   : > { %v6217_v57 = vadd.f32 %v6216_v63, %v6215_v14  ;;  %vm13471_vm11 = vmmov %vm13464_vm0 }
 0x8a4   : > { %vm13472_vm7 = vmmov %vm13464_vm0 }
 0x8a5   : > { %vm13473_vm12 = vmmov %vm13464_vm0 }
 0x8b2   : > { %v12234_v59 = vpop.f32.mrb[24].mxu0 }
 0x8b3   : > { %v12236_v9 = vpop.f32.mrb[25].mxu0  ;;  %v6220_v39 = vsel %vm13459_vm15, %v12234_v59, 0.0  ;;  %vm13475_vm15 = vmmov %vm13464_vm0 }
 0x8b4   : > { %v6218_v49 = vsel %vm13458_vm3, %v12236_v9, 0.0  ;;  %vm13474_vm3 = vmmov %vm13464_vm0 }
 0x8b5   : > { %v6219_v51 = vadd.f32 %v6218_v49, %v6217_v57 }
 0x8b7   : > { %v6221_v43 = vadd.f32 %v6220_v39, %v6219_v51 }
 0x8ce   : > { %v12242_v21 = vpop.f32.mrb[26].mxu0 }
 0x8cf   : > { %v12244_v17 = vpop.f32.mrb[27].mxu0  ;;  %v6224_v18 = vsel %vm13461_vm2, %v12242_v21, 0.0  ;;  %vm13477_vm2 = vmmov %vm13464_vm0 }
 0x8d0   : > { %v6222_v58 = vsel %vm13460_vm4, %v12244_v17, 0.0  ;;  %vm13476_vm4 = vmmov %vm13464_vm0 }
 0x8d1   : > { %v6223_v61 = vadd.f32 %v6222_v58, %v6221_v43 }
 0x8d3   : > { %v6225_v28 = vadd.f32 %v6224_v18, %v6223_v61 }
 0x8ed   : > { %v12250_v24 = vpop.f32.mrb[28].mxu0 }
 0x8ee   : > { %v6128_v41 = vpop.f32.mrb[29].mxu0  ;;  %v6228_v13 = vsel %vm13463_vm14, %v12250_v24, 0.0  ;;  %vm13479_vm14 = vmmov %vm13464_vm0 }
 0x8ef   : > { %v6226_v50 = vsel %vm13462_vm13, %v6128_v41, 0.0  ;;  %vm13478_vm13 = vmmov %vm13464_vm0 }
 0x8f0   : > { %v6227_v48 = vadd.f32 %v6226_v50, %v6225_v28 }
 0x8f2   : > { %v6229_v38 = vadd.f32 %v6228_v13, %v6227_v48 }
 0x90d   : > { %v7067_v29 = vpop.f32.mrb[30].mxu0 }
 0x90e   : > { %v6138_v22 = vpop.f32.mrb[31].mxu0  ;;  %v6232_v7 = vsel %vm13465_vm5, %v7067_v29, 0.0  ;;  %vm13480_vm5 = vmmov %vm13464_vm0 }
 0x90f   : > { %v6230_v10 = vsel %vm13464_vm0, %v6138_v22, 0.0 }
 0x910   : > { %v6231_v33 = vadd.f32 %v6230_v10, %v6229_v38 }
 0x912   : > { %v6233_v55 = vadd.f32 %v6232_v7, %v6231_v33 }
 0x92d   : > { %v7070_v23 = vpop.f32.mrb[32].mxu0 }
 0x92e   : > { %v6148_v62 = vpop.f32.mrb[33].mxu0  ;;  %v6236_v37 = vsel %vm13467_vm1, %v7070_v23, 0.0  ;;  %vm13482_vm1 = vmmov %vm13464_vm0 }
 0x92f   : > { %v6234_v11 = vsel %vm13466_vm8, %v6148_v62, 0.0  ;;  %vm13481_vm8 = vmmov %vm13464_vm0 }
 0x930   : > { %v6235_v3 = vadd.f32 %v6234_v11, %v6233_v55 }
 0x932   : > { %v6237_v40 = vadd.f32 %v6236_v37, %v6235_v3 }
 0x94d   : > { %v7073_v2 = vpop.f32.mrb[34].mxu0 }
 0x94e   : > { %v6158_v4 = vpop.f32.mrb[35].mxu0  ;;  %v6240_v26 = vsel %vm13469_vm6, %v7073_v2, 0.0  ;;  %vm13484_vm6 = vmmov %vm13464_vm0 }
 0x94f   : > { %v6238_v31 = vsel %vm13468_vm9, %v6158_v4, 0.0  ;;  %vm13483_vm9 = vmmov %vm13464_vm0 }
 0x950   : > { %v6239_v34 = vadd.f32 %v6238_v31, %v6237_v40 }
 0x952   : > { %v6241_v53 = vadd.f32 %v6240_v26, %v6239_v34 }
 0x96a   : > { %v7076_v45 = vpop.f32.mrb[36].mxu0 }
 0x96b   : > { %v6168_v6 = vpop.f32.mrb[37].mxu0  ;;  %v6244_v19 = vsel %vm13471_vm11, %v7076_v45, 0.0  ;;  %vm13486_vm11 = vmmov %vm13464_vm0 }
 0x96c   : > { %v6242_v54 = vsel %vm13470_vm10, %v6168_v6, 0.0  ;;  %vm13485_vm10 = vmmov %vm13464_vm0 }
 0x96d   : > { %v6243_v60 = vadd.f32 %v6242_v54, %v6241_v53 }
 0x96f   : > { %v6245_v36 = vadd.f32 %v6244_v19, %v6243_v60 }
 0x970   : > { %v7079_v12 = vpop.f32.mrb[38].mxu0 }
 0x971   : > { %v6178_v30 = vpop.f32.mrb[39].mxu0  ;;  %v6248_v63 = vsel %vm13473_vm12, %v7079_v12, 0.0  ;;  %vm13488_vm12 = vmmov %vm13464_vm0 }
 0x972   : > { %v6246_v27 = vsel %vm13472_vm7, %v6178_v30, 0.0  ;;  %vm13487_vm7 = vmmov %vm13464_vm0 }
 0x973   : > { %v6247_v14 = vadd.f32 %v6246_v27, %v6245_v36 }
 0x975   : > { %v6249_v57 = vadd.f32 %v6248_v63, %v6247_v14 }
 0x977   : > { %v6250_v49 = vrot.slane %v6249_v57, 4 }
 0x979   : > { %v6251_v51 = vadd.f32 %v6250_v49, %v6249_v57 }
 0x97b   : > { %v6252_v39 = vrot.slane %v6251_v51, 2 }
 0x97d   : > { %v6253_v43 = vadd.f32 %v6252_v39, %v6251_v51 }
 0x97f   : > { %v6254_v58 = vrot.slane %v6253_v43, 1 }
 0x981   : > { %v6255_v61 = vadd.f32 %v6254_v58, %v6253_v43 }
 0x983   : > { %v6256_v18 = vmul.f32 0.00390625, %v6255_v61 }
 0x985   : > { %v12266_v28 = vsub.f32 %v12002_v8, %v6256_v18  ;;  %v12269_v50 = vsub.f32 %v11996_v5, %v6256_v18  ;;  %v12272_v48 = vsub.f32 %v12041_v56, %v6256_v18  ;;  %v12275_v13 = vsub.f32 %v12039_v47, %v6256_v18 }
 0x986   : > { %v12278_v38 = vsub.f32 %v12081_v44, %v6256_v18  ;;  %v12281_v10 = vsub.f32 %v12079_v46, %v6256_v18  ;;  %v12284_v33 = vsub.f32 %v12101_v52, %v6256_v18  ;;  %v12287_v8 = vsub.f32 %v12098_v32, %v6256_v18 }
 0x987   : > { %v12290_v5 = vsub.f32 %v12131_v16, %v6256_v18  ;;  %v12293_v56 = vsub.f32 %v12129_v42, %v6256_v18  ;;  %v12296_v47 = vsub.f32 %v12160_v15, %v6256_v18  ;;  %v12299_v44 = vsub.f32 %v12157_v1, %v6256_v18 }
 0x988   : > { %v12302_v46 = vsub.f32 %v12175_v0, %v6256_v18  ;;  %v12305_v52 = vsub.f32 %v12172_v20, %v6256_v18  ;;  %v12308_v32 = vsub.f32 %v12228_v35, %v6256_v18  ;;  %v12311_v16 = vsub.f32 %v12226_v25, %v6256_v18 }
 0x989   : > { %v12314_v42 = vsub.f32 %v12236_v9, %v6256_v18  ;;  %v12317_v15 = vsub.f32 %v12234_v59, %v6256_v18  ;;  %v12320_v1 = vsub.f32 %v12244_v17, %v6256_v18  ;;  %v12323_v0 = vsub.f32 %v12242_v21, %v6256_v18 }
 0x98a   : > { %v12325_v20 = vsub.f32 %v6128_v41, %v6256_v18  ;;  %v12328_v35 = vsub.f32 %v12250_v24, %v6256_v18  ;;  %v12330_v7 = vsub.f32 %v6138_v22, %v6256_v18  ;;  %v12332_v25 = vsub.f32 %v7067_v29, %v6256_v18 }
 0x98b   : > { %v12334_v9 = vsub.f32 %v6148_v62, %v6256_v18  ;;  %v12336_v55 = vsub.f32 %v7070_v23, %v6256_v18  ;;  %v12338_v59 = vsub.f32 %v6158_v4, %v6256_v18  ;;  %v12340_v17 = vsub.f32 %v7073_v2, %v6256_v18 }
 0x98c   : > { %v12342_v11 = vsub.f32 %v6168_v6, %v6256_v18  ;;  %v12344_v21 = vsub.f32 %v7076_v45, %v6256_v18  ;;  %v12346_v41 = vsub.f32 %v6178_v30, %v6256_v18  ;;  %v12348_v24 = vsub.f32 %v7079_v12, %v6256_v18 }
 0x98d   : > { %v6289_v29 = vmul.f32 %v12266_v28, %v12266_v28  ;;  %v6290_v22 = vmul.f32 %v12269_v50, %v12269_v50  ;;  %v6291_v23 = vmul.f32 %v12272_v48, %v12272_v48  ;;  %v6292_v62 = vmul.f32 %v12275_v13, %v12275_v13 }
 0x98e   : > { %v6293_v2 = vmul.f32 %v12278_v38, %v12278_v38  ;;  %v6294_v34 = vmul.f32 %v12281_v10, %v12281_v10  ;;  %v6295_v45 = vmul.f32 %v12284_v33, %v12284_v33  ;;  %v6296_v60 = vmul.f32 %v12287_v8, %v12287_v8 }
 0x98f   : > { %v6321_v3 = vsel %vm13474_vm3, %v6289_v29, 0.0  ;;  %v6322_v37 = vsel %vm13475_vm15, %v6290_v22, 0.0  ;;  %v6324_v4 = vsel %vm13476_vm4, %v6291_v23, 0.0  ;;  %v6326_v26 = vsel %vm13477_vm2, %v6292_v62, 0.0  ;;  %vm13489_vm3 = vmmov %vm13464_vm0 }
 0x990   : > { %v6323_v40 = vadd.f32 %v6322_v37, %v6321_v3  ;;  %v6328_v6 = vsel %vm13478_vm13, %v6293_v2, 0.0  ;;  %v6330_v19 = vsel %vm13479_vm14, %v6294_v34, 0.0  ;;  %v6297_v12 = vmul.f32 %v12290_v5, %v12290_v5  ;;  %vm13490_vm15 = vmmov %vm13464_vm0 }
 0x991   : > { %v6332_v30 = vsel %vm13464_vm0, %v6295_v45, 0.0  ;;  %v6298_v14 = vmul.f32 %v12293_v56, %v12293_v56  ;;  %v6334_v63 = vsel %vm13480_vm5, %v6296_v60, 0.0  ;;  %v6299_v49 = vmul.f32 %v12296_v47, %v12296_v47  ;;  %vm13491_vm4 = vmmov %vm13464_vm0 }
 0x992   : > { %v6325_v31 = vadd.f32 %v6324_v4, %v6323_v40  ;;  %v6336_v51 = vsel %vm13481_vm8, %v6297_v12, 0.0  ;;  %v6300_v43 = vmul.f32 %v12299_v44, %v12299_v44  ;;  %v6301_v18 = vmul.f32 %v12302_v46, %v12302_v46  ;;  %vm13492_vm2 = vmmov %vm13464_vm0 }
 0x993   : > { %v6338_v58 = vsel %vm13482_vm1, %v6298_v14, 0.0  ;;  %v6340_v29 = vsel %vm13483_vm9, %v6299_v49, 0.0  ;;  %v6302_v23 = vmul.f32 %v12305_v52, %v12305_v52  ;;  %v6303_v37 = vmul.f32 %v12308_v32, %v12308_v32  ;;  %vm13493_vm13 = vmmov %vm13464_vm0 }
 0x994   : > { %v6327_v53 = vadd.f32 %v6326_v26, %v6325_v31  ;;  %v6342_v62 = vsel %vm13484_vm6, %v6300_v43, 0.0  ;;  %v6344_v40 = vsel %vm13485_vm10, %v6301_v18, 0.0  ;;  %v6304_v4 = vmul.f32 %v12311_v16, %v12311_v16  ;;  %vm13494_vm14 = vmmov %vm13464_vm0 }
 0x995   : > { %v6346_v31 = vsel %vm13486_vm11, %v6302_v23, 0.0  ;;  %v6305_v26 = vmul.f32 %v12314_v42, %v12314_v42  ;;  %vm13495_vm5 = vmmov %vm13464_vm0 }
 0x996   : > { %v6329_v54 = vadd.f32 %v6328_v6, %v6327_v53  ;;  %v6348_v53 = vsel %vm13487_vm7, %v6303_v37, 0.0  ;;  %v6306_v6 = vmul.f32 %v12317_v15, %v12317_v15  ;;  %vm13496_vm8 = vmmov %vm13464_vm0 }
 0x997   : > { %vm13497_vm1 = vmmov %vm13464_vm0 }
 0x998   : > { %v6331_v36 = vadd.f32 %v6330_v19, %v6329_v54  ;;  %v6350_v54 = vsel %vm13488_vm12, %v6304_v4, 0.0  ;;  %v6307_v19 = vmul.f32 %v12320_v1, %v12320_v1  ;;  %vm13498_vm9 = vmmov %vm13464_vm0 }
 0x999   : > { %vm13499_vm6 = vmmov %vm13464_vm0 }
 0x99a   : > { %v6333_v27 = vadd.f32 %v6332_v30, %v6331_v36  ;;  %v6352_v36 = vsel %vm13489_vm3, %v6305_v26, 0.0  ;;  %v6308_v30 = vmul.f32 %v12323_v0, %v12323_v0  ;;  %vm13500_vm10 = vmmov %vm13464_vm0 }
 0x99b   : > { %vm13501_vm11 = vmmov %vm13464_vm0 }
 0x99c   : > { %v6335_v57 = vadd.f32 %v6334_v63, %v6333_v27  ;;  %v6354_v27 = vsel %vm13490_vm15, %v6306_v6, 0.0  ;;  %v6309_v63 = vmul.f32 %v12325_v20, %v12325_v20  ;;  %vm13502_vm7 = vmmov %vm13464_vm0 }
 0x99d   : > { %vm13503_vm12 = vmmov %vm13464_vm0 }
 0x99e   : > { %v6337_v39 = vadd.f32 %v6336_v51, %v6335_v57  ;;  %v6356_v57 = vsel %vm13491_vm4, %v6307_v19, 0.0  ;;  %v6310_v51 = vmul.f32 %v12328_v35, %v12328_v35 }
 0x9a0   : > { %v6339_v61 = vadd.f32 %v6338_v58, %v6337_v39  ;;  %v6358_v39 = vsel %vm13492_vm2, %v6308_v30, 0.0  ;;  %v6311_v58 = vmul.f32 %v12330_v7, %v12330_v7 }
 0x9a2   : > { %v6341_v22 = vadd.f32 %v6340_v29, %v6339_v61  ;;  %v6360_v61 = vsel %vm13493_vm13, %v6309_v63, 0.0  ;;  %v6312_v29 = vmul.f32 %v12332_v25, %v12332_v25 }
 0x9a4   : > { %v6343_v3 = vadd.f32 %v6342_v62, %v6341_v22  ;;  %v6362_v22 = vsel %vm13494_vm14, %v6310_v51, 0.0  ;;  %v6313_v62 = vmul.f32 %v12334_v9, %v12334_v9 }
 0x9a6   : > { %v6345_v2 = vadd.f32 %v6344_v40, %v6343_v3  ;;  %v6364_v3 = vsel %vm13464_vm0, %v6311_v58, 0.0  ;;  %v6314_v40 = vmul.f32 %v12336_v55, %v12336_v55 }
 0x9a8   : > { %v6347_v34 = vadd.f32 %v6346_v31, %v6345_v2  ;;  %v6366_v2 = vsel %vm13495_vm5, %v6312_v29, 0.0  ;;  %v6315_v31 = vmul.f32 %v12338_v59, %v12338_v59 }
 0x9aa   : > { %v6349_v45 = vadd.f32 %v6348_v53, %v6347_v34  ;;  %v6368_v34 = vsel %vm13496_vm8, %v6313_v62, 0.0  ;;  %v6316_v53 = vmul.f32 %v12340_v17, %v12340_v17 }
 0x9ac   : > { %v6351_v60 = vadd.f32 %v6350_v54, %v6349_v45  ;;  %v6370_v45 = vsel %vm13497_vm1, %v6314_v40, 0.0  ;;  %v6317_v54 = vmul.f32 %v12342_v11, %v12342_v11 }
 0x9ae   : > { %v6353_v12 = vadd.f32 %v6352_v36, %v6351_v60  ;;  %v6372_v60 = vsel %vm13498_vm9, %v6315_v31, 0.0  ;;  %v6318_v36 = vmul.f32 %v12344_v21, %v12344_v21  ;;  %v12453_v31 = vld [vmem:[%s12649_s8] ss:$0 sm:$0xff] }
 0x9b0   : > { %v6355_v14 = vadd.f32 %v6354_v27, %v6353_v12  ;;  %v6374_v12 = vsel %vm13499_vm6, %v6316_v53, 0.0  ;;  %v6319_v27 = vmul.f32 %v12346_v41, %v12346_v41 }
 0x9b2   : > { %v6357_v49 = vadd.f32 %v6356_v57, %v6355_v14  ;;  %v6376_v14 = vsel %vm13500_vm10, %v6317_v54, 0.0  ;;  %v6320_v57 = vmul.f32 %v12348_v24, %v12348_v24 }
 0x9b4   : > { %v6359_v43 = vadd.f32 %v6358_v39, %v6357_v49  ;;  %v6378_v49 = vsel %vm13501_vm11, %v6318_v36, 0.0  ;;  %v6380_v39 = vsel %vm13502_vm7, %v6319_v27, 0.0  ;;  %v6382_v58 = vsel %vm13503_vm12, %v6320_v57, 0.0 }
 0x9b6   : > { %v6361_v18 = vadd.f32 %v6360_v61, %v6359_v43 }
 0x9b8   : > { %v6363_v23 = vadd.f32 %v6362_v22, %v6361_v18 }
 0x9ba   : > { %v6365_v37 = vadd.f32 %v6364_v3, %v6363_v23 }
 0x9bc   : > { %v6367_v4 = vadd.f32 %v6366_v2, %v6365_v37 }
 0x9be   : > { %v6369_v26 = vadd.f32 %v6368_v34, %v6367_v4  ;;  %v12458_v34 = vld [vmem:[%s12650_s9] ss:$0 sm:$0xff] }
 0x9c0   : > { %v6371_v6 = vadd.f32 %v6370_v45, %v6369_v26 }
 0x9c2   : > { %v6373_v19 = vadd.f32 %v6372_v60, %v6371_v6 }
 0x9c4   : > { %v6375_v30 = vadd.f32 %v6374_v12, %v6373_v19 }
 0x9c6   : > { %v6377_v63 = vadd.f32 %v6376_v14, %v6375_v30 }
 0x9c8   : > { %v6379_v51 = vadd.f32 %v6378_v49, %v6377_v63 }
 0x9ca   : > { %v6381_v43 = vadd.f32 %v6380_v39, %v6379_v51 }
 0x9cc   : > { %v6383_v61 = vadd.f32 %v6382_v58, %v6381_v43 }
 0x9ce   : > { %v6384_v18 = vrot.slane %v6383_v61, 4 }
 0x9d0   : > { %v6385_v29 = vadd.f32 %v6384_v18, %v6383_v61 }
 0x9d2   : > { %v6386_v22 = vrot.slane %v6385_v29, 2 }
 0x9d4   : > { %v6387_v23 = vadd.f32 %v6386_v22, %v6385_v29 }
 0x9d6   : > { %v6388_v62 = vrot.slane %v6387_v23, 1 }
 0x9d8   : > { %v6389_v3 = vadd.f32 %v6388_v62, %v6387_v23 }
 0x9da   : > { %v6390_v37 = vmul.f32 0.00390625, %v6389_v3 }
 0x9dc   : > { %v6391_v40 = vadd.f32 1e-05, %v6390_v37 }
 0x9de   : > { %7167 = vrsqrt.f32 %v6391_v40 }
 0x9e8   : > { %v12446_v2 = vpop.eup %7167 }
 0x9e9   : > { %v6409_v4 = vmul.f32 %v12446_v2, %v12314_v42  ;;  %v6393_v26 = vmul.f32 %v12446_v2, %v12266_v28  ;;  %v6394_v45 = vmul.f32 %v12446_v2, %v12269_v50  ;;  %v6408_v42 = vmul.f32 %v12446_v2, %v12311_v16 }
 0x9ea   : > { %v6410_v6 = vmul.f32 %v12446_v2, %v12317_v15  ;;  %v6411_v54 = vmul.f32 %v12446_v2, %v12320_v1  ;;  %v6395_v19 = vmul.f32 %v12446_v2, %v12272_v48  ;;  %v6412_v28 = vmul.f32 %v12446_v2, %v12323_v0 }
 0x9eb   : > { %v6447_v53 = vmul.f32 %v12453_v31, %v6409_v4  ;;  %v6431_v50 = vmul.f32 %v12453_v31, %v6393_v26  ;;  %v6432_v16 = vmul.f32 %v12453_v31, %v6394_v45  ;;  %v12479_v12 = vmul.f32 %v12453_v31, %v6408_v42 }
 0x9ec   : > { %v6448_v15 = vmul.f32 %v12453_v31, %v6410_v6  ;;  %v6449_v1 = vmul.f32 %v12453_v31, %v6411_v54  ;;  %v6396_v48 = vmul.f32 %v12446_v2, %v12275_v13  ;;  %v6413_v0 = vmul.f32 %v12446_v2, %v12325_v20 }
 0x9ed   : > { %v6485_v60 = vadd.f32 %v12458_v34, %v6447_v53  ;;  %v6433_v27 = vmul.f32 %v12453_v31, %v6395_v19  ;;  %v6450_v14 = vmul.f32 %v12453_v31, %v6412_v28  ;;  %v6469_v63 = vadd.f32 %v12458_v34, %v6431_v50 }
 0x9ee   : > { %v6486_v57 = vadd.f32 %v12458_v34, %v6448_v15  ;;  %v6470_v49 = vadd.f32 %v12458_v34, %v6432_v16  ;;  %v6487_v51 = vadd.f32 %v12458_v34, %v6449_v1  ;;  %v6397_v39 = vmul.f32 %v12446_v2, %v12278_v38 }
 0x9ef   : > { %vm6517_vm3 = vcmp.ge.f32.partialorder %v6485_v60, 0.0  ;;  %v6549_v36 = vmul.f32 0.1, %v6485_v60  ;;  %v6414_v13 = vmul.f32 %v12446_v2, %v12328_v35  ;;  %vm6501_vm15 = vcmp.ge.f32.partialorder %v6469_v63, 0.0 }
 0x9f0   : > { %v6533_v20 = vmul.f32 0.1, %v6469_v63  ;;  %vm6518_vm4 = vcmp.ge.f32.partialorder %v6486_v57, 0.0  ;;  %v6550_v43 = vmul.f32 0.1, %v6486_v57  ;;  %v6434_v58 = vmul.f32 %v12453_v31, %v6396_v48 }
 0x9f1   : > { %v6581_v30 = vsel %vm6517_vm3, %v6485_v60, %v6549_v36  ;;  %v6451_v61 = vmul.f32 %v12453_v31, %v6413_v0  ;;  %v6471_v18 = vadd.f32 %v12458_v34, %v6433_v27  ;;  %v6488_v29 = vadd.f32 %v12458_v34, %v6450_v14 }
 0x9f2   : > { %6629 = vxpose.xlu0.b32.start [1/16] (narrow) %v6581_v30, 8  ;;  %v6565_v22 = vsel %vm6501_vm15, %v6469_v63, %v6533_v20  ;;  %v6582_v23 = vsel %vm6518_vm4, %v6486_v57, %v6550_v43  ;;  %v6534_v62 = vmul.f32 0.1, %v6470_v49  ;;  %v6551_v3 = vmul.f32 0.1, %v6487_v51 }
 0x9f3   : > { %6597 = vxpose.xlu1.b32.start [1/16] (narrow) %v6565_v22, 8  ;;  %vm6502_vm2 = vcmp.ge.f32.partialorder %v6470_v49, 0.0  ;;  %vm6519_vm13 = vcmp.ge.f32.partialorder %v6487_v51, 0.0  ;;  %v6398_v38 = vmul.f32 %v12446_v2, %v12281_v10  ;;  %v6415_v35 = vmul.f32 %v12446_v2, %v12330_v7 }
 0x9f4   : > { %v6435_v37 = vmul.f32 %v12453_v31, %v6397_v39  ;;  %v6452_v40 = vmul.f32 %v12453_v31, %v6414_v13  ;;  %v6535_v4 = vmul.f32 0.1, %v6471_v18  ;;  %v6472_v26 = vadd.f32 %v12458_v34, %v6434_v58 }
 0x9f5   : > { %v6489_v53 = vadd.f32 %v12458_v34, %v6451_v61  ;;  %v6566_v45 = vsel %vm6502_vm2, %v6470_v49, %v6534_v62  ;;  %v6583_v42 = vsel %vm6519_vm13, %v6487_v51, %v6551_v3  ;;  %vm6503_vm14 = vcmp.ge.f32.partialorder %v6471_v18, 0.0 }
 0x9f6   : > { %6630 = vxpose.xlu0.b32.cont [2/16] (narrow) %v6582_v23, 8  ;;  %v6552_v6 = vmul.f32 0.1, %v6488_v29  ;;  %vm6520_vm0 = vcmp.ge.f32.partialorder %v6488_v29, 0.0  ;;  %v6399_v10 = vmul.f32 %v12446_v2, %v12284_v33  ;;  %v6416_v7 = vmul.f32 %v12446_v2, %v12332_v25 }
 0x9f7   : > { %6598 = vxpose.xlu1.b32.cont [2/16] (narrow) %v6566_v45, 8  ;;  %v6436_v54 = vmul.f32 %v12453_v31, %v6398_v38  ;;  %v6453_v60 = vmul.f32 %v12453_v31, %v6415_v35  ;;  %v6567_v19 = vsel %vm6503_vm14, %v6471_v18, %v6535_v4  ;;  %vm6504_vm5 = vcmp.ge.f32.partialorder %v6472_v26, 0.0 }
 0x9f8   : > { %v6536_v28 = vmul.f32 0.1, %v6472_v26  ;;  %v6584_v36 = vsel %vm6520_vm0, %v6488_v29, %v6552_v6  ;;  %v6553_v50 = vmul.f32 0.1, %v6489_v53  ;;  %v6473_v16 = vadd.f32 %v12458_v34, %v6435_v37 }
 0x9f9   : > { %v6490_v15 = vadd.f32 %v12458_v34, %v6452_v40  ;;  %vm6521_vm8 = vcmp.ge.f32.partialorder %v6489_v53, 0.0  ;;  %v6400_v33 = vmul.f32 %v12446_v2, %v12287_v8  ;;  %v6417_v25 = vmul.f32 %v12446_v2, %v12334_v9 }
 0x9fa   : > { %6631 = vxpose.xlu0.b32.cont [3/16] (narrow) %v6583_v42, 8  ;;  %v6437_v1 = vmul.f32 %v12453_v31, %v6399_v10  ;;  %v6454_v30 = vmul.f32 %v12453_v31, %v6416_v7  ;;  %v6568_v48 = vsel %vm6504_vm5, %v6472_v26, %v6536_v28  ;;  %v6474_v0 = vadd.f32 %v12458_v34, %v6436_v54 }
 0x9fb   : > { %6599 = vxpose.xlu1.b32.cont [3/16] (narrow) %v6567_v19, 8  ;;  %v6585_v27 = vsel %vm6521_vm8, %v6489_v53, %v6553_v50  ;;  %v6537_v14 = vmul.f32 0.1, %v6473_v16  ;;  %v6554_v63 = vmul.f32 0.1, %v6490_v15  ;;  %v6491_v57 = vadd.f32 %v12458_v34, %v6453_v60 }
 0x9fc   : > { %vm6505_vm1 = vcmp.ge.f32.partialorder %v6473_v16, 0.0  ;;  %vm6522_vm9 = vcmp.ge.f32.partialorder %v6490_v15, 0.0  ;;  %v6401_v8 = vmul.f32 %v12446_v2, %v12290_v5  ;;  %v6418_v9 = vmul.f32 %v12446_v2, %v12336_v55 }
 0x9fd   : > { %v6438_v49 = vmul.f32 %v12453_v31, %v6400_v33  ;;  %v6455_v51 = vmul.f32 %v12453_v31, %v6417_v25  ;;  %v6538_v39 = vmul.f32 0.1, %v6474_v0  ;;  %v6475_v13 = vadd.f32 %v12458_v34, %v6437_v1 }
 0x9fe   : > { %6632 = vxpose.xlu0.b32.cont [4/16] (narrow) %v6584_v36, 8  ;;  %v6569_v20 = vsel %vm6505_vm1, %v6473_v16, %v6537_v14  ;;  %v6586_v43 = vsel %vm6522_vm9, %v6490_v15, %v6554_v63  ;;  %v6555_v58 = vmul.f32 0.1, %v6491_v57  ;;  %v6492_v61 = vadd.f32 %v12458_v34, %v6454_v30 }
 0x9ff   : > { %6600 = vxpose.xlu1.b32.cont [4/16] (narrow) %v6568_v48, 8  ;;  %vm6506_vm6 = vcmp.ge.f32.partialorder %v6474_v0, 0.0  ;;  %vm6523_vm10 = vcmp.ge.f32.partialorder %v6491_v57, 0.0  ;;  %v6402_v5 = vmul.f32 %v12446_v2, %v12293_v56  ;;  %v6419_v55 = vmul.f32 %v12446_v2, %v12338_v59 }
 0xa00   : > { %v6439_v18 = vmul.f32 %v12453_v31, %v6401_v8  ;;  %v6456_v29 = vmul.f32 %v12453_v31, %v6418_v9  ;;  %vm6507_vm11 = vcmp.ge.f32.partialorder %v6475_v13, 0.0  ;;  %v6539_v22 = vmul.f32 0.1, %v6475_v13 }
 0xa01   : > { %v6476_v23 = vadd.f32 %v12458_v34, %v6438_v49  ;;  %v6570_v62 = vsel %vm6506_vm6, %v6474_v0, %v6538_v39  ;;  %v6587_v3 = vsel %vm6523_vm10, %v6491_v57, %v6555_v58  ;;  %v6556_v38 = vmul.f32 0.1, %v6492_v61 }
 0xa02   : > { %6633 = vxpose.xlu0.b32.cont [5/16] (narrow) %v6585_v27, 8  ;;  %v6493_v35 = vadd.f32 %v12458_v34, %v6455_v51  ;;  %vm6524_vm7 = vcmp.ge.f32.partialorder %v6492_v61, 0.0  ;;  %v6403_v56 = vmul.f32 %v12446_v2, %v12296_v47  ;;  %v6420_v59 = vmul.f32 %v12446_v2, %v12340_v17 }
 0xa03   : > { %6601 = vxpose.xlu1.b32.cont [5/16] (narrow) %v6569_v20, 8  ;;  %v6440_v37 = vmul.f32 %v12453_v31, %v6402_v5  ;;  %v6457_v40 = vmul.f32 %v12453_v31, %v6419_v55  ;;  %v6571_v4 = vsel %vm6507_vm11, %v6475_v13, %v6539_v22  ;;  %vm6508_vm12 = vcmp.ge.f32.partialorder %v6476_v23, 0.0 }
 0xa04   : > { %v6540_v26 = vmul.f32 0.1, %v6476_v23  ;;  %v6477_v53 = vadd.f32 %v12458_v34, %v6439_v18  ;;  %v6588_v45 = vsel %vm6524_vm7, %v6492_v61, %v6556_v38  ;;  %v6557_v42 = vmul.f32 0.1, %v6493_v35 }
 0xa05   : > { %v6494_v6 = vadd.f32 %v12458_v34, %v6456_v29  ;;  %v12551_v10 = vadd.f32 %v12458_v34, %v12479_v12  ;;  %vm6525_vm3 = vcmp.ge.f32.partialorder %v6493_v35, 0.0  ;;  %v6404_v47 = vmul.f32 %v12446_v2, %v12299_v44 }
 0xa06   : > { %6634 = vxpose.xlu0.b32.cont [6/16] (narrow) %v6586_v43, 8  ;;  %v6421_v17 = vmul.f32 %v12446_v2, %v12342_v11  ;;  %v6441_v7 = vmul.f32 %v12453_v31, %v6403_v56  ;;  %v6458_v54 = vmul.f32 %v12453_v31, %v6420_v59  ;;  %v6572_v60 = vsel %vm6508_vm12, %v6476_v23, %v6540_v26 }
 0xa07   : > { %6602 = vxpose.xlu1.b32.cont [6/16] (narrow) %v6570_v62, 8  ;;  %v6541_v19 = vmul.f32 0.1, %v6477_v53  ;;  %v6478_v28 = vadd.f32 %v12458_v34, %v6440_v37  ;;  %v6589_v36 = vsel %vm6525_vm3, %v6493_v35, %v6557_v42  ;;  %vm6509_vm15 = vcmp.ge.f32.partialorder %v6477_v53, 0.0 }
 0xa08   : > { %v6558_v12 = vmul.f32 0.1, %v6494_v6  ;;  %v6495_v50 = vadd.f32 %v12458_v34, %v6457_v40  ;;  %vm6526_vm4 = vcmp.ge.f32.partialorder %v6494_v6, 0.0  ;;  %v6405_v44 = vmul.f32 %v12446_v2, %v12302_v46 }
 0xa09   : > { %v6422_v11 = vmul.f32 %v12446_v2, %v12344_v21  ;;  %v6442_v16 = vmul.f32 %v12453_v31, %v6404_v47  ;;  %v6459_v15 = vmul.f32 %v12453_v31, %v6421_v17  ;;  %v6573_v33 = vsel %vm6509_vm15, %v6477_v53, %v6541_v19 }
 0xa0a   : > { %6635 = vxpose.xlu0.b32.cont [7/16] (narrow) %v6587_v3, 8  ;;  %vm6510_vm2 = vcmp.ge.f32.partialorder %v6478_v28, 0.0  ;;  %v6542_v25 = vmul.f32 0.1, %v6478_v28  ;;  %v6590_v1 = vsel %vm6526_vm4, %v6494_v6, %v6558_v12  ;;  %v6559_v30 = vmul.f32 0.1, %v6495_v50 }
 0xa0b   : > { %6603 = vxpose.xlu1.b32.cont [7/16] (narrow) %v6571_v4, 8  ;;  %v6479_v48 = vadd.f32 %v12458_v34, %v6441_v7  ;;  %v6496_v0 = vadd.f32 %v12458_v34, %v6458_v54  ;;  %vm6527_vm13 = vcmp.ge.f32.partialorder %v6495_v50, 0.0  ;;  %v6423_v46 = vmul.f32 %v12446_v2, %v12346_v41 }
 0xa0c   : > { %v6406_v21 = vmul.f32 %v12446_v2, %v12305_v52  ;;  %v6443_v27 = vmul.f32 %v12453_v31, %v6405_v44  ;;  %v6460_v14 = vmul.f32 %v12453_v31, %v6422_v11  ;;  %v6574_v63 = vsel %vm6510_vm2, %v6478_v28, %v6542_v25 }
 0xa0d   : > { %v6480_v57 = vadd.f32 %v12458_v34, %v6442_v16  ;;  %v6591_v8 = vsel %vm6527_vm13, %v6495_v50, %v6559_v30  ;;  %v6543_v9 = vmul.f32 0.1, %v6479_v48  ;;  %v6560_v49 = vmul.f32 0.1, %v6496_v0 }
 0xa0e   : > { %6636 = vxpose.xlu0.b32.cont [8/16] (narrow) %v6588_v45, 8  ;;  %v6497_v51 = vadd.f32 %v12458_v34, %v6459_v15  ;;  %vm6511_vm14 = vcmp.ge.f32.partialorder %v6479_v48, 0.0  ;;  %vm6528_vm0 = vcmp.ge.f32.partialorder %v6496_v0, 0.0  ;;  %v6461_v41 = vmul.f32 %v12453_v31, %v6423_v46 }
 0xa0f   : > { %6604 = vxpose.xlu1.b32.cont [8/16] (narrow) %v6572_v60, 8  ;;  %v6407_v52 = vmul.f32 %v12446_v2, %v12308_v32  ;;  %v6424_v39 = vmul.f32 %v12446_v2, %v12348_v24  ;;  %v6444_v13 = vmul.f32 %v12453_v31, %v6406_v21  ;;  %vm6512_vm5 = vcmp.ge.f32.partialorder %v6480_v57, 0.0 }
 0xa10   : > { %v6544_v20 = vmul.f32 0.1, %v6480_v57  ;;  %v6481_v43 = vadd.f32 %v12458_v34, %v6443_v27  ;;  %v6575_v58 = vsel %vm6511_vm14, %v6479_v48, %v6543_v9  ;;  %v6592_v61 = vsel %vm6528_vm0, %v6496_v0, %v6560_v49 }
 0xa11   : > { %v6561_v5 = vmul.f32 0.1, %v6497_v51  ;;  %v6498_v55 = vadd.f32 %v12458_v34, %v6460_v14  ;;  %vm6529_vm8 = vcmp.ge.f32.partialorder %v6497_v51, 0.0  ;;  %v6445_v18 = vmul.f32 %v12453_v31, %v6407_v52 }
 0xa12   : > { %6637 = vxpose.xlu0.b32.cont [9/16] (narrow) %v6589_v36, 8  ;;  %v6462_v32 = vmul.f32 %v12453_v31, %v6424_v39  ;;  %v6576_v29 = vsel %vm6512_vm5, %v6480_v57, %v6544_v20  ;;  %v6545_v24 = vmul.f32 0.1, %v6481_v43  ;;  %v6482_v2 = vadd.f32 %v12458_v34, %v6444_v13 }
 0xa13   : > { %6605 = vxpose.xlu1.b32.cont [9/16] (narrow) %v6573_v33, 8  ;;  %v6593_v22 = vsel %vm6529_vm8, %v6497_v51, %v6561_v5  ;;  %vm6513_vm1 = vcmp.ge.f32.partialorder %v6481_v43, 0.0  ;;  %v6562_v23 = vmul.f32 0.1, %v6498_v55  ;;  %v6499_v62 = vadd.f32 %v12458_v34, %v6461_v41 }
 0xa14   : > { %vm6530_vm9 = vcmp.ge.f32.partialorder %v6498_v55, 0.0  ;;  %v6577_v3 = vsel %vm6513_vm1, %v6481_v43, %v6545_v24  ;;  %v6546_v38 = vmul.f32 0.1, %v6482_v2  ;;  %v6483_v59 = vadd.f32 %v12458_v34, %v6445_v18 }
 0xa15   : > { %v6594_v35 = vsel %vm6530_vm9, %v6498_v55, %v6562_v23  ;;  %v6563_v56 = vmul.f32 0.1, %v6499_v62  ;;  %v6500_v31 = vadd.f32 %v12458_v34, %v6462_v32  ;;  %vm6514_vm6 = vcmp.ge.f32.partialorder %v6482_v2, 0.0 }
 0xa16   : > { %6638 = vxpose.xlu0.b32.cont [10/16] (narrow) %v6590_v1, 8  ;;  %vm6531_vm10 = vcmp.ge.f32.partialorder %v6499_v62, 0.0  ;;  %v6578_v37 = vsel %vm6514_vm6, %v6482_v2, %v6546_v38  ;;  %v6547_v4 = vmul.f32 0.1, %v6483_v59  ;;  %vm6515_vm11 = vcmp.ge.f32.partialorder %v6483_v59, 0.0 }
 0xa17   : > { %6606 = vxpose.xlu1.b32.cont [10/16] (narrow) %v6574_v63, 8  ;;  %v6595_v40 = vsel %vm6531_vm10, %v6499_v62, %v6563_v56  ;;  %v6564_v26 = vmul.f32 0.1, %v6500_v31  ;;  %vm6532_vm7 = vcmp.ge.f32.partialorder %v6500_v31, 0.0  ;;  %v6548_v42 = vmul.f32 0.1, %v12551_v10 }
 0xa18   : > { %v6579_v53 = vsel %vm6515_vm11, %v6483_v59, %v6547_v4  ;;  %vm6516_vm12 = vcmp.ge.f32.partialorder %v12551_v10, 0.0 }
 0xa19   : > { %v6596_v45 = vsel %vm6532_vm7, %v6500_v31, %v6564_v26  ;;  %v6580_v34 = vsel %vm6516_vm12, %v12551_v10, %v6548_v42 }
 0xa1a   : > { %6639 = vxpose.xlu0.b32.cont [11/16] (narrow) %v6591_v8, 8 }
 0xa1b   : > { %6607 = vxpose.xlu1.b32.cont [11/16] (narrow) %v6575_v58, 8 }
 0xa1e   : > { %6640 = vxpose.xlu0.b32.cont [12/16] (narrow) %v6592_v61, 8 }
 0xa1f   : > { %6608 = vxpose.xlu1.b32.cont [12/16] (narrow) %v6576_v29, 8 }
 0xa22   : > { %6641 = vxpose.xlu0.b32.cont [13/16] (narrow) %v6593_v22, 8 }
 0xa23   : > { %6609 = vxpose.xlu1.b32.cont [13/16] (narrow) %v6577_v3, 8 }
 0xa26   : > { %6642 = vxpose.xlu0.b32.cont [14/16] (narrow) %v6594_v35, 8 }
 0xa27   : > { %6610 = vxpose.xlu1.b32.cont [14/16] (narrow) %v6578_v37, 8 }
 0xa2a   : > { %6643 = vxpose.xlu0.b32.cont [15/16] (narrow) %v6595_v40, 8 }
 0xa2b   : > { %6611 = vxpose.xlu1.b32.cont [15/16] (narrow) %v6579_v53, 8 }
 0xa2e   : > { %6644 = vxpose.xlu0.b32.end [16/16] (narrow) %v6596_v45, 8 }
 0xa2f   : > { %6612 = vxpose.xlu1.b32.end [16/16] (narrow) %v6580_v34, 8 }
 0xa72   : > { %v6645_v6 = vpop.trf.xlu0 }
 0xa73   : > { %6662 = vst [vmem:[%s367_s30 + $0x8] sm:$0xff] %v6645_v6  ;;  %v6613_v10 = vpop.trf.xlu1 }
 0xa74   : > { %6661 = vst [vmem:[%s367_s30] sm:$0xff] %v6613_v10 }
 0xa75   : > { %7182 = shalt.err (!%p7179_p3)
}
 0xa76   : > { %s7183_s12 = scalar_lea.hbm %s12601_s11, 256  ;;  %s7187_s30 = scalar_lea.hbm %s12651_s10, 512 }
 0xa77   : > { %p7184_p4 = scmp.ne.s32.totalorder %s12601_s11, %s7183_s12  ;;  %p7188_p9 = scmp.lt.u32.totalorder %s12601_s11, %s12651_s10 }
 0xa78   : > { %p7189_p10 = scmp.lt.u32.totalorder %s7187_s30, %s7183_s12  ;;  %p7191_p12 = scmp.lt.u32.totalorder %s7183_s12, %s12601_s11 }
 0xa79   : > { %p7185_p7 = pnand %p7184_p4, %p7341_p5 }
 0xa7a   : > { %p7190_p11 = por %p7189_p10, %p7188_p9 }
 0xa7b   : > { %p7186_p8 = pneg %p7185_p7 }
 0xa7c   : > { %p7192_p13 = por %p7191_p12, %p7190_p11 }
 0xa7e   : > { %p7193_p0 = pnand %p7192_p13, %p7186_p8 }
 0xa80   : > { %7196 = shalt.err (!%p7193_p0)
}
 0xa81   : > { %7112 = dma.vmem_to_hbm [thread:$0]  (%p7341_p5), %s12596_s21, 256, %s12601_s11, %s6664_s0  }
 0xa82 PF: > { %p7118_p1 = scmp.ge.s32.totalorder %s7231_s16, 2  ;;  %s6690_s27 = sand.u32 1, %s7219_s13  }
 0xa83   : > { %s6691_s1 = scalar_lea.sflag [#allocation3], %s6690_s27 }
 0xa84   : > { %p7115_p2 = pnand %p7118_p1, %p7345_p6 }
 0xa86   : > { %7214 = dma.done.wait (!%p7115_p2), %s6691_s1, 256  }
 0xa87   : > { %7216 = vsyncadd (!%p7115_p2), %s6691_s1, 4294967040  ;;  %p20_p3 = scmp.ge.s32.totalorder %s7328_s19, 4   ;;  %s13504_s13 = smov %s7223_s14 }
 0xa88   : > { %s13505_s14 = smov %s7227_s15  ;;  %s13506_s15 = smov %s7339_s22 }
 0xa89   : > { %s13507_s16 = smov %s7328_s19  ;;  %22 = sbr.rel (!%p20_p3) target bundleno = 6 (0x6), region = 98 }
 0xa90   :  { %6696 = vsyncpa [#allocation3], 1 }
 0xa91   :  { %6698 = vsyncpa [#allocation3 + $0x1], 1 }

</bundles_post_ra>
